<compile_context>
chip_gen: v6e
topology: v6e:2x2x1
jax: 0.10.0
libtpu: 0.0.40
codegen_flags: <defaults>
</compile_context>

<pallas_src>
import functools

import jax
import jax.numpy as jnp
from jax.experimental import pallas as pl
from jax.experimental.pallas import tpu as pltpu


BN_EPS = 1e-5


# -----------------------------------------------------------------------------
# Kernel: fused (prev-layer activation prologue) + 3x3 "same" conv + BN stats
# -----------------------------------------------------------------------------
def _layer_kernel(x_ref, w_ref, scale_ref, shift_ref, *rest,
                  prologue, emit_stats):
    """One batch element per grid step.

    x_ref:     (1, H, W, Cin)   raw (pre-activation) output of previous layer
    w_ref:     (9*Cin, Cout)    im2col-reshaped effective conv weight
    scale_ref: (1, Cin)         fused BN scale  (gamma * inv_std)   [bn_relu only]
    shift_ref: (1, Cin)         fused BN shift  (beta - mean*scale) [bn_relu only]
    outputs:   y (1, H, W, Cout) [, s (1, 1, Cout), ss (1, 1, Cout)]
    scratch:   pad_ref (H+2, W+2, Cin) VMEM, 1-px zero halo
    """
    if emit_stats:
        y_ref, s_ref, ss_ref, pad_ref = rest
    else:
        y_ref, pad_ref = rest

    _, H, W, Cout = y_ref.shape
    Cin = x_ref.shape[-1]

    # ---- prologue: activation deferred from the previous layer ---------------
    a = x_ref[0]                                       # (H, W, Cin)
    if prologue == "bn_relu":
        a = a.astype(jnp.float32) * scale_ref[...] + shift_ref[...]
    if prologue != "none":
        a = jnp.maximum(a, 0.0)

    # ---- zero-pad into VMEM scratch (replaces a per-layer HBM pad pass) ------
    # Full-buffer zero is a handful of vreg stores; interior is overwritten next.
    pad_ref[...] = jnp.zeros_like(pad_ref)
    pad_ref[1:H + 1, 1:W + 1, :] = a.astype(pad_ref.dtype)

    # ---- im2col: one (H*W, 9*Cin) slab -> single MXU matmul, K = 9*Cin -------
    slab = jnp.concatenate(
        [pad_ref[kh:kh + H, kw:kw + W, :] for kh in range(3) for kw in range(3)],
        axis=-1,
    ).reshape(H * W, 9 * Cin)
    acc = jnp.dot(slab, w_ref[...], preferred_element_type=jnp.float32)

    y_ref[0] = acc.reshape(H, W, Cout).astype(y_ref.dtype)

    # ---- BN batch-stat epilogue (per-channel sum / sum of squares) -----------
    if emit_stats:
        s_ref[0] = jnp.sum(acc, axis=0, keepdims=True)
        ss_ref[0] = jnp.sum(acc * acc, axis=0, keepdims=True)


# -----------------------------------------------------------------------------
# pallas_call wrapper for one layer
# -----------------------------------------------------------------------------
def conv_layer(x_nhwc, w2d, scale, shift, *, prologue, emit_stats):
    """x_nhwc: (N, H, W, Cin); w2d: (9*Cin, Cout); scale/shift: (1, Cin)."""
    N, H, W, Cin = x_nhwc.shape
    K9, Cout = w2d.shape

    kern = functools.partial(_layer_kernel, prologue=prologue,
                             emit_stats=emit_stats)

    in_specs = [
        pl.BlockSpec((1, H, W, Cin), lambda n: (n, 0, 0, 0)),
        pl.BlockSpec((K9, Cout), lambda n: (0, 0)),     # constant block: DMA'd once
        pl.BlockSpec((1, Cin), lambda n: (0, 0)),
        pl.BlockSpec((1, Cin), lambda n: (0, 0)),
    ]

    y_shape = jax.ShapeDtypeStruct((N, H, W, Cout), x_nhwc.dtype)
    y_spec = pl.BlockSpec((1, H, W, Cout), lambda n: (n, 0, 0, 0))
    if emit_stats:
        stat_shape = jax.ShapeDtypeStruct((N, 1, Cout), jnp.float32)
        stat_spec = pl.BlockSpec((1, 1, Cout), lambda n: (n, 0, 0))
        out_shape = (y_shape, stat_shape, stat_shape)
        out_specs = (y_spec, stat_spec, stat_spec)
    else:
        out_shape = y_shape
        out_specs = y_spec

    return pl.pallas_call(
        kern,
        grid=(N,),
        in_specs=in_specs,
        out_specs=out_specs,
        out_shape=out_shape,
        scratch_shapes=[pltpu.VMEM((H + 2, W + 2, Cin), x_nhwc.dtype)],
        compiler_params=pltpu.CompilerParams(
            dimension_semantics=("parallel",)),
    )(x_nhwc, w2d, scale, shift)


# -----------------------------------------------------------------------------
# DnCNN model
# -----------------------------------------------------------------------------
def init_dncnn_params(key, depth, in_channels):
    """Deterministic synthetic parameters matching the PyTorch module shapes.

    Returns (layer_types, params): layer_types is a static Python tuple, params
    a jit-safe pytree of arrays only.
    """
    layer_cfg = [(in_channels, 64, 1)]
    layer_cfg += [(64, 64, 2)] * (depth - 2)
    layer_cfg += [(64, in_channels, 3)]

    types, params = [], []
    for cin, cout, ltype in layer_cfg:
        key, wk = jax.random.split(key)
        # PyTorch ConvTranspose2d weight shape: (Cin, Cout, kH, kW)
        w_t = jax.random.normal(wk, (cin, cout, 3, 3), jnp.float32) * 0.05
        # Equivalent "same" conv weight (HWIO): flip spatial, swap in/out axes;
        # then pre-reshape to the (9*Cin, Cout) im2col layout used by the kernel.
        w_hwio = jnp.flip(w_t, axis=(2, 3)).transpose(2, 3, 0, 1)
        layer = {"w": w_hwio.reshape(9 * cin, cout)}
        if ltype == 2:
            layer["gamma"] = jnp.ones((cout,), jnp.float32)
            layer["beta"] = jnp.zeros((cout,), jnp.float32)
        types.append(ltype)
        params.append(layer)
    return tuple(types), params


@functools.partial(jax.jit, static_argnames=("layer_types",))
def dncnn_forward(x_nchw, params, *, layer_types):
    """Forward pass. Input/output NCHW (PyTorch convention)."""
    x = jnp.transpose(x_nchw, (0, 2, 3, 1))            # NCHW -> NHWC
    N, H, W = x.shape[0], x.shape[1], x.shape[2]
    count = N * H * W

    # Activation deferred into the NEXT layer's conv prologue:
    #   ("none"|"relu"|"bn_relu", scale, shift)
    pending = ("none", None, None)

    for ltype, layer in zip(layer_types, params):
        prologue, scale, shift = pending
        cin = layer["w"].shape[0] // 9
        if scale is None:                               # dummies (never read)
            scale = jnp.ones((1, cin), jnp.float32)
            shift = jnp.zeros((1, cin), jnp.float32)

        emit_stats = (ltype == 2)
        outs = conv_layer(x, layer["w"], scale, shift,
                          prologue=prologue, emit_stats=emit_stats)

        if emit_stats:
            y, s, ss = outs
            s = jnp.sum(s, axis=(0, 1))                 # (Cout,)
            ss = jnp.sum(ss, axis=(0, 1))
            mean = s / count                            # training-mode batch stats
            var = jnp.maximum(ss / count - mean * mean, 0.0)   # biased variance
            inv_std = jax.lax.rsqrt(var + BN_EPS)
            sc = layer["gamma"] * inv_std               # fused BN scale
            sh = layer["beta"] - mean * sc              # fused BN shift
            pending = ("bn_relu", sc.reshape(1, -1).astype(jnp.float32),
                       sh.reshape(1, -1).astype(jnp.float32))
        else:
            y = outs
            pending = ("relu", None, None) if ltype == 1 else ("none", None, None)
        x = y

    # Last layer is type 3 (bare conv): nothing pending to apply.
    return jnp.transpose(x, (0, 3, 1, 2))               # NHWC -> NCHW


# -----------------------------------------------------------------------------
# Pure-JAX reference (same math, lax conv) for an in-script correctness check
# -----------------------------------------------------------------------------
def dncnn_reference(x_nchw, params, layer_types):
    x = jnp.transpose(x_nchw, (0, 2, 3, 1))
    for ltype, layer in zip(layer_types, params):
        cin = layer["w"].shape[0] // 9
        cout = layer["w"].shape[1]
        w = layer["w"].reshape(3, 3, cin, cout)          # HWIO
        y = jax.lax.conv_general_dilated(
            x, w, window_strides=(1, 1), padding="SAME",
            dimension_numbers=("NHWC", "HWIO", "NHWC"))
        if ltype == 1:
            x = jnp.maximum(y, 0.0)
        elif ltype == 2:
            mean = jnp.mean(y, axis=(0, 1, 2))
            var = jnp.mean((y - mean) ** 2, axis=(0, 1, 2))
            yn = (y - mean) * jax.lax.rsqrt(var + BN_EPS)
            x = jnp.maximum(yn * layer["gamma"] + layer["beta"], 0.0)
        else:
            x = y
    return jnp.transpose(x, (0, 3, 1, 2))


# -----------------------------------------------------------------------------
if __name__ == "__main__":
    DEPTH = 4
    IN_CHANNELS = 4
    N, H, W = 2, 16, 16

    key = jax.random.PRNGKey(0)
    key, xkey = jax.random.split(key)
    x = jax.random.normal(xkey, (N, IN_CHANNELS, H, W), jnp.float32)

    layer_types, params = init_dncnn_params(key, DEPTH, IN_CHANNELS)

    out = dncnn_forward(x, params, layer_types=layer_types)
    out = jax.block_until_ready(out)

    assert out.shape == (N, IN_CHANNELS, H, W), out.shape
    assert bool(jnp.all(jnp.isfinite(out)))

    ref = jax.block_until_ready(dncnn_reference(x, params, layer_types))
    err = float(jnp.max(jnp.abs(out - ref)))
    assert err < 1e-3, f"max abs diff vs reference: {err}"

    print("KERNEL_OK")
</pallas_src>

<mosaic_0001>
module attributes {stable_mosaic.version = 11 : i64} {
  func.func @_layer_kernel(%arg0: i32, %arg1: memref<1x16x16x4xf32, #tpu.memory_space<vmem>>, %arg2: memref<36x64xf32, #tpu.memory_space<vmem>>, %arg3: memref<1x4xf32, #tpu.memory_space<vmem>>, %arg4: memref<1x4xf32, #tpu.memory_space<vmem>>, %arg5: memref<1x16x16x64xf32, #tpu.memory_space<vmem>>, %arg6: memref<18x18x4xf32, #tpu.memory_space<vmem>>) attributes {dimension_semantics = [#tpu.dimension_semantics<parallel>], iteration_bounds = array<i64: 2>, scalar_prefetch = 0 : i64, scratch_operands = 1 : i64, tpu.core_type = #tpu.core_type<tc>, window_params = [{transform_indices = @transform_0, window_bounds = array<i64: 1, 16, 16, 4>}, {pipeline_mode = #tpu.pipeline_mode<synchronous>, transform_indices = @transform_1, window_bounds = array<i64: 36, 64>}, {pipeline_mode = #tpu.pipeline_mode<synchronous>, transform_indices = @transform_2, window_bounds = array<i64: 1, 4>}, {pipeline_mode = #tpu.pipeline_mode<synchronous>, transform_indices = @transform_3, window_bounds = array<i64: 1, 4>}, {transform_indices = @transform_4, window_bounds = array<i64: 1, 16, 16, 64>}]} {
    %c0 = arith.constant 0 : index
    %c0_0 = arith.constant 0 : index
    %c0_1 = arith.constant 0 : index
    %c0_2 = arith.constant 0 : index
    %0 = vector.load %arg1[%c0, %c0_0, %c0_1, %c0_2] : memref<1x16x16x4xf32, #tpu.memory_space<vmem>>, vector<1x16x16x4xf32>
    %1 = vector.shape_cast %0 : vector<1x16x16x4xf32> to vector<16x16x4xf32>
    %cst = arith.constant 0.000000e+00 : f32
    %2 = vector.broadcast %cst : f32 to vector<18x18x4xf32>
    %c0_3 = arith.constant 0 : index
    %c0_4 = arith.constant 0 : index
    %c0_5 = arith.constant 0 : index
    %3 = vector.load %arg6[%c0_3, %c0_4, %c0_5] : memref<18x18x4xf32, #tpu.memory_space<vmem>>, vector<18x18x4xf32>
    tpu.vector_store %arg6[%c0_3, %c0_4, %c0_5], %2 {strides = array<i32>} : memref<18x18x4xf32, #tpu.memory_space<vmem>>, vector<18x18x4xf32>,
    %c1 = arith.constant 1 : index
    %c1_6 = arith.constant 1 : index
    %c0_7 = arith.constant 0 : index
    %4 = vector.load %arg6[%c1, %c1_6, %c0_7] : memref<18x18x4xf32, #tpu.memory_space<vmem>>, vector<16x16x4xf32>
    tpu.vector_store %arg6[%c1, %c1_6, %c0_7], %1 {strides = array<i32>} : memref<18x18x4xf32, #tpu.memory_space<vmem>>, vector<16x16x4xf32>,
    %c0_8 = arith.constant 0 : index
    %c0_9 = arith.constant 0 : index
    %c0_10 = arith.constant 0 : index
    %5 = vector.load %arg6[%c0_8, %c0_9, %c0_10] : memref<18x18x4xf32, #tpu.memory_space<vmem>>, vector<16x16x4xf32>
    %c0_11 = arith.constant 0 : index
    %c1_12 = arith.constant 1 : index
    %c0_13 = arith.constant 0 : index
    %6 = vector.load %arg6[%c0_11, %c1_12, %c0_13] : memref<18x18x4xf32, #tpu.memory_space<vmem>>, vector<16x16x4xf32>
    %c0_14 = arith.constant 0 : index
    %c2 = arith.constant 2 : index
    %c0_15 = arith.constant 0 : index
    %7 = vector.load %arg6[%c0_14, %c2, %c0_15] : memref<18x18x4xf32, #tpu.memory_space<vmem>>, vector<16x16x4xf32>
    %c1_16 = arith.constant 1 : index
    %c0_17 = arith.constant 0 : index
    %c0_18 = arith.constant 0 : index
    %8 = vector.load %arg6[%c1_16, %c0_17, %c0_18] : memref<18x18x4xf32, #tpu.memory_space<vmem>>, vector<16x16x4xf32>
    %c1_19 = arith.constant 1 : index
    %c1_20 = arith.constant 1 : index
    %c0_21 = arith.constant 0 : index
    %9 = vector.load %arg6[%c1_19, %c1_20, %c0_21] : memref<18x18x4xf32, #tpu.memory_space<vmem>>, vector<16x16x4xf32>
    %c1_22 = arith.constant 1 : index
    %c2_23 = arith.constant 2 : index
    %c0_24 = arith.constant 0 : index
    %10 = vector.load %arg6[%c1_22, %c2_23, %c0_24] : memref<18x18x4xf32, #tpu.memory_space<vmem>>, vector<16x16x4xf32>
    %c2_25 = arith.constant 2 : index
    %c0_26 = arith.constant 0 : index
    %c0_27 = arith.constant 0 : index
    %11 = vector.load %arg6[%c2_25, %c0_26, %c0_27] : memref<18x18x4xf32, #tpu.memory_space<vmem>>, vector<16x16x4xf32>
    %c2_28 = arith.constant 2 : index
    %c1_29 = arith.constant 1 : index
    %c0_30 = arith.constant 0 : index
    %12 = vector.load %arg6[%c2_28, %c1_29, %c0_30] : memref<18x18x4xf32, #tpu.memory_space<vmem>>, vector<16x16x4xf32>
    %c2_31 = arith.constant 2 : index
    %c2_32 = arith.constant 2 : index
    %c0_33 = arith.constant 0 : index
    %13 = vector.load %arg6[%c2_31, %c2_32, %c0_33] : memref<18x18x4xf32, #tpu.memory_space<vmem>>, vector<16x16x4xf32>
    %14 = tpu.concatenate %5, %6, %7, %8, %9, %10, %11, %12, %13 in 2 : vector<16x16x4xf32>, vector<16x16x4xf32>, vector<16x16x4xf32>, vector<16x16x4xf32>, vector<16x16x4xf32>, vector<16x16x4xf32>, vector<16x16x4xf32>, vector<16x16x4xf32>, vector<16x16x4xf32> -> vector<16x16x36xf32>
    %15 = vector.shape_cast %14 : vector<16x16x36xf32> to vector<256x36xf32>
    %c0_34 = arith.constant 0 : index
    %c0_35 = arith.constant 0 : index
    %16 = vector.load %arg2[%c0_34, %c0_35] : memref<36x64xf32, #tpu.memory_space<vmem>>, vector<36x64xf32>
    %cst_36 = arith.constant dense<0.000000e+00> : vector<256x64xf32>
    %17 = tpu.matmul %15, %16, %cst_36 {dimension_numbers = #tpu.dot_dimension_numbers<[1], [0], [0], [1], [0, 0, 1, 1], [], []>} : vector<256x36xf32>, vector<36x64xf32>, vector<256x64xf32> -> vector<256x64xf32>
    %18 = vector.shape_cast %17 : vector<256x64xf32> to vector<16x16x64xf32>
    %c0_37 = arith.constant 0 : index
    %c0_38 = arith.constant 0 : index
    %c0_39 = arith.constant 0 : index
    %c0_40 = arith.constant 0 : index
    %19 = vector.load %arg5[%c0_37, %c0_38, %c0_39, %c0_40] : memref<1x16x16x64xf32, #tpu.memory_space<vmem>>, vector<1x16x16x64xf32>
    %20 = vector.shape_cast %19 : vector<1x16x16x64xf32> to vector<16x16x64xf32>
    %21 = vector.shape_cast %18 : vector<16x16x64xf32> to vector<1x16x16x64xf32>
    tpu.vector_store %arg5[%c0_37, %c0_38, %c0_39, %c0_40], %21 {strides = array<i32>} : memref<1x16x16x64xf32, #tpu.memory_space<vmem>>, vector<1x16x16x64xf32>,
    return
  }
  func.func @transform_0(%arg0: i32) -> (i32, i32, i32, i32) {
    %c0_i32 = arith.constant 0 : i32
    %c0_i32_0 = arith.constant 0 : i32
    %c0_i32_1 = arith.constant 0 : i32
    %c0_i32_2 = arith.constant 0 : i32
    return %arg0, %c0_i32, %c0_i32_0, %c0_i32_1 : i32, i32, i32, i32
  }
  func.func @transform_1(%arg0: i32) -> (i32, i32) {
    %c0_i32 = arith.constant 0 : i32
    %c0_i32_0 = arith.constant 0 : i32
    %c0_i32_1 = arith.constant 0 : i32
    return %c0_i32, %c0_i32_0 : i32, i32
  }
  func.func @transform_2(%arg0: i32) -> (i32, i32) {
    %c0_i32 = arith.constant 0 : i32
    %c0_i32_0 = arith.constant 0 : i32
    %c0_i32_1 = arith.constant 0 : i32
    return %c0_i32, %c0_i32_0 : i32, i32
  }
  func.func @transform_3(%arg0: i32) -> (i32, i32) {
    %c0_i32 = arith.constant 0 : i32
    %c0_i32_0 = arith.constant 0 : i32
    %c0_i32_1 = arith.constant 0 : i32
    return %c0_i32, %c0_i32_0 : i32, i32
  }
  func.func @transform_4(%arg0: i32) -> (i32, i32, i32, i32) {
    %c0_i32 = arith.constant 0 : i32
    %c0_i32_0 = arith.constant 0 : i32
    %c0_i32_1 = arith.constant 0 : i32
    %c0_i32_2 = arith.constant 0 : i32
    return %arg0, %c0_i32, %c0_i32_0, %c0_i32_1 : i32, i32, i32, i32
  }
}

module attributes {stable_mosaic.version = 11 : i64} {
  func.func @_layer_kernel(%arg0: i32, %arg1: memref<1x16x16x64xf32, #tpu.memory_space<vmem>>, %arg2: memref<576x64xf32, #tpu.memory_space<vmem>>, %arg3: memref<1x64xf32, #tpu.memory_space<vmem>>, %arg4: memref<1x64xf32, #tpu.memory_space<vmem>>, %arg5: memref<1x16x16x64xf32, #tpu.memory_space<vmem>>, %arg6: memref<1x1x64xf32, #tpu.memory_space<vmem>>, %arg7: memref<1x1x64xf32, #tpu.memory_space<vmem>>, %arg8: memref<18x18x64xf32, #tpu.memory_space<vmem>>) attributes {dimension_semantics = [#tpu.dimension_semantics<parallel>], iteration_bounds = array<i64: 2>, scalar_prefetch = 0 : i64, scratch_operands = 1 : i64, tpu.core_type = #tpu.core_type<tc>, window_params = [{transform_indices = @transform_0, window_bounds = array<i64: 1, 16, 16, 64>}, {pipeline_mode = #tpu.pipeline_mode<synchronous>, transform_indices = @transform_1, window_bounds = array<i64: 576, 64>}, {pipeline_mode = #tpu.pipeline_mode<synchronous>, transform_indices = @transform_2, window_bounds = array<i64: 1, 64>}, {pipeline_mode = #tpu.pipeline_mode<synchronous>, transform_indices = @transform_3, window_bounds = array<i64: 1, 64>}, {transform_indices = @transform_4, window_bounds = array<i64: 1, 16, 16, 64>}, {transform_indices = @transform_5, window_bounds = array<i64: 1, 1, 64>}, {transform_indices = @transform_6, window_bounds = array<i64: 1, 1, 64>}]} {
    %c0 = arith.constant 0 : index
    %c0_0 = arith.constant 0 : index
    %c0_1 = arith.constant 0 : index
    %c0_2 = arith.constant 0 : index
    %0 = vector.load %arg1[%c0, %c0_0, %c0_1, %c0_2] : memref<1x16x16x64xf32, #tpu.memory_space<vmem>>, vector<1x16x16x64xf32>
    %1 = vector.shape_cast %0 : vector<1x16x16x64xf32> to vector<16x16x64xf32>
    %cst = arith.constant 0.000000e+00 : f32
    %2 = vector.broadcast %cst : f32 to vector<16x16x64xf32>
    %3 = arith.maximumf %1, %2 : vector<16x16x64xf32>
    %cst_3 = arith.constant 0.000000e+00 : f32
    %4 = vector.broadcast %cst_3 : f32 to vector<18x18x64xf32>
    %c0_4 = arith.constant 0 : index
    %c0_5 = arith.constant 0 : index
    %c0_6 = arith.constant 0 : index
    %5 = vector.load %arg8[%c0_4, %c0_5, %c0_6] : memref<18x18x64xf32, #tpu.memory_space<vmem>>, vector<18x18x64xf32>
    tpu.vector_store %arg8[%c0_4, %c0_5, %c0_6], %4 {strides = array<i32>} : memref<18x18x64xf32, #tpu.memory_space<vmem>>, vector<18x18x64xf32>,
    %c1 = arith.constant 1 : index
    %c1_7 = arith.constant 1 : index
    %c0_8 = arith.constant 0 : index
    %6 = vector.load %arg8[%c1, %c1_7, %c0_8] : memref<18x18x64xf32, #tpu.memory_space<vmem>>, vector<16x16x64xf32>
    tpu.vector_store %arg8[%c1, %c1_7, %c0_8], %3 {strides = array<i32>} : memref<18x18x64xf32, #tpu.memory_space<vmem>>, vector<16x16x64xf32>,
    %c0_9 = arith.constant 0 : index
    %c0_10 = arith.constant 0 : index
    %c0_11 = arith.constant 0 : index
    %7 = vector.load %arg8[%c0_9, %c0_10, %c0_11] : memref<18x18x64xf32, #tpu.memory_space<vmem>>, vector<16x16x64xf32>
    %c0_12 = arith.constant 0 : index
    %c1_13 = arith.constant 1 : index
    %c0_14 = arith.constant 0 : index
    %8 = vector.load %arg8[%c0_12, %c1_13, %c0_14] : memref<18x18x64xf32, #tpu.memory_space<vmem>>, vector<16x16x64xf32>
    %c0_15 = arith.constant 0 : index
    %c2 = arith.constant 2 : index
    %c0_16 = arith.constant 0 : index
    %9 = vector.load %arg8[%c0_15, %c2, %c0_16] : memref<18x18x64xf32, #tpu.memory_space<vmem>>, vector<16x16x64xf32>
    %c1_17 = arith.constant 1 : index
    %c0_18 = arith.constant 0 : index
    %c0_19 = arith.constant 0 : index
    %10 = vector.load %arg8[%c1_17, %c0_18, %c0_19] : memref<18x18x64xf32, #tpu.memory_space<vmem>>, vector<16x16x64xf32>
    %c1_20 = arith.constant 1 : index
    %c1_21 = arith.constant 1 : index
    %c0_22 = arith.constant 0 : index
    %11 = vector.load %arg8[%c1_20, %c1_21, %c0_22] : memref<18x18x64xf32, #tpu.memory_space<vmem>>, vector<16x16x64xf32>
    %c1_23 = arith.constant 1 : index
    %c2_24 = arith.constant 2 : index
    %c0_25 = arith.constant 0 : index
    %12 = vector.load %arg8[%c1_23, %c2_24, %c0_25] : memref<18x18x64xf32, #tpu.memory_space<vmem>>, vector<16x16x64xf32>
    %c2_26 = arith.constant 2 : index
    %c0_27 = arith.constant 0 : index
    %c0_28 = arith.constant 0 : index
    %13 = vector.load %arg8[%c2_26, %c0_27, %c0_28] : memref<18x18x64xf32, #tpu.memory_space<vmem>>, vector<16x16x64xf32>
    %c2_29 = arith.constant 2 : index
    %c1_30 = arith.constant 1 : index
    %c0_31 = arith.constant 0 : index
    %14 = vector.load %arg8[%c2_29, %c1_30, %c0_31] : memref<18x18x64xf32, #tpu.memory_space<vmem>>, vector<16x16x64xf32>
    %c2_32 = arith.constant 2 : index
    %c2_33 = arith.constant 2 : index
    %c0_34 = arith.constant 0 : index
    %15 = vector.load %arg8[%c2_32, %c2_33, %c0_34] : memref<18x18x64xf32, #tpu.memory_space<vmem>>, vector<16x16x64xf32>
    %16 = tpu.concatenate %7, %8, %9, %10, %11, %12, %13, %14, %15 in 2 : vector<16x16x64xf32>, vector<16x16x64xf32>, vector<16x16x64xf32>, vector<16x16x64xf32>, vector<16x16x64xf32>, vector<16x16x64xf32>, vector<16x16x64xf32>, vector<16x16x64xf32>, vector<16x16x64xf32> -> vector<16x16x576xf32>
    %17 = vector.shape_cast %16 : vector<16x16x576xf32> to vector<256x576xf32>
    %c0_35 = arith.constant 0 : index
    %c0_36 = arith.constant 0 : index
    %18 = vector.load %arg2[%c0_35, %c0_36] : memref<576x64xf32, #tpu.memory_space<vmem>>, vector<576x64xf32>
    %cst_37 = arith.constant dense<0.000000e+00> : vector<256x64xf32>
    %19 = tpu.matmul %17, %18, %cst_37 {dimension_numbers = #tpu.dot_dimension_numbers<[1], [0], [0], [1], [0, 0, 1, 1], [], []>} : vector<256x576xf32>, vector<576x64xf32>, vector<256x64xf32> -> vector<256x64xf32>
    %20 = vector.shape_cast %19 : vector<256x64xf32> to vector<16x16x64xf32>
    %c0_38 = arith.constant 0 : index
    %c0_39 = arith.constant 0 : index
    %c0_40 = arith.constant 0 : index
    %c0_41 = arith.constant 0 : index
    %21 = vector.load %arg5[%c0_38, %c0_39, %c0_40, %c0_41] : memref<1x16x16x64xf32, #tpu.memory_space<vmem>>, vector<1x16x16x64xf32>
    %22 = vector.shape_cast %21 : vector<1x16x16x64xf32> to vector<16x16x64xf32>
    %23 = vector.shape_cast %20 : vector<16x16x64xf32> to vector<1x16x16x64xf32>
    tpu.vector_store %arg5[%c0_38, %c0_39, %c0_40, %c0_41], %23 {strides = array<i32>} : memref<1x16x16x64xf32, #tpu.memory_space<vmem>>, vector<1x16x16x64xf32>,
    %cst_42 = arith.constant dense<0.000000e+00> : vector<64xf32>
    %24 = vector.multi_reduction <add>, %19, %cst_42 [0] : vector<256x64xf32> to vector<64xf32>
    %25 = vector.shape_cast %24 : vector<64xf32> to vector<1x64xf32>
    %c0_43 = arith.constant 0 : index
    %c0_44 = arith.constant 0 : index
    %c0_45 = arith.constant 0 : index
    %26 = vector.load %arg6[%c0_43, %c0_44, %c0_45] : memref<1x1x64xf32, #tpu.memory_space<vmem>>, vector<1x1x64xf32>
    %27 = vector.shape_cast %26 : vector<1x1x64xf32> to vector<1x64xf32>
    %28 = vector.shape_cast %25 : vector<1x64xf32> to vector<1x1x64xf32>
    tpu.vector_store %arg6[%c0_43, %c0_44, %c0_45], %28 {strides = array<i32>} : memref<1x1x64xf32, #tpu.memory_space<vmem>>, vector<1x1x64xf32>,
    %29 = arith.mulf %19, %19 : vector<256x64xf32>
    %cst_46 = arith.constant dense<0.000000e+00> : vector<64xf32>
    %30 = vector.multi_reduction <add>, %29, %cst_46 [0] : vector<256x64xf32> to vector<64xf32>
    %31 = vector.shape_cast %30 : vector<64xf32> to vector<1x64xf32>
    %c0_47 = arith.constant 0 : index
    %c0_48 = arith.constant 0 : index
    %c0_49 = arith.constant 0 : index
    %32 = vector.load %arg7[%c0_47, %c0_48, %c0_49] : memref<1x1x64xf32, #tpu.memory_space<vmem>>, vector<1x1x64xf32>
    %33 = vector.shape_cast %32 : vector<1x1x64xf32> to vector<1x64xf32>
    %34 = vector.shape_cast %31 : vector<1x64xf32> to vector<1x1x64xf32>
    tpu.vector_store %arg7[%c0_47, %c0_48, %c0_49], %34 {strides = array<i32>} : memref<1x1x64xf32, #tpu.memory_space<vmem>>, vector<1x1x64xf32>,
    return
  }
  func.func @transform_0(%arg0: i32) -> (i32, i32, i32, i32) {
    %c0_i32 = arith.constant 0 : i32
    %c0_i32_0 = arith.constant 0 : i32
    %c0_i32_1 = arith.constant 0 : i32
    %c0_i32_2 = arith.constant 0 : i32
    return %arg0, %c0_i32, %c0_i32_0, %c0_i32_1 : i32, i32, i32, i32
  }
  func.func @transform_1(%arg0: i32) -> (i32, i32) {
    %c0_i32 = arith.constant 0 : i32
    %c0_i32_0 = arith.constant 0 : i32
    %c0_i32_1 = arith.constant 0 : i32
    return %c0_i32, %c0_i32_0 : i32, i32
  }
  func.func @transform_2(%arg0: i32) -> (i32, i32) {
    %c0_i32 = arith.constant 0 : i32
    %c0_i32_0 = arith.constant 0 : i32
    %c0_i32_1 = arith.constant 0 : i32
    return %c0_i32, %c0_i32_0 : i32, i32
  }
  func.func @transform_3(%arg0: i32) -> (i32, i32) {
    %c0_i32 = arith.constant 0 : i32
    %c0_i32_0 = arith.constant 0 : i32
    %c0_i32_1 = arith.constant 0 : i32
    return %c0_i32, %c0_i32_0 : i32, i32
  }
  func.func @transform_4(%arg0: i32) -> (i32, i32, i32, i32) {
    %c0_i32 = arith.constant 0 : i32
    %c0_i32_0 = arith.constant 0 : i32
    %c0_i32_1 = arith.constant 0 : i32
    %c0_i32_2 = arith.constant 0 : i32
    return %arg0, %c0_i32, %c0_i32_0, %c0_i32_1 : i32, i32, i32, i32
  }
  func.func @transform_5(%arg0: i32) -> (i32, i32, i32) {
    %c0_i32 = arith.constant 0 : i32
    %c0_i32_0 = arith.constant 0 : i32
    %c0_i32_1 = arith.constant 0 : i32
    return %arg0, %c0_i32, %c0_i32_0 : i32, i32, i32
  }
  func.func @transform_6(%arg0: i32) -> (i32, i32, i32) {
    %c0_i32 = arith.constant 0 : i32
    %c0_i32_0 = arith.constant 0 : i32
    %c0_i32_1 = arith.constant 0 : i32
    return %arg0, %c0_i32, %c0_i32_0 : i32, i32, i32
  }
}

module attributes {stable_mosaic.version = 11 : i64} {
  func.func @_layer_kernel(%arg0: i32, %arg1: memref<1x16x16x64xf32, #tpu.memory_space<vmem>>, %arg2: memref<576x64xf32, #tpu.memory_space<vmem>>, %arg3: memref<1x64xf32, #tpu.memory_space<vmem>>, %arg4: memref<1x64xf32, #tpu.memory_space<vmem>>, %arg5: memref<1x16x16x64xf32, #tpu.memory_space<vmem>>, %arg6: memref<1x1x64xf32, #tpu.memory_space<vmem>>, %arg7: memref<1x1x64xf32, #tpu.memory_space<vmem>>, %arg8: memref<18x18x64xf32, #tpu.memory_space<vmem>>) attributes {dimension_semantics = [#tpu.dimension_semantics<parallel>], iteration_bounds = array<i64: 2>, scalar_prefetch = 0 : i64, scratch_operands = 1 : i64, tpu.core_type = #tpu.core_type<tc>, window_params = [{transform_indices = @transform_0, window_bounds = array<i64: 1, 16, 16, 64>}, {pipeline_mode = #tpu.pipeline_mode<synchronous>, transform_indices = @transform_1, window_bounds = array<i64: 576, 64>}, {pipeline_mode = #tpu.pipeline_mode<synchronous>, transform_indices = @transform_2, window_bounds = array<i64: 1, 64>}, {pipeline_mode = #tpu.pipeline_mode<synchronous>, transform_indices = @transform_3, window_bounds = array<i64: 1, 64>}, {transform_indices = @transform_4, window_bounds = array<i64: 1, 16, 16, 64>}, {transform_indices = @transform_5, window_bounds = array<i64: 1, 1, 64>}, {transform_indices = @transform_6, window_bounds = array<i64: 1, 1, 64>}]} {
    %c0 = arith.constant 0 : index
    %c0_0 = arith.constant 0 : index
    %c0_1 = arith.constant 0 : index
    %c0_2 = arith.constant 0 : index
    %0 = vector.load %arg1[%c0, %c0_0, %c0_1, %c0_2] : memref<1x16x16x64xf32, #tpu.memory_space<vmem>>, vector<1x16x16x64xf32>
    %1 = vector.shape_cast %0 : vector<1x16x16x64xf32> to vector<16x16x64xf32>
    %c0_3 = arith.constant 0 : index
    %c0_4 = arith.constant 0 : index
    %2 = vector.load %arg3[%c0_3, %c0_4] : memref<1x64xf32, #tpu.memory_space<vmem>>, vector<1x64xf32>
    %3 = vector.shape_cast %2 : vector<1x64xf32> to vector<1x1x64xf32>
    %4 = vector.broadcast %3 : vector<1x1x64xf32> to vector<16x16x64xf32>
    %5 = arith.mulf %1, %4 : vector<16x16x64xf32>
    %c0_5 = arith.constant 0 : index
    %c0_6 = arith.constant 0 : index
    %6 = vector.load %arg4[%c0_5, %c0_6] : memref<1x64xf32, #tpu.memory_space<vmem>>, vector<1x64xf32>
    %7 = vector.shape_cast %6 : vector<1x64xf32> to vector<1x1x64xf32>
    %8 = vector.broadcast %7 : vector<1x1x64xf32> to vector<16x16x64xf32>
    %9 = arith.addf %5, %8 : vector<16x16x64xf32>
    %cst = arith.constant 0.000000e+00 : f32
    %10 = vector.broadcast %cst : f32 to vector<16x16x64xf32>
    %11 = arith.maximumf %9, %10 : vector<16x16x64xf32>
    %cst_7 = arith.constant 0.000000e+00 : f32
    %12 = vector.broadcast %cst_7 : f32 to vector<18x18x64xf32>
    %c0_8 = arith.constant 0 : index
    %c0_9 = arith.constant 0 : index
    %c0_10 = arith.constant 0 : index
    %13 = vector.load %arg8[%c0_8, %c0_9, %c0_10] : memref<18x18x64xf32, #tpu.memory_space<vmem>>, vector<18x18x64xf32>
    tpu.vector_store %arg8[%c0_8, %c0_9, %c0_10], %12 {strides = array<i32>} : memref<18x18x64xf32, #tpu.memory_space<vmem>>, vector<18x18x64xf32>,
    %c1 = arith.constant 1 : index
    %c1_11 = arith.constant 1 : index
    %c0_12 = arith.constant 0 : index
    %14 = vector.load %arg8[%c1, %c1_11, %c0_12] : memref<18x18x64xf32, #tpu.memory_space<vmem>>, vector<16x16x64xf32>
    tpu.vector_store %arg8[%c1, %c1_11, %c0_12], %11 {strides = array<i32>} : memref<18x18x64xf32, #tpu.memory_space<vmem>>, vector<16x16x64xf32>,
    %c0_13 = arith.constant 0 : index
    %c0_14 = arith.constant 0 : index
    %c0_15 = arith.constant 0 : index
    %15 = vector.load %arg8[%c0_13, %c0_14, %c0_15] : memref<18x18x64xf32, #tpu.memory_space<vmem>>, vector<16x16x64xf32>
    %c0_16 = arith.constant 0 : index
    %c1_17 = arith.constant 1 : index
    %c0_18 = arith.constant 0 : index
    %16 = vector.load %arg8[%c0_16, %c1_17, %c0_18] : memref<18x18x64xf32, #tpu.memory_space<vmem>>, vector<16x16x64xf32>
    %c0_19 = arith.constant 0 : index
    %c2 = arith.constant 2 : index
    %c0_20 = arith.constant 0 : index
    %17 = vector.load %arg8[%c0_19, %c2, %c0_20] : memref<18x18x64xf32, #tpu.memory_space<vmem>>, vector<16x16x64xf32>
    %c1_21 = arith.constant 1 : index
    %c0_22 = arith.constant 0 : index
    %c0_23 = arith.constant 0 : index
    %18 = vector.load %arg8[%c1_21, %c0_22, %c0_23] : memref<18x18x64xf32, #tpu.memory_space<vmem>>, vector<16x16x64xf32>
    %c1_24 = arith.constant 1 : index
    %c1_25 = arith.constant 1 : index
    %c0_26 = arith.constant 0 : index
    %19 = vector.load %arg8[%c1_24, %c1_25, %c0_26] : memref<18x18x64xf32, #tpu.memory_space<vmem>>, vector<16x16x64xf32>
    %c1_27 = arith.constant 1 : index
    %c2_28 = arith.constant 2 : index
    %c0_29 = arith.constant 0 : index
    %20 = vector.load %arg8[%c1_27, %c2_28, %c0_29] : memref<18x18x64xf32, #tpu.memory_space<vmem>>, vector<16x16x64xf32>
    %c2_30 = arith.constant 2 : index
    %c0_31 = arith.constant 0 : index
    %c0_32 = arith.constant 0 : index
    %21 = vector.load %arg8[%c2_30, %c0_31, %c0_32] : memref<18x18x64xf32, #tpu.memory_space<vmem>>, vector<16x16x64xf32>
    %c2_33 = arith.constant 2 : index
    %c1_34 = arith.constant 1 : index
    %c0_35 = arith.constant 0 : index
    %22 = vector.load %arg8[%c2_33, %c1_34, %c0_35] : memref<18x18x64xf32, #tpu.memory_space<vmem>>, vector<16x16x64xf32>
    %c2_36 = arith.constant 2 : index
    %c2_37 = arith.constant 2 : index
    %c0_38 = arith.constant 0 : index
    %23 = vector.load %arg8[%c2_36, %c2_37, %c0_38] : memref<18x18x64xf32, #tpu.memory_space<vmem>>, vector<16x16x64xf32>
    %24 = tpu.concatenate %15, %16, %17, %18, %19, %20, %21, %22, %23 in 2 : vector<16x16x64xf32>, vector<16x16x64xf32>, vector<16x16x64xf32>, vector<16x16x64xf32>, vector<16x16x64xf32>, vector<16x16x64xf32>, vector<16x16x64xf32>, vector<16x16x64xf32>, vector<16x16x64xf32> -> vector<16x16x576xf32>
    %25 = vector.shape_cast %24 : vector<16x16x576xf32> to vector<256x576xf32>
    %c0_39 = arith.constant 0 : index
    %c0_40 = arith.constant 0 : index
    %26 = vector.load %arg2[%c0_39, %c0_40] : memref<576x64xf32, #tpu.memory_space<vmem>>, vector<576x64xf32>
    %cst_41 = arith.constant dense<0.000000e+00> : vector<256x64xf32>
    %27 = tpu.matmul %25, %26, %cst_41 {dimension_numbers = #tpu.dot_dimension_numbers<[1], [0], [0], [1], [0, 0, 1, 1], [], []>} : vector<256x576xf32>, vector<576x64xf32>, vector<256x64xf32> -> vector<256x64xf32>
    %28 = vector.shape_cast %27 : vector<256x64xf32> to vector<16x16x64xf32>
    %c0_42 = arith.constant 0 : index
    %c0_43 = arith.constant 0 : index
    %c0_44 = arith.constant 0 : index
    %c0_45 = arith.constant 0 : index
    %29 = vector.load %arg5[%c0_42, %c0_43, %c0_44, %c0_45] : memref<1x16x16x64xf32, #tpu.memory_space<vmem>>, vector<1x16x16x64xf32>
    %30 = vector.shape_cast %29 : vector<1x16x16x64xf32> to vector<16x16x64xf32>
    %31 = vector.shape_cast %28 : vector<16x16x64xf32> to vector<1x16x16x64xf32>
    tpu.vector_store %arg5[%c0_42, %c0_43, %c0_44, %c0_45], %31 {strides = array<i32>} : memref<1x16x16x64xf32, #tpu.memory_space<vmem>>, vector<1x16x16x64xf32>,
    %cst_46 = arith.constant dense<0.000000e+00> : vector<64xf32>
    %32 = vector.multi_reduction <add>, %27, %cst_46 [0] : vector<256x64xf32> to vector<64xf32>
    %33 = vector.shape_cast %32 : vector<64xf32> to vector<1x64xf32>
    %c0_47 = arith.constant 0 : index
    %c0_48 = arith.constant 0 : index
    %c0_49 = arith.constant 0 : index
    %34 = vector.load %arg6[%c0_47, %c0_48, %c0_49] : memref<1x1x64xf32, #tpu.memory_space<vmem>>, vector<1x1x64xf32>
    %35 = vector.shape_cast %34 : vector<1x1x64xf32> to vector<1x64xf32>
    %36 = vector.shape_cast %33 : vector<1x64xf32> to vector<1x1x64xf32>
    tpu.vector_store %arg6[%c0_47, %c0_48, %c0_49], %36 {strides = array<i32>} : memref<1x1x64xf32, #tpu.memory_space<vmem>>, vector<1x1x64xf32>,
    %37 = arith.mulf %27, %27 : vector<256x64xf32>
    %cst_50 = arith.constant dense<0.000000e+00> : vector<64xf32>
    %38 = vector.multi_reduction <add>, %37, %cst_50 [0] : vector<256x64xf32> to vector<64xf32>
    %39 = vector.shape_cast %38 : vector<64xf32> to vector<1x64xf32>
    %c0_51 = arith.constant 0 : index
    %c0_52 = arith.constant 0 : index
    %c0_53 = arith.constant 0 : index
    %40 = vector.load %arg7[%c0_51, %c0_52, %c0_53] : memref<1x1x64xf32, #tpu.memory_space<vmem>>, vector<1x1x64xf32>
    %41 = vector.shape_cast %40 : vector<1x1x64xf32> to vector<1x64xf32>
    %42 = vector.shape_cast %39 : vector<1x64xf32> to vector<1x1x64xf32>
    tpu.vector_store %arg7[%c0_51, %c0_52, %c0_53], %42 {strides = array<i32>} : memref<1x1x64xf32, #tpu.memory_space<vmem>>, vector<1x1x64xf32>,
    return
  }
  func.func @transform_0(%arg0: i32) -> (i32, i32, i32, i32) {
    %c0_i32 = arith.constant 0 : i32
    %c0_i32_0 = arith.constant 0 : i32
    %c0_i32_1 = arith.constant 0 : i32
    %c0_i32_2 = arith.constant 0 : i32
    return %arg0, %c0_i32, %c0_i32_0, %c0_i32_1 : i32, i32, i32, i32
  }
  func.func @transform_1(%arg0: i32) -> (i32, i32) {
    %c0_i32 = arith.constant 0 : i32
    %c0_i32_0 = arith.constant 0 : i32
    %c0_i32_1 = arith.constant 0 : i32
    return %c0_i32, %c0_i32_0 : i32, i32
  }
  func.func @transform_2(%arg0: i32) -> (i32, i32) {
    %c0_i32 = arith.constant 0 : i32
    %c0_i32_0 = arith.constant 0 : i32
    %c0_i32_1 = arith.constant 0 : i32
    return %c0_i32, %c0_i32_0 : i32, i32
  }
  func.func @transform_3(%arg0: i32) -> (i32, i32) {
    %c0_i32 = arith.constant 0 : i32
    %c0_i32_0 = arith.constant 0 : i32
    %c0_i32_1 = arith.constant 0 : i32
    return %c0_i32, %c0_i32_0 : i32, i32
  }
  func.func @transform_4(%arg0: i32) -> (i32, i32, i32, i32) {
    %c0_i32 = arith.constant 0 : i32
    %c0_i32_0 = arith.constant 0 : i32
    %c0_i32_1 = arith.constant 0 : i32
    %c0_i32_2 = arith.constant 0 : i32
    return %arg0, %c0_i32, %c0_i32_0, %c0_i32_1 : i32, i32, i32, i32
  }
  func.func @transform_5(%arg0: i32) -> (i32, i32, i32) {
    %c0_i32 = arith.constant 0 : i32
    %c0_i32_0 = arith.constant 0 : i32
    %c0_i32_1 = arith.constant 0 : i32
    return %arg0, %c0_i32, %c0_i32_0 : i32, i32, i32
  }
  func.func @transform_6(%arg0: i32) -> (i32, i32, i32) {
    %c0_i32 = arith.constant 0 : i32
    %c0_i32_0 = arith.constant 0 : i32
    %c0_i32_1 = arith.constant 0 : i32
    return %arg0, %c0_i32, %c0_i32_0 : i32, i32, i32
  }
}

module attributes {stable_mosaic.version = 11 : i64} {
  func.func @_layer_kernel(%arg0: i32, %arg1: memref<1x16x16x64xf32, #tpu.memory_space<vmem>>, %arg2: memref<576x4xf32, #tpu.memory_space<vmem>>, %arg3: memref<1x64xf32, #tpu.memory_space<vmem>>, %arg4: memref<1x64xf32, #tpu.memory_space<vmem>>, %arg5: memref<1x16x16x4xf32, #tpu.memory_space<vmem>>, %arg6: memref<18x18x64xf32, #tpu.memory_space<vmem>>) attributes {dimension_semantics = [#tpu.dimension_semantics<parallel>], iteration_bounds = array<i64: 2>, scalar_prefetch = 0 : i64, scratch_operands = 1 : i64, tpu.core_type = #tpu.core_type<tc>, window_params = [{transform_indices = @transform_0, window_bounds = array<i64: 1, 16, 16, 64>}, {pipeline_mode = #tpu.pipeline_mode<synchronous>, transform_indices = @transform_1, window_bounds = array<i64: 576, 4>}, {pipeline_mode = #tpu.pipeline_mode<synchronous>, transform_indices = @transform_2, window_bounds = array<i64: 1, 64>}, {pipeline_mode = #tpu.pipeline_mode<synchronous>, transform_indices = @transform_3, window_bounds = array<i64: 1, 64>}, {transform_indices = @transform_4, window_bounds = array<i64: 1, 16, 16, 4>}]} {
    %c0 = arith.constant 0 : index
    %c0_0 = arith.constant 0 : index
    %c0_1 = arith.constant 0 : index
    %c0_2 = arith.constant 0 : index
    %0 = vector.load %arg1[%c0, %c0_0, %c0_1, %c0_2] : memref<1x16x16x64xf32, #tpu.memory_space<vmem>>, vector<1x16x16x64xf32>
    %1 = vector.shape_cast %0 : vector<1x16x16x64xf32> to vector<16x16x64xf32>
    %c0_3 = arith.constant 0 : index
    %c0_4 = arith.constant 0 : index
    %2 = vector.load %arg3[%c0_3, %c0_4] : memref<1x64xf32, #tpu.memory_space<vmem>>, vector<1x64xf32>
    %3 = vector.shape_cast %2 : vector<1x64xf32> to vector<1x1x64xf32>
    %4 = vector.broadcast %3 : vector<1x1x64xf32> to vector<16x16x64xf32>
    %5 = arith.mulf %1, %4 : vector<16x16x64xf32>
    %c0_5 = arith.constant 0 : index
    %c0_6 = arith.constant 0 : index
    %6 = vector.load %arg4[%c0_5, %c0_6] : memref<1x64xf32, #tpu.memory_space<vmem>>, vector<1x64xf32>
    %7 = vector.shape_cast %6 : vector<1x64xf32> to vector<1x1x64xf32>
    %8 = vector.broadcast %7 : vector<1x1x64xf32> to vector<16x16x64xf32>
    %9 = arith.addf %5, %8 : vector<16x16x64xf32>
    %cst = arith.constant 0.000000e+00 : f32
    %10 = vector.broadcast %cst : f32 to vector<16x16x64xf32>
    %11 = arith.maximumf %9, %10 : vector<16x16x64xf32>
    %cst_7 = arith.constant 0.000000e+00 : f32
    %12 = vector.broadcast %cst_7 : f32 to vector<18x18x64xf32>
    %c0_8 = arith.constant 0 : index
    %c0_9 = arith.constant 0 : index
    %c0_10 = arith.constant 0 : index
    %13 = vector.load %arg6[%c0_8, %c0_9, %c0_10] : memref<18x18x64xf32, #tpu.memory_space<vmem>>, vector<18x18x64xf32>
    tpu.vector_store %arg6[%c0_8, %c0_9, %c0_10], %12 {strides = array<i32>} : memref<18x18x64xf32, #tpu.memory_space<vmem>>, vector<18x18x64xf32>,
    %c1 = arith.constant 1 : index
    %c1_11 = arith.constant 1 : index
    %c0_12 = arith.constant 0 : index
    %14 = vector.load %arg6[%c1, %c1_11, %c0_12] : memref<18x18x64xf32, #tpu.memory_space<vmem>>, vector<16x16x64xf32>
    tpu.vector_store %arg6[%c1, %c1_11, %c0_12], %11 {strides = array<i32>} : memref<18x18x64xf32, #tpu.memory_space<vmem>>, vector<16x16x64xf32>,
    %c0_13 = arith.constant 0 : index
    %c0_14 = arith.constant 0 : index
    %c0_15 = arith.constant 0 : index
    %15 = vector.load %arg6[%c0_13, %c0_14, %c0_15] : memref<18x18x64xf32, #tpu.memory_space<vmem>>, vector<16x16x64xf32>
    %c0_16 = arith.constant 0 : index
    %c1_17 = arith.constant 1 : index
    %c0_18 = arith.constant 0 : index
    %16 = vector.load %arg6[%c0_16, %c1_17, %c0_18] : memref<18x18x64xf32, #tpu.memory_space<vmem>>, vector<16x16x64xf32>
    %c0_19 = arith.constant 0 : index
    %c2 = arith.constant 2 : index
    %c0_20 = arith.constant 0 : index
    %17 = vector.load %arg6[%c0_19, %c2, %c0_20] : memref<18x18x64xf32, #tpu.memory_space<vmem>>, vector<16x16x64xf32>
    %c1_21 = arith.constant 1 : index
    %c0_22 = arith.constant 0 : index
    %c0_23 = arith.constant 0 : index
    %18 = vector.load %arg6[%c1_21, %c0_22, %c0_23] : memref<18x18x64xf32, #tpu.memory_space<vmem>>, vector<16x16x64xf32>
    %c1_24 = arith.constant 1 : index
    %c1_25 = arith.constant 1 : index
    %c0_26 = arith.constant 0 : index
    %19 = vector.load %arg6[%c1_24, %c1_25, %c0_26] : memref<18x18x64xf32, #tpu.memory_space<vmem>>, vector<16x16x64xf32>
    %c1_27 = arith.constant 1 : index
    %c2_28 = arith.constant 2 : index
    %c0_29 = arith.constant 0 : index
    %20 = vector.load %arg6[%c1_27, %c2_28, %c0_29] : memref<18x18x64xf32, #tpu.memory_space<vmem>>, vector<16x16x64xf32>
    %c2_30 = arith.constant 2 : index
    %c0_31 = arith.constant 0 : index
    %c0_32 = arith.constant 0 : index
    %21 = vector.load %arg6[%c2_30, %c0_31, %c0_32] : memref<18x18x64xf32, #tpu.memory_space<vmem>>, vector<16x16x64xf32>
    %c2_33 = arith.constant 2 : index
    %c1_34 = arith.constant 1 : index
    %c0_35 = arith.constant 0 : index
    %22 = vector.load %arg6[%c2_33, %c1_34, %c0_35] : memref<18x18x64xf32, #tpu.memory_space<vmem>>, vector<16x16x64xf32>
    %c2_36 = arith.constant 2 : index
    %c2_37 = arith.constant 2 : index
    %c0_38 = arith.constant 0 : index
    %23 = vector.load %arg6[%c2_36, %c2_37, %c0_38] : memref<18x18x64xf32, #tpu.memory_space<vmem>>, vector<16x16x64xf32>
    %24 = tpu.concatenate %15, %16, %17, %18, %19, %20, %21, %22, %23 in 2 : vector<16x16x64xf32>, vector<16x16x64xf32>, vector<16x16x64xf32>, vector<16x16x64xf32>, vector<16x16x64xf32>, vector<16x16x64xf32>, vector<16x16x64xf32>, vector<16x16x64xf32>, vector<16x16x64xf32> -> vector<16x16x576xf32>
    %25 = vector.shape_cast %24 : vector<16x16x576xf32> to vector<256x576xf32>
    %c0_39 = arith.constant 0 : index
    %c0_40 = arith.constant 0 : index
    %26 = vector.load %arg2[%c0_39, %c0_40] : memref<576x4xf32, #tpu.memory_space<vmem>>, vector<576x4xf32>
    %cst_41 = arith.constant dense<0.000000e+00> : vector<256x4xf32>
    %27 = tpu.matmul %25, %26, %cst_41 {dimension_numbers = #tpu.dot_dimension_numbers<[1], [0], [0], [1], [0, 0, 1, 1], [], []>} : vector<256x576xf32>, vector<576x4xf32>, vector<256x4xf32> -> vector<256x4xf32>
    %28 = vector.shape_cast %27 : vector<256x4xf32> to vector<16x16x4xf32>
    %c0_42 = arith.constant 0 : index
    %c0_43 = arith.constant 0 : index
    %c0_44 = arith.constant 0 : index
    %c0_45 = arith.constant 0 : index
    %29 = vector.load %arg5[%c0_42, %c0_43, %c0_44, %c0_45] : memref<1x16x16x4xf32, #tpu.memory_space<vmem>>, vector<1x16x16x4xf32>
    %30 = vector.shape_cast %29 : vector<1x16x16x4xf32> to vector<16x16x4xf32>
    %31 = vector.shape_cast %28 : vector<16x16x4xf32> to vector<1x16x16x4xf32>
    tpu.vector_store %arg5[%c0_42, %c0_43, %c0_44, %c0_45], %31 {strides = array<i32>} : memref<1x16x16x4xf32, #tpu.memory_space<vmem>>, vector<1x16x16x4xf32>,
    return
  }
  func.func @transform_0(%arg0: i32) -> (i32, i32, i32, i32) {
    %c0_i32 = arith.constant 0 : i32
    %c0_i32_0 = arith.constant 0 : i32
    %c0_i32_1 = arith.constant 0 : i32
    %c0_i32_2 = arith.constant 0 : i32
    return %arg0, %c0_i32, %c0_i32_0, %c0_i32_1 : i32, i32, i32, i32
  }
  func.func @transform_1(%arg0: i32) -> (i32, i32) {
    %c0_i32 = arith.constant 0 : i32
    %c0_i32_0 = arith.constant 0 : i32
    %c0_i32_1 = arith.constant 0 : i32
    return %c0_i32, %c0_i32_0 : i32, i32
  }
  func.func @transform_2(%arg0: i32) -> (i32, i32) {
    %c0_i32 = arith.constant 0 : i32
    %c0_i32_0 = arith.constant 0 : i32
    %c0_i32_1 = arith.constant 0 : i32
    return %c0_i32, %c0_i32_0 : i32, i32
  }
  func.func @transform_3(%arg0: i32) -> (i32, i32) {
    %c0_i32 = arith.constant 0 : i32
    %c0_i32_0 = arith.constant 0 : i32
    %c0_i32_1 = arith.constant 0 : i32
    return %c0_i32, %c0_i32_0 : i32, i32
  }
  func.func @transform_4(%arg0: i32) -> (i32, i32, i32, i32) {
    %c0_i32 = arith.constant 0 : i32
    %c0_i32_0 = arith.constant 0 : i32
    %c0_i32_1 = arith.constant 0 : i32
    %c0_i32_2 = arith.constant 0 : i32
    return %arg0, %c0_i32, %c0_i32_0, %c0_i32_1 : i32, i32, i32, i32
  }
}

</mosaic_0001>

<bundles_post_ra>
// kernel: dncnn_forward.4
= control target key start
LH: loop header
LB: loop body
LE: loop exit
PB: predicated region body
PF: predicated region fallthrough
CT: control target
= control target key end

     0   :  { %s2544_s15 = smov 0   ;;  %s4019_s0 = inlined_call_operand.vmem [shape: f32[2,16,16,4], index: 0, kind: input, shape index: {}]   ;;  %s4020_s1 = inlined_call_operand.vmem [shape: f32[36,64], index: 1, kind: input, shape index: {}]   ;;  %s4021_s2 = inlined_call_operand.vmem [shape: f32[1,4], index: 2, kind: input, shape index: {}]   ;;  %s4022_s3 = inlined_call_operand.vmem [shape: f32[1,4], index: 3, kind: input, shape index: {}]   ;;  %s4023_s4 = inlined_call_operand.vmem [shape: f32[2,16,16,64], index: 4, kind: output, shape index: {}]  }
   0x1 LB: > { %s2314_s16 = sadd.s32 4294967295, %s2508_s15   ;;  %p2318_p0 = scmp.ge.s32.totalorder %s2508_s15, 1  ;;  %s2508_s15 = sphi %s2544_s15, %s14_s15  }
   0x2   : > { %p162_p1 = scmp.lt.s32.totalorder %s2508_s15, 3 }
   0x4   : > { %p163_p2 = pnand %p2318_p0, %p162_p1 }
   0x6   : > { %166 = sbr.rel (%p163_p2) target bundleno = 867 (0x363), region = 36 }
   0xb   : > { %vm230_vm0 = vcmask 31744   ;;  %vm233_vm1 = vcmask 25600   ;;  %p2554_p3 = scmp.lt.s32.totalorder %s2314_s16, 1  ;;  %v2510_v0 = vmov 0.0   ;;  %s2511_s20 = smov 4   ;;  %vm1997_vm2 = vcmask 1043456  }
   0xc   : > { %231 = vst.msk [vmem:[#allocation2] sm:$0xff] %vm230_vm0, %v2510_v0  ;;  %232 = vst.msk [vmem:[#allocation2 + $0x8] sm:$0xff] %vm230_vm0, %v2510_v0  ;;  %s2512_s21 = smov 8   ;;  %s2513_s22 = smov 12   ;;  %vm1664_vm3 = vcmask 64512   ;;  %vm1697_vm4 = vcmask 97280  }
   0xd   : > { %235 = vst.msk [vmem:[#allocation2 + $0x18] sm:$0xff] %vm230_vm0, %v2510_v0  ;;  %236 = vst.msk [vmem:[#allocation2 + $0x20] sm:$0xff] %vm230_vm0, %v2510_v0  ;;  %s4198_s16 = smov (!%p2554_p3, %s2314_s16), 1  ;;  %s2514_s23 = smov 16   ;;  %vm1730_vm5 = vcmask 130048   ;;  %vm1763_vm6 = vcmask 162816  }
   0xe   : > { %238 = vst.msk [vmem:[#allocation2 + $0x30] sm:$0xff] %vm230_vm0, %v2510_v0  ;;  %239 = vst.msk [vmem:[#allocation2 + $0x38] sm:$0xff] %vm230_vm0, %v2510_v0  ;;  %s2358_s3 = sshll.u32 %s4198_s16, 8  ;;  %s2515_s24 = smov 20   ;;  %vm1796_vm7 = vcmask 195584   ;;  %vm1862_vm8 = vcmask 261120  }
   0xf   : > { %241 = vst.msk [vmem:[#allocation2 + $0x48] sm:$0xff] %vm230_vm0, %v2510_v0  ;;  %242 = vst.msk [vmem:[#allocation2 + $0x50] sm:$0xff] %vm230_vm0, %v2510_v0  ;;  %s2624_s19 = scalar_lea.vmem %s4019_s0, %s2358_s3  ;;  %s2516_s25 = smov 24   ;;  %vm1829_vm9 = vcmask 228352   ;;  %vm1900_vm10 = vcmask 293888   ;;  %vm2226_vm11 = vcmask 523264  }
  0x10   : > { %244 = vst.msk [vmem:[#allocation2 + $0x60] sm:$0xff] %vm230_vm0, %v2510_v0  ;;  %245 = vst.msk [vmem:[#allocation2 + $0x68] sm:$0xff] %vm230_vm0, %v2510_v0  ;;  %v198_v1 = vld [vmem:[%s2624_s19] sm:$0xff]  ;;  %v200_v2 = vld [vmem:[%s2624_s19 + $0x10] sm:$0xff]  ;;  %s2517_s30 = smov 28   ;;  %s2518_s11 = smov 32  }
  0x11   : > { %247 = vst.msk [vmem:[#allocation2 + $0x78] sm:$0xff] %vm230_vm0, %v2510_v0  ;;  %248 = vst.msk [vmem:[#allocation2 + $0x80] sm:$0xff] %vm230_vm0, %v2510_v0  ;;  %v199_v3 = vld [vmem:[%s2624_s19 + $0x8] sm:$0xff]  ;;  %v202_v4 = vld [vmem:[%s2624_s19 + $0x20] sm:$0xff]  ;;  %s3842_s14 = scalar_lea.vmem %s4023_s4, %s2358_s3 }
  0x12   : > { %250 = vst.msk [vmem:[#allocation2 + $0x90] sm:$0xff] %vm230_vm0, %v2510_v0  ;;  %251 = vst.msk [vmem:[#allocation2 + $0x98] sm:$0xff] %vm230_vm0, %v2510_v0  ;;  %v201_v5 = vld [vmem:[%s2624_s19 + $0x18] sm:$0xff]  ;;  %v204_v6 = vld [vmem:[%s2624_s19 + $0x30] sm:$0xff] }
  0x13   : > { %253 = vst.msk [vmem:[#allocation2 + $0xa8] sm:$0xff] %vm230_vm0, %v2510_v0  ;;  %254 = vst.msk [vmem:[#allocation2 + $0xb0] sm:$0xff] %vm230_vm0, %v2510_v0  ;;  %v351_v7 = vld [vmem:[#allocation2 + $0x1] sm:$0xff]  ;;  %v205_v11 = vld [vmem:[%s2624_s19 + $0x38] sm:$0xff] }
  0x14   : > { %256 = vst.msk [vmem:[#allocation2 + $0xc0] sm:$0xff] %vm230_vm0, %v2510_v0  ;;  %257 = vst.msk [vmem:[#allocation2 + $0xc8] sm:$0xff] %vm230_vm0, %v2510_v0  ;;  %v203_v9 = vld [vmem:[%s2624_s19 + $0x28] sm:$0xff]  ;;  %640 = vrot.lane.b32.xlu0 %v351_v7, %s2511_s20  ;;  %v206_v10 = vld [vmem:[%s2624_s19 + $0x40] sm:$0xff] }
  0x15   : > { %259 = vst.msk [vmem:[#allocation2 + $0xd8] sm:$0xff] %vm230_vm0, %v2510_v0  ;;  %260 = vst.msk [vmem:[#allocation2 + $0xe0] sm:$0xff] %vm230_vm0, %v2510_v0  ;;  %v208_v12 = vld [vmem:[%s2624_s19 + $0x50] sm:$0xff]  ;;  %v207_v13 = vld [vmem:[%s2624_s19 + $0x48] sm:$0xff] }
  0x16   : > { %262 = vst.msk [vmem:[#allocation2 + $0xf0] sm:$0xff] %vm230_vm0, %v2510_v0  ;;  %263 = vst.msk [vmem:[#allocation2 + $0xf8] sm:$0xff] %vm230_vm0, %v2510_v0  ;;  %v210_v14 = vld [vmem:[%s2624_s19 + $0x60] sm:$0xff]  ;;  %v209_v15 = vld [vmem:[%s2624_s19 + $0x58] sm:$0xff] }
  0x17   : > { %265 = vst.msk [vmem:[#allocation2 + $0x108] sm:$0xff] %vm230_vm0, %v2510_v0  ;;  %266 = vst.msk [vmem:[#allocation2 + $0x110] sm:$0xff] %vm230_vm0, %v2510_v0  ;;  %v212_v16 = vld [vmem:[%s2624_s19 + $0x70] sm:$0xff]  ;;  %v211_v17 = vld [vmem:[%s2624_s19 + $0x68] sm:$0xff] }
  0x18   : > { %268 = vst.msk [vmem:[#allocation2 + $0x120] sm:$0xff] %vm230_vm0, %v2510_v0  ;;  %269 = vst.msk [vmem:[#allocation2 + $0x128] sm:$0xff] %vm230_vm0, %v2510_v0  ;;  %v214_v18 = vld [vmem:[%s2624_s19 + $0x80] sm:$0xff]  ;;  %v213_v19 = vld [vmem:[%s2624_s19 + $0x78] sm:$0xff] }
  0x19   : > { %271 = vst.msk [vmem:[#allocation2 + $0x138] sm:$0xff] %vm230_vm0, %v2510_v0  ;;  %272 = vst.msk [vmem:[#allocation2 + $0x140] sm:$0xff] %vm230_vm0, %v2510_v0  ;;  %v216_v20 = vld [vmem:[%s2624_s19 + $0x90] sm:$0xff]  ;;  %v215_v21 = vld [vmem:[%s2624_s19 + $0x88] sm:$0xff] }
  0x1a   : > { %274 = vst.msk [vmem:[#allocation2 + $0x150] sm:$0xff] %vm230_vm0, %v2510_v0  ;;  %275 = vst.msk [vmem:[#allocation2 + $0x158] sm:$0xff] %vm230_vm0, %v2510_v0  ;;  %v218_v22 = vld [vmem:[%s2624_s19 + $0xa0] sm:$0xff]  ;;  %v217_v23 = vld [vmem:[%s2624_s19 + $0x98] sm:$0xff] }
  0x1b   : > { %277 = vst.msk [vmem:[#allocation2 + $0x168] sm:$0xff] %vm230_vm0, %v2510_v0  ;;  %278 = vst.msk [vmem:[#allocation2 + $0x170] sm:$0xff] %vm230_vm0, %v2510_v0  ;;  %v220_v24 = vld [vmem:[%s2624_s19 + $0xb0] sm:$0xff]  ;;  %v219_v28 = vld [vmem:[%s2624_s19 + $0xa8] sm:$0xff] }
  0x1c   : > { %280 = vst.msk [vmem:[#allocation2 + $0x180] sm:$0xff] %vm230_vm0, %v2510_v0  ;;  %281 = vst.msk [vmem:[#allocation2 + $0x188] sm:$0xff] %vm230_vm0, %v2510_v0  ;;  %v222_v29 = vld [vmem:[%s2624_s19 + $0xc0] sm:$0xff]  ;;  %v221_v33 = vld [vmem:[%s2624_s19 + $0xb8] sm:$0xff] }
  0x1d   : > { %283 = vst.msk [vmem:[#allocation2 + $0x198] sm:$0xff] %vm230_vm0, %v2510_v0  ;;  %284 = vst.msk [vmem:[#allocation2 + $0x1a0] sm:$0xff] %vm230_vm0, %v2510_v0  ;;  %v224_v34 = vld [vmem:[%s2624_s19 + $0xd0] sm:$0xff]  ;;  %v223_v35 = vld [vmem:[%s2624_s19 + $0xc8] sm:$0xff] }
  0x1e   : > { %234 = vst.msk [vmem:[#allocation2 + $0x10] sm:$0x3] %vm233_vm1, %v2510_v0  ;;  %237 = vst.msk [vmem:[#allocation2 + $0x28] sm:$0x3] %vm233_vm1, %v2510_v0  ;;  %v226_v36 = vld [vmem:[%s2624_s19 + $0xe0] sm:$0xff]  ;;  %v225_v37 = vld [vmem:[%s2624_s19 + $0xd8] sm:$0xff] }
  0x1f   : > { %240 = vst.msk [vmem:[#allocation2 + $0x40] sm:$0x3] %vm233_vm1, %v2510_v0  ;;  %243 = vst.msk [vmem:[#allocation2 + $0x58] sm:$0x3] %vm233_vm1, %v2510_v0  ;;  %v227_v39 = vld [vmem:[%s2624_s19 + $0xe8] sm:$0xff]  ;;  %v228_v58 = vld [vmem:[%s2624_s19 + $0xf0] sm:$0xff] }
  0x20   : > { %246 = vst.msk [vmem:[#allocation2 + $0x70] sm:$0x3] %vm233_vm1, %v2510_v0  ;;  %249 = vst.msk [vmem:[#allocation2 + $0x88] sm:$0x3] %vm233_vm1, %v2510_v0  ;;  %v229_v62 = vld [vmem:[%s2624_s19 + $0xf8] sm:$0xff] }
  0x21   : > { %252 = vst.msk [vmem:[#allocation2 + $0xa0] sm:$0x3] %vm233_vm1, %v2510_v0  ;;  %255 = vst.msk [vmem:[#allocation2 + $0xb8] sm:$0x3] %vm233_vm1, %v2510_v0 }
  0x22   : > { %258 = vst.msk [vmem:[#allocation2 + $0xd0] sm:$0x3] %vm233_vm1, %v2510_v0  ;;  %261 = vst.msk [vmem:[#allocation2 + $0xe8] sm:$0x3] %vm233_vm1, %v2510_v0 }
  0x23   : > { %264 = vst.msk [vmem:[#allocation2 + $0x100] sm:$0x3] %vm233_vm1, %v2510_v0  ;;  %267 = vst.msk [vmem:[#allocation2 + $0x118] sm:$0x3] %vm233_vm1, %v2510_v0 }
  0x24   : > { %270 = vst.msk [vmem:[#allocation2 + $0x130] sm:$0x3] %vm233_vm1, %v2510_v0  ;;  %273 = vst.msk [vmem:[#allocation2 + $0x148] sm:$0x3] %vm233_vm1, %v2510_v0 }
  0x25   : > { %276 = vst.msk [vmem:[#allocation2 + $0x160] sm:$0x3] %vm233_vm1, %v2510_v0  ;;  %279 = vst.msk [vmem:[#allocation2 + $0x178] sm:$0x3] %vm233_vm1, %v2510_v0  ;;  %v352_v8 = vld [vmem:[#allocation2 + $0x9] sm:$0xff] }
  0x26   : > { %282 = vst.msk [vmem:[#allocation2 + $0x190] sm:$0x3] %vm233_vm1, %v2510_v0  ;;  %285 = vst.msk [vmem:[#allocation2 + $0x1a8] sm:$0x3] %vm233_vm1, %v2510_v0  ;;  %642 = vrot.lane.b32.xlu0 %v352_v8, %s2511_s20  ;;  %v383_v0 = vld [vmem:[#allocation2 + $0x2] sm:$0xff] }
  0x27   : > { %287 = vst.msk [vmem:[#allocation2 + $0x19] sm:$0xff] %vm230_vm0, %v198_v1  ;;  %289 = vst.msk [vmem:[#allocation2 + $0x31] sm:$0xff] %vm230_vm0, %v200_v2 }
  0x28   : > { %288 = vst.msk [vmem:[#allocation2 + $0x21] sm:$0xff] %vm230_vm0, %v199_v3  ;;  %291 = vst.msk [vmem:[#allocation2 + $0x49] sm:$0xff] %vm230_vm0, %v202_v4  ;;  %v384_v3 = vld [vmem:[#allocation2 + $0xa] sm:$0xff] }
  0x29   : > { %290 = vst.msk [vmem:[#allocation2 + $0x39] sm:$0xff] %vm230_vm0, %v201_v5  ;;  %293 = vst.msk [vmem:[#allocation2 + $0x61] sm:$0xff] %vm230_vm0, %v204_v6 }
  0x2a   : > { %292 = vst.msk [vmem:[#allocation2 + $0x51] sm:$0xff] %vm230_vm0, %v203_v9  ;;  %295 = vst.msk [vmem:[#allocation2 + $0x79] sm:$0xff] %vm230_vm0, %v206_v10 }
  0x2b   : > { %294 = vst.msk [vmem:[#allocation2 + $0x69] sm:$0xff] %vm230_vm0, %v205_v11  ;;  %297 = vst.msk [vmem:[#allocation2 + $0x91] sm:$0xff] %vm230_vm0, %v208_v12 }
  0x2c   : > { %296 = vst.msk [vmem:[#allocation2 + $0x81] sm:$0xff] %vm230_vm0, %v207_v13  ;;  %299 = vst.msk [vmem:[#allocation2 + $0xa9] sm:$0xff] %vm230_vm0, %v210_v14 }
  0x2d   : > { %298 = vst.msk [vmem:[#allocation2 + $0x99] sm:$0xff] %vm230_vm0, %v209_v15  ;;  %301 = vst.msk [vmem:[#allocation2 + $0xc1] sm:$0xff] %vm230_vm0, %v212_v16 }
  0x2e   : > { %300 = vst.msk [vmem:[#allocation2 + $0xb1] sm:$0xff] %vm230_vm0, %v211_v17  ;;  %303 = vst.msk [vmem:[#allocation2 + $0xd9] sm:$0xff] %vm230_vm0, %v214_v18  ;;  %v2669_v25 = vld [vmem:[#allocation2 + $0x19] sm:$0xff]  ;;  %v2671_v26 = vld [vmem:[#allocation2 + $0x31] sm:$0xff] }
  0x2f   : > { %302 = vst.msk [vmem:[#allocation2 + $0xc9] sm:$0xff] %vm230_vm0, %v213_v19  ;;  %305 = vst.msk [vmem:[#allocation2 + $0xf1] sm:$0xff] %vm230_vm0, %v216_v20  ;;  %644 = vrot.lane.b32.xlu1 %v2669_v25, %s2511_s20  ;;  %v2678_v27 = vld [vmem:[#allocation2 + $0x21] sm:$0xff]  ;;  %648 = vrot.lane.b32.xlu0 %v2671_v26, %s2511_s20  ;;  %v2686_v30 = vld [vmem:[#allocation2 + $0x49] sm:$0xff] }
  0x30   : > { %304 = vst.msk [vmem:[#allocation2 + $0xe1] sm:$0xff] %vm230_vm0, %v215_v21  ;;  %307 = vst.msk [vmem:[#allocation2 + $0x109] sm:$0xff] %vm230_vm0, %v218_v22  ;;  %v2690_v31 = vld [vmem:[#allocation2 + $0x39] sm:$0xff]  ;;  %v2694_v32 = vld [vmem:[#allocation2 + $0x61] sm:$0xff] }
  0x31   : > { %306 = vst.msk [vmem:[#allocation2 + $0xf9] sm:$0xff] %vm230_vm0, %v217_v23  ;;  %309 = vst.msk [vmem:[#allocation2 + $0x121] sm:$0xff] %vm230_vm0, %v220_v24  ;;  %v2706_v38 = vld [vmem:[#allocation2 + $0x51] sm:$0xff]  ;;  %v2714_v40 = vld [vmem:[#allocation2 + $0x79] sm:$0xff] }
  0x32   : > { %308 = vst.msk [vmem:[#allocation2 + $0x111] sm:$0xff] %vm230_vm0, %v219_v28  ;;  %311 = vst.msk [vmem:[#allocation2 + $0x139] sm:$0xff] %vm230_vm0, %v222_v29  ;;  %v2718_v41 = vld [vmem:[#allocation2 + $0x69] sm:$0xff]  ;;  %v2722_v42 = vld [vmem:[#allocation2 + $0x91] sm:$0xff] }
  0x33   : > { %646 = vrot.lane.b32.xlu1 %v2678_v27, %s2511_s20  ;;  %652 = vrot.lane.b32.xlu0 %v2686_v30, %s2511_s20  ;;  %310 = vst.msk [vmem:[#allocation2 + $0x129] sm:$0xff] %vm230_vm0, %v221_v33  ;;  %313 = vst.msk [vmem:[#allocation2 + $0x151] sm:$0xff] %vm230_vm0, %v224_v34  ;;  %v2726_v43 = vld [vmem:[#allocation2 + $0x81] sm:$0xff]  ;;  %v2730_v44 = vld [vmem:[#allocation2 + $0xa9] sm:$0xff] }
  0x34   : > { %312 = vst.msk [vmem:[#allocation2 + $0x141] sm:$0xff] %vm230_vm0, %v223_v35  ;;  %315 = vst.msk [vmem:[#allocation2 + $0x169] sm:$0xff] %vm230_vm0, %v226_v36  ;;  %v2734_v45 = vld [vmem:[#allocation2 + $0x99] sm:$0xff]  ;;  %v2738_v46 = vld [vmem:[#allocation2 + $0xc1] sm:$0xff] }
  0x35   : > { %314 = vst.msk [vmem:[#allocation2 + $0x159] sm:$0xff] %vm230_vm0, %v225_v37  ;;  %316 = vst.msk [vmem:[#allocation2 + $0x171] sm:$0xff] %vm230_vm0, %v227_v39  ;;  %v2742_v47 = vld [vmem:[#allocation2 + $0xb1] sm:$0xff]  ;;  %v2746_v48 = vld [vmem:[#allocation2 + $0xd9] sm:$0xff] }
  0x36   : > { %v2750_v49 = vld [vmem:[#allocation2 + $0xc9] sm:$0xff]  ;;  %v2754_v50 = vld [vmem:[#allocation2 + $0xf1] sm:$0xff]  ;;  %317 = vst.msk [vmem:[#allocation2 + $0x181] sm:$0xff] %vm230_vm0, %v228_v58  ;;  %318 = vst.msk [vmem:[#allocation2 + $0x189] sm:$0xff] %vm230_vm0, %v229_v62 }
  0x37   : > { %650 = vrot.lane.b32.xlu1 %v2690_v31, %s2511_s20  ;;  %656 = vrot.lane.b32.xlu0 %v2694_v32, %s2511_s20  ;;  %v2758_v51 = vld [vmem:[#allocation2 + $0xe1] sm:$0xff]  ;;  %v2762_v52 = vld [vmem:[#allocation2 + $0x109] sm:$0xff]  ;;  %v2793_v4 = vld [vmem:[#allocation2 + $0x32] sm:$0xff] }
  0x38   : > { %v2766_v53 = vld [vmem:[#allocation2 + $0xf9] sm:$0xff]  ;;  %v375_v54 = vld [vmem:[#allocation2 + $0x121] sm:$0xff]  ;;  %v2800_v6 = vld [vmem:[#allocation2 + $0x4a] sm:$0xff] }
  0x39   : > { %v2772_v55 = vld [vmem:[#allocation2 + $0x111] sm:$0xff]  ;;  %v377_v56 = vld [vmem:[#allocation2 + $0x139] sm:$0xff]  ;;  %v2796_v5 = vld [vmem:[#allocation2 + $0x22] sm:$0xff] }
  0x3a   : > { %v376_v57 = vld [vmem:[#allocation2 + $0x129] sm:$0xff]  ;;  %v379_v59 = vld [vmem:[#allocation2 + $0x151] sm:$0xff]  ;;  %v2788_v2 = vld [vmem:[#allocation2 + $0x1a] sm:$0xff] }
  0x3b   : > { %654 = vrot.lane.b32.xlu1 %v2706_v38, %s2511_s20  ;;  %660 = vrot.lane.b32.xlu0 %v2714_v40, %s2511_s20  ;;  %v378_v60 = vld [vmem:[#allocation2 + $0x141] sm:$0xff]  ;;  %v381_v61 = vld [vmem:[#allocation2 + $0x169] sm:$0xff]  ;;  %v2812_v9 = vld [vmem:[#allocation2 + $0x52] sm:$0xff] }
  0x3c   : > { %v380_v63 = vld [vmem:[#allocation2 + $0x159] sm:$0xff]  ;;  %v382_v1 = vld [vmem:[#allocation2 + $0x171] sm:$0xff]  ;;  %v2808_v8 = vld [vmem:[#allocation2 + $0x62] sm:$0xff] }
  0x3d   : > { %v2804_v7 = vld [vmem:[#allocation2 + $0x3a] sm:$0xff]  ;;  %v392_v11 = vld [vmem:[#allocation2 + $0x6a] sm:$0xff]  ;;  %v395_v12 = vld [vmem:[#allocation2 + $0x92] sm:$0xff] }
  0x3e   : > { %v393_v10 = vld [vmem:[#allocation2 + $0x7a] sm:$0xff]  ;;  %v394_v13 = vld [vmem:[#allocation2 + $0x82] sm:$0xff]  ;;  %v397_v14 = vld [vmem:[#allocation2 + $0xaa] sm:$0xff] }
  0x3f   : > { %658 = vrot.lane.b32.xlu1 %v2718_v41, %s2511_s20  ;;  %664 = vrot.lane.b32.xlu0 %v2722_v42, %s2511_s20  ;;  %v396_v15 = vld [vmem:[#allocation2 + $0x9a] sm:$0xff]  ;;  %v399_v16 = vld [vmem:[#allocation2 + $0xc2] sm:$0xff]  ;;  %v398_v17 = vld [vmem:[#allocation2 + $0xb2] sm:$0xff] }
  0x40   : > { %v2825_v18 = vld [vmem:[#allocation2 + $0xda] sm:$0xff]  ;;  %v400_v19 = vld [vmem:[#allocation2 + $0xca] sm:$0xff]  ;;  %v2830_v20 = vld [vmem:[#allocation2 + $0xf2] sm:$0xff] }
  0x41   : > { %v2833_v21 = vld [vmem:[#allocation2 + $0xe2] sm:$0xff]  ;;  %v2837_v22 = vld [vmem:[#allocation2 + $0x10a] sm:$0xff]  ;;  %v2841_v23 = vld [vmem:[#allocation2 + $0xfa] sm:$0xff] }
  0x42   : > { %v2845_v24 = vld [vmem:[#allocation2 + $0x122] sm:$0xff]  ;;  %v2849_v28 = vld [vmem:[#allocation2 + $0x112] sm:$0xff]  ;;  %v409_v29 = vld [vmem:[#allocation2 + $0x13a] sm:$0xff] }
  0x43   : > { %662 = vrot.lane.b32.xlu1 %v2726_v43, %s2511_s20  ;;  %668 = vrot.lane.b32.xlu0 %v2730_v44, %s2511_s20  ;;  %v2857_v34 = vld [vmem:[#allocation2 + $0x12a] sm:$0xff]  ;;  %v411_v35 = vld [vmem:[#allocation2 + $0x152] sm:$0xff]  ;;  %v410_v37 = vld [vmem:[#allocation2 + $0x142] sm:$0xff] }
  0x47   : > { %666 = vrot.lane.b32.xlu1 %v2734_v45, %s2511_s20  ;;  %672 = vrot.lane.b32.xlu0 %v2738_v46, %s2511_s20 }
  0x4b   : > { %670 = vrot.lane.b32.xlu1 %v2742_v47, %s2511_s20  ;;  %676 = vrot.lane.b32.xlu0 %v2746_v48, %s2511_s20 }
  0x4f   : > { %674 = vrot.lane.b32.xlu1 %v2750_v49, %s2511_s20  ;;  %680 = vrot.lane.b32.xlu0 %v2754_v50, %s2511_s20 }
  0x53   : > { %678 = vrot.lane.b32.xlu1 %v2758_v51, %s2511_s20  ;;  %684 = vrot.lane.b32.xlu0 %v2762_v52, %s2511_s20 }
  0x57   : > { %682 = vrot.lane.b32.xlu1 %v2766_v53, %s2511_s20  ;;  %688 = vrot.lane.b32.xlu0 %v375_v54, %s2511_s20  ;;  %v413_v54 = vld [vmem:[#allocation2 + $0x16a] sm:$0xff] }
  0x5b   : > { %686 = vrot.lane.b32.xlu1 %v2772_v55, %s2511_s20  ;;  %692 = vrot.lane.b32.xlu0 %v377_v56, %s2511_s20 }
  0x5f   : > { %690 = vrot.lane.b32.xlu1 %v376_v57, %s2511_s20  ;;  %696 = vrot.lane.b32.xlu0 %v379_v59, %s2511_s20  ;;  %v412_v57 = vld [vmem:[#allocation2 + $0x15a] sm:$0xff] }
  0x63   : > { %694 = vrot.lane.b32.xlu1 %v378_v60, %s2511_s20  ;;  %700 = vrot.lane.b32.xlu0 %v381_v61, %s2511_s20  ;;  %v2876_v60 = vld [vmem:[#allocation2 + $0x18] sm:$0xff] }
  0x64   : > { %4036 = vst [vmem:[#allocation8_spill] sm:$0xff] %v2876_v60  ;;  %v414_v61 = vld [vmem:[#allocation2 + $0x172] sm:$0xff] }
  0x67   : > { %698 = vrot.lane.b32.xlu1 %v380_v63, %s2511_s20  ;;  %768 = vrot.lane.b32.xlu0 %v383_v0, %s2512_s21  ;;  %v2885_v0 = vld [vmem:[#allocation2 + $0x30] sm:$0xff] }
  0x6b   : > { %702 = vrot.lane.b32.xlu1 %v382_v1, %s2511_s20  ;;  %772 = vrot.lane.b32.xlu0 %v2788_v2, %s2512_s21 }
  0x6f   : > { %770 = vrot.lane.b32.xlu1 %v384_v3, %s2512_s21  ;;  %776 = vrot.lane.b32.xlu0 %v2793_v4, %s2512_s21  ;;  %v2891_v3 = vld [vmem:[#allocation2 + $0x20] sm:$0xff] }
  0x70   : > { %4040 = vst [vmem:[#allocation12_spill] sm:$0xff] %v2891_v3 }
  0x73   : > { %774 = vrot.lane.b32.xlu1 %v2796_v5, %s2512_s21  ;;  %780 = vrot.lane.b32.xlu0 %v2800_v6, %s2512_s21 }
  0x77   : > { %778 = vrot.lane.b32.xlu1 %v2804_v7, %s2512_s21  ;;  %784 = vrot.lane.b32.xlu0 %v2808_v8, %s2512_s21 }
  0x7b   : > { %782 = vrot.lane.b32.xlu1 %v2812_v9, %s2512_s21  ;;  %788 = vrot.lane.b32.xlu0 %v393_v10, %s2512_s21 }
  0x7f   : > { %786 = vrot.lane.b32.xlu1 %v392_v11, %s2512_s21  ;;  %792 = vrot.lane.b32.xlu0 %v395_v12, %s2512_s21  ;;  %v2897_v11 = vld [vmem:[#allocation2 + $0x48] sm:$0xff] }
  0x83   : > { %790 = vrot.lane.b32.xlu1 %v394_v13, %s2512_s21  ;;  %796 = vrot.lane.b32.xlu0 %v397_v14, %s2512_s21  ;;  %v2903_v13 = vld [vmem:[#allocation2 + $0x38] sm:$0xff] }
  0x86   : > { %v2853_v33 = vpop.permute.xlu0 %640 }
  0x87   : > { %794 = vrot.lane.b32.xlu1 %v396_v15, %s2512_s21  ;;  %800 = vrot.lane.b32.xlu0 %v399_v16, %s2512_s21  ;;  %v2909_v15 = vld [vmem:[#allocation2 + $0x60] sm:$0xff] }
  0x8b   : > { %798 = vrot.lane.b32.xlu1 %v398_v17, %s2512_s21  ;;  %804 = vrot.lane.b32.xlu0 %v2825_v18, %s2512_s21  ;;  %v2915_v17 = vld [vmem:[#allocation2 + $0x50] sm:$0xff] }
  0x8f   : > { %802 = vrot.lane.b32.xlu1 %v400_v19, %s2512_s21  ;;  %808 = vrot.lane.b32.xlu0 %v2830_v20, %s2512_s21 }
  0x93   : > { %806 = vrot.lane.b32.xlu1 %v2833_v21, %s2512_s21  ;;  %812 = vrot.lane.b32.xlu0 %v2837_v22, %s2512_s21 }
  0x97   : > { %810 = vrot.lane.b32.xlu1 %v2841_v23, %s2512_s21  ;;  %816 = vrot.lane.b32.xlu0 %v2845_v24, %s2512_s21 }
  0x98   : > { %v2860_v36 = vpop.permute.xlu0 %642 }
  0x99   : > { %4031 = vst [vmem:[#allocation3_spill] sm:$0xff] %v2860_v36  ;;  %v445_v36 = vld [vmem:[#allocation2 + $0x180] sm:$0xff] }
  0x9b   : > { %814 = vrot.lane.b32.xlu1 %v2849_v28, %s2512_s21  ;;  %820 = vrot.lane.b32.xlu0 %v409_v29, %s2512_s21  ;;  %v2921_v29 = vld [vmem:[#allocation2 + $0x78] sm:$0xff] }
  0x9f   : > { %818 = vrot.lane.b32.xlu1 %v2857_v34, %s2512_s21  ;;  %824 = vrot.lane.b32.xlu0 %v411_v35, %s2512_s21 }
  0xa1   : > { %v2865_v39 = vpop.permute.xlu1 %644  ;;  %v2867_v56 = vpop.permute.xlu0 %648 }
  0xa2   : > { %4032 = vst [vmem:[#allocation4_spill] sm:$0xff] %v2865_v39  ;;  %4033 = vst [vmem:[#allocation5_spill] sm:$0xff] %v2867_v56  ;;  %v2969_v56 = vld [vmem:[#allocation2 + $0xf0] sm:$0xff] }
  0xa3   : > { %822 = vrot.lane.b32.xlu1 %v410_v37, %s2512_s21  ;;  %828 = vrot.lane.b32.xlu0 %v413_v54, %s2512_s21  ;;  %v2927_v37 = vld [vmem:[#allocation2 + $0x68] sm:$0xff] }
  0xa5   : > { %v2871_v58 = vpop.permute.xlu1 %646  ;;  %v2873_v59 = vpop.permute.xlu0 %652 }
  0xa6   : > { %4034 = vst [vmem:[#allocation6_spill] sm:$0xff] %v2871_v58  ;;  %4035 = vst [vmem:[#allocation7_spill] sm:$0xff] %v2873_v59 }
  0xa7   : > { %826 = vrot.lane.b32.xlu1 %v412_v57, %s2512_s21  ;;  %896 = vrot.lane.b32.xlu0 %v2876_v60, %s2513_s22  ;;  %v331_v57 = vld [vmem:[#allocation2 + $0x90] sm:$0xff]  ;;  %v3011_v60 = vld [vmem:[#allocation2 + $0x128] sm:$0xff] }
  0xa9   : > { %v2880_v62 = vpop.permute.xlu1 %650  ;;  %v2882_v63 = vpop.permute.xlu0 %656 }
  0xaa   : > { %4037 = vst [vmem:[#allocation9_spill] sm:$0xff] %v2880_v62  ;;  %4038 = vst [vmem:[#allocation10_spill] sm:$0xff] %v2882_v63  ;;  %v334_v63 = vld [vmem:[#allocation2 + $0xb0] sm:$0xff] }
  0xab   : > { %830 = vrot.lane.b32.xlu1 %v414_v61, %s2512_s21  ;;  %900 = vrot.lane.b32.xlu0 %v2885_v0, %s2513_s22 }
  0xad   : > { %v2889_v1 = vpop.permute.xlu1 %654  ;;  %v2893_v10 = vpop.permute.xlu0 %660 }
  0xae   : > { %4039 = vst [vmem:[#allocation11_spill] sm:$0xff] %v2889_v1  ;;  %4041 = vst [vmem:[#allocation13_spill] sm:$0xff] %v2893_v10  ;;  %v332_v10 = vld [vmem:[#allocation2 + $0x98] sm:$0xff] }
  0xaf   : > { %898 = vrot.lane.b32.xlu1 %v2891_v3, %s2513_s22  ;;  %904 = vrot.lane.b32.xlu0 %v2897_v11, %s2513_s22 }
  0xb1   : > { %v2901_v12 = vpop.permute.xlu1 %658  ;;  %v2905_v14 = vpop.permute.xlu0 %664 }
  0xb2   : > { %4042 = vst [vmem:[#allocation14_spill] sm:$0xff] %v2901_v12  ;;  %4043 = vst [vmem:[#allocation15_spill] sm:$0xff] %v2905_v14 }
  0xb3   : > { %902 = vrot.lane.b32.xlu1 %v2903_v13, %s2513_s22  ;;  %908 = vrot.lane.b32.xlu0 %v2909_v15, %s2513_s22 }
  0xb5   : > { %v2913_v16 = vpop.permute.xlu1 %662  ;;  %v2917_v19 = vpop.permute.xlu0 %668 }
  0xb6   : > { %4044 = vst [vmem:[#allocation16_spill] sm:$0xff] %v2913_v16  ;;  %4045 = vst [vmem:[#allocation17_spill] sm:$0xff] %v2917_v19  ;;  %v2936_v19 = vld [vmem:[#allocation2 + $0x80] sm:$0xff] }
  0xb7   : > { %906 = vrot.lane.b32.xlu1 %v2915_v17, %s2513_s22  ;;  %912 = vrot.lane.b32.xlu0 %v2921_v29, %s2513_s22 }
  0xb9   : > { %v2925_v35 = vpop.permute.xlu1 %666  ;;  %v2929_v54 = vpop.permute.xlu0 %672 }
  0xba   : > { %4046 = vst [vmem:[#allocation18_spill] sm:$0xff] %v2925_v35  ;;  %v333_v35 = vld [vmem:[#allocation2 + $0xa8] sm:$0xff] }
  0xbb   : > { %910 = vrot.lane.b32.xlu1 %v2927_v37, %s2513_s22  ;;  %916 = vrot.lane.b32.xlu0 %v331_v57, %s2513_s22  ;;  %v2948_v57 = vld [vmem:[#allocation2 + $0xc0] sm:$0xff] }
  0xbd   : > { %v2934_v61 = vpop.permute.xlu1 %670  ;;  %v2938_v14 = vpop.permute.xlu0 %676 }
  0xbe   : > { %4047 = vst [vmem:[#allocation19_spill] sm:$0xff] %v2934_v61  ;;  %4048 = vst [vmem:[#allocation20_spill] sm:$0xff] %v2938_v14 }
  0xbf   : > { %914 = vrot.lane.b32.xlu1 %v2936_v19, %s2513_s22  ;;  %920 = vrot.lane.b32.xlu0 %v333_v35, %s2513_s22  ;;  %v2957_v35 = vld [vmem:[#allocation2 + $0xd8] sm:$0xff] }
  0xc0   : > { %4053 = vst [vmem:[#allocation25_spill] sm:$0xff] %v2957_v35 }
  0xc1   : > { %v2943_v16 = vpop.permute.xlu1 %674  ;;  %v2945_v12 = vpop.permute.xlu0 %680 }
  0xc2   : > { %4049 = vst [vmem:[#allocation21_spill] sm:$0xff] %v2943_v16  ;;  %4050 = vst [vmem:[#allocation22_spill] sm:$0xff] %v2945_v12  ;;  %v3032_v16 = vld [vmem:[#allocation2 + $0x158] sm:$0xff] }
  0xc3   : > { %918 = vrot.lane.b32.xlu1 %v332_v10, %s2513_s22  ;;  %924 = vrot.lane.b32.xlu0 %v2948_v57, %s2513_s22  ;;  %v2963_v10 = vld [vmem:[#allocation2 + $0xc8] sm:$0xff] }
  0xc4   : > { %4055 = vst [vmem:[#allocation27_spill] sm:$0xff] %v2963_v10 }
  0xc5   : > { %v2952_v61 = vpop.permute.xlu1 %678  ;;  %v2954_v1 = vpop.permute.xlu0 %684 }
  0xc6   : > { %4051 = vst [vmem:[#allocation23_spill] sm:$0xff] %v2952_v61  ;;  %4052 = vst [vmem:[#allocation24_spill] sm:$0xff] %v2954_v1  ;;  %v2975_v1 = vld [vmem:[#allocation2 + $0xe0] sm:$0xff]  ;;  %v2987_v61 = vld [vmem:[#allocation2 + $0xf8] sm:$0xff] }
  0xc7   : > { %922 = vrot.lane.b32.xlu1 %v334_v63, %s2513_s22  ;;  %928 = vrot.lane.b32.xlu0 %v2957_v35, %s2513_s22  ;;  %4058 = vst [vmem:[#allocation30_spill] sm:$0xff] %v2975_v1  ;;  %v3023_v35 = vld [vmem:[#allocation2 + $0x140] sm:$0xff] }
  0xc9   : > { %v2961_v59 = vpop.permute.xlu1 %682  ;;  %v2965_v62 = vpop.permute.xlu0 %688 }
  0xca   : > { %4054 = vst [vmem:[#allocation26_spill] sm:$0xff] %v2961_v59  ;;  %4056 = vst [vmem:[#allocation28_spill] sm:$0xff] %v2965_v62  ;;  %v2981_v59 = vld [vmem:[#allocation2 + $0x108] sm:$0xff] }
  0xcb   : > { %926 = vrot.lane.b32.xlu1 %v2963_v10, %s2513_s22  ;;  %932 = vrot.lane.b32.xlu0 %v2969_v56, %s2513_s22 }
  0xcd   : > { %v2973_v63 = vpop.permute.xlu1 %686  ;;  %v2977_v12 = vpop.permute.xlu0 %692 }
  0xce   : > { %4057 = vst [vmem:[#allocation29_spill] sm:$0xff] %v2973_v63  ;;  %4059 = vst [vmem:[#allocation31_spill] sm:$0xff] %v2977_v12  ;;  %v2993_v63 = vld [vmem:[#allocation2 + $0x120] sm:$0xff] }
  0xcf   : > { %930 = vrot.lane.b32.xlu1 %v2975_v1, %s2513_s22  ;;  %936 = vrot.lane.b32.xlu0 %v2981_v59, %s2513_s22  ;;  %v2999_v1 = vld [vmem:[#allocation2 + $0x110] sm:$0xff] }
  0xd1   : > { %v2985_v62 = vpop.permute.xlu1 %690  ;;  %v2989_v3 = vpop.permute.xlu0 %696 }
  0xd2   : > { %4060 = vst [vmem:[#allocation32_spill] sm:$0xff] %v2985_v62  ;;  %4061 = vst [vmem:[#allocation33_spill] sm:$0xff] %v2989_v3  ;;  %v3005_v62 = vld [vmem:[#allocation2 + $0x138] sm:$0xff] }
  0xd3   : > { %934 = vrot.lane.b32.xlu1 %v2987_v61, %s2513_s22  ;;  %940 = vrot.lane.b32.xlu0 %v2993_v63, %s2513_s22 }
  0xd5   : > { %v2997_v12 = vpop.permute.xlu1 %694  ;;  %v3001_v58 = vpop.permute.xlu0 %700 }
  0xd6   : > { %4062 = vst [vmem:[#allocation34_spill] sm:$0xff] %v2997_v12  ;;  %4063 = vst [vmem:[#allocation35_spill] sm:$0xff] %v3001_v58  ;;  %v3017_v12 = vld [vmem:[#allocation2 + $0x150] sm:$0xff] }
  0xd7   : > { %938 = vrot.lane.b32.xlu1 %v2999_v1, %s2513_s22  ;;  %944 = vrot.lane.b32.xlu0 %v3005_v62, %s2513_s22  ;;  %4066 = vst [vmem:[#allocation38_spill] sm:$0xff] %v3017_v12 }
  0xd9   : > { %v3009_v3 = vpop.permute.xlu1 %698  ;;  %v3013_v39 = vpop.permute.xlu0 %768 }
  0xda   : > { %4064 = vst [vmem:[#allocation36_spill] sm:$0xff] %v3009_v3  ;;  %4065 = vst [vmem:[#allocation37_spill] sm:$0xff] %v3013_v39  ;;  %v349_v3 = vld [vmem:[#allocation2 + $0x168] sm:$0xff] }
  0xdb   : > { %942 = vrot.lane.b32.xlu1 %v3011_v60, %s2513_s22  ;;  %948 = vrot.lane.b32.xlu0 %v3017_v12, %s2513_s22 }
  0xdd   : > { %v3021_v58 = vpop.permute.xlu1 %702  ;;  %v3025_v14 = vpop.permute.xlu0 %772 }
  0xde   : > { %4067 = vst [vmem:[#allocation39_spill] sm:$0xff] %v3021_v58  ;;  %4068 = vst [vmem:[#allocation40_spill] sm:$0xff] %v3025_v14  ;;  %v350_v14 = vld [vmem:[#allocation2 + $0x170] sm:$0xff] }
  0xdf   : > { %946 = vrot.lane.b32.xlu1 %v3023_v35, %s2513_s22  ;;  %952 = vrot.lane.b32.xlu0 %v349_v3, %s2513_s22  ;;  %v446_v3 = vld [vmem:[#allocation2 + $0x188] sm:$0xff] }
  0xe1   : > { %v3030_v10 = vpop.permute.xlu1 %770  ;;  %v3034_v39 = vpop.permute.xlu0 %776 }
  0xe2   : > { %4069 = vst [vmem:[#allocation41_spill] sm:$0xff] %v3030_v10  ;;  %4070 = vst [vmem:[#allocation42_spill] sm:$0xff] %v3034_v39 }
  0xe3   : > { %950 = vrot.lane.b32.xlu1 %v3032_v16, %s2513_s22  ;;  %956 = vrot.lane.b32.xlu0 %v445_v36, %s2513_s22 }
  0xe5   : > { %v3039_v58 = vpop.permute.xlu1 %774  ;;  %v3041_v12 = vpop.permute.xlu0 %780 }
  0xe6   : > { %4071 = vst [vmem:[#allocation43_spill] sm:$0xff] %v3039_v58 }
  0xe7   : > { %954 = vrot.lane.b32.xlu1 %v350_v14, %s2513_s22  ;;  %1024 = vrot.lane.b32.xlu0 %v2669_v25, %s2514_s23 }
  0xe9   : > { %v3046_v10 = vpop.permute.xlu1 %778  ;;  %v3048_v39 = vpop.permute.xlu0 %784 }
  0xea   : > { %4072 = vst [vmem:[#allocation44_spill] sm:$0xff] %v3048_v39 }
  0xeb   : > { %958 = vrot.lane.b32.xlu1 %v446_v3, %s2513_s22  ;;  %1028 = vrot.lane.b32.xlu0 %v2671_v26, %s2514_s23 }
  0xed   : > { %v3053_v36 = vpop.permute.xlu1 %782  ;;  %v3055_v58 = vpop.permute.xlu0 %788 }
  0xee   : > { %4073 = vst [vmem:[#allocation45_spill] sm:$0xff] %v3055_v58 }
  0xef   : > { %1026 = vrot.lane.b32.xlu1 %v2678_v27, %s2514_s23  ;;  %1032 = vrot.lane.b32.xlu0 %v2686_v30, %s2514_s23 }
  0xf1   : > { %v3061_v25 = vpop.permute.xlu1 %786  ;;  %v3063_v14 = vpop.permute.xlu0 %792 }
  0xf2   : > { %4074 = vst [vmem:[#allocation46_spill] sm:$0xff] %v3061_v25  ;;  %4075 = vst [vmem:[#allocation47_spill] sm:$0xff] %v3063_v14 }
  0xf3   : > { %1030 = vrot.lane.b32.xlu1 %v2690_v31, %s2514_s23  ;;  %1036 = vrot.lane.b32.xlu0 %v2694_v32, %s2514_s23 }
  0xf5   : > { %v3069_v3 = vpop.permute.xlu1 %790  ;;  %v3071_v39 = vpop.permute.xlu0 %796 }
  0xf6   : > { %4076 = vst [vmem:[#allocation48_spill] sm:$0xff] %v3069_v3  ;;  %4077 = vst [vmem:[#allocation49_spill] sm:$0xff] %v3071_v39 }
  0xf7   : > { %1034 = vrot.lane.b32.xlu1 %v2706_v38, %s2514_s23  ;;  %1040 = vrot.lane.b32.xlu0 %v2714_v40, %s2514_s23 }
  0xf9   : > { %v3077_v27 = vpop.permute.xlu1 %794  ;;  %v3079_v30 = vpop.permute.xlu0 %800 }
  0xfa   : > { %4078 = vst [vmem:[#allocation50_spill] sm:$0xff] %v3077_v27 }
  0xfb   : > { %1038 = vrot.lane.b32.xlu1 %v2718_v41, %s2514_s23  ;;  %1044 = vrot.lane.b32.xlu0 %v2722_v42, %s2514_s23 }
  0xfd   : > { %v3085_v32 = vpop.permute.xlu1 %798  ;;  %v3087_v14 = vpop.permute.xlu0 %804 }
  0xfe   : > { %4079 = vst [vmem:[#allocation51_spill] sm:$0xff] %v3085_v32  ;;  %v1897_v32 = vld [vmem:[%s4020_s1 + $0x10] sm:$0xff] }
  0xff   : > { %1042 = vrot.lane.b32.xlu1 %v2726_v43, %s2514_s23  ;;  %1048 = vrot.lane.b32.xlu0 %v2730_v44, %s2514_s23 }
 0x101   : > { %v3093_v38 = vpop.permute.xlu1 %802  ;;  %v3095_v40 = vpop.permute.xlu0 %808 }
 0x103   : > { %1046 = vrot.lane.b32.xlu1 %v2734_v45, %s2514_s23  ;;  %1052 = vrot.lane.b32.xlu0 %v2738_v46, %s2514_s23 }
 0x105   : > { %v3101_v41 = vpop.permute.xlu1 %806  ;;  %v3103_v42 = vpop.permute.xlu0 %812 }
 0x107   : > { %1050 = vrot.lane.b32.xlu1 %v2742_v47, %s2514_s23  ;;  %1056 = vrot.lane.b32.xlu0 %v2746_v48, %s2514_s23 }
 0x109   : > { %v3109_v43 = vpop.permute.xlu1 %810  ;;  %v3111_v44 = vpop.permute.xlu0 %816 }
 0x10a   : > { %4080 = vst [vmem:[#allocation52_spill] sm:$0xff] %v3111_v44 }
 0x10b   : > { %1054 = vrot.lane.b32.xlu1 %v2750_v49, %s2514_s23  ;;  %1152 = vrot.lane.b32.xlu0 %v2788_v2, %s2515_s24 }
 0x10d   : > { %v3117_v45 = vpop.permute.xlu1 %814  ;;  %v3119_v46 = vpop.permute.xlu0 %820 }
 0x10e   : > { %4081 = vst [vmem:[#allocation53_spill] sm:$0xff] %v3117_v45  ;;  %4082 = vst [vmem:[#allocation54_spill] sm:$0xff] %v3119_v46  ;;  %v485_v46 = vld [vmem:[#allocation2 + $0x62] sm:$0xff] }
 0x10f   : > { %1058 = vrot.lane.b32.xlu1 %v2758_v51, %s2514_s23  ;;  %1154 = vrot.lane.b32.xlu0 %v2796_v5, %s2515_s24  ;;  %v1899_v5 = vld [vmem:[%s4020_s1 + $0x20] sm:$0xf] }
 0x110   : > { %2397 = vmatprep.subr.msk.mxu0 %vm1997_vm2, %v1899_v5  ;;  %2455 = vmatprep.subr.msk.mxu1 %vm1997_vm2, %v1899_v5  ;;  %v4114_v45 = vld [vmem:[#allocation37_spill] sm:$0xff] }
 0x111   : > { %v3125_v47 = vpop.permute.xlu1 %818  ;;  %v3127_v48 = vpop.permute.xlu0 %824  ;;  %2398 = vmatpush3.msk.msra.mxu0 %vm1997_vm2, %v1899_v5  ;;  %2460 = vmatpush3.msk.msra.mxu1 %vm1997_vm2, %v1899_v5  ;;  %v1895_v5 = vld [vmem:[%s4020_s1] sm:$0xff] }
 0x112   : > { %4083 = vst [vmem:[#allocation55_spill] sm:$0xff] %v3125_v47  ;;  %4084 = vst [vmem:[#allocation56_spill] sm:$0xff] %v3127_v48  ;;  %v581_v47 = vld [vmem:[#allocation2 + $0x6a] sm:$0xff] }
 0x113   : > { %1184 = vrot.lane.b32.xlu1 %v2825_v18, %s2515_s24  ;;  %1280 = vrot.lane.b32.xlu0 %v2885_v0, %s2516_s25 }
 0x115   : > { %v3133_v49 = vpop.permute.xlu1 %822  ;;  %v3135_v2 = vpop.permute.xlu0 %828 }
 0x116   : > { %4085 = vst [vmem:[#allocation57_spill] sm:$0xff] %v3133_v49  ;;  %4086 = vst [vmem:[#allocation58_spill] sm:$0xff] %v3135_v2 }
 0x117   : > { %1186 = vrot.lane.b32.xlu1 %v2833_v21, %s2515_s24  ;;  %1282 = vrot.lane.b32.xlu0 %v2903_v13, %s2516_s25  ;;  %v1898_v21 = vld [vmem:[%s4020_s1 + $0x18] sm:$0xff] }
 0x118   : > { %2399 = vmatprep.subr.mxu0 %v1898_v21  ;;  %2456 = vmatprep.subr.mxu1 %v1898_v21 }
 0x119   : > { %v3141_v51 = vpop.permute.xlu1 %826  ;;  %v3146_v18 = vpop.permute.xlu0 %896  ;;  %2400 = vmatpush3.msra.mxu0 %v1898_v21  ;;  %2461 = vmatpush3.msra.mxu1 %v1898_v21 }
 0x11a   : > { %4087 = vst [vmem:[#allocation59_spill] sm:$0xff] %v3141_v51  ;;  %2401 = vmatprep.subr.mxu0 %v1897_v32  ;;  %2457 = vmatprep.subr.mxu1 %v1897_v32 }
 0x11b   : > { %1312 = vrot.lane.b32.xlu1 %v2969_v56, %s2516_s25  ;;  %1408 = vrot.lane.b32.xlu0 %v2671_v26, %s2517_s30  ;;  %v1896_v26 = vld [vmem:[%s4020_s1 + $0x8] sm:$0xff] }
 0x11c   : > { %2402 = vmatpush3.msra.mxu0 %v1897_v32  ;;  %2462 = vmatpush3.msra.mxu1 %v1897_v32 }
 0x11d   : > { %v3155_v2 = vpop.permute.xlu1 %830  ;;  %v3160_v39 = vpop.permute.xlu0 %900  ;;  %2403 = vmatprep.subr.mxu0 %v1896_v26  ;;  %2458 = vmatprep.subr.mxu1 %v1896_v26 }
 0x11e   : > { %4088 = vst [vmem:[#allocation60_spill] sm:$0xff] %v3155_v2  ;;  %2404 = vmatpush3.msra.mxu0 %v1896_v26  ;;  %2463 = vmatpush3.msra.mxu1 %v1896_v26 }
 0x11f   : > { %1314 = vrot.lane.b32.xlu1 %v2987_v61, %s2516_s25  ;;  %1060 = vrot.lane.b32.xlu0 %v2754_v50, %s2514_s23 }
 0x120   : > { %2405 = vmatprep.subr.mxu0 %v1895_v5  ;;  %2459 = vmatprep.subr.mxu1 %v1895_v5 }
 0x121   : > { %v3169_v2 = vpop.permute.xlu1 %898  ;;  %v3174_v51 = vpop.permute.xlu0 %904  ;;  %2406 = vmatpush3.msra.mxu0 %v1895_v5  ;;  %2464 = vmatpush3.msra.mxu1 %v1895_v5 }
 0x123   : > { %1440 = vrot.lane.b32.xlu1 %v2754_v50, %s2517_s30  ;;  %1442 = vrot.lane.b32.xlu0 %v2766_v53, %s2517_s30 }
 0x125   : > { %v3180_v27 = vpop.permute.xlu1 %902  ;;  %v3182_v48 = vpop.permute.xlu0 %908 }
 0x127   : > { %1410 = vrot.lane.b32.xlu1 %v2690_v31, %s2517_s30  ;;  %1568 = vrot.lane.b32.xlu0 %v2830_v20, %s2518_s11 }
 0x129   : > { %v3188_v50 = vpop.permute.xlu1 %906  ;;  %v3190_v21 = vpop.permute.xlu0 %912 }
 0x12a   : > { %4089 = vst [vmem:[#allocation61_spill] sm:$0xff] %v3190_v21  ;;  %v582_v21 = vld [vmem:[#allocation2 + $0x7a] sm:$0xff] }
 0x12b   : > { %1536 = vrot.lane.b32.xlu1 %v2793_v4, %s2518_s11  ;;  %1156 = vrot.lane.b32.xlu0 %v2793_v4, %s2515_s24 }
 0x12d   : > { %v3196_v32 = vpop.permute.xlu1 %910  ;;  %v3198_v31 = vpop.permute.xlu0 %916 }
 0x12e   : > { %4090 = vst [vmem:[#allocation62_spill] sm:$0xff] %v3198_v31 }
 0x12f   : > { %1062 = vrot.lane.b32.xlu1 %v2766_v53, %s2514_s23  ;;  %1538 = vrot.lane.b32.xlu0 %v2804_v7, %s2518_s11 }
 0x131   : > { %v3204_v26 = vpop.permute.xlu1 %914  ;;  %v3206_v5 = vpop.permute.xlu0 %920 }
 0x132   : > { %4091 = vst [vmem:[#allocation63_spill] sm:$0xff] %v3204_v26  ;;  %4092 = vst [vmem:[#allocation64_spill] sm:$0xff] %v3206_v5 }
 0x133   : > { %1188 = vrot.lane.b32.xlu1 %v2830_v20, %s2515_s24  ;;  %1158 = vrot.lane.b32.xlu0 %v2804_v7, %s2515_s24  ;;  %v546_v20 = vld [vmem:[#allocation2 + $0x49] sm:$0xff] }
 0x135   : > { %v3212_v4 = vpop.permute.xlu1 %918  ;;  %v3214_v49 = vpop.permute.xlu0 %924 }
 0x136   : > { %4093 = vst [vmem:[#allocation65_spill] sm:$0xff] %v3212_v4  ;;  %4094 = vst [vmem:[#allocation66_spill] sm:$0xff] %v3214_v49 }
 0x137   : > { %1570 = vrot.lane.b32.xlu1 %v2841_v23, %s2518_s11  ;;  %1284 = vrot.lane.b32.xlu0 %v2897_v11, %s2516_s25 }
 0x139   : > { %v3220_v53 = vpop.permute.xlu1 %922  ;;  %v3222_v3 = vpop.permute.xlu0 %928 }
 0x13a   : > { %4095 = vst [vmem:[#allocation67_spill] sm:$0xff] %v3220_v53 }
 0x13b   : > { %1190 = vrot.lane.b32.xlu1 %v2841_v23, %s2515_s24  ;;  %1286 = vrot.lane.b32.xlu0 %v2915_v17, %s2516_s25 }
 0x13d   : > { %v3228_v7 = vpop.permute.xlu1 %926  ;;  %v3230_v49 = vpop.permute.xlu0 %932 }
 0x13e   : > { %4096 = vst [vmem:[#allocation68_spill] sm:$0xff] %v3228_v7 }
 0x13f   : > { %1316 = vrot.lane.b32.xlu1 %v2981_v59, %s2516_s25  ;;  %1412 = vrot.lane.b32.xlu0 %v546_v20, %s2517_s30  ;;  %v547_v59 = vld [vmem:[#allocation2 + $0x51] sm:$0xff] }
 0x141   : > { %v3235_v11 = vpop.permute.xlu1 %930  ;;  %v3237_v53 = vpop.permute.xlu0 %936 }
 0x143   : > { %1318 = vrot.lane.b32.xlu1 %v2999_v1, %s2516_s25  ;;  %1064 = vrot.lane.b32.xlu0 %v2762_v52, %s2514_s23 }
 0x145   : > { %v3243_v23 = vpop.permute.xlu1 %934  ;;  %v3245_v17 = vpop.permute.xlu0 %940 }
 0x147   : > { %1444 = vrot.lane.b32.xlu1 %v2762_v52, %s2517_s30  ;;  %1446 = vrot.lane.b32.xlu0 %v2772_v55, %s2517_s30 }
 0x149   : > { %v3251_v20 = vpop.permute.xlu1 %938  ;;  %v3253_v7 = vpop.permute.xlu0 %944 }
 0x14a   : > { %4097 = vst [vmem:[#allocation69_spill] sm:$0xff] %v3253_v7 }
 0x14b   : > { %1414 = vrot.lane.b32.xlu1 %v547_v59, %s2517_s30  ;;  %1572 = vrot.lane.b32.xlu0 %v2837_v22, %s2518_s11 }
 0x14d   : > { %v3258_v1 = vpop.permute.xlu1 %942  ;;  %v3260_v5 = vpop.permute.xlu0 %948 }
 0x14e   : > { %4098 = vst [vmem:[#allocation70_spill] sm:$0xff] %v3258_v1  ;;  %4099 = vst [vmem:[#allocation71_spill] sm:$0xff] %v3260_v5 }
 0x14f   : > { %1540 = vrot.lane.b32.xlu1 %v2800_v6, %s2518_s11  ;;  %1160 = vrot.lane.b32.xlu0 %v2800_v6, %s2515_s24 }
 0x151   : > { %v3266_v52 = vpop.permute.xlu1 %946  ;;  %v3268_v4 = vpop.permute.xlu0 %952 }
 0x152   : > { %4100 = vst [vmem:[#allocation72_spill] sm:$0xff] %v3266_v52  ;;  %4101 = vst [vmem:[#allocation73_spill] sm:$0xff] %v3268_v4 }
 0x153   : > { %1066 = vrot.lane.b32.xlu1 %v2772_v55, %s2514_s23  ;;  %1542 = vrot.lane.b32.xlu0 %v2812_v9, %s2518_s11 }
 0x155   : > { %v3274_v59 = vpop.permute.xlu1 %950  ;;  %v3276_v31 = vpop.permute.xlu0 %956 }
 0x156   : > { %4102 = vst [vmem:[#allocation74_spill] sm:$0xff] %v3274_v59  ;;  %4103 = vst [vmem:[#allocation75_spill] sm:$0xff] %v3276_v31 }
 0x157   : > { %1192 = vrot.lane.b32.xlu1 %v2837_v22, %s2515_s24  ;;  %1162 = vrot.lane.b32.xlu0 %v2812_v9, %s2515_s24  ;;  %v548_v22 = vld [vmem:[#allocation2 + $0x61] sm:$0xff] }
 0x159   : > { %v3282_v6 = vpop.permute.xlu1 %954  ;;  %v3284_v58 = vpop.permute.xlu0 %1024 }
 0x15a   : > { %4104 = vst [vmem:[#allocation76_spill] sm:$0xff] %v3282_v6 }
 0x15b   : > { %1574 = vrot.lane.b32.xlu1 %v2849_v28, %s2518_s11  ;;  %1288 = vrot.lane.b32.xlu0 %v2909_v15, %s2516_s25 }
 0x15d   : > { %v3290_v55 = vpop.permute.xlu1 %958  ;;  %v3292_v4 = vpop.permute.xlu0 %1028 }
 0x15e   : > { %4105 = vst [vmem:[#allocation77_spill] sm:$0xff] %v3290_v55  ;;  %v469_v55 = vld [vmem:[#allocation2 + $0x121] sm:$0xff] }
 0x15f   : > { %1194 = vrot.lane.b32.xlu1 %v2849_v28, %s2515_s24  ;;  %1290 = vrot.lane.b32.xlu0 %v2927_v37, %s2516_s25  ;;  %v565_v37 = vld [vmem:[#allocation2 + $0x129] sm:$0xff] }
 0x161   : > { %v3298_v9 = vpop.permute.xlu1 %1026  ;;  %v3300_v31 = vpop.permute.xlu0 %1032 }
 0x163   : > { %1320 = vrot.lane.b32.xlu1 %v2993_v63, %s2516_s25  ;;  %1416 = vrot.lane.b32.xlu0 %v548_v22, %s2517_s30  ;;  %v549_v63 = vld [vmem:[#allocation2 + $0x69] sm:$0xff] }
 0x165   : > { %v3305_v15 = vpop.permute.xlu1 %1030  ;;  %v3307_v6 = vpop.permute.xlu0 %1036 }
 0x167   : > { %1322 = vrot.lane.b32.xlu1 %v3011_v60, %s2516_s25  ;;  %1068 = vrot.lane.b32.xlu0 %v469_v55, %s2514_s23 }
 0x169   : > { %v3312_v28 = vpop.permute.xlu1 %1034  ;;  %v3314_v59 = vpop.permute.xlu0 %1040 }
 0x16a   : > { %4106 = vst [vmem:[#allocation78_spill] sm:$0xff] %v3314_v59  ;;  %v319_v59 = vld [vmem:[#allocation2] sm:$0xff] }
 0x16b   : > { %1448 = vrot.lane.b32.xlu1 %v469_v55, %s2517_s30  ;;  %1450 = vrot.lane.b32.xlu0 %v565_v37, %s2517_s30  ;;  %v1632_v44 = vsel %vm230_vm0, %v319_v59, %v2853_v33 }
 0x16d   : > { %v3318_v22 = vpop.permute.xlu1 %1038  ;;  %v3320_v5 = vpop.permute.xlu0 %1044 }
 0x16e   : > { %4107 = vst [vmem:[#allocation79_spill] sm:$0xff] %v3320_v5 }
 0x16f   : > { %1418 = vrot.lane.b32.xlu1 %v549_v63, %s2517_s30  ;;  %1576 = vrot.lane.b32.xlu0 %v2845_v24, %s2518_s11 }
 0x171   : > { %v3325_v60 = vpop.permute.xlu1 %1042  ;;  %v3327_v52 = vpop.permute.xlu0 %1048 }
 0x172   : > { %4108 = vst [vmem:[#allocation80_spill] sm:$0xff] %v3325_v60  ;;  %4109 = vst [vmem:[#allocation81_spill] sm:$0xff] %v3327_v52  ;;  %v551_v60 = vld [vmem:[#allocation2 + $0x81] sm:$0xff] }
 0x173   : > { %1544 = vrot.lane.b32.xlu1 %v2808_v8, %s2518_s11  ;;  %1164 = vrot.lane.b32.xlu0 %v485_v46, %s2515_s24 }
 0x175   : > { %v3332_v55 = vpop.permute.xlu1 %1046  ;;  %v3334_v26 = vpop.permute.xlu0 %1052 }
 0x176   : > { %4110 = vst [vmem:[#allocation82_spill] sm:$0xff] %v3332_v55  ;;  %4111 = vst [vmem:[#allocation83_spill] sm:$0xff] %v3334_v26 }
 0x177   : > { %1070 = vrot.lane.b32.xlu1 %v565_v37, %s2514_s23  ;;  %1546 = vrot.lane.b32.xlu0 %v581_v47, %s2518_s11 }
 0x179   : > { %v3338_v63 = vpop.permute.xlu1 %1050  ;;  %v1057_v5 = vpop.permute.xlu0 %1056 }
 0x17a   : > { %4112 = vst [vmem:[#allocation84_spill] sm:$0xff] %v3338_v63 }
 0x17b   : > { %1196 = vrot.lane.b32.xlu1 %v2845_v24, %s2515_s24  ;;  %1166 = vrot.lane.b32.xlu0 %v581_v47, %s2515_s24  ;;  %v550_v47 = vld [vmem:[#allocation2 + $0x79] sm:$0xff] }
 0x17d   : > { %v3343_v8 = vpop.permute.xlu1 %1054  ;;  %v1153_v46 = vpop.permute.xlu0 %1152 }
 0x17e   : > { %4113 = vst [vmem:[#allocation85_spill] sm:$0xff] %v3343_v8 }
 0x17f   : > { %1578 = vrot.lane.b32.xlu1 %v2857_v34, %s2518_s11  ;;  %1292 = vrot.lane.b32.xlu0 %v2921_v29, %s2516_s25  ;;  %v471_v29 = vld [vmem:[#allocation2 + $0x139] sm:$0xff] }
 0x181   : > { %v3349_v37 = vpop.permute.xlu1 %1058  ;;  %v3351_v26 = vpop.permute.xlu0 %1154 }
 0x183   : > { %1198 = vrot.lane.b32.xlu1 %v2857_v34, %s2515_s24  ;;  %1294 = vrot.lane.b32.xlu0 %v2936_v19, %s2516_s25  ;;  %v567_v19 = vld [vmem:[#allocation2 + $0x141] sm:$0xff] }
 0x185   : > { %v1185_v24 = vpop.permute.xlu1 %1184  ;;  %v1281_v8 = vpop.permute.xlu0 %1280 }
 0x187   : > { %1324 = vrot.lane.b32.xlu1 %v3005_v62, %s2516_s25  ;;  %1420 = vrot.lane.b32.xlu0 %v550_v47, %s2517_s30  ;;  %v598_v47 = vld [vmem:[#allocation2 + $0x13a] sm:$0xff] }
 0x189   : > { %v3360_v63 = vpop.permute.xlu1 %1186  ;;  %v3362_v52 = vpop.permute.xlu0 %1282 }
 0x18b   : > { %1326 = vrot.lane.b32.xlu1 %v3023_v35, %s2516_s25  ;;  %1072 = vrot.lane.b32.xlu0 %v471_v29, %s2514_s23  ;;  %v1648_v35 = vsel %vm230_vm0, %v2948_v57, %v2929_v54  ;;  %v1665_v54 = vsel %vm1664_vm3, %v1632_v44, %v4114_v45  ;;  %v583_v44 = vld [vmem:[#allocation2 + $0x82] sm:$0xff] }
 0x18c   : > { %v1681_v7 = vsel %vm1664_vm3, %v1648_v35, %v3079_v30  ;;  %v1698_v30 = vsel %vm1697_vm4, %v1665_v54, %v3146_v18 }
 0x18d   : > { %v1313_v34 = vpop.permute.xlu1 %1312  ;;  %v1409_v55 = vpop.permute.xlu0 %1408 }
 0x18f   : > { %1452 = vrot.lane.b32.xlu1 %v471_v29, %s2517_s30  ;;  %1454 = vrot.lane.b32.xlu0 %v567_v19, %s2517_s30 }
 0x191   : > { %v3369_v62 = vpop.permute.xlu1 %1314  ;;  %v3371_v25 = vpop.permute.xlu0 %1060 }
 0x193   : > { %1422 = vrot.lane.b32.xlu1 %v551_v60, %s2517_s30  ;;  %1580 = vrot.lane.b32.xlu0 %v598_v47, %s2518_s11  ;;  %v1714_v60 = vsel %vm1697_vm4, %v1681_v7, %v3222_v3  ;;  %v320_v3 = vld [vmem:[#allocation2 + $0x8] sm:$0xff]  ;;  %v1731_v7 = vsel %vm1730_vm5, %v1698_v30, %v3284_v58 }
 0x194   : > { %v1747_v57 = vsel %vm1730_vm5, %v1714_v60, %v1057_v5  ;;  %v1764_v45 = vsel %vm1763_vm6, %v1731_v7, %v1153_v46  ;;  %v4115_v60 = vld [vmem:[#allocation3_spill] sm:$0xff]  ;;  %v4116_v46 = vld [vmem:[#allocation41_spill] sm:$0xff] }
 0x195   : > { %v1441_v29 = vpop.permute.xlu1 %1440  ;;  %v1443_v1 = vpop.permute.xlu0 %1442  ;;  %v1780_v35 = vsel %vm1763_vm6, %v1747_v57, %v1185_v24  ;;  %v1633_v54 = vsel %vm230_vm0, %v320_v3, %v4115_v60  ;;  %v599_v30 = vld [vmem:[#allocation2 + $0x142] sm:$0xff]  ;;  %v520_v7 = vld [vmem:[#allocation2 + $0x90] sm:$0xff] }
 0x196   : > { %v1813_v59 = vsel %vm1796_vm7, %v1780_v35, %v1313_v34 }
 0x197   : > { %1548 = vrot.lane.b32.xlu1 %v582_v21, %s2518_s11  ;;  %1168 = vrot.lane.b32.xlu0 %v582_v21, %s2515_s24  ;;  %v1846_v18 = vsel %vm1829_vm9, %v1813_v59, %v1441_v29  ;;  %v1797_v21 = vsel %vm1796_vm7, %v1764_v45, %v1281_v8  ;;  %v1666_v29 = vsel %vm1664_vm3, %v1633_v54, %v4116_v46  ;;  %v4117_v59 = vld [vmem:[#allocation21_spill] sm:$0xff]  ;;  %v4118_v45 = vld [vmem:[#allocation27_spill] sm:$0xff]  ;;  %v4119_v46 = vld [vmem:[#allocation38_spill] sm:$0xff] }
 0x198   : > { %v1830_v58 = vsel %vm1829_vm9, %v1797_v21, %v1409_v55  ;;  %v1699_v8 = vsel %vm1697_vm4, %v1666_v29, %v3169_v2  ;;  %v473_v29 = vld [vmem:[#allocation2 + $0x151] sm:$0xff] }
 0x199   : > { %v1411_v33 = vpop.permute.xlu1 %1410  ;;  %v1569_v5 = vpop.permute.xlu0 %1568  ;;  %v1732_v55 = vsel %vm1730_vm5, %v1699_v8, %v3298_v9 }
 0x19a   : > { %v1879_v24 = vsel %vm1862_vm8, %v1846_v18, %v1569_v5  ;;  %v1765_v35 = vsel %vm1763_vm6, %v1732_v55, %v3351_v26  ;;  %v553_v55 = vld [vmem:[#allocation2 + $0x99] sm:$0xff] }
 0x19b   : > { %1074 = vrot.lane.b32.xlu1 %v567_v19, %s2514_s23  ;;  %1550 = vrot.lane.b32.xlu0 %v583_v44, %s2518_s11  ;;  %v1798_v2 = vsel %vm1796_vm7, %v1765_v35, %v3362_v52  ;;  %v600_v35 = vld [vmem:[#allocation2 + $0x152] sm:$0xff] }
 0x19c   : > { %2431 = vmatprep.mubr.msk.f32.mxu1 %vm1900_vm10, %v1879_v24  ;;  %v1831_v18 = vsel %vm1829_vm9, %v1798_v2, %v1411_v33  ;;  %v521_v33 = vld [vmem:[#allocation2 + $0x98] sm:$0xff] }
 0x19d   : > { %v1537_v34 = vpop.permute.xlu1 %1536  ;;  %v3410_v19 = vpop.permute.xlu0 %1156 }
 0x19e   : > { %v1863_v57 = vsel %vm1862_vm8, %v1830_v58, %v1537_v34  ;;  %v552_v34 = vld [vmem:[#allocation2 + $0x91] sm:$0xff] }
 0x19f   : > { %1200 = vrot.lane.b32.xlu1 %v598_v47, %s2515_s24  ;;  %2407 = vmatprep.mubr.msk.f32.mxu0 %vm1900_vm10, %v1863_v57  ;;  %v1649_v47 = vsel %vm230_vm0, %v4118_v45, %v4117_v59  ;;  %v569_v57 = vld [vmem:[#allocation2 + $0x159] sm:$0xff] }
 0x1a0   : > { %1170 = vrot.lane.b32.xlu0 %v583_v44, %s2515_s24  ;;  %v1682_v26 = vsel %vm1664_vm3, %v1649_v47, %v3093_v38  ;;  %v4120_v59 = vld [vmem:[#allocation20_spill] sm:$0xff]  ;;  %v4121_v45 = vld [vmem:[#allocation25_spill] sm:$0xff] }
 0x1a1   : > { %v3419_v3 = vpop.permute.xlu1 %1062  ;;  %v1539_v5 = vpop.permute.xlu0 %1538  ;;  %v1715_v44 = vsel %vm1697_vm4, %v1682_v26, %v3235_v11  ;;  %v4123_v26 = vld [vmem:[#allocation8_spill] sm:$0xff] }
 0x1a2   : > { %v1864_v9 = vsel %vm1862_vm8, %v1831_v18, %v1539_v5  ;;  %v1748_v21 = vsel %vm1730_vm5, %v1715_v44, %v3349_v37  ;;  %v4122_v5 = vld [vmem:[#allocation4_spill] sm:$0xff] }
 0x1a3   : > { %1582 = vrot.lane.b32.xlu1 %v599_v30, %s2518_s11  ;;  %2408 = vmatmul.mubr.msk.f32.vlgmr.msra.gmra.mxu0 %vm1900_vm10, %v1864_v9  ;;  %v1781_v24 = vsel %vm1763_vm6, %v1748_v21, %v3360_v63  ;;  %v1634_v9 = vsel %vm230_vm0, %v4123_v26, %v4122_v5 }
 0x1a4   : > { %1296 = vrot.lane.b32.xlu0 %v520_v7, %s2516_s25  ;;  %v1814_v38 = vsel %vm1796_vm7, %v1781_v24, %v3369_v62  ;;  %v584_v7 = vld [vmem:[#allocation2 + $0x92] sm:$0xff] }
 0x1a5   : > { %v1189_v52 = vpop.permute.xlu1 %1188  ;;  %v3439_v60 = vpop.permute.xlu0 %1158  ;;  %v1847_v11 = vsel %vm1829_vm9, %v1814_v38, %v1443_v1 }
 0x1a7   : > { %1202 = vrot.lane.b32.xlu1 %v599_v30, %s2515_s24 }
 0x1a8   : > { %1298 = vrot.lane.b32.xlu0 %v521_v33, %s2516_s25  ;;  %v4124_v33 = vld [vmem:[#allocation40_spill] sm:$0xff] }
 0x1a9   : > { %v1571_v54 = vpop.permute.xlu1 %1570  ;;  %v1285_v37 = vpop.permute.xlu0 %1284  ;;  %v1667_v24 = vsel %vm1664_vm3, %v1634_v9, %v4124_v33  ;;  %v4128_v9 = vld [vmem:[#allocation23_spill] sm:$0xff] }
 0x1aa   : > { %v1880_v58 = vsel %vm1862_vm8, %v1847_v11, %v1571_v54  ;;  %v1700_v11 = vsel %vm1697_vm4, %v1667_v24, %v3160_v39 }
 0x1ab   : > { %1328 = vrot.lane.b32.xlu1 %v4119_v46, %s2516_s25  ;;  %2432 = vmatmul.mubr.msk.f32.vlgmr.msra.gmra.mxu1 %vm1900_vm10, %v1880_v58 }
 0x1ac   : > { %1424 = vrot.lane.b32.xlu0 %v552_v34, %s2517_s30  ;;  %v585_v34 = vld [vmem:[#allocation2 + $0x9a] sm:$0xff] }
 0x1ad   : > { %v3451_v63 = vpop.permute.xlu1 %1190  ;;  %v1287_v62 = vpop.permute.xlu0 %1286 }
 0x1af   : > { %1330 = vrot.lane.b32.xlu1 %v3032_v16, %s2516_s25  ;;  %v1650_v16 = vsel %vm230_vm0, %v4121_v45, %v4120_v59 }
 0x1b0   : > { %1076 = vrot.lane.b32.xlu0 %v473_v29, %s2514_s23  ;;  %v1683_v18 = vsel %vm1664_vm3, %v1650_v16, %v3087_v14 }
 0x1b1   : > { %v1317_v1 = vpop.permute.xlu1 %1316  ;;  %v1413_v8 = vpop.permute.xlu0 %1412  ;;  %v1716_v44 = vsel %vm1697_vm4, %v1683_v18, %v3230_v49  ;;  %v1733_v49 = vsel %vm1730_vm5, %v1700_v11, %v3292_v4 }
 0x1b2   : > { %v1749_v38 = vsel %vm1730_vm5, %v1716_v44, %v3371_v25  ;;  %v1766_v46 = vsel %vm1763_vm6, %v1733_v49, %v3410_v19  ;;  %v4129_v44 = vld [vmem:[#allocation30_spill] sm:$0xff] }
 0x1b3   : > { %1456 = vrot.lane.b32.xlu1 %v473_v29, %s2517_s30  ;;  %v1782_v14 = vsel %vm1763_vm6, %v1749_v38, %v1189_v52  ;;  %v1799_v39 = vsel %vm1796_vm7, %v1766_v46, %v1285_v37 }
 0x1b4   : > { %1458 = vrot.lane.b32.xlu0 %v569_v57, %s2517_s30  ;;  %v1815_v58 = vsel %vm1796_vm7, %v1782_v14, %v1317_v1  ;;  %v1832_v4 = vsel %vm1829_vm9, %v1799_v39, %v1413_v8  ;;  %v4127_v1 = vld [vmem:[#allocation43_spill] sm:$0xff] }
 0x1b5   : > { %v1319_v30 = vpop.permute.xlu1 %1318  ;;  %v3458_v2 = vpop.permute.xlu0 %1064  ;;  %v523_v14 = vld [vmem:[#allocation2 + $0xb0] sm:$0xff] }
 0x1b7   : > { %1426 = vrot.lane.b32.xlu1 %v553_v55, %s2517_s30  ;;  %v4125_v55 = vld [vmem:[#allocation6_spill] sm:$0xff] }
 0x1b8   : > { %1584 = vrot.lane.b32.xlu0 %v600_v35, %s2518_s11 }
 0x1b9   : > { %v1445_v47 = vpop.permute.xlu1 %1444  ;;  %v1447_v21 = vpop.permute.xlu0 %1446 }
 0x1ba   : > { %v1848_v29 = vsel %vm1829_vm9, %v1815_v58, %v1445_v47  ;;  %v601_v47 = vld [vmem:[#allocation2 + $0x15a] sm:$0xff]  ;;  %v538_v58 = vld [vmem:[#allocation2 + $0x168] sm:$0xff] }
 0x1bb   : > { %1552 = vrot.lane.b32.xlu1 %v584_v7, %s2518_s11 }
 0x1bc   : > { %1172 = vrot.lane.b32.xlu0 %v584_v7, %s2515_s24  ;;  %v4126_v7 = vld [vmem:[#allocation12_spill] sm:$0xff] }
 0x1bd   : > { %v1415_v54 = vpop.permute.xlu1 %1414  ;;  %v1573_v25 = vpop.permute.xlu0 %1572  ;;  %v1635_v59 = vsel %vm230_vm0, %v4126_v7, %v4125_v55  ;;  %v555_v7 = vld [vmem:[#allocation2 + $0xb1] sm:$0xff] }
 0x1be   : > { %v1881_v52 = vsel %vm1862_vm8, %v1848_v29, %v1573_v25  ;;  %v1668_v45 = vsel %vm1664_vm3, %v1635_v59, %v4127_v1  ;;  %v554_v29 = vld [vmem:[#allocation2 + $0xa9] sm:$0xff] }
 0x1bf   : > { %1078 = vrot.lane.b32.xlu1 %v569_v57, %s2514_s23  ;;  %2434 = vmatprep.mubr.msk.f32.mxu1 %vm1900_vm10, %v1881_v52  ;;  %v1701_v37 = vsel %vm1697_vm4, %v1668_v45, %v3180_v27  ;;  %v522_v27 = vld [vmem:[#allocation2 + $0xa8] sm:$0xff]  ;;  %v571_v52 = vld [vmem:[#allocation2 + $0x171] sm:$0xff] }
 0x1c0   : > { %1554 = vrot.lane.b32.xlu0 %v585_v34, %s2518_s11  ;;  %v1734_v8 = vsel %vm1730_vm5, %v1701_v37, %v3305_v15  ;;  %v586_v1 = vld [vmem:[#allocation2 + $0xaa] sm:$0xff] }
 0x1c1   : > { %v1541_v19 = vpop.permute.xlu1 %1540  ;;  %v3501_v16 = vpop.permute.xlu0 %1160  ;;  %v1767_v18 = vsel %vm1763_vm6, %v1734_v8, %v3439_v60  ;;  %v4130_v45 = vld [vmem:[#allocation22_spill] sm:$0xff] }
 0x1c2   : > { %v1865_v57 = vsel %vm1862_vm8, %v1832_v4, %v1541_v19  ;;  %v1800_v26 = vsel %vm1796_vm7, %v1767_v18, %v1287_v62  ;;  %v602_v4 = vld [vmem:[#allocation2 + $0x16a] sm:$0xff] }
 0x1c3   : > { %1204 = vrot.lane.b32.xlu1 %v600_v35, %s2515_s24  ;;  %2410 = vmatprep.mubr.msk.f32.mxu0 %vm1900_vm10, %v1865_v57  ;;  %v1651_v35 = vsel %vm230_vm0, %v4129_v44, %v4128_v9  ;;  %v1833_v33 = vsel %vm1829_vm9, %v1800_v26, %v1415_v54  ;;  %v1652_v57 = vsel %vm230_vm0, %v2969_v56, %v4130_v45  ;;  %v4132_v9 = vld [vmem:[#allocation42_spill] sm:$0xff] }
 0x1c4   : > { %1174 = vrot.lane.b32.xlu0 %v585_v34, %s2515_s24  ;;  %v1684_v15 = vsel %vm1664_vm3, %v1651_v35, %v3101_v41  ;;  %v1685_v8 = vsel %vm1664_vm3, %v1652_v57, %v3095_v40  ;;  %v556_v57 = vld [vmem:[#allocation2 + $0xc1] sm:$0xff] }
 0x1c5   : > { %v3510_v5 = vpop.permute.xlu1 %1066  ;;  %v1543_v24 = vpop.permute.xlu0 %1542  ;;  %v1717_v38 = vsel %vm1697_vm4, %v1684_v15, %v3243_v23  ;;  %v1718_v26 = vsel %vm1697_vm4, %v1685_v8, %v3237_v53 }
 0x1c6   : > { %v1866_v60 = vsel %vm1862_vm8, %v1833_v33, %v1543_v24  ;;  %v1750_v11 = vsel %vm1730_vm5, %v1717_v38, %v3419_v3  ;;  %v1751_v56 = vsel %vm1730_vm5, %v1718_v26, %v3458_v2  ;;  %v587_v24 = vld [vmem:[#allocation2 + $0xb2] sm:$0xff] }
 0x1c7   : > { %1586 = vrot.lane.b32.xlu1 %v601_v47, %s2518_s11  ;;  %2411 = vmatmul.mubr.msk.f32.gmra.mxu0 %vm1900_vm10, %v1866_v60  ;;  %v1783_v54 = vsel %vm1763_vm6, %v1750_v11, %v3451_v63  ;;  %v539_v63 = vld [vmem:[#allocation2 + $0x170] sm:$0xff] }
 0x1c8   : > { %1300 = vrot.lane.b32.xlu0 %v522_v27, %s2516_s25  ;;  %v1816_v41 = vsel %vm1796_vm7, %v1783_v54, %v1319_v30  ;;  %v475_v30 = vld [vmem:[#allocation2 + $0x169] sm:$0xff] }
 0x1c9   : > { %v1193_v62 = vpop.permute.xlu1 %1192  ;;  %v3529_v49 = vpop.permute.xlu0 %1162  ;;  %v1849_v23 = vsel %vm1829_vm9, %v1816_v41, %v1447_v21 }
 0x1ca   : > { %v1784_v40 = vsel %vm1763_vm6, %v1751_v56, %v1193_v62  ;;  %v4133_v62 = vld [vmem:[#allocation9_spill] sm:$0xff] }
 0x1cb   : > { %1206 = vrot.lane.b32.xlu1 %v601_v47, %s2515_s24  ;;  %v4131_v47 = vld [vmem:[#allocation5_spill] sm:$0xff]  ;;  %v1637_v11 = vsel %vm230_vm0, %v2903_v13, %v4133_v62 }
 0x1cc   : > { %1302 = vrot.lane.b32.xlu0 %v523_v14, %s2516_s25  ;;  %v1636_v18 = vsel %vm230_vm0, %v2885_v0, %v4131_v47  ;;  %v1670_v14 = vsel %vm1664_vm3, %v1637_v11, %v3046_v10 }
 0x1cd   : > { %v1575_v34 = vpop.permute.xlu1 %1574  ;;  %v1289_v3 = vpop.permute.xlu0 %1288  ;;  %v1669_v44 = vsel %vm1664_vm3, %v1636_v18, %v4132_v9  ;;  %v1703_v41 = vsel %vm1697_vm4, %v1670_v14, %v3188_v50  ;;  %v524_v50 = vld [vmem:[#allocation2 + $0xc0] sm:$0xff]  ;;  %v573_v18 = vld [vmem:[#allocation2 + $0x189] sm:$0xff] }
 0x1ce   : > { %v1882_v46 = vsel %vm1862_vm8, %v1849_v23, %v1575_v34  ;;  %v1702_v35 = vsel %vm1697_vm4, %v1669_v44, %v3174_v51  ;;  %v1736_v13 = vsel %vm1730_vm5, %v1703_v41, %v3312_v28  ;;  %v603_v23 = vld [vmem:[#allocation2 + $0x172] sm:$0xff]  ;;  %v604_v44 = vld [vmem:[#allocation2 + $0x182] sm:$0xff] }
 0x1cf   : > { %1332 = vrot.lane.b32.xlu1 %v538_v58, %s2516_s25  ;;  %2435 = vmatmul.mubr.msk.f32.gmra.mxu1 %vm1900_vm10, %v1882_v46  ;;  %v1735_v53 = vsel %vm1730_vm5, %v1702_v35, %v3300_v31  ;;  %v1769_v34 = vsel %vm1763_vm6, %v1736_v13, %v3529_v49  ;;  %v588_v35 = vld [vmem:[#allocation2 + $0xc2] sm:$0xff] }
 0x1d0   : > { %1428 = vrot.lane.b32.xlu0 %v554_v29, %s2517_s30  ;;  %v1768_v15 = vsel %vm1763_vm6, %v1735_v53, %v3501_v16  ;;  %v4134_v29 = vld [vmem:[#allocation26_spill] sm:$0xff] }
 0x1d1   : > { %v3539_v25 = vpop.permute.xlu1 %1194  ;;  %v1291_v39 = vpop.permute.xlu0 %1290  ;;  %v1801_v51 = vsel %vm1796_vm7, %v1768_v15, %v1289_v3  ;;  %v1653_v3 = vsel %vm230_vm0, %v2987_v61, %v4134_v29  ;;  %v2483_v15 = vld [vmem:[#allocation2 + $0x48] sm:$0xff] }
 0x1d2   : > { %v1802_v46 = vsel %vm1796_vm7, %v1769_v34, %v1291_v39  ;;  %v1686_v28 = vsel %vm1664_vm3, %v1653_v3, %v3109_v43  ;;  %v4137_v34 = vld [vmem:[#allocation11_spill] sm:$0xff] }
 0x1d3   : > { %1334 = vrot.lane.b32.xlu1 %v539_v63, %s2516_s25 }
 0x1d4   : > { %1080 = vrot.lane.b32.xlu0 %v475_v30, %s2514_s23 }
 0x1d5   : > { %v1321_v21 = vpop.permute.xlu1 %1320  ;;  %v1417_v55 = vpop.permute.xlu0 %1416 }
 0x1d6   : > { %v1817_v33 = vsel %vm1796_vm7, %v1784_v40, %v1321_v21  ;;  %v1834_v31 = vsel %vm1829_vm9, %v1801_v51, %v1417_v55  ;;  %v1719_v21 = vsel %vm1697_vm4, %v1686_v28, %v3251_v20  ;;  %v2482_v40 = vld [vmem:[#allocation2 + $0x108] sm:$0xff] }
 0x1d7   : > { %1460 = vrot.lane.b32.xlu1 %v475_v30, %s2517_s30  ;;  %v1752_v61 = vsel %vm1730_vm5, %v1719_v21, %v3510_v5  ;;  %v605_v28 = vld [vmem:[#allocation2 + $0x18a] sm:$0xff] }
 0x1d8   : > { %1462 = vrot.lane.b32.xlu0 %v571_v52, %s2517_s30  ;;  %v1785_v55 = vsel %vm1763_vm6, %v1752_v61, %v3539_v25  ;;  %v541_v25 = vld [vmem:[#allocation2 + $0x188] sm:$0xff]  ;;  %v4138_v61 = vld [vmem:[#allocation29_spill] sm:$0xff] }
 0x1d9   : > { %v1323_v59 = vpop.permute.xlu1 %1322  ;;  %v3545_v19 = vpop.permute.xlu0 %1068 }
 0x1da   : > { %v1818_v43 = vsel %vm1796_vm7, %v1785_v55, %v1323_v59  ;;  %v477_v59 = vld [vmem:[#allocation2 + $0x181] sm:$0xff] }
 0x1db   : > { %1430 = vrot.lane.b32.xlu1 %v555_v7, %s2517_s30 }
 0x1dc   : > { %1588 = vrot.lane.b32.xlu0 %v602_v4, %s2518_s11 }
 0x1dd   : > { %v1449_v37 = vpop.permute.xlu1 %1448  ;;  %v1451_v27 = vpop.permute.xlu0 %1450 }
 0x1de   : > { %v1850_v60 = vsel %vm1829_vm9, %v1817_v33, %v1449_v37  ;;  %v1851_v20 = vsel %vm1829_vm9, %v1818_v43, %v1451_v27  ;;  %v557_v27 = vld [vmem:[#allocation2 + $0xc9] sm:$0xff] }
 0x1df   : > { %1556 = vrot.lane.b32.xlu1 %v586_v1, %s2518_s11 }
 0x1e0   : > { %1176 = vrot.lane.b32.xlu0 %v586_v1, %s2515_s24 }
 0x1e1   : > { %v1419_v0 = vpop.permute.xlu1 %1418  ;;  %v1577_v2 = vpop.permute.xlu0 %1576 }
 0x1e2   : > { %v1883_v38 = vsel %vm1862_vm8, %v1850_v60, %v1577_v2  ;;  %v1835_v63 = vsel %vm1829_vm9, %v1802_v46, %v1419_v0  ;;  %v4135_v0 = vld [vmem:[#allocation24_spill] sm:$0xff]  ;;  %v4136_v60 = vld [vmem:[#allocation7_spill] sm:$0xff] }
 0x1e3   : > { %1082 = vrot.lane.b32.xlu1 %v571_v52, %s2514_s23  ;;  %2437 = vmatprep.mubr.msk.f32.mxu1 %vm1900_vm10, %v1883_v38  ;;  %v525_v52 = vld [vmem:[#allocation2 + $0xc8] sm:$0xff]  ;;  %v1654_v53 = vsel %vm230_vm0, %v2482_v40, %v4135_v0  ;;  %v1638_v2 = vsel %vm230_vm0, %v2483_v15, %v4136_v60  ;;  %v574_v0 = vld [vmem:[#allocation2 + $0x199] sm:$0xff] }
 0x1e4   : > { %1558 = vrot.lane.b32.xlu0 %v587_v24, %s2518_s11  ;;  %v1671_v62 = vsel %vm1664_vm3, %v1638_v2, %v3041_v12  ;;  %v575_v15 = vld [vmem:[#allocation2 + $0x1a1] sm:$0xff] }
 0x1e5   : > { %v1545_v16 = vpop.permute.xlu1 %1544  ;;  %v3588_v58 = vpop.permute.xlu0 %1164  ;;  %v591_v2 = vld [vmem:[#allocation2 + $0xe2] sm:$0xff] }
 0x1e6   : > { %v1867_v54 = vsel %vm1862_vm8, %v1834_v31, %v1545_v16  ;;  %v1704_v31 = vsel %vm1697_vm4, %v1671_v62, %v3182_v48  ;;  %v2486_v62 = vld [vmem:[#allocation2 + $0x120] sm:$0xff] }
 0x1e7   : > { %1208 = vrot.lane.b32.xlu1 %v602_v4, %s2515_s24  ;;  %2413 = vmatprep.mubr.msk.f32.mxu0 %vm1900_vm10, %v1867_v54  ;;  %v540_v4 = vld [vmem:[#allocation2 + $0x180] sm:$0xff]  ;;  %v589_v54 = vld [vmem:[#allocation2 + $0xca] sm:$0xff] }
 0x1e8   : > { %1178 = vrot.lane.b32.xlu0 %v587_v24, %s2515_s24  ;;  %v1687_v24 = vsel %vm1664_vm3, %v1654_v53, %v3103_v42 }
 0x1e9   : > { %v3597_v10 = vpop.permute.xlu1 %1070  ;;  %v1547_v30 = vpop.permute.xlu0 %1546  ;;  %v1720_v51 = vsel %vm1697_vm4, %v1687_v24, %v3245_v17  ;;  %v1737_v17 = vsel %vm1730_vm5, %v1704_v31, %v3307_v6 }
 0x1ea   : > { %v1868_v49 = vsel %vm1862_vm8, %v1835_v63, %v1547_v30  ;;  %v1753_v11 = vsel %vm1730_vm5, %v1720_v51, %v3545_v19  ;;  %v1770_v12 = vsel %vm1763_vm6, %v1737_v17, %v3588_v58 }
 0x1eb   : > { %1590 = vrot.lane.b32.xlu1 %v603_v23, %s2518_s11  ;;  %2414 = vmatmul.mubr.msk.f32.gmra.mxu0 %vm1900_vm10, %v1868_v49 }
 0x1ec   : > { %1304 = vrot.lane.b32.xlu0 %v524_v50, %s2516_s25 }
 0x1ed   : > { %v1197_v39 = vpop.permute.xlu1 %1196  ;;  %v3616_v7 = vpop.permute.xlu0 %1166 }
 0x1ee   : > { %v1786_v42 = vsel %vm1763_vm6, %v1753_v11, %v1197_v39  ;;  %v2485_v39 = vld [vmem:[#allocation2 + $0x110] sm:$0xff]  ;;  %v4141_v11 = vld [vmem:[#allocation28_spill] sm:$0xff] }
 0x1ef   : > { %1210 = vrot.lane.b32.xlu1 %v603_v23, %s2515_s24  ;;  %v2484_v23 = vld [vmem:[#allocation2 + $0x50] sm:$0xff]  ;;  %v1656_v31 = vsel %vm230_vm0, %v2486_v62, %v4141_v11 }
 0x1f0   : > { %1306 = vrot.lane.b32.xlu0 %v525_v52, %s2516_s25  ;;  %v1639_v46 = vsel %vm230_vm0, %v2484_v23, %v4137_v34  ;;  %v1655_v52 = vsel %vm230_vm0, %v2485_v39, %v4138_v61  ;;  %v2488_v61 = vld [vmem:[#allocation2 + $0x68] sm:$0xff] }
 0x1f1   : > { %v1579_v1 = vpop.permute.xlu1 %1578  ;;  %v1293_v5 = vpop.permute.xlu0 %1292  ;;  %v1672_v50 = vsel %vm1664_vm3, %v1639_v46, %v3053_v36  ;;  %v607_v46 = vld [vmem:[#allocation2 + $0x1a2] sm:$0xff] }
 0x1f2   : > { %v1884_v45 = vsel %vm1862_vm8, %v1851_v20, %v1579_v1  ;;  %v1803_v48 = vsel %vm1796_vm7, %v1770_v12, %v1293_v5  ;;  %v1705_v3 = vsel %vm1697_vm4, %v1672_v50, %v3196_v32  ;;  %v526_v32 = vld [vmem:[#allocation2 + $0xd8] sm:$0xff]  ;;  %v4140_v20 = vld [vmem:[#allocation70_spill] sm:$0xff]  ;;  %v527_v5 = vld [vmem:[#allocation2 + $0xe0] sm:$0xff] }
 0x1f3   : > { %1336 = vrot.lane.b32.xlu1 %v540_v4, %s2516_s25  ;;  %2438 = vmatmul.mubr.msk.f32.gmra.mxu1 %vm1900_vm10, %v1884_v45  ;;  %v1738_v30 = vsel %vm1730_vm5, %v1705_v3, %v3318_v22  ;;  %v4139_v22 = vld [vmem:[#allocation53_spill] sm:$0xff]  ;;  %v4147_v3 = vld [vmem:[#allocation78_spill] sm:$0xff] }
 0x1f4   : > { %1432 = vrot.lane.b32.xlu0 %v556_v57, %s2517_s30  ;;  %v1771_v49 = vsel %vm1763_vm6, %v1738_v30, %v3616_v7  ;;  %v1688_v4 = vsel %vm1664_vm3, %v1655_v52, %v4139_v22  ;;  %v4148_v52 = vld [vmem:[#allocation14_spill] sm:$0xff] }
 0x1f5   : > { %v3626_v37 = vpop.permute.xlu1 %1198  ;;  %v1295_v8 = vpop.permute.xlu0 %1294  ;;  %v1721_v1 = vsel %vm1697_vm4, %v1688_v4, %v4140_v20  ;;  %v4149_v4 = vld [vmem:[#allocation46_spill] sm:$0xff]  ;;  %v4150_v20 = vld [vmem:[#allocation63_spill] sm:$0xff] }
 0x1f6   : > { %v1804_v21 = vsel %vm1796_vm7, %v1771_v49, %v1295_v8  ;;  %v1754_v57 = vsel %vm1730_vm5, %v1721_v1, %v3597_v10  ;;  %v558_v10 = vld [vmem:[#allocation2 + $0xd9] sm:$0xff] }
 0x1f7   : > { %1338 = vrot.lane.b32.xlu1 %v541_v25, %s2516_s25  ;;  %v1787_v25 = vsel %vm1763_vm6, %v1754_v57, %v3626_v37  ;;  %v543_v37 = vld [vmem:[#allocation2 + $0x1a0] sm:$0xff]  ;;  %v4151_v57 = vld [vmem:[#allocation80_spill] sm:$0xff] }
 0x1f8   : > { %1084 = vrot.lane.b32.xlu0 %v477_v59, %s2514_s23 }
 0x1f9   : > { %v1325_v47 = vpop.permute.xlu1 %1324  ;;  %v1421_v26 = vpop.permute.xlu0 %1420 }
 0x1fa   : > { %v1819_v14 = vsel %vm1796_vm7, %v1786_v42, %v1325_v47  ;;  %v1836_v6 = vsel %vm1829_vm9, %v1803_v48, %v1421_v26  ;;  %v542_v47 = vld [vmem:[#allocation2 + $0x198] sm:$0xff] }
 0x1fb   : > { %1464 = vrot.lane.b32.xlu1 %v477_v59, %s2517_s30 }
 0x1fc   : > { %1466 = vrot.lane.b32.xlu0 %v573_v18, %s2517_s30 }
 0x1fd   : > { %v3632_v9 = vpop.permute.xlu1 %1326  ;;  %v3634_v56 = vpop.permute.xlu0 %1072 }
 0x1fe   : > { %v1820_v8 = vsel %vm1796_vm7, %v1787_v25, %v3632_v9  ;;  %v559_v9 = vld [vmem:[#allocation2 + $0xe1] sm:$0xff] }
 0x1ff   : > { %1434 = vrot.lane.b32.xlu1 %v557_v27, %s2517_s30 }
 0x200   : > { %1592 = vrot.lane.b32.xlu0 %v604_v44, %s2518_s11 }
 0x201   : > { %v1453_v33 = vpop.permute.xlu1 %1452  ;;  %v1455_v38 = vpop.permute.xlu0 %1454 }
 0x202   : > { %v1852_v41 = vsel %vm1829_vm9, %v1819_v14, %v1453_v33  ;;  %v590_v33 = vld [vmem:[#allocation2 + $0xda] sm:$0xff] }
 0x203   : > { %1560 = vrot.lane.b32.xlu1 %v588_v35, %s2518_s11  ;;  %v2487_v14 = vld [vmem:[#allocation2 + $0x60] sm:$0xff] }
 0x204   : > { %1180 = vrot.lane.b32.xlu0 %v588_v35, %s2515_s24 }
 0x205   : > { %v1423_v16 = vpop.permute.xlu1 %1422  ;;  %v1581_v19 = vpop.permute.xlu0 %1580 }
 0x206   : > { %v1885_v13 = vsel %vm1862_vm8, %v1852_v41, %v1581_v19  ;;  %v1837_v55 = vsel %vm1829_vm9, %v1804_v21, %v1423_v16  ;;  %v4142_v16 = vld [vmem:[#allocation52_spill] sm:$0xff]  ;;  %v4144_v41 = vld [vmem:[#allocation69_spill] sm:$0xff] }
 0x207   : > { %1086 = vrot.lane.b32.xlu1 %v573_v18, %s2514_s23  ;;  %2440 = vmatprep.mubr.msk.f32.mxu1 %vm1900_vm10, %v1885_v13  ;;  %v1853_v18 = vsel %vm1829_vm9, %v1820_v8, %v1455_v38  ;;  %v606_v38 = vld [vmem:[#allocation2 + $0x19a] sm:$0xff]  ;;  %v1689_v17 = vsel %vm1664_vm3, %v1656_v31, %v4142_v16 }
 0x208   : > { %1562 = vrot.lane.b32.xlu0 %v589_v54, %s2518_s11  ;;  %v1722_v19 = vsel %vm1697_vm4, %v1689_v17, %v4144_v41  ;;  %v4145_v13 = vld [vmem:[#allocation44_spill] sm:$0xff] }
 0x209   : > { %v1549_v58 = vpop.permute.xlu1 %1548  ;;  %v3674_v63 = vpop.permute.xlu0 %1168  ;;  %v1755_v34 = vsel %vm1730_vm5, %v1722_v19, %v3634_v56  ;;  %v4156_v19 = vld [vmem:[#allocation54_spill] sm:$0xff] }
 0x20a   : > { %v1869_v29 = vsel %vm1862_vm8, %v1836_v6, %v1549_v58  ;;  %v4146_v6 = vld [vmem:[#allocation61_spill] sm:$0xff] }
 0x20b   : > { %1212 = vrot.lane.b32.xlu1 %v604_v44, %s2515_s24  ;;  %2416 = vmatprep.mubr.msk.f32.mxu0 %vm1900_vm10, %v1869_v29 }
 0x20c   : > { %1182 = vrot.lane.b32.xlu0 %v589_v54, %s2515_s24  ;;  %v4143_v54 = vld [vmem:[#allocation10_spill] sm:$0xff] }
 0x20d   : > { %v3683_v36 = vpop.permute.xlu1 %1074  ;;  %v1551_v43 = vpop.permute.xlu0 %1550  ;;  %v1640_v12 = vsel %vm230_vm0, %v2487_v14, %v4143_v54 }
 0x20e   : > { %v1870_v7 = vsel %vm1862_vm8, %v1837_v55, %v1551_v43  ;;  %v1673_v23 = vsel %vm1664_vm3, %v1640_v12, %v4145_v13  ;;  %v1641_v55 = vsel %vm230_vm0, %v2488_v61, %v4148_v52  ;;  %v2490_v12 = vld [vmem:[#allocation2 + $0x138] sm:$0xff] }
 0x20f   : > { %1594 = vrot.lane.b32.xlu1 %v605_v28, %s2518_s11  ;;  %2417 = vmatmul.mubr.msk.f32.gmra.mxu0 %vm1900_vm10, %v1870_v7  ;;  %v1706_v58 = vsel %vm1697_vm4, %v1673_v23, %v4146_v6  ;;  %v2491_v13 = vld [vmem:[#allocation2 + $0x78] sm:$0xff]  ;;  %v4157_v23 = vld [vmem:[#allocation13_spill] sm:$0xff] }
 0x210   : > { %1308 = vrot.lane.b32.xlu0 %v526_v32, %s2516_s25  ;;  %v1739_v30 = vsel %vm1730_vm5, %v1706_v58, %v4147_v3 }
 0x211   : > { %v1201_v45 = vpop.permute.xlu1 %1200  ;;  %v1772_v49 = vsel %vm1763_vm6, %v1739_v30, %v3674_v63  ;;  %v1674_v63 = vsel %vm1664_vm3, %v1641_v55, %v4149_v4  ;;  %v4160_v30 = vld [vmem:[#allocation62_spill] sm:$0xff]  ;;  %v4162_v4 = vld [vmem:[#allocation16_spill] sm:$0xff] }
 0x212   : > { %v3701_v59 = vpop.permute.xlu0 %1170  ;;  %v1788_v50 = vsel %vm1763_vm6, %v1755_v34, %v1201_v45  ;;  %v1707_v1 = vsel %vm1697_vm4, %v1674_v63, %v4150_v20  ;;  %v1642_v34 = vsel %vm230_vm0, %v2491_v13, %v4157_v23 }
 0x213   : > { %1214 = vrot.lane.b32.xlu1 %v605_v28, %s2515_s24 }
 0x214   : > { %1310 = vrot.lane.b32.xlu0 %v527_v5, %s2516_s25  ;;  %v1740_v5 = vsel %vm1730_vm5, %v1707_v1, %v4151_v57  ;;  %v4163_v1 = vld [vmem:[#allocation48_spill] sm:$0xff] }
 0x215   : > { %v1583_v26 = vpop.permute.xlu1 %1582  ;;  %v1773_v25 = vsel %vm1763_vm6, %v1740_v5, %v3701_v59  ;;  %v4164_v5 = vld [vmem:[#allocation65_spill] sm:$0xff] }
 0x216   : > { %v1886_v27 = vsel %vm1862_vm8, %v1853_v18, %v1583_v26  ;;  %v1297_v44 = vpop.permute.xlu0 %1296  ;;  %v2489_v18 = vld [vmem:[#allocation2 + $0x128] sm:$0xff]  ;;  %v4152_v26 = vld [vmem:[#allocation32_spill] sm:$0xff] }
 0x217   : > { %1340 = vrot.lane.b32.xlu1 %v542_v47, %s2516_s25  ;;  %2441 = vmatmul.mubr.msk.f32.gmra.mxu1 %vm1900_vm10, %v1886_v27  ;;  %v1805_v56 = vsel %vm1796_vm7, %v1772_v49, %v1297_v44  ;;  %v1657_v27 = vsel %vm230_vm0, %v2489_v18, %v4152_v26  ;;  %v4165_v18 = vld [vmem:[#allocation82_spill] sm:$0xff] }
 0x218   : > { %1436 = vrot.lane.b32.xlu0 %v558_v10, %s2517_s30 }
 0x219   : > { %v3712_v35 = vpop.permute.xlu1 %1202 }
 0x21a   : > { %v1299_v40 = vpop.permute.xlu0 %1298 }
 0x21b   : > { %1342 = vrot.lane.b32.xlu1 %v543_v37, %s2516_s25  ;;  %v1806_v47 = vsel %vm1796_vm7, %v1773_v25, %v1299_v40  ;;  %v4153_v37 = vld [vmem:[#allocation55_spill] sm:$0xff] }
 0x21c   : > { %1438 = vrot.lane.b32.xlu0 %v559_v9, %s2517_s30  ;;  %v1690_v9 = vsel %vm1664_vm3, %v1657_v27, %v4153_v37  ;;  %v2493_v37 = vld [vmem:[#allocation2 + $0x140] sm:$0xff] }
 0x21d   : > { %v1329_v53 = vpop.permute.xlu1 %1328 }
 0x21e   : > { %v1425_v24 = vpop.permute.xlu0 %1424  ;;  %v1821_v28 = vsel %vm1796_vm7, %v1788_v50, %v1329_v53  ;;  %v4154_v53 = vld [vmem:[#allocation72_spill] sm:$0xff]  ;;  %v4159_v50 = vld [vmem:[#allocation45_spill] sm:$0xff] }
 0x21f   : > { %1468 = vrot.lane.b32.xlu1 %v574_v0, %s2517_s30  ;;  %v1838_v43 = vsel %vm1829_vm9, %v1805_v56, %v1425_v24 }
 0x220   : > { %1564 = vrot.lane.b32.xlu0 %v590_v33, %s2518_s11  ;;  %v1723_v33 = vsel %vm1697_vm4, %v1690_v9, %v4154_v53  ;;  %v4166_v9 = vld [vmem:[#allocation34_spill] sm:$0xff] }
 0x221   : > { %v1331_v60 = vpop.permute.xlu1 %1330  ;;  %v1756_v40 = vsel %vm1730_vm5, %v1723_v33, %v3683_v36 }
 0x222   : > { %v3718_v51 = vpop.permute.xlu0 %1076  ;;  %v1789_v24 = vsel %vm1763_vm6, %v1756_v40, %v3712_v35  ;;  %v4155_v35 = vld [vmem:[#allocation31_spill] sm:$0xff] }
 0x223   : > { %1470 = vrot.lane.b32.xlu1 %v575_v15, %s2517_s30  ;;  %v1658_v41 = vsel %vm230_vm0, %v2490_v12, %v4155_v35 }
 0x224   : > { %1566 = vrot.lane.b32.xlu0 %v591_v2, %s2518_s11  ;;  %v1822_v2 = vsel %vm1796_vm7, %v1789_v24, %v1331_v60 }
 0x225   : > { %v1457_v42 = vpop.permute.xlu1 %1456 }
 0x226   : > { %v1459_v48 = vpop.permute.xlu0 %1458  ;;  %v1854_v21 = vsel %vm1829_vm9, %v1821_v28, %v1457_v42 }
 0x227   : > { %1596 = vrot.lane.b32.xlu1 %v606_v38, %s2518_s11  ;;  %v1855_v38 = vsel %vm1829_vm9, %v1822_v2, %v1459_v48  ;;  %v1691_v48 = vsel %vm1664_vm3, %v1658_v41, %v4156_v19  ;;  %v4168_v2 = vld [vmem:[#allocation74_spill] sm:$0xff] }
 0x229   : > { %v1427_v29 = vpop.permute.xlu1 %1426 }
 0x22a   : > { %v1585_v32 = vpop.permute.xlu0 %1584  ;;  %v1839_v10 = vsel %vm1829_vm9, %v1806_v47, %v1427_v29  ;;  %v1675_v29 = vsel %vm1664_vm3, %v1642_v34, %v4159_v50  ;;  %v2494_v34 = vld [vmem:[#allocation2 + $0x150] sm:$0xff] }
 0x22b   : > { %1598 = vrot.lane.b32.xlu1 %v607_v46, %s2518_s11  ;;  %v1887_v39 = vsel %vm1862_vm8, %v1854_v21, %v1585_v32  ;;  %v4158_v46 = vld [vmem:[#allocation71_spill] sm:$0xff]  ;;  %v1708_v28 = vsel %vm1697_vm4, %v1675_v29, %v4160_v30  ;;  %v4170_v29 = vld [vmem:[#allocation56_spill] sm:$0xff] }
 0x22c   : > { %2443 = vmatprep.mubr.msk.f32.mxu1 %vm1900_vm10, %v1887_v39  ;;  %v1724_v6 = vsel %vm1697_vm4, %v1691_v48, %v4158_v46  ;;  %v4161_v32 = vld [vmem:[#allocation79_spill] sm:$0xff]  ;;  %v4169_v46 = vld [vmem:[#allocation33_spill] sm:$0xff] }
 0x22d   : > { %v1553_v22 = vpop.permute.xlu1 %1552  ;;  %v1757_v3 = vsel %vm1730_vm5, %v1724_v6, %v3718_v51  ;;  %v1741_v56 = vsel %vm1730_vm5, %v1708_v28, %v4161_v32  ;;  %v1660_v6 = vsel %vm230_vm0, %v2494_v34, %v4169_v46  ;;  %v2495_v30 = vld [vmem:[#allocation2 + $0x90] sm:$0xff] }
 0x22e   : > { %v1871_v7 = vsel %vm1862_vm8, %v1838_v43, %v1553_v22  ;;  %v1173_v45 = vpop.permute.xlu0 %1172  ;;  %v2492_v22 = vld [vmem:[#allocation2 + $0x80] sm:$0xff]  ;;  %v4171_v28 = vld [vmem:[#allocation15_spill] sm:$0xff] }
 0x22f   : > { %2419 = vmatprep.mubr.msk.f32.mxu0 %vm1900_vm10, %v1871_v7  ;;  %v1774_v61 = vsel %vm1763_vm6, %v1741_v56, %v1173_v45  ;;  %v1643_v63 = vsel %vm230_vm0, %v2492_v22, %v4162_v4  ;;  %v4175_v4 = vld [vmem:[#allocation81_spill] sm:$0xff] }
 0x230   : > { %v1676_v57 = vsel %vm1664_vm3, %v1643_v63, %v4163_v1 }
 0x231   : > { %v3761_v8 = vpop.permute.xlu1 %1078  ;;  %v1709_v25 = vsel %vm1697_vm4, %v1676_v57, %v4164_v5  ;;  %v2496_v5 = vld [vmem:[#allocation2 + $0x98] sm:$0xff] }
 0x232   : > { %v1555_v44 = vpop.permute.xlu0 %1554  ;;  %v1742_v26 = vsel %vm1730_vm5, %v1709_v25, %v4165_v18  ;;  %v4176_v25 = vld [vmem:[#allocation18_spill] sm:$0xff] }
 0x233   : > { %v1872_v0 = vsel %vm1862_vm8, %v1839_v10, %v1555_v44  ;;  %v1645_v18 = vsel %vm230_vm0, %v2496_v5, %v4176_v25  ;;  %v4189_v5 = vld [vmem:[#allocation35_spill] sm:$0xff] }
 0x234   : > { %2420 = vmatmul.mubr.msk.f32.gmra.mxu0 %vm1900_vm10, %v1872_v0  ;;  %v1659_v0 = vsel %vm230_vm0, %v2493_v37, %v4166_v9  ;;  %v4178_v9 = vld [vmem:[#allocation67_spill] sm:$0xff] }
 0x235   : > { %v1205_v59 = vpop.permute.xlu1 %1204 }
 0x236   : > { %v1175_v15 = vpop.permute.xlu0 %1174  ;;  %v1790_v49 = vsel %vm1763_vm6, %v1757_v3, %v1205_v59  ;;  %v4167_v59 = vld [vmem:[#allocation57_spill] sm:$0xff]  ;;  %v1693_v3 = vsel %vm1664_vm3, %v1660_v6, %v4170_v29 }
 0x237   : > { %v1775_v27 = vsel %vm1763_vm6, %v1742_v26, %v1175_v15  ;;  %v1692_v40 = vsel %vm1664_vm3, %v1659_v0, %v4167_v59 }
 0x238   : > { %v1725_v15 = vsel %vm1697_vm4, %v1692_v40, %v4168_v2 }
 0x239   : > { %v1587_v62 = vpop.permute.xlu1 %1586 }
 0x23a   : > { %v1888_v11 = vsel %vm1862_vm8, %v1855_v38, %v1587_v62  ;;  %v1301_v31 = vpop.permute.xlu0 %1300  ;;  %v1758_v62 = vsel %vm1730_vm5, %v1725_v15, %v3761_v8  ;;  %v2497_v15 = vld [vmem:[#allocation2 + $0x158] sm:$0xff] }
 0x23b   : > { %2444 = vmatmul.mubr.msk.f32.gmra.mxu1 %vm1900_vm10, %v1888_v11  ;;  %v1807_v43 = vsel %vm1796_vm7, %v1774_v61, %v1301_v31 }
 0x23d   : > { %v1207_v42 = vpop.permute.xlu1 %1206 }
 0x23e   : > { %v1303_v16 = vpop.permute.xlu0 %1302  ;;  %v1791_v11 = vsel %vm1763_vm6, %v1758_v62, %v1207_v42 }
 0x23f   : > { %v1808_v44 = vsel %vm1796_vm7, %v1775_v27, %v1303_v16 }
 0x241   : > { %v1333_v17 = vpop.permute.xlu1 %1332 }
 0x242   : > { %v1429_v14 = vpop.permute.xlu0 %1428  ;;  %v1823_v39 = vsel %vm1796_vm7, %v1790_v49, %v1333_v17  ;;  %v1644_v49 = vsel %vm230_vm0, %v2495_v30, %v4171_v28  ;;  %v4183_v30 = vld [vmem:[#allocation17_spill] sm:$0xff] }
 0x243   : > { %v1840_v7 = vsel %vm1829_vm9, %v1807_v43, %v1429_v14 }
 0x245   : > { %v1335_v54 = vpop.permute.xlu1 %1334 }
 0x246   : > { %v3781_v36 = vpop.permute.xlu0 %1080  ;;  %v1824_v16 = vsel %vm1796_vm7, %v1791_v11, %v1335_v54 }
 0x249   : > { %v1461_v60 = vpop.permute.xlu1 %1460 }
 0x24a   : > { %v1463_v58 = vpop.permute.xlu0 %1462  ;;  %v1856_v52 = vsel %vm1829_vm9, %v1823_v39, %v1461_v60  ;;  %v4173_v39 = vld [vmem:[#allocation47_spill] sm:$0xff] }
 0x24b   : > { %v1857_v17 = vsel %vm1829_vm9, %v1824_v16, %v1463_v58  ;;  %v1677_v61 = vsel %vm1664_vm3, %v1644_v49, %v4173_v39 }
 0x24d   : > { %v1431_v21 = vpop.permute.xlu1 %1430 }
 0x24e   : > { %v1589_v55 = vpop.permute.xlu0 %1588  ;;  %v1841_v53 = vsel %vm1829_vm9, %v1808_v44, %v1431_v21  ;;  %v4172_v21 = vld [vmem:[#allocation73_spill] sm:$0xff]  ;;  %v4177_v44 = vld [vmem:[#allocation50_spill] sm:$0xff] }
 0x24f   : > { %v1889_v51 = vsel %vm1862_vm8, %v1856_v52, %v1589_v55  ;;  %v1726_v32 = vsel %vm1697_vm4, %v1693_v3, %v4172_v21  ;;  %v4174_v55 = vld [vmem:[#allocation64_spill] sm:$0xff]  ;;  %v1678_v37 = vsel %vm1664_vm3, %v1645_v18, %v4177_v44  ;;  %v4184_v21 = vld [vmem:[#allocation49_spill] sm:$0xff] }
 0x250   : > { %2446 = vmatprep.mubr.msk.f32.mxu1 %vm1900_vm10, %v1889_v51  ;;  %v1759_v52 = vsel %vm1730_vm5, %v1726_v32, %v3781_v36  ;;  %v1710_v43 = vsel %vm1697_vm4, %v1677_v61, %v4174_v55  ;;  %v1711_v0 = vsel %vm1697_vm4, %v1678_v37, %v4178_v9  ;;  %v4186_v55 = vld [vmem:[#allocation83_spill] sm:$0xff]  ;;  %v4190_v18 = vld [vmem:[#allocation68_spill] sm:$0xff]  ;;  %v4191_v37 = vld [vmem:[#allocation58_spill] sm:$0xff] }
 0x251   : > { %v1557_v20 = vpop.permute.xlu1 %1556  ;;  %v1743_v63 = vsel %vm1730_vm5, %v1710_v43, %v4175_v4  ;;  %v4192_v9 = vld [vmem:[#allocation85_spill] sm:$0xff] }
 0x252   : > { %v1873_v45 = vsel %vm1862_vm8, %v1840_v7, %v1557_v20  ;;  %v1177_v47 = vpop.permute.xlu0 %1176 }
 0x253   : > { %2422 = vmatprep.mubr.msk.f32.mxu0 %vm1900_vm10, %v1873_v45  ;;  %v1776_v20 = vsel %vm1763_vm6, %v1743_v63, %v1177_v47 }
 0x255   : > { %v3818_v10 = vpop.permute.xlu1 %1082 }
 0x256   : > { %v1559_v33 = vpop.permute.xlu0 %1558 }
 0x257   : > { %v1874_v24 = vsel %vm1862_vm8, %v1841_v53, %v1559_v33  ;;  %v4179_v33 = vld [vmem:[#allocation84_spill] sm:$0xff] }
 0x258   : > { %2423 = vmatmul.mubr.msk.f32.gmra.mxu0 %vm1900_vm10, %v1874_v24  ;;  %v1744_v59 = vsel %vm1730_vm5, %v1711_v0, %v4179_v33  ;;  %v4193_v33 = vld [vmem:[#allocation75_spill] sm:$0xff] }
 0x259   : > { %v1209_v38 = vpop.permute.xlu1 %1208 }
 0x25a   : > { %v1179_v31 = vpop.permute.xlu0 %1178  ;;  %v1792_v51 = vsel %vm1763_vm6, %v1759_v52, %v1209_v38  ;;  %v4180_v38 = vld [vmem:[#allocation36_spill] sm:$0xff] }
 0x25b   : > { %v1777_v40 = vsel %vm1763_vm6, %v1744_v59, %v1179_v31  ;;  %v1661_v62 = vsel %vm230_vm0, %v2497_v15, %v4180_v38 }
 0x25d   : > { %v1591_v14 = vpop.permute.xlu1 %1590 }
 0x25e   : > { %v1890_v12 = vsel %vm1862_vm8, %v1857_v17, %v1591_v14  ;;  %v1305_v35 = vpop.permute.xlu0 %1304  ;;  %v4181_v17 = vld [vmem:[#allocation59_spill] sm:$0xff] }
 0x25f   : > { %2447 = vmatmul.mubr.msk.f32.gmra.mxu1 %vm1900_vm10, %v1890_v12  ;;  %v1809_v45 = vsel %vm1796_vm7, %v1776_v20, %v1305_v35  ;;  %v1694_v14 = vsel %vm1664_vm3, %v1661_v62, %v4181_v17  ;;  %v4182_v35 = vld [vmem:[#allocation76_spill] sm:$0xff]  ;;  %v2501_v62 = vld [vmem:[#allocation2 + $0x170] sm:$0xff] }
 0x261   : > { %v1211_v41 = vpop.permute.xlu1 %1210 }
 0x262   : > { %v1307_v60 = vpop.permute.xlu0 %1306 }
 0x263   : > { %v2409_v8 = vpop.f32.mrf.mxu0  ;;  %v1810_v2 = vsel %vm1796_vm7, %v1777_v40, %v1307_v60 }
 0x264   : > { %2228 = vst.msk [vmem:[%s3842_s14 + $0x8] sm:$0xff] %vm2226_vm11, %v2409_v8  ;;  %v1727_v8 = vsel %vm1697_vm4, %v1694_v14, %v4182_v35  ;;  %v4195_v35 = vld [vmem:[#allocation60_spill] sm:$0xff] }
 0x265   : > { %v1337_v42 = vpop.permute.xlu1 %1336  ;;  %v2067_v19 = vpop.f32.mrf.mxu0  ;;  %v1760_v60 = vsel %vm1730_vm5, %v1727_v8, %v3818_v10 }
 0x266   : > { %v1433_v54 = vpop.permute.xlu0 %1432  ;;  %2227 = vst.msk [vmem:[%s3842_s14] sm:$0xff] %vm2226_vm11, %v2067_v19  ;;  %v1825_v7 = vsel %vm1796_vm7, %v1792_v51, %v1337_v42  ;;  %v1793_v42 = vsel %vm1763_vm6, %v1760_v60, %v1211_v41  ;;  %v2499_v51 = vld [vmem:[#allocation2 + $0xb0] sm:$0xff] }
 0x267   : > { %v1842_v26 = vsel %vm1829_vm9, %v1809_v45, %v1433_v54 }
 0x269   : > { %v1339_v48 = vpop.permute.xlu1 %1338 }
 0x26a   : > { %v3848_v13 = vpop.permute.xlu0 %1084  ;;  %v1826_v19 = vsel %vm1796_vm7, %v1793_v42, %v1339_v48  ;;  %v2498_v48 = vld [vmem:[#allocation2 + $0xa8] sm:$0xff] }
 0x26b   : > { %v2433_v23 = vpop.f32.mrf.mxu1  ;;  %v1646_v28 = vsel %vm230_vm0, %v2498_v48, %v4183_v30 }
 0x26c   : > { %2244 = vst.msk [vmem:[%s3842_s14 + $0x88] sm:$0xff] %vm2226_vm11, %v2433_v23  ;;  %v1679_v32 = vsel %vm1664_vm3, %v1646_v28, %v4184_v21 }
 0x26d   : > { %v2147_v58 = vpop.f32.mrf.mxu1  ;;  %v1465_v50 = vpop.permute.xlu1 %1464 }
 0x26e   : > { %2243 = vst.msk [vmem:[%s3842_s14 + $0x80] sm:$0xff] %vm2226_vm11, %v2147_v58  ;;  %v1467_v56 = vpop.permute.xlu0 %1466  ;;  %v1858_v1 = vsel %vm1829_vm9, %v1825_v7, %v1465_v50 }
 0x26f   : > { %v1859_v23 = vsel %vm1829_vm9, %v1826_v19, %v1467_v56  ;;  %v4185_v56 = vld [vmem:[#allocation66_spill] sm:$0xff] }
 0x270   : > { %v1712_v39 = vsel %vm1697_vm4, %v1679_v32, %v4185_v56 }
 0x271   : > { %v1435_v22 = vpop.permute.xlu1 %1434  ;;  %v1745_v43 = vsel %vm1730_vm5, %v1712_v39, %v4186_v55 }
 0x272   : > { %v1593_v57 = vpop.permute.xlu0 %1592  ;;  %v1843_v11 = vsel %vm1829_vm9, %v1810_v2, %v1435_v22  ;;  %v4187_v22 = vld [vmem:[#allocation19_spill] sm:$0xff] }
 0x273   : > { %v1891_v36 = vsel %vm1862_vm8, %v1858_v1, %v1593_v57  ;;  %v1647_v4 = vsel %vm230_vm0, %v2499_v51, %v4187_v22  ;;  %v4188_v1 = vld [vmem:[#allocation51_spill] sm:$0xff] }
 0x274   : > { %2449 = vmatprep.mubr.msk.f32.mxu1 %vm1900_vm10, %v1891_v36  ;;  %v1680_v57 = vsel %vm1664_vm3, %v1647_v4, %v4188_v1  ;;  %v2500_v36 = vld [vmem:[#allocation2 + $0x168] sm:$0xff] }
 0x275   : > { %v1561_v27 = vpop.permute.xlu1 %1560  ;;  %v1662_v25 = vsel %vm230_vm0, %v2500_v36, %v4189_v5 }
 0x276   : > { %v1875_v47 = vsel %vm1862_vm8, %v1842_v26, %v1561_v27  ;;  %v1181_v53 = vpop.permute.xlu0 %1180  ;;  %v1713_v26 = vsel %vm1697_vm4, %v1680_v57, %v4190_v18 }
 0x277   : > { %2425 = vmatprep.mubr.msk.f32.mxu0 %vm1900_vm10, %v1875_v47  ;;  %v1778_v63 = vsel %vm1763_vm6, %v1745_v43, %v1181_v53  ;;  %v1695_v47 = vsel %vm1664_vm3, %v1662_v25, %v4191_v37  ;;  %v1746_v0 = vsel %vm1730_vm5, %v1713_v26, %v4192_v9 }
 0x278   : > { %v1728_v59 = vsel %vm1697_vm4, %v1695_v47, %v4193_v33 }
 0x279   : > { %v3889_v24 = vpop.permute.xlu1 %1086  ;;  %v1761_v15 = vsel %vm1730_vm5, %v1728_v59, %v3848_v13  ;;  %v4196_v13 = vld [vmem:[#allocation77_spill] sm:$0xff] }
 0x27a   : > { %v1563_v16 = vpop.permute.xlu0 %1562 }
 0x27b   : > { %v1876_v12 = vsel %vm1862_vm8, %v1843_v11, %v1563_v16  ;;  %v4194_v11 = vld [vmem:[#allocation39_spill] sm:$0xff] }
 0x27c   : > { %2426 = vmatmul.mubr.msk.f32.gmra.mxu0 %vm1900_vm10, %v1876_v12  ;;  %v1663_v16 = vsel %vm230_vm0, %v2501_v62, %v4194_v11 }
 0x27d   : > { %v1213_v31 = vpop.permute.xlu1 %1212  ;;  %v1696_v8 = vsel %vm1664_vm3, %v1663_v16, %v4195_v35 }
 0x27e   : > { %v1183_v54 = vpop.permute.xlu0 %1182  ;;  %v1794_v17 = vsel %vm1763_vm6, %v1761_v15, %v1213_v31 }
 0x27f   : > { %v1779_v40 = vsel %vm1763_vm6, %v1746_v0, %v1183_v54  ;;  %v1729_v54 = vsel %vm1697_vm4, %v1696_v8, %v4196_v13 }
 0x280   : > { %v1762_v31 = vsel %vm1730_vm5, %v1729_v54, %v3889_v24 }
 0x281   : > { %v1595_v34 = vpop.permute.xlu1 %1594 }
 0x282   : > { %v1892_v46 = vsel %vm1862_vm8, %v1859_v23, %v1595_v34  ;;  %v1309_v6 = vpop.permute.xlu0 %1308 }
 0x283   : > { %2450 = vmatmul.mubr.msk.f32.gmra.mxu1 %vm1900_vm10, %v1892_v46  ;;  %v1811_v45 = vsel %vm1796_vm7, %v1778_v63, %v1309_v6 }
 0x285   : > { %v1215_v58 = vpop.permute.xlu1 %1214 }
 0x286   : > { %v1311_v50 = vpop.permute.xlu0 %1310  ;;  %v1795_v46 = vsel %vm1763_vm6, %v1762_v31, %v1215_v58 }
 0x287   : > { %v2412_v3 = vpop.f32.mrf.mxu0  ;;  %v1812_v38 = vsel %vm1796_vm7, %v1779_v40, %v1311_v50 }
 0x288   : > { %2230 = vst.msk [vmem:[%s3842_s14 + $0x18] sm:$0xff] %vm2226_vm11, %v2412_v3 }
 0x289   : > { %v1341_v29 = vpop.permute.xlu1 %1340  ;;  %v2077_v41 = vpop.f32.mrf.mxu0 }
 0x28a   : > { %v1437_v10 = vpop.permute.xlu0 %1436  ;;  %2229 = vst.msk [vmem:[%s3842_s14 + $0x10] sm:$0xff] %vm2226_vm11, %v2077_v41  ;;  %v1827_v60 = vsel %vm1796_vm7, %v1794_v17, %v1341_v29 }
 0x28b   : > { %v1844_v27 = vsel %vm1829_vm9, %v1811_v45, %v1437_v10 }
 0x28d   : > { %v1343_v49 = vpop.permute.xlu1 %1342 }
 0x28e   : > { %v1439_v61 = vpop.permute.xlu0 %1438  ;;  %v1828_v6 = vsel %vm1796_vm7, %v1795_v46, %v1343_v49 }
 0x28f   : > { %v2436_v52 = vpop.f32.mrf.mxu1  ;;  %v1845_v14 = vsel %vm1829_vm9, %v1812_v38, %v1439_v61 }
 0x290   : > { %2246 = vst.msk [vmem:[%s3842_s14 + $0x98] sm:$0xff] %vm2226_vm11, %v2436_v52 }
 0x291   : > { %v2157_v7 = vpop.f32.mrf.mxu1  ;;  %v1469_v20 = vpop.permute.xlu1 %1468 }
 0x292   : > { %2245 = vst.msk [vmem:[%s3842_s14 + $0x90] sm:$0xff] %vm2226_vm11, %v2157_v7  ;;  %v1565_v44 = vpop.permute.xlu0 %1564  ;;  %v1860_v19 = vsel %vm1829_vm9, %v1827_v60, %v1469_v20 }
 0x293   : > { %v1877_v53 = vsel %vm1862_vm8, %v1844_v27, %v1565_v44 }
 0x294   : > { %2428 = vmatprep.mubr.msk.f32.mxu0 %vm1900_vm10, %v1877_v53 }
 0x295   : > { %v1471_v2 = vpop.permute.xlu1 %1470 }
 0x296   : > { %v1567_v12 = vpop.permute.xlu0 %1566  ;;  %v1861_v50 = vsel %vm1829_vm9, %v1828_v6, %v1471_v2 }
 0x297   : > { %v1878_v42 = vsel %vm1862_vm8, %v1845_v14, %v1567_v12 }
 0x298   : > { %2429 = vmatmul.mubr.msk.f32.gmra.mxu0 %vm1900_vm10, %v1878_v42 }
 0x299   : > { %v1597_v23 = vpop.permute.xlu1 %1596 }
 0x29a   : > { %v1893_v34 = vsel %vm1862_vm8, %v1860_v19, %v1597_v23 }
 0x29b   : > { %2452 = vmatprep.mubr.msk.f32.mxu1 %vm1900_vm10, %v1893_v34 }
 0x29d   : > { %v1599_v29 = vpop.permute.xlu1 %1598 }
 0x29e   : > { %v1894_v3 = vsel %vm1862_vm8, %v1861_v50, %v1599_v29 }
 0x29f   : > { %2453 = vmatmul.mubr.msk.f32.gmra.mxu1 %vm1900_vm10, %v1894_v3 }
 0x2ab   : > { %v2415_v24 = vpop.f32.mrf.mxu0 }
 0x2ac   : > { %2232 = vst.msk [vmem:[%s3842_s14 + $0x28] sm:$0xff] %vm2226_vm11, %v2415_v24 }
 0x2ad   : > { %v2087_v58 = vpop.f32.mrf.mxu0 }
 0x2ae   : > { %2231 = vst.msk [vmem:[%s3842_s14 + $0x20] sm:$0xff] %vm2226_vm11, %v2087_v58 }
 0x2b3   : > { %v2439_v10 = vpop.f32.mrf.mxu1 }
 0x2b4   : > { %2248 = vst.msk [vmem:[%s3842_s14 + $0xa8] sm:$0xff] %vm2226_vm11, %v2439_v10 }
 0x2b5   : > { %v2167_v41 = vpop.f32.mrf.mxu1 }
 0x2b6   : > { %2247 = vst.msk [vmem:[%s3842_s14 + $0xa0] sm:$0xff] %vm2226_vm11, %v2167_v41 }
 0x2cf   : > { %v2418_v48 = vpop.f32.mrf.mxu0 }
 0x2d0   : > { %2234 = vst.msk [vmem:[%s3842_s14 + $0x38] sm:$0xff] %vm2226_vm11, %v2418_v48 }
 0x2d1   : > { %v2097_v30 = vpop.f32.mrf.mxu0 }
 0x2d2   : > { %2233 = vst.msk [vmem:[%s3842_s14 + $0x30] sm:$0xff] %vm2226_vm11, %v2097_v30 }
 0x2d7   : > { %v2442_v28 = vpop.f32.mrf.mxu1 }
 0x2d8   : > { %2250 = vst.msk [vmem:[%s3842_s14 + $0xb8] sm:$0xff] %vm2226_vm11, %v2442_v28 }
 0x2d9   : > { %v2177_v49 = vpop.f32.mrf.mxu1 }
 0x2da   : > { %2249 = vst.msk [vmem:[%s3842_s14 + $0xb0] sm:$0xff] %vm2226_vm11, %v2177_v49 }
 0x2f4   : > { %v2421_v21 = vpop.f32.mrf.mxu0 }
 0x2f5   : > { %2236 = vst.msk [vmem:[%s3842_s14 + $0x48] sm:$0xff] %vm2226_vm11, %v2421_v21 }
 0x2f6   : > { %v2107_v32 = vpop.f32.mrf.mxu0 }
 0x2f7   : > { %2235 = vst.msk [vmem:[%s3842_s14 + $0x40] sm:$0xff] %vm2226_vm11, %v2107_v32 }
 0x2fb   : > { %v2445_v56 = vpop.f32.mrf.mxu1 }
 0x2fc   : > { %2252 = vst.msk [vmem:[%s3842_s14 + $0xc8] sm:$0xff] %vm2226_vm11, %v2445_v56 }
 0x2fd   : > { %v2187_v39 = vpop.f32.mrf.mxu1 }
 0x2fe   : > { %2251 = vst.msk [vmem:[%s3842_s14 + $0xc0] sm:$0xff] %vm2226_vm11, %v2187_v39 }
 0x318   : > { %v2424_v61 = vpop.f32.mrf.mxu0 }
 0x319   : > { %2238 = vst.msk [vmem:[%s3842_s14 + $0x58] sm:$0xff] %vm2226_vm11, %v2424_v61 }
 0x31a   : > { %v2117_v52 = vpop.f32.mrf.mxu0 }
 0x31b   : > { %2237 = vst.msk [vmem:[%s3842_s14 + $0x50] sm:$0xff] %vm2226_vm11, %v2117_v52 }
 0x31f   : > { %v2448_v55 = vpop.f32.mrf.mxu1 }
 0x320   : > { %2254 = vst.msk [vmem:[%s3842_s14 + $0xd8] sm:$0xff] %vm2226_vm11, %v2448_v55 }
 0x321   : > { %v2197_v43 = vpop.f32.mrf.mxu1 }
 0x322   : > { %2253 = vst.msk [vmem:[%s3842_s14 + $0xd0] sm:$0xff] %vm2226_vm11, %v2197_v43 }
 0x33c   : > { %v2427_v51 = vpop.f32.mrf.mxu0 }
 0x33d   : > { %2240 = vst.msk [vmem:[%s3842_s14 + $0x68] sm:$0xff] %vm2226_vm11, %v2427_v51 }
 0x33e   : > { %v2127_v22 = vpop.f32.mrf.mxu0 }
 0x33f   : > { %2239 = vst.msk [vmem:[%s3842_s14 + $0x60] sm:$0xff] %vm2226_vm11, %v2127_v22 }
 0x343   : > { %v2451_v4 = vpop.f32.mrf.mxu1 }
 0x344   : > { %2256 = vst.msk [vmem:[%s3842_s14 + $0xe8] sm:$0xff] %vm2226_vm11, %v2451_v4 }
 0x345   : > { %v2207_v63 = vpop.f32.mrf.mxu1 }
 0x346   : > { %2255 = vst.msk [vmem:[%s3842_s14 + $0xe0] sm:$0xff] %vm2226_vm11, %v2207_v63 }
 0x358   : > { %v2430_v7 = vpop.f32.mrf.mxu0 }
 0x359   : > { %2242 = vst.msk [vmem:[%s3842_s14 + $0x78] sm:$0xff] %vm2226_vm11, %v2430_v7 }
 0x35a   : > { %v2137_v20 = vpop.f32.mrf.mxu0 }
 0x35b   : > { %2241 = vst.msk [vmem:[%s3842_s14 + $0x70] sm:$0xff] %vm2226_vm11, %v2137_v20 }
 0x35f   : > { %v2454_v1 = vpop.f32.mrf.mxu1 }
 0x360   : > { %2258 = vst.msk [vmem:[%s3842_s14 + $0xf8] sm:$0xff] %vm2226_vm11, %v2454_v1 }
 0x361   : > { %v2217_v57 = vpop.f32.mrf.mxu1 }
 0x362   : > { %2257 = vst.msk [vmem:[%s3842_s14 + $0xf0] sm:$0xff] %vm2226_vm11, %v2217_v57 }
 0x363 PF: > { %s14_s15 = sadd.s32 1, %s2508_s15  }
 0x364   : > { %p11_p4 = scmp.ge.s32.totalorder %s14_s15, 4  }
 0x366   :  { %13 = sbr.rel (!%p11_p4) target bundleno = 1 (0x1), region = 68 }

// kernel: dncnn_forward.6
= control target key start
LH: loop header
LB: loop body
LE: loop exit
PB: predicated region body
PF: predicated region fallthrough
CT: control target
= control target key end

     0   :  { %s3124_s21 = smov 0   ;;  %s4690_s0 = inlined_call_operand.vmem [shape: f32[2,16,16,64], index: 0, kind: input, shape index: {}]   ;;  %s4691_s1 = inlined_call_operand.vmem [shape: f32[576,64], index: 1, kind: input, shape index: {}]   ;;  %s4692_s2 = inlined_call_operand.vmem [shape: f32[1,64], index: 2, kind: input, shape index: {}]   ;;  %s4693_s3 = inlined_call_operand.vmem [shape: f32[1,64], index: 3, kind: input, shape index: {}]   ;;  %s4694_s4 = inlined_call_operand.vmem [shape: f32[2,16,16,64], index: 4, kind: output, shape index: {0}]   ;;  %s4695_s5 = inlined_call_operand.vmem [shape: f32[2,1,64], index: 5, kind: output, shape index: {1}]   ;;  %s4696_s6 = inlined_call_operand.vmem [shape: f32[2,1,64], index: 6, kind: output, shape index: {2}]  }
   0x1 LB: > { %s2582_s22 = sadd.s32 4294967295, %s3085_s21   ;;  %p2586_p0 = scmp.ge.s32.totalorder %s3085_s21, 1  ;;  %s3085_s21 = sphi %s3124_s21, %s17_s21  }
   0x2   : > { %p217_p1 = scmp.lt.s32.totalorder %s3085_s21, 3 }
   0x4   : > { %p218_p2 = pnand %p2586_p0, %p217_p1 }
   0x5   : > { %p253_p3 = scmp.lt.s32.totalorder (!%p218_p2), %s2582_s22, 1  ;;  %s3088_s25 = smov (!%p218_p2), 64  }
   0x6   : > { %221 = sbr.rel (%p218_p2) target bundleno = 573 (0x23d), region = 36 }
   0xb   : > { %vm411_vm0 = vcmask 523264   ;;  %vm414_vm1 = vcmask 517120   ;;  %v1444_v0 = vld [vmem:[%s4691_s1 + $0x78] sm:$0xff]  ;;  %s4698_s22 = smov (!%p253_p3, %s2582_s22), 1  ;;  %v3087_v1 = vmov 0.0   ;;  %v1443_v2 = vld [vmem:[%s4691_s1 + $0x70] sm:$0xff] }
   0xc   : > { %412 = vst.msk [vmem:[#allocation2] sm:$0xff] %vm411_vm0, %v3087_v1  ;;  %413 = vst.msk [vmem:[#allocation2 + $0x8] sm:$0xff] %vm411_vm0, %v3087_v1  ;;  %1597 = vmatprep.subr.mxu0 %v3087_v1  ;;  %1822 = vmatprep.subr.mxu1 %v3087_v1  ;;  %v3253_v3 = vld [vmem:[%s4692_s2] ss:$0 sm:$0xff]  ;;  %s2627_s29 = sshll.u32 %s4698_s22, 8  ;;  %v1442_v4 = vld [vmem:[%s4691_s1 + $0x68] sm:$0xff]  ;;  %s265_s16 = scalar_lea.vmem %s4695_s5, %s4698_s22 }
   0xd   : > { %416 = vst.msk [vmem:[#allocation2 + $0x18] sm:$0xff] %vm411_vm0, %v3087_v1  ;;  %417 = vst.msk [vmem:[#allocation2 + $0x20] sm:$0xff] %vm411_vm0, %v3087_v1  ;;  %1598 = vmatpush1.msra.mxu0 %v1444_v0  ;;  %v1476_v5 = vld [vmem:[%s4691_s1 + $0x178] sm:$0xff]  ;;  %v1475_v6 = vld [vmem:[%s4691_s1 + $0x170] sm:$0xff]  ;;  %s3271_s14 = scalar_lea.vmem %s4690_s0, %s2627_s29  ;;  %s4412_s13 = scalar_lea.vmem %s4694_s4, %s2627_s29  ;;  %vm2373_vm2 = vcmask 516096  }
   0xe   : > { %419 = vst.msk [vmem:[#allocation2 + $0x30] sm:$0xff] %vm411_vm0, %v3087_v1  ;;  %420 = vst.msk [vmem:[#allocation2 + $0x38] sm:$0xff] %vm411_vm0, %v3087_v1  ;;  %1599 = vmatprep.subr.mxu0 %v3087_v1  ;;  %v3276_v7 = vld [vmem:[%s4693_s3] ss:$0 sm:$0xff]  ;;  %1823 = vmatpush1.msra.mxu1 %v1476_v5  ;;  %v271_v10 = vld [vmem:[%s3271_s14 + $0x10] sm:$0xff]  ;;  %s268_s19 = scalar_lea.vmem %s4696_s6, %s4698_s22 }
   0xf   : > { %422 = vst.msk [vmem:[#allocation2 + $0x48] sm:$0xff] %vm411_vm0, %v3087_v1  ;;  %423 = vst.msk [vmem:[#allocation2 + $0x50] sm:$0xff] %vm411_vm0, %v3087_v1  ;;  %1600 = vmatpush1.msra.mxu0 %v1443_v2  ;;  %v1441_v8 = vld [vmem:[%s4691_s1 + $0x60] sm:$0xff]  ;;  %v270_v11 = vld [vmem:[%s3271_s14 + $0x8] sm:$0xff]  ;;  %1824 = vmatprep.subr.mxu1 %v3087_v1  ;;  %v310_v14 = vmul.f32 %v3253_v3, %v271_v10 }
  0x10   : > { %425 = vst.msk [vmem:[#allocation2 + $0x60] sm:$0xff] %vm411_vm0, %v3087_v1  ;;  %426 = vst.msk [vmem:[#allocation2 + $0x68] sm:$0xff] %vm411_vm0, %v3087_v1  ;;  %v269_v9 = vld [vmem:[%s3271_s14] sm:$0xff]  ;;  %1601 = vmatprep.subr.mxu0 %v3087_v1  ;;  %v1440_v12 = vld [vmem:[%s4691_s1 + $0x58] sm:$0xff]  ;;  %v309_v15 = vmul.f32 %v3253_v3, %v270_v11  ;;  %1825 = vmatpush1.msra.mxu1 %v1475_v6 }
  0x11   : > { %428 = vst.msk [vmem:[#allocation2 + $0x78] sm:$0xff] %vm411_vm0, %v3087_v1  ;;  %429 = vst.msk [vmem:[#allocation2 + $0x80] sm:$0xff] %vm411_vm0, %v3087_v1  ;;  %v308_v13 = vmul.f32 %v3253_v3, %v269_v9  ;;  %v272_v16 = vld [vmem:[%s3271_s14 + $0x18] sm:$0xff]  ;;  %v273_v17 = vld [vmem:[%s3271_s14 + $0x20] sm:$0xff]  ;;  %1602 = vmatpush1.msra.mxu0 %v1442_v4  ;;  %1826 = vmatprep.subr.mxu1 %v3087_v1  ;;  %v349_v26 = vadd.f32 %v3276_v7, %v310_v14 }
  0x12   : > { %431 = vst.msk [vmem:[#allocation2 + $0x90] sm:$0xff] %vm411_vm0, %v3087_v1  ;;  %432 = vst.msk [vmem:[#allocation2 + $0x98] sm:$0xff] %vm411_vm0, %v3087_v1  ;;  %v274_v18 = vld [vmem:[%s3271_s14 + $0x28] sm:$0xff]  ;;  %v311_v19 = vmul.f32 %v3253_v3, %v272_v16  ;;  %v312_v20 = vmul.f32 %v3253_v3, %v273_v17  ;;  %v275_v22 = vld [vmem:[%s3271_s14 + $0x30] sm:$0xff]  ;;  %1603 = vmatprep.subr.mxu0 %v3087_v1  ;;  %v348_v27 = vadd.f32 %v3276_v7, %v309_v15 }
  0x13   : > { %434 = vst.msk [vmem:[#allocation2 + $0xa8] sm:$0xff] %vm411_vm0, %v3087_v1  ;;  %435 = vst.msk [vmem:[#allocation2 + $0xb0] sm:$0xff] %vm411_vm0, %v3087_v1  ;;  %v313_v21 = vmul.f32 %v3253_v3, %v274_v18  ;;  %v276_v23 = vld [vmem:[%s3271_s14 + $0x38] sm:$0xff]  ;;  %v1474_v24 = vld [vmem:[%s4691_s1 + $0x168] sm:$0xff]  ;;  %v347_v25 = vadd.f32 %v3276_v7, %v308_v13  ;;  %v314_v28 = vmul.f32 %v3253_v3, %v275_v22  ;;  %1604 = vmatpush1.msra.mxu0 %v1441_v8 }
  0x14   : > { %437 = vst.msk [vmem:[#allocation2 + $0xc0] sm:$0xff] %vm411_vm0, %v3087_v1  ;;  %438 = vst.msk [vmem:[#allocation2 + $0xc8] sm:$0xff] %vm411_vm0, %v3087_v1  ;;  %v1439_v29 = vld [vmem:[%s4691_s1 + $0x50] sm:$0xff]  ;;  %v350_v30 = vadd.f32 %v3276_v7, %v311_v19  ;;  %v351_v31 = vadd.f32 %v3276_v7, %v312_v20  ;;  %v315_v33 = vmul.f32 %v3253_v3, %v276_v23  ;;  %v277_v34 = vld [vmem:[%s3271_s14 + $0x40] sm:$0xff]  ;;  %1605 = vmatprep.subr.mxu0 %v3087_v1 }
  0x15   : > { %440 = vst.msk [vmem:[#allocation2 + $0xd8] sm:$0xff] %vm411_vm0, %v3087_v1  ;;  %441 = vst.msk [vmem:[#allocation2 + $0xe0] sm:$0xff] %vm411_vm0, %v3087_v1  ;;  %v352_v32 = vadd.f32 %v3276_v7, %v313_v21  ;;  %v278_v35 = vld [vmem:[%s3271_s14 + $0x48] sm:$0xff]  ;;  %v279_v36 = vld [vmem:[%s3271_s14 + $0x50] sm:$0xff]  ;;  %v379_v37 = vmax.f32 %v347_v25, 0.0  ;;  %v381_v38 = vmax.f32 %v349_v26, 0.0  ;;  %v353_v40 = vadd.f32 %v3276_v7, %v314_v28  ;;  %1606 = vmatpush1.msra.mxu0 %v1440_v12 }
  0x16   : > { %443 = vst.msk [vmem:[#allocation2 + $0xf0] sm:$0xff] %vm411_vm0, %v3087_v1  ;;  %444 = vst.msk [vmem:[#allocation2 + $0xf8] sm:$0xff] %vm411_vm0, %v3087_v1  ;;  %v380_v39 = vmax.f32 %v348_v27, 0.0  ;;  %v280_v41 = vld [vmem:[%s3271_s14 + $0x58] sm:$0xff]  ;;  %v281_v42 = vld [vmem:[%s3271_s14 + $0x60] sm:$0xff]  ;;  %1827 = vmatpush1.msra.mxu1 %v1474_v24  ;;  %v382_v44 = vmax.f32 %v350_v30, 0.0  ;;  %v354_v47 = vadd.f32 %v3276_v7, %v315_v33  ;;  %1607 = vmatprep.subr.mxu0 %v3087_v1 }
  0x17   : > { %446 = vst.msk [vmem:[#allocation2 + $0x108] sm:$0xff] %vm411_vm0, %v3087_v1  ;;  %447 = vst.msk [vmem:[#allocation2 + $0x110] sm:$0xff] %vm411_vm0, %v3087_v1  ;;  %v282_v43 = vld [vmem:[%s3271_s14 + $0x68] sm:$0xff]  ;;  %v383_v45 = vmax.f32 %v351_v31, 0.0  ;;  %v384_v46 = vmax.f32 %v352_v32, 0.0  ;;  %v283_v48 = vld [vmem:[%s3271_s14 + $0x70] sm:$0xff]  ;;  %1828 = vmatprep.subr.mxu1 %v3087_v1  ;;  %v316_v51 = vmul.f32 %v3253_v3, %v277_v34  ;;  %v317_v52 = vmul.f32 %v3253_v3, %v278_v35 }
  0x18   : > { %449 = vst.msk [vmem:[#allocation2 + $0x120] sm:$0xff] %vm411_vm0, %v3087_v1  ;;  %450 = vst.msk [vmem:[#allocation2 + $0x128] sm:$0xff] %vm411_vm0, %v3087_v1  ;;  %v1438_v49 = vld [vmem:[%s4691_s1 + $0x48] sm:$0xff]  ;;  %v385_v50 = vmax.f32 %v353_v40, 0.0  ;;  %v318_v53 = vmul.f32 %v3253_v3, %v279_v36  ;;  %v284_v54 = vld [vmem:[%s3271_s14 + $0x78] sm:$0xff]  ;;  %1608 = vmatpush1.msra.mxu0 %v1439_v29  ;;  %v386_v55 = vmax.f32 %v354_v47, 0.0  ;;  %v319_v56 = vmul.f32 %v3253_v3, %v280_v41 }
  0x19   : > { %452 = vst.msk [vmem:[#allocation2 + $0x138] sm:$0xff] %vm411_vm0, %v3087_v1  ;;  %453 = vst.msk [vmem:[#allocation2 + $0x140] sm:$0xff] %vm411_vm0, %v3087_v1  ;;  %v320_v57 = vmul.f32 %v3253_v3, %v281_v42  ;;  %v321_v58 = vmul.f32 %v3253_v3, %v282_v43  ;;  %1609 = vmatprep.subr.mxu0 %v3087_v1  ;;  %v1437_v59 = vld [vmem:[%s4691_s1 + $0x40] sm:$0xff]  ;;  %v355_v61 = vadd.f32 %v3276_v7, %v316_v51  ;;  %v1436_v4 = vld [vmem:[%s4691_s1 + $0x38] sm:$0xff] }
  0x1a   : > { %455 = vst.msk [vmem:[#allocation2 + $0x150] sm:$0xff] %vm411_vm0, %v3087_v1  ;;  %456 = vst.msk [vmem:[#allocation2 + $0x158] sm:$0xff] %vm411_vm0, %v3087_v1  ;;  %v1473_v60 = vld [vmem:[%s4691_s1 + $0x160] sm:$0xff]  ;;  %v356_v62 = vadd.f32 %v3276_v7, %v317_v52  ;;  %v357_v63 = vadd.f32 %v3276_v7, %v318_v53  ;;  %v322_v0 = vmul.f32 %v3253_v3, %v283_v48  ;;  %1610 = vmatpush1.msra.mxu0 %v1438_v49  ;;  %v286_v10 = vld [vmem:[%s3271_s14 + $0x88] sm:$0xff] }
  0x1b   : > { %458 = vst.msk [vmem:[#allocation2 + $0x168] sm:$0xff] %vm411_vm0, %v3087_v1  ;;  %459 = vst.msk [vmem:[#allocation2 + $0x170] sm:$0xff] %vm411_vm0, %v3087_v1  ;;  %v285_v2 = vld [vmem:[%s3271_s14 + $0x80] sm:$0xff]  ;;  %v358_v5 = vadd.f32 %v3276_v7, %v319_v56  ;;  %v359_v6 = vadd.f32 %v3276_v7, %v320_v57  ;;  %v360_v8 = vadd.f32 %v3276_v7, %v321_v58  ;;  %v287_v11 = vld [vmem:[%s3271_s14 + $0x90] sm:$0xff]  ;;  %1611 = vmatprep.subr.mxu0 %v3087_v1 }
  0x1c   : > { %461 = vst.msk [vmem:[#allocation2 + $0x180] sm:$0xff] %vm411_vm0, %v3087_v1  ;;  %462 = vst.msk [vmem:[#allocation2 + $0x188] sm:$0xff] %vm411_vm0, %v3087_v1  ;;  %v323_v9 = vmul.f32 %v3253_v3, %v284_v54  ;;  %v1472_v12 = vld [vmem:[%s4691_s1 + $0x158] sm:$0xff]  ;;  %v387_v13 = vmax.f32 %v355_v61, 0.0  ;;  %v388_v14 = vmax.f32 %v356_v62, 0.0  ;;  %v389_v15 = vmax.f32 %v357_v63, 0.0  ;;  %1612 = vmatpush1.msra.mxu0 %v1437_v59  ;;  %1829 = vmatpush1.msra.mxu1 %v1473_v60 }
  0x1d   : > { %464 = vst.msk [vmem:[#allocation2 + $0x198] sm:$0xff] %vm411_vm0, %v3087_v1  ;;  %465 = vst.msk [vmem:[#allocation2 + $0x1a0] sm:$0xff] %vm411_vm0, %v3087_v1  ;;  %v361_v16 = vadd.f32 %v3276_v7, %v322_v0  ;;  %v288_v17 = vld [vmem:[%s3271_s14 + $0x98] sm:$0xff]  ;;  %v289_v18 = vld [vmem:[%s3271_s14 + $0xa0] sm:$0xff]  ;;  %v390_v21 = vmax.f32 %v358_v5, 0.0  ;;  %v391_v22 = vmax.f32 %v359_v6, 0.0  ;;  %1613 = vmatprep.subr.mxu0 %v3087_v1  ;;  %1830 = vmatprep.subr.mxu1 %v3087_v1 }
  0x1e   : > { %415 = vst.msk [vmem:[#allocation2 + $0x10] sm:$0x3] %vm414_vm1, %v3087_v1  ;;  %418 = vst.msk [vmem:[#allocation2 + $0x28] sm:$0x3] %vm414_vm1, %v3087_v1  ;;  %v290_v19 = vld [vmem:[%s3271_s14 + $0xa8] sm:$0xff]  ;;  %v392_v23 = vmax.f32 %v360_v8, 0.0  ;;  %v362_v24 = vadd.f32 %v3276_v7, %v323_v9  ;;  %v324_v28 = vmul.f32 %v3253_v3, %v285_v2  ;;  %v325_v29 = vmul.f32 %v3253_v3, %v286_v10 }
  0x1f   : > { %421 = vst.msk [vmem:[#allocation2 + $0x40] sm:$0x3] %vm414_vm1, %v3087_v1  ;;  %424 = vst.msk [vmem:[#allocation2 + $0x58] sm:$0x3] %vm414_vm1, %v3087_v1  ;;  %v532_v20 = vld [vmem:[#allocation2 + $0x1] sm:$0xff]  ;;  %v1435_v25 = vld [vmem:[%s4691_s1 + $0x30] sm:$0xff]  ;;  %v326_v30 = vmul.f32 %v3253_v3, %v287_v11  ;;  %1614 = vmatpush1.msra.mxu0 %v1436_v4  ;;  %1831 = vmatpush1.msra.mxu1 %v1472_v12 }
  0x20   : > { %427 = vst.msk [vmem:[#allocation2 + $0x70] sm:$0x3] %vm414_vm1, %v3087_v1  ;;  %430 = vst.msk [vmem:[#allocation2 + $0x88] sm:$0x3] %vm414_vm1, %v3087_v1  ;;  %v393_v27 = vmax.f32 %v361_v16, 0.0  ;;  %v1434_v31 = vld [vmem:[%s4691_s1 + $0x28] sm:$0xff]  ;;  %1615 = vmatprep.subr.mxu0 %v3087_v1  ;;  %1832 = vmatprep.subr.mxu1 %v3087_v1 }
  0x21   : > { %433 = vst.msk [vmem:[#allocation2 + $0xa0] sm:$0x3] %vm414_vm1, %v3087_v1  ;;  %436 = vst.msk [vmem:[#allocation2 + $0xb8] sm:$0x3] %vm414_vm1, %v3087_v1  ;;  %v1471_v32 = vld [vmem:[%s4691_s1 + $0x150] sm:$0xff]  ;;  %v394_v36 = vmax.f32 %v362_v24, 0.0  ;;  %1616 = vmatpush1.msra.mxu0 %v1435_v25  ;;  %v365_v48 = vadd.f32 %v3276_v7, %v326_v30 }
  0x22   : > { %439 = vst.msk [vmem:[#allocation2 + $0xd0] sm:$0x3] %vm414_vm1, %v3087_v1  ;;  %442 = vst.msk [vmem:[#allocation2 + $0xe8] sm:$0x3] %vm414_vm1, %v3087_v1  ;;  %1617 = vmatprep.subr.mxu0 %v3087_v1  ;;  %v1433_v51 = vld [vmem:[%s4691_s1 + $0x20] sm:$0xff]  ;;  %v292_v57 = vld [vmem:[%s3271_s14 + $0xb8] sm:$0xff]  ;;  %1833 = vmatpush1.msra.mxu1 %v1471_v32 }
  0x23   : > { %445 = vst.msk [vmem:[#allocation2 + $0x100] sm:$0x3] %vm414_vm1, %v3087_v1  ;;  %448 = vst.msk [vmem:[#allocation2 + $0x118] sm:$0x3] %vm414_vm1, %v3087_v1  ;;  %v293_v58 = vld [vmem:[%s3271_s14 + $0xc0] sm:$0xff]  ;;  %v397_v62 = vmax.f32 %v365_v48, 0.0  ;;  %1618 = vmatpush1.msra.mxu0 %v1434_v31  ;;  %1834 = vmatprep.subr.mxu1 %v3087_v1  ;;  %v331_v5 = vmul.f32 %v3253_v3, %v292_v57 }
  0x24   : > { %451 = vst.msk [vmem:[#allocation2 + $0x130] sm:$0x3] %vm414_vm1, %v3087_v1  ;;  %454 = vst.msk [vmem:[#allocation2 + $0x148] sm:$0x3] %vm414_vm1, %v3087_v1  ;;  %1619 = vmatprep.subr.mxu0 %v3087_v1  ;;  %v1432_v6 = vld [vmem:[%s4691_s1 + $0x18] sm:$0xff]  ;;  %v332_v8 = vmul.f32 %v3253_v3, %v293_v58  ;;  %v1470_v9 = vld [vmem:[%s4691_s1 + $0x148] sm:$0xff] }
  0x25   : > { %457 = vst.msk [vmem:[#allocation2 + $0x160] sm:$0x3] %vm414_vm1, %v3087_v1  ;;  %460 = vst.msk [vmem:[#allocation2 + $0x178] sm:$0x3] %vm414_vm1, %v3087_v1  ;;  %v3381_v26 = vld [vmem:[#allocation2 + $0x9] sm:$0xff]  ;;  %1620 = vmatpush1.msra.mxu0 %v1433_v51  ;;  %1835 = vmatpush1.msra.mxu1 %v1470_v9  ;;  %v1468_v31 = vld [vmem:[%s4691_s1 + $0x138] sm:$0xff] }
  0x26   : > { %463 = vst.msk [vmem:[#allocation2 + $0x190] sm:$0x3] %vm414_vm1, %v3087_v1  ;;  %466 = vst.msk [vmem:[#allocation2 + $0x1a8] sm:$0x3] %vm414_vm1, %v3087_v1  ;;  %1621 = vmatprep.subr.mxu0 %v3087_v1  ;;  %1836 = vmatprep.subr.mxu1 %v3087_v1  ;;  %v1458_v57 = vld [vmem:[%s4691_s1 + $0xe8] sm:$0xff]  ;;  %v1456_v9 = vld [vmem:[%s4691_s1 + $0xd8] sm:$0xff] }
  0x27   : > { %468 = vst.msk [vmem:[#allocation2 + $0x19] sm:$0xff] %vm411_vm0, %v379_v37  ;;  %470 = vst.msk [vmem:[#allocation2 + $0x31] sm:$0xff] %vm411_vm0, %v381_v38  ;;  %v327_v37 = vmul.f32 %v3253_v3, %v288_v17  ;;  %v328_v38 = vmul.f32 %v3253_v3, %v289_v18  ;;  %1622 = vmatpush1.msra.mxu0 %v1432_v6  ;;  %v1466_v58 = vld [vmem:[%s4691_s1 + $0x128] sm:$0xff] }
  0x28   : > { %469 = vst.msk [vmem:[#allocation2 + $0x21] sm:$0xff] %vm411_vm0, %v380_v39  ;;  %471 = vst.msk [vmem:[#allocation2 + $0x39] sm:$0xff] %vm411_vm0, %v382_v44  ;;  %v329_v39 = vmul.f32 %v3253_v3, %v290_v19  ;;  %v370_v19 = vadd.f32 %v3276_v7, %v331_v5  ;;  %1623 = vmatprep.subr.mxu0 %v3087_v1  ;;  %v297_v5 = vld [vmem:[%s3271_s14 + $0xe0] sm:$0xff] }
  0x29   : > { %472 = vst.msk [vmem:[#allocation2 + $0x49] sm:$0xff] %vm411_vm0, %v383_v45  ;;  %473 = vst.msk [vmem:[#allocation2 + $0x51] sm:$0xff] %vm411_vm0, %v384_v46  ;;  %v363_v45 = vadd.f32 %v3276_v7, %v324_v28  ;;  %v364_v46 = vadd.f32 %v3276_v7, %v325_v29  ;;  %v366_v49 = vadd.f32 %v3276_v7, %v327_v37  ;;  %v1430_v29 = vld [vmem:[%s4691_s1 + $0x8] sm:$0xff]  ;;  %v1429_v37 = vld [vmem:[%s4691_s1] sm:$0xff] }
  0x2a   : > { %474 = vst.msk [vmem:[#allocation2 + $0x61] sm:$0xff] %vm411_vm0, %v385_v50  ;;  %475 = vst.msk [vmem:[#allocation2 + $0x69] sm:$0xff] %vm411_vm0, %v386_v55  ;;  %v291_v50 = vld [vmem:[%s3271_s14 + $0xb0] sm:$0xff]  ;;  %v367_v56 = vadd.f32 %v3276_v7, %v328_v38  ;;  %v368_v2 = vadd.f32 %v3276_v7, %v329_v39  ;;  %v402_v25 = vmax.f32 %v370_v19, 0.0 }
  0x2b   : > { %476 = vst.msk [vmem:[#allocation2 + $0x79] sm:$0xff] %vm411_vm0, %v387_v13  ;;  %477 = vst.msk [vmem:[#allocation2 + $0x81] sm:$0xff] %vm411_vm0, %v388_v14  ;;  %v395_v54 = vmax.f32 %v363_v45, 0.0  ;;  %v396_v55 = vmax.f32 %v364_v46, 0.0  ;;  %v398_v63 = vmax.f32 %v366_v49, 0.0  ;;  %v330_v4 = vmul.f32 %v3253_v3, %v291_v50  ;;  %v294_v14 = vld [vmem:[%s3271_s14 + $0xc8] sm:$0xff] }
  0x2c   : > { %478 = vst.msk [vmem:[#allocation2 + $0x91] sm:$0xff] %vm411_vm0, %v389_v15  ;;  %479 = vst.msk [vmem:[#allocation2 + $0x99] sm:$0xff] %vm411_vm0, %v390_v21  ;;  %v399_v0 = vmax.f32 %v367_v56, 0.0  ;;  %v400_v13 = vmax.f32 %v368_v2, 0.0  ;;  %v1431_v21 = vld [vmem:[%s4691_s1 + $0x10] sm:$0xff]  ;;  %v333_v30 = vmul.f32 %v3253_v3, %v294_v14 }
  0x2d   : > { %480 = vst.msk [vmem:[#allocation2 + $0xa9] sm:$0xff] %vm411_vm0, %v391_v22  ;;  %481 = vst.msk [vmem:[#allocation2 + $0xb1] sm:$0xff] %vm411_vm0, %v392_v23  ;;  %v369_v18 = vadd.f32 %v3276_v7, %v330_v4  ;;  %v1469_v22 = vld [vmem:[%s4691_s1 + $0x140] sm:$0xff]  ;;  %v295_v23 = vld [vmem:[%s3271_s14 + $0xd0] sm:$0xff]  ;;  %1624 = vmatpush1.msra.mxu0 %v1431_v21 }
  0x2e   : > { %v596_v33 = vld [vmem:[#allocation2 + $0x18] sm:$0xff]  ;;  %v598_v35 = vld [vmem:[#allocation2 + $0x30] sm:$0xff]  ;;  %482 = vst.msk [vmem:[#allocation2 + $0xc1] sm:$0xff] %vm411_vm0, %v393_v27  ;;  %483 = vst.msk [vmem:[#allocation2 + $0xc9] sm:$0xff] %vm411_vm0, %v394_v36  ;;  %1837 = vmatpush1.msra.mxu1 %v1469_v22  ;;  %1625 = vmatprep.subr.mxu0 %v3087_v1  ;;  %v372_v36 = vadd.f32 %v3276_v7, %v333_v30 }
  0x2f   : > { %v534_v34 = vld [vmem:[#allocation2 + $0x19] sm:$0xff]  ;;  %v2759_v40 = vpack.i.bf16 %v532_v20, %v596_v33  ;;  %v535_v43 = vld [vmem:[#allocation2 + $0x21] sm:$0xff]  ;;  %v3417_v53 = vld [vmem:[#allocation2 + $0x31] sm:$0xff]  ;;  %484 = vst.msk [vmem:[#allocation2 + $0xd9] sm:$0xff] %vm411_vm0, %v395_v54  ;;  %v371_v20 = vadd.f32 %v3276_v7, %v332_v8  ;;  %v401_v24 = vmax.f32 %v369_v18, 0.0  ;;  %1838 = vmatprep.subr.mxu1 %v3087_v1  ;;  %1626 = vmatpush1.msra.mxu0 %v1430_v29 }
  0x30   : > { %v2769_v41 = vpack.i.bf16 %v534_v34, %v598_v35  ;;  %v597_v42 = vld [vmem:[#allocation2 + $0x20] sm:$0xff]  ;;  %v599_v44 = vld [vmem:[#allocation2 + $0x38] sm:$0xff]  ;;  %v600_v59 = vld [vmem:[#allocation2 + $0x48] sm:$0xff]  ;;  %485 = vst.msk [vmem:[#allocation2 + $0xe1] sm:$0xff] %vm411_vm0, %v396_v55  ;;  %v334_v35 = vmul.f32 %v3253_v3, %v295_v23  ;;  %1839 = vmatpush1.msra.mxu1 %v1468_v31  ;;  %1627 = vmatprep.subr.mxu0 %v3087_v1 }
  0x31   : > { %v2764_v47 = vpack.i.bf16 %v3381_v26, %v597_v42  ;;  %2760 = vrot.lane.b32.xlu0 %v2759_v40, %s3088_s25  ;;  %v2774_v52 = vpack.i.bf16 %v535_v43, %v599_v44  ;;  %v3422_v60 = vld [vmem:[#allocation2 + $0x39] sm:$0xff]  ;;  %v601_v61 = vld [vmem:[#allocation2 + $0x50] sm:$0xff]  ;;  %486 = vst.msk [vmem:[#allocation2 + $0xf1] sm:$0xff] %vm411_vm0, %v397_v62  ;;  %487 = vst.msk [vmem:[#allocation2 + $0xf9] sm:$0xff] %vm411_vm0, %v398_v63  ;;  %v2779_v10 = vpack.i.bf16 %v3417_v53, %v600_v59 }
  0x32   : > { %2770 = vrot.lane.b32.xlu1 %v2769_v41, %s3088_s25  ;;  %v2784_v11 = vpack.i.bf16 %v3422_v60, %v601_v61  ;;  %v3444_v12 = vld [vmem:[#allocation2 + $0x49] sm:$0xff]  ;;  %488 = vst.msk [vmem:[#allocation2 + $0x109] sm:$0xff] %vm411_vm0, %v399_v0  ;;  %v602_v15 = vld [vmem:[#allocation2 + $0x60] sm:$0xff]  ;;  %v3448_v16 = vld [vmem:[#allocation2 + $0x51] sm:$0xff]  ;;  %v403_v28 = vmax.f32 %v371_v20, 0.0  ;;  %v373_v38 = vadd.f32 %v3276_v7, %v334_v35  ;;  %v404_v42 = vmax.f32 %v372_v36, 0.0  ;;  %1840 = vmatprep.subr.mxu1 %v3087_v1 }
  0x33   : > { %v603_v17 = vld [vmem:[#allocation2 + $0x68] sm:$0xff]  ;;  %489 = vst.msk [vmem:[#allocation2 + $0x111] sm:$0xff] %vm411_vm0, %v400_v13  ;;  %v2789_v26 = vpack.i.bf16 %v3444_v12, %v602_v15  ;;  %v604_v32 = vld [vmem:[#allocation2 + $0x78] sm:$0xff]  ;;  %490 = vst.msk [vmem:[#allocation2 + $0x121] sm:$0xff] %vm411_vm0, %v401_v24  ;;  %1628 = vmatpush1.msra.mxu0 %v1429_v37 }
  0x34   : > { %v2794_v27 = vpack.i.bf16 %v3448_v16, %v603_v17  ;;  %v3475_v33 = vld [vmem:[#allocation2 + $0x61] sm:$0xff]  ;;  %491 = vst.msk [vmem:[#allocation2 + $0x129] sm:$0xff] %vm411_vm0, %v402_v25  ;;  %492 = vst.msk [vmem:[#allocation2 + $0x139] sm:$0xff] %vm411_vm0, %v403_v28  ;;  %v1467_v39 = vld [vmem:[%s4691_s1 + $0x130] sm:$0xff]  ;;  %v2799_v40 = vpack.i.bf16 %v3417_v53, %v604_v32  ;;  %v405_v46 = vmax.f32 %v373_v38, 0.0  ;;  %1629 = vmatprep.subr.mxu0 %v3087_v1 }
  0x35   : > { %2765 = vrot.lane.b32.xlu0 %v2764_v47, %s3088_s25  ;;  %v660_v34 = vld [vmem:[#allocation2 + $0x1a] sm:$0xff]  ;;  %v3495_v44 = vld [vmem:[#allocation2 + $0x69] sm:$0xff]  ;;  %493 = vst.msk [vmem:[#allocation2 + $0x141] sm:$0xff] %vm411_vm0, %v404_v42  ;;  %1841 = vmatpush1.msra.mxu1 %v1467_v39  ;;  %v662_v53 = vld [vmem:[#allocation2 + $0x32] sm:$0xff] }
  0x36   : > { %2775 = vrot.lane.b32.xlu1 %v2774_v52, %s3088_s25  ;;  %v2804_v41 = vpack.i.bf16 %v660_v34, %v3475_v33  ;;  %v605_v43 = vld [vmem:[#allocation2 + $0x80] sm:$0xff]  ;;  %v1460_v47 = vld [vmem:[%s4691_s1 + $0xf8] sm:$0xff]  ;;  %494 = vst.msk [vmem:[#allocation2 + $0x151] sm:$0xff] %vm411_vm0, %v405_v46  ;;  %1842 = vmatprep.subr.mxu1 %v3087_v1  ;;  %v1459_v50 = vld [vmem:[%s4691_s1 + $0xf0] sm:$0xff] }
  0x37   : > { %v661_v45 = vld [vmem:[#allocation2 + $0x22] sm:$0xff]  ;;  %v2809_v48 = vpack.i.bf16 %v3422_v60, %v605_v43  ;;  %v606_v51 = vld [vmem:[#allocation2 + $0x90] sm:$0xff]  ;;  %v3513_v52 = vld [vmem:[#allocation2 + $0x79] sm:$0xff]  ;;  %1630 = vmatpush2.msra.mxu0 %v1460_v47  ;;  %1843 = vmatpush1.msra.mxu1 %v1466_v58 }
  0x38   : > { %v2814_v49 = vpack.i.bf16 %v661_v45, %v3495_v44  ;;  %1631 = vmatprep.subr.mxu0 %v3087_v1  ;;  %v2819_v54 = vpack.i.bf16 %v3444_v12, %v606_v51  ;;  %v2824_v55 = vpack.i.bf16 %v662_v53, %v3513_v52  ;;  %v607_v56 = vld [vmem:[#allocation2 + $0x98] sm:$0xff]  ;;  %v3526_v59 = vld [vmem:[#allocation2 + $0x81] sm:$0xff]  ;;  %1844 = vmatprep.subr.mxu1 %v3087_v1  ;;  %v664_v13 = vld [vmem:[#allocation2 + $0x4a] sm:$0xff] }
  0x39   : > { %2780 = vrot.lane.b32.xlu0 %v2779_v10, %s3088_s25  ;;  %1632 = vmatpush2.msra.mxu0 %v1459_v50  ;;  %v663_v60 = vld [vmem:[#allocation2 + $0x3a] sm:$0xff]  ;;  %v2829_v2 = vpack.i.bf16 %v3448_v16, %v607_v56  ;;  %v336_v10 = vmul.f32 %v3253_v3, %v297_v5  ;;  %v3552_v12 = vld [vmem:[#allocation2 + $0x91] sm:$0xff]  ;;  %v298_v17 = vld [vmem:[%s3271_s14 + $0xe8] sm:$0xff] }
  0x3a   : > { %2785 = vrot.lane.b32.xlu1 %v2784_v11, %s3088_s25  ;;  %1633 = vmatprep.subr.mxu0 %v3087_v1  ;;  %v296_v61 = vld [vmem:[%s3271_s14 + $0xd8] sm:$0xff]  ;;  %v1457_v63 = vld [vmem:[%s4691_s1 + $0xe0] sm:$0xff]  ;;  %v2834_v6 = vpack.i.bf16 %v663_v60, %v3526_v59  ;;  %v608_v11 = vld [vmem:[#allocation2 + $0xa8] sm:$0xff]  ;;  %v337_v19 = vmul.f32 %v3253_v3, %v298_v17  ;;  %v2844_v21 = vpack.i.bf16 %v664_v13, %v3552_v12 }
  0x3b   : > { %1634 = vmatpush2.msra.mxu0 %v1458_v57  ;;  %v335_v62 = vmul.f32 %v3253_v3, %v296_v61  ;;  %v1465_v0 = vld [vmem:[%s4691_s1 + $0x120] sm:$0xff]  ;;  %v1464_v4 = vld [vmem:[%s4691_s1 + $0x118] sm:$0xff]  ;;  %v375_v15 = vadd.f32 %v3276_v7, %v336_v10  ;;  %v1463_v16 = vld [vmem:[%s4691_s1 + $0x110] sm:$0xff]  ;;  %v2839_v20 = vpack.i.bf16 %v3475_v33, %v608_v11 }
  0x3c   : > { %1635 = vmatprep.subr.mxu0 %v3087_v1  ;;  %1845 = vmatpush1.msra.mxu1 %v1465_v0  ;;  %v1455_v18 = vld [vmem:[%s4691_s1 + $0xd0] sm:$0xff]  ;;  %v1462_v23 = vld [vmem:[%s4691_s1 + $0x108] sm:$0xff]  ;;  %v376_v28 = vadd.f32 %v3276_v7, %v337_v19  ;;  %v300_v31 = vld [vmem:[%s3271_s14 + $0xf8] sm:$0xff] }
  0x3d   : > { %2790 = vrot.lane.b32.xlu0 %v2789_v26, %s3088_s25  ;;  %v374_v8 = vadd.f32 %v3276_v7, %v335_v62  ;;  %1636 = vmatpush2.msra.mxu0 %v1457_v63  ;;  %v407_v22 = vmax.f32 %v375_v15, 0.0  ;;  %v299_v24 = vld [vmem:[%s3271_s14 + $0xf0] sm:$0xff]  ;;  %v3575_v26 = vld [vmem:[#allocation2 + $0x99] sm:$0xff]  ;;  %v1454_v30 = vld [vmem:[%s4691_s1 + $0xc8] sm:$0xff]  ;;  %v339_v35 = vmul.f32 %v3253_v3, %v300_v31 }
  0x3e   : > { %2795 = vrot.lane.b32.xlu1 %v2794_v27, %s3088_s25  ;;  %1846 = vmatprep.subr.mxu1 %v3087_v1  ;;  %v609_v25 = vld [vmem:[#allocation2 + $0xb0] sm:$0xff]  ;;  %v338_v29 = vmul.f32 %v3253_v3, %v299_v24  ;;  %v408_v32 = vmax.f32 %v376_v28, 0.0  ;;  %v1461_v33 = vld [vmem:[%s4691_s1 + $0x100] sm:$0xff]  ;;  %v1492_v43 = vld [vmem:[%s4691_s1 + $0x1f8] sm:$0xff] }
  0x3f   : > { %v406_v14 = vmax.f32 %v374_v8, 0.0  ;;  %1637 = vmatprep.subr.mxu0 %v3087_v1  ;;  %1847 = vmatpush1.msra.mxu1 %v1464_v4  ;;  %v665_v27 = vld [vmem:[#allocation2 + $0x52] sm:$0xff]  ;;  %496 = vst.msk [vmem:[#allocation2 + $0x169] sm:$0xff] %vm411_vm0, %v407_v22  ;;  %v2849_v36 = vpack.i.bf16 %v3495_v44, %v609_v25  ;;  %v1453_v38 = vld [vmem:[%s4691_s1 + $0xc0] sm:$0xff]  ;;  %v378_v42 = vadd.f32 %v3276_v7, %v339_v35  ;;  %v667_v50 = vld [vmem:[#allocation2 + $0x6a] sm:$0xff] }
  0x40   : > { %1638 = vmatpush2.msra.mxu0 %v1456_v9  ;;  %1848 = vmatprep.subr.mxu1 %v3087_v1  ;;  %v377_v34 = vadd.f32 %v3276_v7, %v338_v29  ;;  %v2854_v37 = vpack.i.bf16 %v665_v27, %v3575_v26  ;;  %v610_v39 = vld [vmem:[#allocation2 + $0xc0] sm:$0xff]  ;;  %497 = vst.msk [vmem:[#allocation2 + $0x171] sm:$0xff] %vm411_vm0, %v408_v32  ;;  %v1452_v44 = vld [vmem:[%s4691_s1 + $0xb8] sm:$0xff]  ;;  %v1491_v47 = vld [vmem:[%s4691_s1 + $0x1f0] sm:$0xff] }
  0x41   : > { %2800 = vrot.lane.b32.xlu0 %v2799_v40, %s3088_s25  ;;  %495 = vst.msk [vmem:[#allocation2 + $0x159] sm:$0xff] %vm411_vm0, %v406_v14  ;;  %1639 = vmatprep.subr.mxu0 %v3087_v1  ;;  %v3599_v40 = vld [vmem:[#allocation2 + $0xa9] sm:$0xff]  ;;  %v410_v45 = vmax.f32 %v378_v42, 0.0  ;;  %v2859_v7 = vpack.i.bf16 %v3513_v52, %v610_v39  ;;  %v612_v56 = vld [vmem:[#allocation2 + $0xd8] sm:$0xff]  ;;  %v3639_v57 = vld [vmem:[#allocation2 + $0xc1] sm:$0xff] }
  0x42   : > { %2805 = vrot.lane.b32.xlu1 %v2804_v41, %s3088_s25  ;;  %1849 = vmatpush1.msra.mxu1 %v1463_v16  ;;  %v666_v41 = vld [vmem:[#allocation2 + $0x62] sm:$0xff]  ;;  %v409_v3 = vmax.f32 %v377_v34, 0.0  ;;  %v1451_v51 = vld [vmem:[%s4691_s1 + $0xb0] sm:$0xff]  ;;  %v668_v58 = vld [vmem:[#allocation2 + $0x7a] sm:$0xff]  ;;  %v2879_v61 = vpack.i.bf16 %v3552_v12, %v612_v56 }
  0x43   : > { %1640 = vmatpush2.msra.mxu0 %v1455_v18  ;;  %1850 = vmatprep.subr.mxu1 %v3087_v1  ;;  %v2864_v46 = vpack.i.bf16 %v666_v41, %v3599_v40  ;;  %499 = vst.msk [vmem:[#allocation2 + $0x189] sm:$0xff] %vm411_vm0, %v410_v45  ;;  %v1490_v52 = vld [vmem:[%s4691_s1 + $0x1e8] sm:$0xff]  ;;  %v1449_v60 = vld [vmem:[%s4691_s1 + $0xa0] sm:$0xff]  ;;  %v2884_v62 = vpack.i.bf16 %v668_v58, %v3639_v57  ;;  %v1488_v63 = vld [vmem:[%s4691_s1 + $0x1d8] sm:$0xff] }
  0x44   : > { %1641 = vmatprep.subr.mxu0 %v3087_v1  ;;  %1851 = vmatpush1.msra.mxu1 %v1462_v23  ;;  %498 = vst.msk [vmem:[#allocation2 + $0x181] sm:$0xff] %vm411_vm0, %v409_v3  ;;  %v613_v0 = vld [vmem:[#allocation2 + $0xe0] sm:$0xff]  ;;  %v1448_v5 = vld [vmem:[%s4691_s1 + $0x98] sm:$0xff]  ;;  %v1447_v10 = vld [vmem:[%s4691_s1 + $0x90] sm:$0xff] }
  0x45   : > { %2810 = vrot.lane.b32.xlu0 %v2809_v48, %s3088_s25  ;;  %1642 = vmatpush2.msra.mxu0 %v1454_v30  ;;  %v611_v48 = vld [vmem:[#allocation2 + $0xc8] sm:$0xff]  ;;  %v2889_v8 = vpack.i.bf16 %v3575_v26, %v613_v0  ;;  %v614_v11 = vld [vmem:[#allocation2 + $0xf0] sm:$0xff]  ;;  %v3675_v12 = vld [vmem:[#allocation2 + $0xd9] sm:$0xff] }
  0x46   : > { %2815 = vrot.lane.b32.xlu1 %v2814_v49, %s3088_s25  ;;  %1852 = vmatprep.subr.mxu1 %v3087_v1  ;;  %v3620_v49 = vld [vmem:[#allocation2 + $0xb1] sm:$0xff]  ;;  %v2869_v53 = vpack.i.bf16 %v3526_v59, %v611_v48  ;;  %v1489_v59 = vld [vmem:[%s4691_s1 + $0x1e0] sm:$0xff]  ;;  %v1486_v14 = vld [vmem:[%s4691_s1 + $0x1c8] sm:$0xff]  ;;  %v2899_v16 = vpack.i.bf16 %v3599_v40, %v614_v11 }
  0x47   : > { %1643 = vmatprep.subr.mxu0 %v3087_v1  ;;  %1853 = vmatpush1.msra.mxu1 %v1461_v33  ;;  %v669_v4 = vld [vmem:[#allocation2 + $0x82] sm:$0xff]  ;;  %v670_v13 = vld [vmem:[#allocation2 + $0x92] sm:$0xff]  ;;  %v672_v29 = vld [vmem:[#allocation2 + $0xaa] sm:$0xff] }
  0x48   : > { %1644 = vmatpush2.msra.mxu0 %v1453_v38  ;;  %1854 = vmatprep.subr.mxu1 %v3087_v1  ;;  %v1446_v15 = vld [vmem:[%s4691_s1 + $0x88] sm:$0xff]  ;;  %v2904_v17 = vpack.i.bf16 %v670_v13, %v3675_v12  ;;  %v1485_v18 = vld [vmem:[%s4691_s1 + $0x1c0] sm:$0xff]  ;;  %v615_v19 = vld [vmem:[#allocation2 + $0xf8] sm:$0xff] }
  0x49   : > { %2820 = vrot.lane.b32.xlu0 %v2819_v54, %s3088_s25  ;;  %1645 = vmatprep.subr.mxu0 %v3087_v1  ;;  %v2874_v54 = vpack.i.bf16 %v667_v50, %v3620_v49  ;;  %v1445_v22 = vld [vmem:[%s4691_s1 + $0x80] sm:$0xff]  ;;  %v3704_v23 = vld [vmem:[%s4691_s1 + $0x238] sm:$0xff]  ;;  %v2909_v25 = vpack.i.bf16 %v3620_v49, %v615_v19  ;;  %v616_v27 = vld [vmem:[#allocation2 + $0x108] sm:$0xff] }
  0x4a   : > { %2825 = vrot.lane.b32.xlu1 %v2824_v55, %s3088_s25  ;;  %1855 = vmatpush2.msra.mxu1 %v1492_v43  ;;  %v1450_v55 = vld [vmem:[%s4691_s1 + $0xa8] sm:$0xff]  ;;  %v1484_v24 = vld [vmem:[%s4691_s1 + $0x1b8] sm:$0xff]  ;;  %v1483_v30 = vld [vmem:[%s4691_s1 + $0x1b0] sm:$0xff]  ;;  %v2919_v31 = vpack.i.bf16 %v3639_v57, %v616_v27 }
  0x4b   : > { %1646 = vmatpush2.msra.mxu0 %v1452_v44  ;;  %1856 = vmatprep.subr.mxu1 %v3087_v1  ;;  %v3713_v28 = vld [vmem:[#allocation2 + $0xf1] sm:$0xff]  ;;  %v1482_v33 = vld [vmem:[%s4691_s1 + $0x1a8] sm:$0xff]  ;;  %v553_v35 = vld [vmem:[#allocation2 + $0xf9] sm:$0xff] }
  0x4c   : > { %1647 = vmatprep.subr.mxu0 %v3087_v1  ;;  %1857 = vmatpush2.msra.mxu1 %v1491_v47  ;;  %v2924_v32 = vpack.i.bf16 %v672_v29, %v3713_v28  ;;  %v617_v34 = vld [vmem:[#allocation2 + $0x110] sm:$0xff]  ;;  %v618_v40 = vld [vmem:[#allocation2 + $0x120] sm:$0xff]  ;;  %v1480_v42 = vld [vmem:[%s4691_s1 + $0x198] sm:$0xff] }
  0x4d   : > { %2830 = vrot.lane.b32.xlu0 %v2829_v2, %s3088_s25  ;;  %1648 = vmatpush2.msra.mxu0 %v1451_v51  ;;  %v3657_v2 = vld [vmem:[#allocation2 + $0xc9] sm:$0xff]  ;;  %v2939_v43 = vpack.i.bf16 %v3675_v12, %v618_v40  ;;  %v620_v51 = vld [vmem:[#allocation2 + $0x138] sm:$0xff]  ;;  %v621_v57 = vld [vmem:[#allocation2 + $0x140] sm:$0xff] }
  0x4e   : > { %2835 = vrot.lane.b32.xlu1 %v2834_v6, %s3088_s25  ;;  %1858 = vmatprep.subr.mxu1 %v3087_v1  ;;  %v1487_v6 = vld [vmem:[%s4691_s1 + $0x1d0] sm:$0xff]  ;;  %v2894_v9 = vpack.i.bf16 %v669_v4, %v3657_v2  ;;  %v2929_v38 = vpack.i.bf16 %v3657_v2, %v617_v34  ;;  %v674_v3 = vld [vmem:[#allocation2 + $0xc2] sm:$0xff]  ;;  %v623_v4 = vld [vmem:[#allocation2 + $0x158] sm:$0xff] }
  0x4f   : > { %1649 = vmatprep.subr.mxu0 %v3087_v1  ;;  %1859 = vmatpush2.msra.mxu1 %v1490_v52  ;;  %v554_v41 = vld [vmem:[#allocation2 + $0x109] sm:$0xff]  ;;  %v556_v52 = vld [vmem:[#allocation2 + $0x121] sm:$0xff]  ;;  %v560_v11 = vld [vmem:[#allocation2 + $0x151] sm:$0xff] }
  0x50   : > { %1650 = vmatpush2.msra.mxu0 %v1450_v55  ;;  %1860 = vmatprep.subr.mxu1 %v3087_v1  ;;  %v2944_v44 = vpack.i.bf16 %v674_v3, %v554_v41  ;;  %v1479_v45 = vld [vmem:[%s4691_s1 + $0x190] sm:$0xff]  ;;  %v1478_v48 = vld [vmem:[%s4691_s1 + $0x188] sm:$0xff]  ;;  %v2959_v55 = vpack.i.bf16 %v3713_v28, %v620_v51 }
  0x51   : > { %2840 = vrot.lane.b32.xlu0 %v2839_v20, %s3088_s25  ;;  %1651 = vmatprep.subr.mxu0 %v3087_v1  ;;  %v3693_v20 = vld [vmem:[#allocation2 + $0xe1] sm:$0xff]  ;;  %v675_v47 = vld [vmem:[#allocation2 + $0xca] sm:$0xff] }
  0x52   : > { %2845 = vrot.lane.b32.xlu1 %v2844_v21, %s3088_s25  ;;  %1861 = vmatpush2.msra.mxu1 %v1489_v59  ;;  %v671_v21 = vld [vmem:[#allocation2 + $0x9a] sm:$0xff]  ;;  %v557_v58 = vld [vmem:[#allocation2 + $0x129] sm:$0xff]  ;;  %v563_v27 = vld [vmem:[#allocation2 + $0x171] sm:$0xff] }
  0x53   : > { %1652 = vmatpush2.msra.mxu0 %v1449_v60  ;;  %1862 = vmatprep.subr.mxu1 %v3087_v1  ;;  %v2914_v26 = vpack.i.bf16 %v671_v21, %v3693_v20  ;;  %v677_v59 = vld [vmem:[#allocation2 + $0xe2] sm:$0xff]  ;;  %v2969_v60 = vpack.i.bf16 %v553_v35, %v621_v57  ;;  %v680_v12 = vld [vmem:[#allocation2 + $0x10a] sm:$0xff] }
  0x54   : > { %1653 = vmatprep.subr.mxu0 %v3087_v1  ;;  %1863 = vmatpush2.msra.mxu1 %v1488_v63  ;;  %v678_v63 = vld [vmem:[#allocation2 + $0xf2] sm:$0xff]  ;;  %v562_v21 = vld [vmem:[#allocation2 + $0x169] sm:$0xff] }
  0x55   : > { %2850 = vrot.lane.b32.xlu0 %v2849_v36, %s3088_s25  ;;  %1654 = vmatpush2.msra.mxu0 %v1448_v5  ;;  %v673_v36 = vld [vmem:[#allocation2 + $0xb2] sm:$0xff]  ;;  %v559_v5 = vld [vmem:[#allocation2 + $0x141] sm:$0xff]  ;;  %v683_v28 = vld [vmem:[#allocation2 + $0x12a] sm:$0xff] }
  0x56   : > { %2855 = vrot.lane.b32.xlu1 %v2854_v37, %s3088_s25  ;;  %1864 = vmatprep.subr.mxu1 %v3087_v1  ;;  %v1481_v37 = vld [vmem:[%s4691_s1 + $0x1a0] sm:$0xff]  ;;  %v2934_v39 = vpack.i.bf16 %v673_v36, %v553_v35  ;;  %v686_v35 = vld [vmem:[#allocation2 + $0x152] sm:$0xff]  ;;  %v688_v40 = vld [vmem:[#allocation2 + $0x16a] sm:$0xff] }
  0x57   : > { %1655 = vmatprep.subr.mxu0 %v3087_v1  ;;  %1865 = vmatpush2.msra.mxu1 %v1487_v6  ;;  %v679_v6 = vld [vmem:[#allocation2 + $0xfa] sm:$0xff]  ;;  %v501_v57 = vld [vmem:[#allocation2 + $0x8] sm:$0xff] }
  0x58   : > { %1656 = vmatpush2.msra.mxu0 %v1447_v10  ;;  %1866 = vmatprep.subr.mxu1 %v3087_v1  ;;  %v624_v10 = vld [vmem:[#allocation2 + $0x168] sm:$0xff]  ;;  %v687_v36 = vld [vmem:[#allocation2 + $0x15a] sm:$0xff] }
  0x59   : > { %2860 = vrot.lane.b32.xlu0 %v2859_v7, %s3088_s25  ;;  %1657 = vmatprep.subr.mxu0 %v3087_v1  ;;  %v619_v7 = vld [vmem:[#allocation2 + $0x128] sm:$0xff]  ;;  %v2999_v13 = vpack.i.bf16 %v556_v52, %v624_v10 }
  0x5a   : > { %2865 = vrot.lane.b32.xlu1 %v2864_v46, %s3088_s25  ;;  %1867 = vmatpush2.msra.mxu1 %v1486_v14  ;;  %v555_v46 = vld [vmem:[#allocation2 + $0x111] sm:$0xff]  ;;  %v2949_v49 = vpack.i.bf16 %v3693_v20, %v619_v7  ;;  %v3004_v14 = vpack.i.bf16 %v680_v12, %v560_v11  ;;  %v626_v20 = vld [vmem:[#allocation2 + $0x180] sm:$0xff] }
  0x5b   : > { %1658 = vmatpush2.msra.mxu0 %v1446_v15  ;;  %1868 = vmatprep.subr.mxu1 %v3087_v1  ;;  %v2954_v50 = vpack.i.bf16 %v675_v47, %v555_v46  ;;  %v625_v15 = vld [vmem:[#allocation2 + $0x170] sm:$0xff] }
  0x5c   : > { %1659 = vmatprep.subr.mxu0 %v3087_v1  ;;  %1869 = vmatpush2.msra.mxu1 %v1485_v18  ;;  %v3009_v18 = vpack.i.bf16 %v557_v58, %v625_v15 }
  0x5d   : > { %2870 = vrot.lane.b32.xlu0 %v2869_v53, %s3088_s25  ;;  %1660 = vmatpush2.msra.mxu0 %v1445_v22  ;;  %v676_v53 = vld [vmem:[#allocation2 + $0xda] sm:$0xff]  ;;  %v682_v22 = vld [vmem:[#allocation2 + $0x122] sm:$0xff] }
  0x5e   : > { %2875 = vrot.lane.b32.xlu1 %v2874_v54, %s3088_s25  ;;  %1870 = vmatprep.subr.mxu1 %v3087_v1  ;;  %v1477_v54 = vld [vmem:[%s4691_s1 + $0x180] sm:$0xff]  ;;  %v2964_v56 = vpack.i.bf16 %v676_v53, %v556_v52 }
  0x5f   : > { %2669 = vmatprep.subr.mxu0 %v3704_v23  ;;  %1871 = vmatpush2.msra.mxu1 %v1484_v24  ;;  %v690_v52 = vld [vmem:[#allocation2 + $0x182] sm:$0xff]  ;;  %v755_v53 = vld [vmem:[#allocation2 + $0x199] sm:$0xff] }
  0x60   : > { %1872 = vmatprep.subr.mxu1 %v3087_v1 }
  0x61   : > { %2880 = vrot.lane.b32.xlu0 %v2879_v61, %s3088_s25  ;;  %1873 = vmatpush2.msra.mxu1 %v1483_v30  ;;  %v2974_v61 = vpack.i.bf16 %v677_v59, %v557_v58  ;;  %v3034_v30 = vpack.i.bf16 %v683_v28, %v563_v27  ;;  %v566_v58 = vld [vmem:[#allocation2 + $0x1a] sm:$0xff] }
  0x62   : > { %2885 = vrot.lane.b32.xlu1 %v2884_v62, %s3088_s25  ;;  %1874 = vmatprep.subr.mxu1 %v3087_v1  ;;  %v558_v62 = vld [vmem:[#allocation2 + $0x139] sm:$0xff] }
  0x63   : > { %1875 = vmatpush2.msra.mxu1 %v1482_v33  ;;  %v2984_v2 = vpack.i.bf16 %v678_v63, %v558_v62  ;;  %v3019_v24 = vpack.i.bf16 %v558_v62, %v626_v20  ;;  %v756_v62 = vld [vmem:[#allocation2 + $0x1a1] sm:$0xff] }
  0x64   : > { %1876 = vmatprep.subr.mxu1 %v3087_v1 }
  0x65   : > { %2890 = vrot.lane.b32.xlu0 %v2889_v8, %s3088_s25  ;;  %1877 = vmatpush2.msra.mxu1 %v1481_v37  ;;  %v2989_v8 = vpack.i.bf16 %v555_v46, %v623_v4  ;;  %v3049_v37 = vpack.i.bf16 %v686_v35, %v562_v21 }
  0x66   : > { %2895 = vrot.lane.b32.xlu1 %v2894_v9, %s3088_s25  ;;  %1878 = vmatprep.subr.mxu1 %v3087_v1  ;;  %v2994_v9 = vpack.i.bf16 %v679_v6, %v559_v5 }
  0x67   : > { %1879 = vmatpush2.msra.mxu1 %v1480_v42 }
  0x68   : > { %1880 = vmatprep.subr.mxu1 %v3087_v1 }
  0x69   : > { %2900 = vrot.lane.b32.xlu0 %v2899_v16, %s3088_s25  ;;  %1881 = vmatpush2.msra.mxu1 %v1479_v45  ;;  %v561_v16 = vld [vmem:[#allocation2 + $0x159] sm:$0xff]  ;;  %v754_v45 = vld [vmem:[#allocation2 + $0x189] sm:$0xff] }
  0x6a   : > { %2905 = vrot.lane.b32.xlu1 %v2904_v17, %s3088_s25  ;;  %1882 = vmatprep.subr.mxu1 %v3087_v1  ;;  %v681_v17 = vld [vmem:[#allocation2 + $0x112] sm:$0xff] }
  0x6b   : > { %1883 = vmatpush2.msra.mxu1 %v1478_v48  ;;  %v3014_v19 = vpack.i.bf16 %v681_v17, %v561_v16 }
  0x6c   : > { %1884 = vmatprep.subr.mxu1 %v3087_v1  ;;  %v622_v1 = vld [vmem:[#allocation2 + $0x150] sm:$0xff] }
  0x6d   : > { %2910 = vrot.lane.b32.xlu0 %v2909_v25, %s3088_s25  ;;  %1885 = vmatpush2.msra.mxu1 %v1477_v54  ;;  %v2979_v0 = vpack.i.bf16 %v554_v41, %v622_v1  ;;  %v3024_v25 = vpack.i.bf16 %v682_v22, %v562_v21  ;;  %v753_v41 = vld [vmem:[#allocation2 + $0x181] sm:$0xff]  ;;  %v691_v1 = vld [vmem:[#allocation2 + $0x18a] sm:$0xff]  ;;  %v568_v21 = vld [vmem:[#allocation2 + $0x32] sm:$0xff] }
  0x6e   : > { %2915 = vrot.lane.b32.xlu1 %v2914_v26, %s3088_s25  ;;  %2733 = vmatprep.subr.mxu1 %v3704_v23  ;;  %v627_v26 = vld [vmem:[#allocation2 + $0x188] sm:$0xff]  ;;  %v3059_v47 = vpack.i.bf16 %v688_v40, %v753_v41  ;;  %v3074_v12 = vpack.i.bf16 %v691_v1, %v756_v62  ;;  %v3816_v22 = vld [vmem:[%s4691_s1 + $0x220] sm:$0xff] }
  0x6f   : > { %v3029_v29 = vpack.i.bf16 %v559_v5, %v627_v26  ;;  %v3823_v26 = vld [vmem:[%s4691_s1 + $0x218] sm:$0xff] }
  0x71   : > { %2920 = vrot.lane.b32.xlu0 %v2919_v31, %s3088_s25  ;;  %v684_v31 = vld [vmem:[#allocation2 + $0x13a] sm:$0xff] }
  0x72   : > { %2925 = vrot.lane.b32.xlu1 %v2924_v32, %s3088_s25  ;;  %v685_v32 = vld [vmem:[#allocation2 + $0x142] sm:$0xff]  ;;  %v3039_v33 = vpack.i.bf16 %v684_v31, %v560_v11 }
  0x73   : > { %v3044_v34 = vpack.i.bf16 %v685_v32, %v561_v16  ;;  %v567_v11 = vld [vmem:[#allocation2 + $0x22] sm:$0xff]  ;;  %v628_v32 = vld [vmem:[#allocation2 + $0x19] sm:$0xff] }
  0x75   : > { %2930 = vrot.lane.b32.xlu0 %v2929_v38, %s3088_s25  ;;  %v3054_v38 = vpack.i.bf16 %v687_v36, %v563_v27 }
  0x76   : > { %2935 = vrot.lane.b32.xlu1 %v2934_v39, %s3088_s25  ;;  %v564_v39 = vld [vmem:[#allocation2 + $0x2] sm:$0xff] }
  0x79   : > { %2940 = vrot.lane.b32.xlu0 %v2939_v43, %s3088_s25  ;;  %v500_v43 = vld [vmem:[#allocation2] sm:$0xff] }
  0x7a   : > { %2945 = vrot.lane.b32.xlu1 %v2944_v44, %s3088_s25  ;;  %v689_v44 = vld [vmem:[#allocation2 + $0x172] sm:$0xff] }
  0x7b   : > { %v3064_v51 = vpack.i.bf16 %v689_v44, %v754_v45  ;;  %v629_v45 = vld [vmem:[#allocation2 + $0x21] sm:$0xff] }
  0x7d   : > { %2950 = vrot.lane.b32.xlu0 %v2949_v49, %s3088_s25 }
  0x7e   : > { %2955 = vrot.lane.b32.xlu1 %v2954_v50, %s3088_s25 }
  0x81   : > { %2960 = vrot.lane.b32.xlu0 %v2959_v55, %s3088_s25 }
  0x82   : > { %2965 = vrot.lane.b32.xlu1 %v2964_v56, %s3088_s25  ;;  %v565_v56 = vld [vmem:[#allocation2 + $0xa] sm:$0xff] }
  0x85   : > { %2970 = vrot.lane.b32.xlu0 %v2969_v60, %s3088_s25 }
  0x86   : > { %2975 = vrot.lane.b32.xlu1 %v2974_v61, %s3088_s25  ;;  %v3787_v61 = vld [vmem:[%s4691_s1 + $0x230] sm:$0xff] }
  0x89   : > { %2980 = vrot.lane.b32.xlu0 %v2979_v0, %s3088_s25  ;;  %v3069_v0 = vpack.i.bf16 %v690_v52, %v755_v53 }
  0x8a   : > { %2985 = vrot.lane.b32.xlu1 %v2984_v2, %s3088_s25 }
  0x8d   : > { %2990 = vrot.lane.b32.xlu0 %v2989_v8, %s3088_s25  ;;  %v502_v8 = vld [vmem:[#allocation2 + $0x18] sm:$0xff] }
  0x8e   : > { %2995 = vrot.lane.b32.xlu1 %v2994_v9, %s3088_s25 }
  0x91   : > { %3000 = vrot.lane.b32.xlu0 %v2999_v13, %s3088_s25  ;;  %v3801_v13 = vld [vmem:[%s4691_s1 + $0x228] sm:$0xff] }
  0x92   : > { %3005 = vrot.lane.b32.xlu1 %v3004_v14, %s3088_s25 }
  0x95   : > { %3010 = vrot.lane.b32.xlu0 %v3009_v18, %s3088_s25  ;;  %v503_v18 = vld [vmem:[#allocation2 + $0x20] sm:$0xff] }
  0x96   : > { %3015 = vrot.lane.b32.xlu1 %v3014_v19, %s3088_s25 }
  0x99   : > { %3020 = vrot.lane.b32.xlu0 %v3019_v24, %s3088_s25 }
  0x9a   : > { %3025 = vrot.lane.b32.xlu1 %v3024_v25, %s3088_s25 }
  0x9d   : > { %3030 = vrot.lane.b32.xlu0 %v3029_v29, %s3088_s25  ;;  %v693_v29 = vld [vmem:[#allocation2 + $0x30] sm:$0xff] }
  0x9e   : > { %3035 = vrot.lane.b32.xlu1 %v3034_v30, %s3088_s25 }
  0xa1   : > { %3040 = vrot.lane.b32.xlu0 %v3039_v33, %s3088_s25  ;;  %v569_v33 = vld [vmem:[#allocation2 + $0x3a] sm:$0xff] }
  0xa2   : > { %3045 = vrot.lane.b32.xlu1 %v3044_v34, %s3088_s25  ;;  %v3836_v34 = vld [vmem:[%s4691_s1 + $0x210] sm:$0xff] }
  0xa3   : > { %v2761_v3 = vpop.permute.xlu0 %2760 }
  0xa4   : > { %v2771_v42 = vpop.permute.xlu1 %2770  ;;  %v2763_v7 = vunpack.i.h.bf16 %v2761_v3  ;;  %v2762_v46 = vunpack.i.l.bf16 %v2761_v3 }
  0xa5   : > { %3050 = vrot.lane.b32.xlu0 %v3049_v37, %s3088_s25  ;;  %v2772_v48 = vunpack.i.l.bf16 %v2771_v42  ;;  %v2773_v63 = vunpack.i.h.bf16 %v2771_v42  ;;  %v694_v42 = vld [vmem:[#allocation2 + $0x38] sm:$0xff] }
  0xa6   : > { %3055 = vrot.lane.b32.xlu1 %v3054_v38, %s3088_s25  ;;  %v1333_v49 = vsel %vm411_vm0, %v564_v39, %v2762_v46  ;;  %v1301_v50 = vsel %vm411_vm0, %v500_v43, %v2763_v7  ;;  %v3853_v7 = vld [vmem:[#allocation2 + $0x4a] sm:$0xff] }
  0xa7   : > { %v2766_v54 = vpop.permute.xlu0 %2765  ;;  %1661 = vmatprep.mubr.f32.mxu0 %v1333_v49  ;;  %v1335_v6 = vsel %vm411_vm0, %v566_v58, %v2772_v48  ;;  %v1303_v15 = vsel %vm411_vm0, %v502_v8, %v2773_v63  ;;  %v3871_v58 = vld [vmem:[#allocation2 + $0x52] sm:$0xff]  ;;  %v3889_v8 = vld [vmem:[#allocation2 + $0x62] sm:$0xff] }
  0xa8   : > { %v2776_v55 = vpop.permute.xlu1 %2775  ;;  %v2768_v59 = vunpack.i.h.bf16 %v2766_v54  ;;  %v2767_v60 = vunpack.i.l.bf16 %v2766_v54  ;;  %1662 = vmatmul.mubr.f32.vlgmr.msra.gmra.mxu0 %v1301_v50  ;;  %v695_v54 = vld [vmem:[#allocation2 + $0x48] sm:$0xff] }
  0xa9   : > { %2670 = vmatpush3.msra.mxu0 %v3704_v23  ;;  %3060 = vrot.lane.b32.xlu0 %v3059_v47, %s3088_s25  ;;  %v2777_v2 = vunpack.i.l.bf16 %v2776_v55  ;;  %v2778_v14 = vunpack.i.h.bf16 %v2776_v55 }
  0xaa   : > { %v1334_v4 = vsel %vm411_vm0, %v565_v56, %v2767_v60  ;;  %v1302_v5 = vsel %vm411_vm0, %v501_v57, %v2768_v59  ;;  %3065 = vrot.lane.b32.xlu1 %v3064_v51, %s3088_s25  ;;  %2671 = vmatprep.subr.mxu0 %v3787_v61  ;;  %v630_v57 = vld [vmem:[#allocation2 + $0x31] sm:$0xff] }
  0xab   : > { %v2781_v9 = vpop.permute.xlu0 %2780  ;;  %1666 = vmatprep.mubr.f32.mxu0 %v1334_v4  ;;  %2672 = vmatpush3.msra.mxu0 %v3787_v61  ;;  %v1336_v17 = vsel %vm411_vm0, %v567_v11, %v2777_v2  ;;  %v1304_v25 = vsel %vm411_vm0, %v503_v18, %v2778_v14  ;;  %v696_v2 = vld [vmem:[#allocation2 + $0x50] sm:$0xff]  ;;  %v3897_v11 = vld [vmem:[%s4691_s1 + $0x208] sm:$0xff]  ;;  %v697_v18 = vld [vmem:[#allocation2 + $0x60] sm:$0xff] }
  0xac   : > { %v3795_v10 = vpop.permute.xlu1 %2785  ;;  %1667 = vmatmul.mubr.f32.gmra.mxu0 %v1302_v5  ;;  %v2782_v16 = vunpack.i.l.bf16 %v2781_v9  ;;  %2673 = vmatprep.subr.mxu0 %v3801_v13  ;;  %v2783_v24 = vunpack.i.h.bf16 %v2781_v9 }
  0xad   : > { %1671 = vmatprep.mubr.f32.mxu0 %v1335_v6  ;;  %3070 = vrot.lane.b32.xlu0 %v3069_v0, %s3088_s25  ;;  %v2787_v27 = vunpack.i.l.bf16 %v3795_v10  ;;  %v2788_v37 = vunpack.i.h.bf16 %v3795_v10  ;;  %v631_v6 = vld [vmem:[#allocation2 + $0x39] sm:$0xff] }
  0xae   : > { %3075 = vrot.lane.b32.xlu1 %v3074_v12, %s3088_s25  ;;  %2674 = vmatpush3.msra.mxu0 %v3801_v13  ;;  %v1337_v28 = vsel %vm411_vm0, %v568_v21, %v2782_v16  ;;  %v1305_v38 = vsel %vm411_vm0, %v693_v29, %v2783_v24  ;;  %v632_v21 = vld [vmem:[#allocation2 + $0x49] sm:$0xff] }
  0xaf   : > { %v3807_v19 = vpop.permute.xlu0 %2790  ;;  %2675 = vmatprep.subr.mxu0 %v3816_v22  ;;  %v1338_v3 = vsel %vm411_vm0, %v569_v33, %v2787_v27  ;;  %v1306_v49 = vsel %vm411_vm0, %v694_v42, %v2788_v37  ;;  %v3912_v24 = vld [vmem:[#allocation2 + $0x6a] sm:$0xff]  ;;  %v3920_v27 = vld [vmem:[%s4691_s1 + $0x200] sm:$0xff] }
  0xb0   : > { %v3809_v20 = vpop.permute.xlu1 %2795  ;;  %1672 = vmatmul.mubr.f32.gmra.mxu0 %v1303_v15  ;;  %v2792_v39 = vunpack.i.l.bf16 %v3807_v19  ;;  %v2793_v48 = vunpack.i.h.bf16 %v3807_v19 }
  0xb1   : > { %1676 = vmatprep.mubr.f32.mxu0 %v1336_v17  ;;  %2676 = vmatpush3.msra.mxu0 %v3816_v22  ;;  %v2797_v50 = vunpack.i.l.bf16 %v3809_v20  ;;  %v2798_v60 = vunpack.i.h.bf16 %v3809_v20 }
  0xb2   : > { %2677 = vmatprep.subr.mxu0 %v3823_v26  ;;  %v1339_v53 = vsel %vm411_vm0, %v3853_v7, %v2792_v39  ;;  %v1307_v1 = vsel %vm411_vm0, %v695_v54, %v2793_v48  ;;  %v3935_v39 = vld [vmem:[#allocation2 + $0x7a] sm:$0xff] }
  0xb3   : > { %v3828_v30 = vpop.permute.xlu0 %2800  ;;  %2678 = vmatpush3.msra.mxu0 %v3823_v26 }
  0xb4   : > { %v3830_v31 = vpop.permute.xlu1 %2805  ;;  %v2803_v35 = vunpack.i.h.bf16 %v3828_v30  ;;  %1677 = vmatmul.mubr.f32.gmra.mxu0 %v1304_v25  ;;  %2679 = vmatprep.subr.mxu0 %v3836_v34  ;;  %v2802_v62 = vunpack.i.l.bf16 %v3828_v30 }
  0xb5   : > { %v2808_v36 = vunpack.i.h.bf16 %v3830_v31  ;;  %1681 = vmatprep.mubr.f32.mxu0 %v1337_v28  ;;  %2680 = vmatpush3.msra.mxu0 %v3836_v34  ;;  %v2807_v12 = vunpack.i.l.bf16 %v3830_v31 }
  0xb6   : > { %v1397_v40 = vsel %vm411_vm0, %v693_v29, %v2803_v35  ;;  %v1341_v17 = vsel %vm411_vm0, %v3889_v8, %v2802_v62  ;;  %2681 = vmatprep.subr.mxu0 %v3897_v11  ;;  %v698_v35 = vld [vmem:[#allocation2 + $0x68] sm:$0xff]  ;;  %v3971_v62 = vld [vmem:[#allocation2 + $0x92] sm:$0xff] }
  0xb7   : > { %v1365_v41 = vsel %vm411_vm0, %v628_v32, %v2808_v36  ;;  %v3849_v43 = vpop.permute.xlu0 %2810  ;;  %1886 = vmatprep.mubr.f32.mxu1 %v1397_v40  ;;  %v1309_v29 = vsel %vm411_vm0, %v697_v18, %v2807_v12  ;;  %2682 = vmatpush3.msra.mxu0 %v3897_v11 }
  0xb8   : > { %v3851_v44 = vpop.permute.xlu1 %2815  ;;  %v2813_v46 = vunpack.i.h.bf16 %v3849_v43  ;;  %1682 = vmatmul.mubr.f32.gmra.mxu0 %v1305_v38  ;;  %1887 = vmatmul.mubr.f32.vlgmr.msra.gmra.mxu1 %v1365_v41  ;;  %v2812_v14 = vunpack.i.l.bf16 %v3849_v43  ;;  %v633_v38 = vld [vmem:[#allocation2 + $0x51] sm:$0xff] }
  0xb9   : > { %v2818_v47 = vunpack.i.h.bf16 %v3851_v44  ;;  %1686 = vmatprep.mubr.f32.mxu0 %v1338_v3  ;;  %2741 = vmatpush3.msra.mxu1 %v3704_v23  ;;  %v2817_v28 = vunpack.i.l.bf16 %v3851_v44 }
  0xba   : > { %v1398_v51 = vsel %vm411_vm0, %v694_v42, %v2813_v46  ;;  %2734 = vmatprep.subr.mxu1 %v3787_v61  ;;  %v1342_v33 = vsel %vm411_vm0, %v3912_v24, %v2812_v14  ;;  %2683 = vmatprep.subr.mxu0 %v3920_v27  ;;  %v699_v46 = vld [vmem:[#allocation2 + $0x78] sm:$0xff] }
  0xbb   : > { %v1366_v52 = vsel %vm411_vm0, %v629_v45, %v2818_v47  ;;  %v3867_v55 = vpop.permute.xlu0 %2820  ;;  %1891 = vmatprep.mubr.f32.mxu1 %v1398_v51  ;;  %2742 = vmatpush3.msra.mxu1 %v3787_v61  ;;  %v1340_v61 = vsel %vm411_vm0, %v3871_v58, %v2797_v50  ;;  %v3953_v50 = vld [vmem:[#allocation2 + $0x82] sm:$0xff]  ;;  %v3988_v14 = vld [vmem:[#allocation2 + $0x9a] sm:$0xff] }
  0xbc   : > { %v3869_v56 = vpop.permute.xlu1 %2825  ;;  %v2823_v23 = vunpack.i.h.bf16 %v3867_v55  ;;  %1687 = vmatmul.mubr.f32.gmra.mxu0 %v1306_v49  ;;  %1892 = vmatmul.mubr.f32.gmra.mxu1 %v1366_v52  ;;  %v2822_v30 = vunpack.i.l.bf16 %v3867_v55  ;;  %v634_v49 = vld [vmem:[#allocation2 + $0x61] sm:$0xff] }
  0xbd   : > { %v2828_v59 = vunpack.i.h.bf16 %v3869_v56  ;;  %1691 = vmatprep.mubr.f32.mxu0 %v1339_v53  ;;  %2735 = vmatprep.subr.mxu1 %v3801_v13  ;;  %v2827_v3 = vunpack.i.l.bf16 %v3869_v56 }
  0xbe   : > { %v1399_v63 = vsel %vm411_vm0, %v695_v54, %v2823_v23  ;;  %2743 = vmatpush3.msra.mxu1 %v3801_v13  ;;  %v1308_v13 = vsel %vm411_vm0, %v696_v2, %v2798_v60  ;;  %v1343_v45 = vsel %vm411_vm0, %v3935_v39, %v2822_v30  ;;  %2684 = vmatpush3.msra.mxu0 %v3920_v27  ;;  %v700_v23 = vld [vmem:[#allocation2 + $0x80] sm:$0xff]  ;;  %v4003_v30 = vld [vmem:[#allocation2 + $0xaa] sm:$0xff] }
  0xbf   : > { %v1367_v0 = vsel %vm411_vm0, %v630_v57, %v2828_v59  ;;  %v3885_v4 = vpop.permute.xlu0 %2830  ;;  %1896 = vmatprep.mubr.f32.mxu1 %v1399_v63  ;;  %2736 = vmatprep.subr.mxu1 %v3816_v22 }
  0xc0   : > { %v3887_v5 = vpop.permute.xlu1 %2835  ;;  %v2833_v9 = vunpack.i.h.bf16 %v3885_v4  ;;  %1692 = vmatmul.mubr.f32.gmra.mxu0 %v1307_v1  ;;  %1897 = vmatmul.mubr.f32.gmra.mxu1 %v1367_v0  ;;  %v2832_v42 = vunpack.i.l.bf16 %v3885_v4  ;;  %v635_v1 = vld [vmem:[#allocation2 + $0x69] sm:$0xff] }
  0xc1   : > { %v2838_v10 = vunpack.i.h.bf16 %v3887_v5  ;;  %1696 = vmatprep.mubr.f32.mxu0 %v1340_v61  ;;  %2744 = vmatpush3.msra.mxu1 %v3816_v22  ;;  %v2837_v53 = vunpack.i.l.bf16 %v3887_v5 }
  0xc2   : > { %v1400_v15 = vsel %vm411_vm0, %v696_v2, %v2833_v9  ;;  %2737 = vmatprep.subr.mxu1 %v3823_v26  ;;  %v1344_v57 = vsel %vm411_vm0, %v3953_v50, %v2832_v42  ;;  %v638_v42 = vld [vmem:[#allocation2 + $0x91] sm:$0xff] }
  0xc3   : > { %v1368_v16 = vsel %vm411_vm0, %v631_v6, %v2838_v10  ;;  %v3908_v19 = vpop.permute.xlu0 %2840  ;;  %1901 = vmatprep.mubr.f32.mxu1 %v1400_v15  ;;  %2745 = vmatpush3.msra.mxu1 %v3823_v26  ;;  %v1310_v26 = vsel %vm411_vm0, %v698_v35, %v2817_v28  ;;  %v1312_v2 = vsel %vm411_vm0, %v700_v23, %v2837_v53  ;;  %v701_v10 = vld [vmem:[#allocation2 + $0x90] sm:$0xff] }
  0xc4   : > { %v3910_v20 = vpop.permute.xlu1 %2845  ;;  %v2843_v22 = vunpack.i.h.bf16 %v3908_v19  ;;  %1697 = vmatmul.mubr.f32.gmra.mxu0 %v1308_v13  ;;  %1902 = vmatmul.mubr.f32.gmra.mxu1 %v1368_v16  ;;  %v2842_v54 = vunpack.i.l.bf16 %v3908_v19  ;;  %v636_v13 = vld [vmem:[#allocation2 + $0x79] sm:$0xff]  ;;  %v704_v53 = vld [vmem:[#allocation2 + $0xb0] sm:$0xff] }
  0xc5   : > { %v2848_v25 = vunpack.i.h.bf16 %v3910_v20  ;;  %1701 = vmatprep.mubr.f32.mxu0 %v1341_v17  ;;  %2738 = vmatprep.subr.mxu1 %v3836_v34  ;;  %v2847_v61 = vunpack.i.l.bf16 %v3910_v20 }
  0xc6   : > { %v1401_v31 = vsel %vm411_vm0, %v697_v18, %v2843_v22  ;;  %2746 = vmatpush3.msra.mxu1 %v3836_v34  ;;  %v1311_v34 = vsel %vm411_vm0, %v699_v46, %v2827_v3  ;;  %v1345_v9 = vsel %vm411_vm0, %v3971_v62, %v2842_v54 }
  0xc7   : > { %v1369_v32 = vsel %vm411_vm0, %v632_v21, %v2848_v25  ;;  %v3931_v36 = vpop.permute.xlu0 %2850  ;;  %1906 = vmatprep.mubr.f32.mxu1 %v1401_v31  ;;  %2739 = vmatprep.subr.mxu1 %v3897_v11  ;;  %v1313_v18 = vsel %vm411_vm0, %v701_v10, %v2847_v61  ;;  %v702_v25 = vld [vmem:[#allocation2 + $0x98] sm:$0xff] }
  0xc8   : > { %v3933_v37 = vpop.permute.xlu1 %2855  ;;  %v2853_v40 = vunpack.i.h.bf16 %v3931_v36  ;;  %1702 = vmatmul.mubr.f32.gmra.mxu0 %v1309_v29  ;;  %1907 = vmatmul.mubr.f32.gmra.mxu1 %v1369_v32  ;;  %v2852_v4 = vunpack.i.l.bf16 %v3931_v36  ;;  %v637_v29 = vld [vmem:[#allocation2 + $0x81] sm:$0xff] }
  0xc9   : > { %v2858_v41 = vunpack.i.h.bf16 %v3933_v37  ;;  %1706 = vmatprep.mubr.f32.mxu0 %v1342_v33  ;;  %2747 = vmatpush3.msra.mxu1 %v3897_v11  ;;  %v2857_v17 = vunpack.i.l.bf16 %v3933_v37 }
  0xca   : > { %v1402_v43 = vsel %vm411_vm0, %v698_v35, %v2853_v40  ;;  %2740 = vmatprep.subr.mxu1 %v3920_v27  ;;  %v1346_v22 = vsel %vm411_vm0, %v3988_v14, %v2852_v4 }
  0xcb   : > { %v1370_v44 = vsel %vm411_vm0, %v633_v38, %v2858_v41  ;;  %v3949_v47 = vpop.permute.xlu0 %2860  ;;  %1911 = vmatprep.mubr.f32.mxu1 %v1402_v43  ;;  %2748 = vmatpush3.msra.mxu1 %v3920_v27  ;;  %v1314_v35 = vsel %vm411_vm0, %v702_v25, %v2857_v17  ;;  %v703_v41 = vld [vmem:[#allocation2 + $0xa8] sm:$0xff]  ;;  %v4018_v43 = vld [vmem:[#allocation2 + $0xb2] sm:$0xff] }
  0xcc   : > { %v3951_v48 = vpop.permute.xlu1 %2865  ;;  %v2863_v51 = vunpack.i.h.bf16 %v3949_v47  ;;  %1707 = vmatmul.mubr.f32.gmra.mxu0 %v1310_v26  ;;  %1912 = vmatmul.mubr.f32.gmra.mxu1 %v1370_v44  ;;  %v2862_v19 = vunpack.i.l.bf16 %v3949_v47 }
  0xcd   : > { %v2868_v52 = vunpack.i.h.bf16 %v3951_v48  ;;  %1711 = vmatprep.mubr.f32.mxu0 %v1343_v45  ;;  %v2867_v33 = vunpack.i.l.bf16 %v3951_v48 }
  0xce   : > { %v1403_v55 = vsel %vm411_vm0, %v699_v46, %v2863_v51  ;;  %v1347_v40 = vsel %vm411_vm0, %v4003_v30, %v2862_v19  ;;  %v706_v19 = vld [vmem:[#allocation2 + $0xc8] sm:$0xff] }
  0xcf   : > { %v1371_v56 = vsel %vm411_vm0, %v634_v49, %v2868_v52  ;;  %v3967_v59 = vpop.permute.xlu0 %2870  ;;  %1916 = vmatprep.mubr.f32.mxu1 %v1403_v55  ;;  %v1315_v47 = vsel %vm411_vm0, %v703_v41, %v2867_v33  ;;  %v639_v55 = vld [vmem:[#allocation2 + $0x99] sm:$0xff] }
  0xd0   : > { %v3969_v60 = vpop.permute.xlu1 %2875  ;;  %v2873_v63 = vunpack.i.h.bf16 %v3967_v59  ;;  %1712 = vmatmul.mubr.f32.gmra.mxu0 %v1311_v34  ;;  %1917 = vmatmul.mubr.f32.gmra.mxu1 %v1371_v56  ;;  %v2872_v36 = vunpack.i.l.bf16 %v3967_v59  ;;  %v4033_v56 = vld [vmem:[#allocation2 + $0xc2] sm:$0xff] }
  0xd1   : > { %v2878_v0 = vunpack.i.h.bf16 %v3969_v60  ;;  %1716 = vmatprep.mubr.f32.mxu0 %v1344_v57  ;;  %v2877_v46 = vunpack.i.l.bf16 %v3969_v60 }
  0xd2   : > { %v1404_v5 = vsel %vm411_vm0, %v700_v23, %v2873_v63  ;;  %v1348_v52 = vsel %vm411_vm0, %v4018_v43, %v2872_v36 }
  0xd3   : > { %v1372_v6 = vsel %vm411_vm0, %v635_v1, %v2878_v0  ;;  %v3984_v11 = vpop.permute.xlu0 %2880  ;;  %1921 = vmatprep.mubr.f32.mxu1 %v1404_v5  ;;  %v1316_v60 = vsel %vm411_vm0, %v704_v53, %v2877_v46 }
  0xd4   : > { %v3986_v12 = vpop.permute.xlu1 %2885  ;;  %v2883_v15 = vunpack.i.h.bf16 %v3984_v11  ;;  %1717 = vmatmul.mubr.f32.gmra.mxu0 %v1312_v2  ;;  %1922 = vmatmul.mubr.f32.gmra.mxu1 %v1372_v6  ;;  %v2882_v48 = vunpack.i.l.bf16 %v3984_v11  ;;  %v705_v2 = vld [vmem:[#allocation2 + $0xc0] sm:$0xff]  ;;  %v640_v6 = vld [vmem:[#allocation2 + $0xa9] sm:$0xff] }
  0xd5   : > { %v2888_v16 = vunpack.i.h.bf16 %v3986_v12  ;;  %1721 = vmatprep.mubr.f32.mxu0 %v1345_v9  ;;  %v2887_v59 = vunpack.i.l.bf16 %v3986_v12  ;;  %v4048_v9 = vld [vmem:[#allocation2 + $0xca] sm:$0xff] }
  0xd6   : > { %v1405_v20 = vsel %vm411_vm0, %v701_v10, %v2883_v15  ;;  %v1349_v61 = vsel %vm411_vm0, %v4033_v56, %v2882_v48 }
  0xd7   : > { %v1373_v21 = vsel %vm411_vm0, %v636_v13, %v2888_v16  ;;  %v3999_v27 = vpop.permute.xlu0 %2890  ;;  %1926 = vmatprep.mubr.f32.mxu1 %v1405_v20  ;;  %v1317_v13 = vsel %vm411_vm0, %v705_v2, %v2887_v59 }
  0xd8   : > { %v4001_v28 = vpop.permute.xlu1 %2895  ;;  %v2893_v31 = vunpack.i.h.bf16 %v3999_v27  ;;  %1722 = vmatmul.mubr.f32.gmra.mxu0 %v1313_v18  ;;  %1927 = vmatmul.mubr.f32.gmra.mxu1 %v1373_v21  ;;  %v2892_v1 = vunpack.i.l.bf16 %v3999_v27 }
  0xd9   : > { %v2898_v32 = vunpack.i.h.bf16 %v4001_v28  ;;  %1726 = vmatprep.mubr.f32.mxu0 %v1346_v22  ;;  %v2897_v12 = vunpack.i.l.bf16 %v4001_v28  ;;  %v641_v22 = vld [vmem:[#allocation2 + $0xb1] sm:$0xff] }
  0xda   : > { %v1406_v37 = vsel %vm411_vm0, %v702_v25, %v2893_v31  ;;  %v1350_v18 = vsel %vm411_vm0, %v4048_v9, %v2892_v1  ;;  %v4063_v25 = vld [vmem:[#allocation2 + $0xda] sm:$0xff] }
  0xdb   : > { %v1374_v38 = vsel %vm411_vm0, %v637_v29, %v2898_v32  ;;  %v4014_v3 = vpop.permute.xlu0 %2900  ;;  %1931 = vmatprep.mubr.f32.mxu1 %v1406_v37  ;;  %v1318_v31 = vsel %vm411_vm0, %v706_v19, %v2897_v12  ;;  %v707_v37 = vld [vmem:[#allocation2 + $0xd8] sm:$0xff] }
  0xdc   : > { %v4016_v26 = vpop.permute.xlu1 %2905  ;;  %v2903_v44 = vunpack.i.h.bf16 %v4014_v3  ;;  %1727 = vmatmul.mubr.f32.gmra.mxu0 %v1314_v35  ;;  %1932 = vmatmul.mubr.f32.gmra.mxu1 %v1374_v38  ;;  %v2902_v15 = vunpack.i.l.bf16 %v4014_v3  ;;  %v4078_v3 = vld [vmem:[#allocation2 + $0xe2] sm:$0xff] }
  0xdd   : > { %v2908_v45 = vunpack.i.h.bf16 %v4016_v26  ;;  %1731 = vmatprep.mubr.f32.mxu0 %v1347_v40  ;;  %v2907_v29 = vunpack.i.l.bf16 %v4016_v26 }
  0xde   : > { %v1407_v49 = vsel %vm411_vm0, %v703_v41, %v2903_v44  ;;  %v1351_v36 = vsel %vm411_vm0, %v4063_v25, %v2902_v15  ;;  %v642_v41 = vld [vmem:[#allocation2 + $0xc1] sm:$0xff] }
  0xdf   : > { %v1375_v51 = vsel %vm411_vm0, %v638_v42, %v2908_v45  ;;  %v4029_v34 = vpop.permute.xlu0 %2910  ;;  %1936 = vmatprep.mubr.f32.mxu1 %v1407_v49  ;;  %v1319_v45 = vsel %vm411_vm0, %v707_v37, %v2907_v29 }
  0xe0   : > { %v4031_v54 = vpop.permute.xlu1 %2915  ;;  %v2913_v57 = vunpack.i.h.bf16 %v4029_v34  ;;  %1732 = vmatmul.mubr.f32.gmra.mxu0 %v1315_v47  ;;  %1937 = vmatmul.mubr.f32.gmra.mxu1 %v1375_v51  ;;  %v2912_v32 = vunpack.i.l.bf16 %v4029_v34  ;;  %v708_v51 = vld [vmem:[#allocation2 + $0xe0] sm:$0xff]  ;;  %v643_v34 = vld [vmem:[#allocation2 + $0xc9] sm:$0xff] }
  0xe1   : > { %v2918_v23 = vunpack.i.h.bf16 %v4031_v54  ;;  %1736 = vmatprep.mubr.f32.mxu0 %v1348_v52  ;;  %v2917_v44 = vunpack.i.l.bf16 %v4031_v54  ;;  %v4093_v54 = vld [vmem:[#allocation2 + $0xf2] sm:$0xff] }
  0xe2   : > { %v1408_v63 = vsel %vm411_vm0, %v704_v53, %v2913_v57  ;;  %v1352_v49 = vsel %vm411_vm0, %v4078_v3, %v2912_v32 }
  0xe3   : > { %v1376_v0 = vsel %vm411_vm0, %v639_v55, %v2918_v23  ;;  %v4044_v4 = vpop.permute.xlu0 %2920  ;;  %1941 = vmatprep.mubr.f32.mxu1 %v1408_v63  ;;  %v1320_v59 = vsel %vm411_vm0, %v708_v51, %v2917_v44 }
  0xe4   : > { %v4046_v5 = vpop.permute.xlu1 %2925  ;;  %v2923_v10 = vunpack.i.h.bf16 %v4044_v4  ;;  %1737 = vmatmul.mubr.f32.gmra.mxu0 %v1316_v60  ;;  %1942 = vmatmul.mubr.f32.gmra.mxu1 %v1376_v0  ;;  %v2922_v46 = vunpack.i.l.bf16 %v4044_v4 }
  0xe5   : > { %v2928_v11 = vunpack.i.h.bf16 %v4046_v5  ;;  %1741 = vmatprep.mubr.f32.mxu0 %v1349_v61  ;;  %v2927_v23 = vunpack.i.l.bf16 %v4046_v5  ;;  %v709_v61 = vld [vmem:[#allocation2 + $0xf0] sm:$0xff]  ;;  %v4108_v5 = vld [vmem:[#allocation2 + $0xfa] sm:$0xff] }
  0xe6   : > { %v1409_v16 = vsel %vm411_vm0, %v705_v2, %v2923_v10  ;;  %v1353_v0 = vsel %vm411_vm0, %v4093_v54, %v2922_v46 }
  0xe7   : > { %v1377_v17 = vsel %vm411_vm0, %v640_v6, %v2928_v11  ;;  %v4059_v20 = vpop.permute.xlu0 %2930  ;;  %1946 = vmatprep.mubr.f32.mxu1 %v1409_v16  ;;  %v644_v6 = vld [vmem:[#allocation2 + $0xd9] sm:$0xff] }
  0xe8   : > { %v4061_v21 = vpop.permute.xlu1 %2935  ;;  %v2933_v27 = vunpack.i.h.bf16 %v4059_v20  ;;  %1742 = vmatmul.mubr.f32.gmra.mxu0 %v1317_v13  ;;  %1947 = vmatmul.mubr.f32.gmra.mxu1 %v1377_v17  ;;  %v2932_v60 = vunpack.i.l.bf16 %v4059_v20  ;;  %v1321_v13 = vsel %vm411_vm0, %v709_v61, %v2927_v23  ;;  %v647_v23 = vld [vmem:[#allocation2 + $0xf9] sm:$0xff] }
  0xe9   : > { %v2938_v28 = vunpack.i.h.bf16 %v4061_v21  ;;  %1746 = vmatprep.mubr.f32.mxu0 %v1350_v18  ;;  %v2937_v12 = vunpack.i.l.bf16 %v4061_v21  ;;  %v4123_v21 = vld [vmem:[#allocation2 + $0x10a] sm:$0xff] }
  0xea   : > { %v1410_v33 = vsel %vm411_vm0, %v706_v19, %v2933_v27  ;;  %v1354_v18 = vsel %vm411_vm0, %v4108_v5, %v2932_v60  ;;  %v710_v19 = vld [vmem:[#allocation2 + $0xf8] sm:$0xff]  ;;  %v645_v27 = vld [vmem:[#allocation2 + $0xe1] sm:$0xff] }
  0xeb   : > { %v1378_v35 = vsel %vm411_vm0, %v641_v22, %v2938_v28  ;;  %v4074_v38 = vpop.permute.xlu0 %2940  ;;  %1951 = vmatprep.mubr.f32.mxu1 %v1410_v33  ;;  %v1322_v32 = vsel %vm411_vm0, %v710_v19, %v2937_v12 }
  0xec   : > { %v4076_v40 = vpop.permute.xlu1 %2945  ;;  %v2943_v26 = vunpack.i.h.bf16 %v4074_v38  ;;  %1747 = vmatmul.mubr.f32.gmra.mxu0 %v1318_v31  ;;  %1952 = vmatmul.mubr.f32.gmra.mxu1 %v1378_v35  ;;  %v2942_v15 = vunpack.i.l.bf16 %v4074_v38  ;;  %v711_v38 = vld [vmem:[#allocation2 + $0x108] sm:$0xff] }
  0xed   : > { %v2948_v42 = vunpack.i.h.bf16 %v4076_v40  ;;  %1751 = vmatprep.mubr.f32.mxu0 %v1351_v36  ;;  %v2947_v31 = vunpack.i.l.bf16 %v4076_v40  ;;  %v4138_v40 = vld [vmem:[#allocation2 + $0x112] sm:$0xff] }
  0xee   : > { %v1411_v47 = vsel %vm411_vm0, %v707_v37, %v2943_v26  ;;  %v1355_v37 = vsel %vm411_vm0, %v4123_v21, %v2942_v15 }
  0xef   : > { %v1379_v48 = vsel %vm411_vm0, %v642_v41, %v2948_v42  ;;  %v4089_v52 = vpop.permute.xlu0 %2950  ;;  %1956 = vmatprep.mubr.f32.mxu1 %v1411_v47  ;;  %v646_v42 = vld [vmem:[#allocation2 + $0xf1] sm:$0xff]  ;;  %v1323_v47 = vsel %vm411_vm0, %v711_v38, %v2947_v31 }
  0xf0   : > { %v4091_v53 = vpop.permute.xlu1 %2955  ;;  %v2953_v55 = vunpack.i.h.bf16 %v4089_v52  ;;  %1752 = vmatmul.mubr.f32.gmra.mxu0 %v1319_v45  ;;  %1957 = vmatmul.mubr.f32.gmra.mxu1 %v1379_v48  ;;  %v2952_v33 = vunpack.i.l.bf16 %v4089_v52 }
  0xf1   : > { %v2958_v57 = vunpack.i.h.bf16 %v4091_v53  ;;  %1756 = vmatprep.mubr.f32.mxu0 %v1352_v49  ;;  %v2957_v46 = vunpack.i.l.bf16 %v4091_v53  ;;  %v4153_v53 = vld [vmem:[#allocation2 + $0x122] sm:$0xff] }
  0xf2   : > { %v1412_v1 = vsel %vm411_vm0, %v708_v51, %v2953_v55  ;;  %v1356_v52 = vsel %vm411_vm0, %v4138_v40, %v2952_v33  ;;  %v649_v33 = vld [vmem:[#allocation2 + $0x111] sm:$0xff] }
  0xf3   : > { %v1380_v63 = vsel %vm411_vm0, %v643_v34, %v2958_v57  ;;  %v4104_v2 = vpop.permute.xlu0 %2960  ;;  %1961 = vmatprep.mubr.f32.mxu1 %v1412_v1  ;;  %v712_v34 = vld [vmem:[#allocation2 + $0x110] sm:$0xff] }
  0xf4   : > { %v4106_v4 = vpop.permute.xlu1 %2965  ;;  %v2963_v10 = vunpack.i.h.bf16 %v4104_v2  ;;  %1757 = vmatmul.mubr.f32.gmra.mxu0 %v1320_v59  ;;  %1962 = vmatmul.mubr.f32.gmra.mxu1 %v1380_v63  ;;  %v2962_v48 = vunpack.i.l.bf16 %v4104_v2  ;;  %v1324_v63 = vsel %vm411_vm0, %v712_v34, %v2957_v46  ;;  %v715_v46 = vld [vmem:[#allocation2 + $0x138] sm:$0xff] }
  0xf5   : > { %v2968_v11 = vunpack.i.h.bf16 %v4106_v4  ;;  %1761 = vmatprep.mubr.f32.mxu0 %v1353_v0  ;;  %v2967_v1 = vunpack.i.l.bf16 %v4106_v4  ;;  %v4168_v4 = vld [vmem:[#allocation2 + $0x12a] sm:$0xff] }
  0xf6   : > { %v1413_v16 = vsel %vm411_vm0, %v709_v61, %v2963_v10  ;;  %v713_v10 = vld [vmem:[#allocation2 + $0x120] sm:$0xff] }
  0xf7   : > { %v1381_v17 = vsel %vm411_vm0, %v644_v6, %v2968_v11  ;;  %v4119_v20 = vpop.permute.xlu0 %2970  ;;  %1966 = vmatprep.mubr.f32.mxu1 %v1413_v16  ;;  %v1357_v6 = vsel %vm411_vm0, %v4153_v53, %v2962_v48 }
  0xf8   : > { %v4121_v22 = vpop.permute.xlu1 %2975  ;;  %v2973_v28 = vunpack.i.h.bf16 %v4119_v20  ;;  %1762 = vmatmul.mubr.f32.gmra.mxu0 %v1321_v13  ;;  %1967 = vmatmul.mubr.f32.gmra.mxu1 %v1381_v17  ;;  %v2972_v0 = vunpack.i.l.bf16 %v4119_v20  ;;  %v648_v13 = vld [vmem:[#allocation2 + $0x109] sm:$0xff] }
  0xf9   : > { %v2978_v29 = vunpack.i.h.bf16 %v4121_v22  ;;  %1766 = vmatprep.mubr.f32.mxu0 %v1354_v18  ;;  %v2977_v17 = vunpack.i.l.bf16 %v4121_v22  ;;  %v1325_v18 = vsel %vm411_vm0, %v713_v10, %v2967_v1  ;;  %v4183_v22 = vld [vmem:[#allocation2 + $0x13a] sm:$0xff] }
  0xfa   : > { %v1414_v35 = vsel %vm411_vm0, %v710_v19, %v2973_v28  ;;  %v1358_v28 = vsel %vm411_vm0, %v4168_v4, %v2972_v0 }
  0xfb   : > { %v1382_v36 = vsel %vm411_vm0, %v645_v27, %v2978_v29  ;;  %v4134_v41 = vpop.permute.xlu0 %2980  ;;  %1971 = vmatprep.mubr.f32.mxu1 %v1414_v35  ;;  %v714_v29 = vld [vmem:[#allocation2 + $0x128] sm:$0xff] }
  0xfc   : > { %v4136_v26 = vpop.permute.xlu1 %2985  ;;  %v2983_v44 = vunpack.i.h.bf16 %v4134_v41  ;;  %1767 = vmatmul.mubr.f32.gmra.mxu0 %v1322_v32  ;;  %1972 = vmatmul.mubr.f32.gmra.mxu1 %v1382_v36  ;;  %v2982_v19 = vunpack.i.l.bf16 %v4134_v41 }
  0xfd   : > { %v2988_v45 = vunpack.i.h.bf16 %v4136_v26  ;;  %1771 = vmatprep.mubr.f32.mxu0 %v1355_v37  ;;  %v2987_v37 = vunpack.i.l.bf16 %v4136_v26  ;;  %v4198_v26 = vld [vmem:[#allocation2 + $0x142] sm:$0xff] }
  0xfe   : > { %v1415_v49 = vsel %vm411_vm0, %v711_v38, %v2983_v44  ;;  %v1326_v38 = vsel %vm411_vm0, %v714_v29, %v2977_v17 }
  0xff   : > { %v1383_v51 = vsel %vm411_vm0, %v646_v42, %v2988_v45  ;;  %v4149_v55 = vpop.permute.xlu0 %2990  ;;  %1976 = vmatprep.mubr.f32.mxu1 %v1415_v49  ;;  %v1359_v45 = vsel %vm411_vm0, %v4183_v22, %v2982_v19  ;;  %v650_v49 = vld [vmem:[#allocation2 + $0x121] sm:$0xff]  ;;  %v717_v19 = vld [vmem:[#allocation2 + $0x150] sm:$0xff] }
 0x100   : > { %v4151_v57 = vpop.permute.xlu1 %2995  ;;  %v2993_v59 = vunpack.i.h.bf16 %v4149_v55  ;;  %1772 = vmatmul.mubr.f32.gmra.mxu0 %v1323_v47  ;;  %1977 = vmatmul.mubr.f32.gmra.mxu1 %v1383_v51  ;;  %v2992_v41 = vunpack.i.l.bf16 %v4149_v55  ;;  %v1327_v55 = vsel %vm411_vm0, %v715_v46, %v2987_v37 }
 0x101   : > { %v2998_v60 = vunpack.i.h.bf16 %v4151_v57  ;;  %1776 = vmatprep.mubr.f32.mxu0 %v1356_v52 }
 0x102   : > { %v1416_v61 = vsel %vm411_vm0, %v712_v34, %v2993_v59  ;;  %v2997_v34 = vunpack.i.l.bf16 %v4151_v57  ;;  %v1360_v1 = vsel %vm411_vm0, %v4198_v26, %v2992_v41  ;;  %v4213_v57 = vld [vmem:[#allocation2 + $0x152] sm:$0xff] }
 0x103   : > { %v1384_v2 = vsel %vm411_vm0, %v647_v23, %v2998_v60  ;;  %v4164_v11 = vpop.permute.xlu0 %3000  ;;  %1981 = vmatprep.mubr.f32.mxu1 %v1416_v61 }
 0x104   : > { %v4166_v12 = vpop.permute.xlu1 %3005  ;;  %v3003_v15 = vunpack.i.h.bf16 %v4164_v11  ;;  %1777 = vmatmul.mubr.f32.gmra.mxu0 %v1324_v63  ;;  %1982 = vmatmul.mubr.f32.gmra.mxu1 %v1384_v2  ;;  %v3002_v23 = vunpack.i.l.bf16 %v4164_v11  ;;  %v716_v63 = vld [vmem:[#allocation2 + $0x140] sm:$0xff]  ;;  %v651_v2 = vld [vmem:[#allocation2 + $0x129] sm:$0xff] }
 0x105   : > { %v3008_v16 = vunpack.i.h.bf16 %v4166_v12  ;;  %1781 = vmatprep.mubr.f32.mxu0 %v1357_v6  ;;  %v3007_v11 = vunpack.i.l.bf16 %v4166_v12  ;;  %v718_v12 = vld [vmem:[#allocation2 + $0x158] sm:$0xff] }
 0x106   : > { %v1417_v20 = vsel %vm411_vm0, %v713_v10, %v3003_v15  ;;  %v1328_v15 = vsel %vm411_vm0, %v716_v63, %v2997_v34  ;;  %v719_v34 = vld [vmem:[#allocation2 + $0x168] sm:$0xff] }
 0x107   : > { %v1385_v27 = vsel %vm411_vm0, %v648_v13, %v3008_v16  ;;  %v4179_v31 = vpop.permute.xlu0 %3010  ;;  %1986 = vmatprep.mubr.f32.mxu1 %v1417_v20  ;;  %v4224_v20 = vld [vmem:[#allocation2 + $0x15a] sm:$0xff] }
 0x108   : > { %v4181_v32 = vpop.permute.xlu1 %3015  ;;  %v3013_v35 = vunpack.i.h.bf16 %v4179_v31  ;;  %1782 = vmatmul.mubr.f32.gmra.mxu0 %v1325_v18  ;;  %1987 = vmatmul.mubr.f32.gmra.mxu1 %v1385_v27  ;;  %v3012_v13 = vunpack.i.l.bf16 %v4179_v31  ;;  %v1361_v18 = vsel %vm411_vm0, %v4213_v57, %v3002_v23 }
 0x109   : > { %v3018_v36 = vunpack.i.h.bf16 %v4181_v32  ;;  %1786 = vmatprep.mubr.f32.mxu0 %v1358_v28 }
 0x10a   : > { %v1418_v42 = vsel %vm411_vm0, %v714_v29, %v3013_v35  ;;  %v652_v29 = vld [vmem:[#allocation2 + $0x139] sm:$0xff]  ;;  %v1362_v41 = vsel %vm411_vm0, %v4224_v20, %v3012_v13 }
 0x10b   : > { %v1386_v44 = vsel %vm411_vm0, %v649_v33, %v3018_v36  ;;  %v4194_v47 = vpop.permute.xlu0 %3020  ;;  %1991 = vmatprep.mubr.f32.mxu1 %v1418_v42  ;;  %v3017_v36 = vunpack.i.l.bf16 %v4181_v32  ;;  %v4234_v32 = vld [vmem:[#allocation2 + $0x16a] sm:$0xff]  ;;  %v4243_v13 = vld [vmem:[#allocation2 + $0x172] sm:$0xff] }
 0x10c   : > { %v4196_v48 = vpop.permute.xlu1 %3025  ;;  %v3023_v51 = vunpack.i.h.bf16 %v4194_v47  ;;  %1787 = vmatmul.mubr.f32.gmra.mxu0 %v1326_v38  ;;  %1992 = vmatmul.mubr.f32.gmra.mxu1 %v1386_v44  ;;  %v1329_v38 = vsel %vm411_vm0, %v717_v19, %v3007_v11  ;;  %v3022_v42 = vunpack.i.l.bf16 %v4194_v47 }
 0x10d   : > { %v3028_v52 = vunpack.i.h.bf16 %v4196_v48  ;;  %1791 = vmatprep.mubr.f32.mxu0 %v1359_v45  ;;  %v3027_v23 = vunpack.i.l.bf16 %v4196_v48  ;;  %v1330_v47 = vsel %vm411_vm0, %v718_v12, %v3017_v36  ;;  %v720_v48 = vld [vmem:[#allocation2 + $0x170] sm:$0xff] }
 0x10e   : > { %v1419_v59 = vsel %vm411_vm0, %v715_v46, %v3023_v51 }
 0x10f   : > { %v1387_v60 = vsel %vm411_vm0, %v650_v49, %v3028_v52  ;;  %v4209_v0 = vpop.permute.xlu0 %3030  ;;  %1996 = vmatprep.mubr.f32.mxu1 %v1419_v59  ;;  %v653_v49 = vld [vmem:[#allocation2 + $0x141] sm:$0xff] }
 0x110   : > { %v4211_v61 = vpop.permute.xlu1 %3035  ;;  %v3033_v6 = vunpack.i.h.bf16 %v4209_v0  ;;  %1792 = vmatmul.mubr.f32.gmra.mxu0 %v1327_v55  ;;  %1997 = vmatmul.mubr.f32.gmra.mxu1 %v1387_v60 }
 0x111   : > { %v3038_v10 = vunpack.i.h.bf16 %v4211_v61  ;;  %1796 = vmatprep.mubr.f32.mxu0 %v1360_v1  ;;  %v3032_v1 = vunpack.i.l.bf16 %v4209_v0  ;;  %v1331_v0 = vsel %vm411_vm0, %v719_v34, %v3027_v23 }
 0x112   : > { %v1420_v16 = vsel %vm411_vm0, %v716_v63, %v3033_v6 }
 0x113   : > { %v1388_v17 = vsel %vm411_vm0, %v651_v2, %v3038_v10  ;;  %v3041_v27 = vpop.permute.xlu0 %3040  ;;  %2001 = vmatprep.mubr.f32.mxu1 %v1420_v16  ;;  %v1363_v2 = vsel %vm411_vm0, %v4234_v32, %v3022_v42  ;;  %v654_v10 = vld [vmem:[#allocation2 + $0x151] sm:$0xff]  ;;  %v722_v42 = vld [vmem:[#allocation2 + $0x188] sm:$0xff] }
 0x114   : > { %v3046_v28 = vpop.permute.xlu1 %3045  ;;  %v3043_v33 = vunpack.i.h.bf16 %v3041_v27  ;;  %v3042_v31 = vunpack.i.l.bf16 %v3041_v27  ;;  %1797 = vmatmul.mubr.f32.gmra.mxu0 %v1328_v15  ;;  %2002 = vmatmul.mubr.f32.gmra.mxu1 %v1388_v17  ;;  %v3037_v15 = vunpack.i.l.bf16 %v4211_v61 }
 0x115   : > { %v3047_v35 = vunpack.i.l.bf16 %v3046_v28  ;;  %v3048_v37 = vunpack.i.h.bf16 %v3046_v28  ;;  %1801 = vmatprep.mubr.f32.mxu0 %v1361_v18  ;;  %v655_v28 = vld [vmem:[#allocation2 + $0x159] sm:$0xff] }
 0x116   : > { %v1421_v44 = vsel %vm411_vm0, %v717_v19, %v3042_v31  ;;  %v1389_v45 = vsel %vm411_vm0, %v652_v29, %v3043_v33  ;;  %v1364_v19 = vsel %vm411_vm0, %v4243_v13, %v3032_v1  ;;  %v1332_v61 = vsel %vm411_vm0, %v720_v48, %v3037_v15  ;;  %v658_v1 = vld [vmem:[#allocation2 + $0x181] sm:$0xff] }
 0x117   : > { %v1422_v46 = vsel %vm411_vm0, %v718_v12, %v3047_v35  ;;  %2006 = vmatprep.mubr.f32.mxu1 %v1421_v44  ;;  %v3051_v51 = vpop.permute.xlu0 %3050  ;;  %v1390_v60 = vsel %vm411_vm0, %v653_v49, %v3048_v37  ;;  %v721_v12 = vld [vmem:[#allocation2 + $0x180] sm:$0xff]  ;;  %v757_v37 = vld [vmem:[#allocation2 + $0x32] sm:$0xff] }
 0x118   : > { %v3056_v52 = vpop.permute.xlu1 %3055  ;;  %1802 = vmatmul.mubr.f32.gmra.mxu0 %v1329_v38  ;;  %2007 = vmatmul.mubr.f32.gmra.mxu1 %v1389_v45  ;;  %v3052_v55 = vunpack.i.l.bf16 %v3051_v51  ;;  %v3053_v59 = vunpack.i.h.bf16 %v3051_v51  ;;  %v656_v38 = vld [vmem:[#allocation2 + $0x169] sm:$0xff] }
 0x119   : > { %1806 = vmatprep.mubr.f32.mxu0 %v1362_v41  ;;  %2011 = vmatprep.mubr.f32.mxu1 %v1422_v46  ;;  %v3057_v63 = vunpack.i.l.bf16 %v3056_v52  ;;  %v3058_v16 = vunpack.i.h.bf16 %v3056_v52  ;;  %v758_v46 = vld [vmem:[#allocation2 + $0x3a] sm:$0xff]  ;;  %v657_v52 = vld [vmem:[#allocation2 + $0x171] sm:$0xff] }
 0x11a   : > { %v1423_v6 = vsel %vm411_vm0, %v719_v34, %v3052_v55  ;;  %v1391_v17 = vsel %vm411_vm0, %v654_v10, %v3053_v59  ;;  %v723_v55 = vld [vmem:[#allocation2 + $0x198] sm:$0xff]  ;;  %v659_v10 = vld [vmem:[#allocation2 + $0x189] sm:$0xff] }
 0x11b   : > { %v3061_v11 = vpop.permute.xlu0 %3060  ;;  %v1424_v27 = vsel %vm411_vm0, %v720_v48, %v3057_v63  ;;  %v1392_v31 = vsel %vm411_vm0, %v655_v28, %v3058_v16  ;;  %v724_v63 = vld [vmem:[#allocation2 + $0x1a0] sm:$0xff] }
 0x11c   : > { %1807 = vmatmul.mubr.f32.gmra.mxu0 %v1330_v47  ;;  %2012 = vmatmul.mubr.f32.gmra.mxu1 %v1390_v60  ;;  %v3062_v18 = vunpack.i.l.bf16 %v3061_v11  ;;  %v3066_v29 = vpop.permute.xlu1 %3065  ;;  %v3063_v33 = vunpack.i.h.bf16 %v3061_v11 }
 0x11d   : > { %1811 = vmatprep.mubr.f32.mxu0 %v1363_v2  ;;  %2016 = vmatprep.mubr.f32.mxu1 %v1423_v6  ;;  %v3067_v35 = vunpack.i.l.bf16 %v3066_v29  ;;  %v3068_v44 = vunpack.i.h.bf16 %v3066_v29 }
 0x11e   : > { %v1425_v36 = vsel %vm411_vm0, %v721_v12, %v3062_v18  ;;  %v1393_v45 = vsel %vm411_vm0, %v656_v38, %v3063_v33 }
 0x11f   : > { %v3071_v41 = vpop.permute.xlu0 %3070  ;;  %v1426_v51 = vsel %vm411_vm0, %v722_v42, %v3067_v35  ;;  %v1394_v59 = vsel %vm411_vm0, %v657_v52, %v3068_v44 }
 0x120   : > { %1812 = vmatmul.mubr.f32.gmra.mxu0 %v1331_v0  ;;  %2017 = vmatmul.mubr.f32.gmra.mxu1 %v1391_v17  ;;  %v3072_v49 = vunpack.i.l.bf16 %v3071_v41  ;;  %v3076_v34 = vpop.permute.xlu1 %3075  ;;  %v3073_v23 = vunpack.i.h.bf16 %v3071_v41 }
 0x121   : > { %1816 = vmatprep.mubr.f32.mxu0 %v1364_v19  ;;  %2021 = vmatprep.mubr.f32.mxu1 %v1424_v27  ;;  %v3077_v47 = vunpack.i.l.bf16 %v3076_v34  ;;  %v3078_v2 = vunpack.i.h.bf16 %v3076_v34 }
 0x122   : > { %v1427_v60 = vsel %vm411_vm0, %v723_v55, %v3072_v49  ;;  %v1395_v6 = vsel %vm411_vm0, %v658_v1, %v3073_v23 }
 0x124   : > { %1817 = vmatmul.mubr.f32.gmra.mxu0 %v1332_v61  ;;  %2022 = vmatmul.mubr.f32.gmra.mxu1 %v1392_v31 }
 0x125   : > { %2026 = vmatprep.mubr.f32.mxu1 %v1425_v36  ;;  %2685 = vmatprep.mubr.msk.f32.mxu0 %vm411_vm0, %v757_v37 }
 0x128   : > { %2027 = vmatmul.mubr.f32.gmra.mxu1 %v1393_v45  ;;  %2686 = vmatmul.mubr.msk.f32.vlgmr.msra.gmra.mxu0 %vm411_vm0, %v758_v46 }
 0x129   : > { %2031 = vmatprep.mubr.f32.mxu1 %v1426_v51  ;;  %2688 = vmatprep.mubr.msk.f32.mxu0 %vm411_vm0, %v3853_v7  ;;  %v1428_v7 = vsel %vm411_vm0, %v724_v63, %v3077_v47 }
 0x12c   : > { %2032 = vmatmul.mubr.f32.gmra.mxu1 %v1394_v59  ;;  %2689 = vmatmul.mubr.msk.f32.gmra.mxu0 %vm411_vm0, %v3871_v58  ;;  %v1396_v58 = vsel %vm411_vm0, %v659_v10, %v3078_v2 }
 0x12d   : > { %2036 = vmatprep.mubr.f32.mxu1 %v1427_v60  ;;  %2691 = vmatprep.mubr.msk.f32.mxu0 %vm411_vm0, %v3889_v8  ;;  %v785_v8 = vld [vmem:[#allocation2 + $0x182] sm:$0xff] }
 0x130   : > { %2037 = vmatmul.mubr.f32.gmra.mxu1 %v1395_v6  ;;  %2692 = vmatmul.mubr.msk.f32.gmra.mxu0 %vm411_vm0, %v3912_v24  ;;  %v786_v24 = vld [vmem:[#allocation2 + $0x18a] sm:$0xff] }
 0x131   : > { %2041 = vmatprep.mubr.f32.mxu1 %v1428_v7  ;;  %2694 = vmatprep.mubr.msk.f32.mxu0 %vm411_vm0, %v3935_v39  ;;  %v787_v39 = vld [vmem:[#allocation2 + $0x19a] sm:$0xff] }
 0x134   : > { %2042 = vmatmul.mubr.f32.gmra.mxu1 %v1396_v58  ;;  %2695 = vmatmul.mubr.msk.f32.gmra.mxu0 %vm411_vm0, %v3953_v50  ;;  %v788_v50 = vld [vmem:[#allocation2 + $0x1a2] sm:$0xff] }
 0x135   : > { %2697 = vmatprep.mubr.msk.f32.mxu0 %vm411_vm0, %v3971_v62  ;;  %2709 = vmatprep.mubr.msk.f32.mxu1 %vm411_vm0, %v4093_v54 }
 0x138   : > { %2698 = vmatmul.mubr.msk.f32.gmra.mxu0 %vm411_vm0, %v3988_v14  ;;  %2710 = vmatmul.mubr.msk.f32.vlgmr.msra.gmra.mxu1 %vm411_vm0, %v4108_v5 }
 0x139   : > { %2700 = vmatprep.mubr.msk.f32.mxu0 %vm411_vm0, %v4003_v30  ;;  %2712 = vmatprep.mubr.msk.f32.mxu1 %vm411_vm0, %v4123_v21 }
 0x13c   : > { %2701 = vmatmul.mubr.msk.f32.gmra.mxu0 %vm411_vm0, %v4018_v43  ;;  %2713 = vmatmul.mubr.msk.f32.gmra.mxu1 %vm411_vm0, %v4138_v40 }
 0x13d   : > { %2703 = vmatprep.mubr.msk.f32.mxu0 %vm411_vm0, %v4033_v56  ;;  %2715 = vmatprep.mubr.msk.f32.mxu1 %vm411_vm0, %v4153_v53 }
 0x140   : > { %2704 = vmatmul.mubr.msk.f32.gmra.mxu0 %vm411_vm0, %v4048_v9  ;;  %2716 = vmatmul.mubr.msk.f32.gmra.mxu1 %vm411_vm0, %v4168_v4 }
 0x141   : > { %2706 = vmatprep.mubr.msk.f32.mxu0 %vm411_vm0, %v4063_v25  ;;  %2718 = vmatprep.mubr.msk.f32.mxu1 %vm411_vm0, %v4183_v22 }
 0x144   : > { %2707 = vmatmul.mubr.msk.f32.gmra.mxu0 %vm411_vm0, %v4078_v3  ;;  %2719 = vmatmul.mubr.msk.f32.gmra.mxu1 %vm411_vm0, %v4198_v26 }
 0x145   : > { %2721 = vmatprep.mubr.msk.f32.mxu1 %vm411_vm0, %v4213_v57 }
 0x148   : > { %2722 = vmatmul.mubr.msk.f32.gmra.mxu1 %vm411_vm0, %v4224_v20 }
 0x149   : > { %2724 = vmatprep.mubr.msk.f32.mxu1 %vm411_vm0, %v4234_v32 }
 0x14c   : > { %2725 = vmatmul.mubr.msk.f32.gmra.mxu1 %vm411_vm0, %v4243_v13 }
 0x14d   : > { %2727 = vmatprep.mubr.msk.f32.mxu1 %vm411_vm0, %v785_v8 }
 0x150   : > { %2728 = vmatmul.mubr.msk.f32.gmra.mxu1 %vm411_vm0, %v786_v24 }
 0x151   : > { %2730 = vmatprep.mubr.msk.f32.mxu1 %vm411_vm0, %v787_v39 }
 0x154   : > { %2731 = vmatmul.mubr.msk.f32.gmra.mxu1 %vm411_vm0, %v788_v50 }
 0x168   : > { %v1663_v62 = vpop.f32.mrf.mxu0 }
 0x16a   : > { %v1665_v14 = vpop.f32.mrf.mxu0 }
 0x16c   : > { %v1668_v30 = vpop.f32.mrf.mxu0 }
 0x16e   : > { %v1670_v43 = vpop.f32.mrf.mxu0 }
 0x170   : > { %v1673_v56 = vpop.f32.mrf.mxu0 }
 0x172   : > { %v1675_v9 = vpop.f32.mrf.mxu0 }
 0x174   : > { %v1678_v25 = vpop.f32.mrf.mxu0 }
 0x176   : > { %v1680_v3 = vpop.f32.mrf.mxu0 }
 0x178   : > { %v1683_v54 = vpop.f32.mrf.mxu0  ;;  %v1888_v5 = vpop.f32.mrf.mxu1 }
 0x179   : > { %v4319_v21 = vadd.f32 %v1888_v5, %v1663_v62 }
 0x17a   : > { %v1685_v40 = vpop.f32.mrf.mxu0  ;;  %v1890_v53 = vpop.f32.mrf.mxu1 }
 0x17c   : > { %v1688_v4 = vpop.f32.mrf.mxu0  ;;  %v1893_v22 = vpop.f32.mrf.mxu1 }
 0x17d   : > { %v4321_v26 = vadd.f32 %v1893_v22, %v1668_v30 }
 0x17e   : > { %v1690_v57 = vpop.f32.mrf.mxu0  ;;  %v1895_v20 = vpop.f32.mrf.mxu1 }
 0x180   : > { %v1693_v32 = vpop.f32.mrf.mxu0  ;;  %v1898_v11 = vpop.f32.mrf.mxu1 }
 0x181   : > { %v4323_v13 = vadd.f32 %v1898_v11, %v1673_v56 }
 0x182   : > { %v1695_v48 = vpop.f32.mrf.mxu0  ;;  %v1900_v15 = vpop.f32.mrf.mxu1 }
 0x184   : > { %v1698_v16 = vpop.f32.mrf.mxu0  ;;  %v1903_v0 = vpop.f32.mrf.mxu1 }
 0x185   : > { %v4325_v17 = vadd.f32 %v1903_v0, %v1678_v25 }
 0x186   : > { %v1700_v18 = vpop.f32.mrf.mxu0  ;;  %v1905_v19 = vpop.f32.mrf.mxu1 }
 0x188   : > { %v1703_v27 = vpop.f32.mrf.mxu0  ;;  %v1908_v28 = vpop.f32.mrf.mxu1 }
 0x189   : > { %v4327_v29 = vadd.f32 %v1908_v28, %v1683_v54 }
 0x18a   : > { %v1705_v12 = vpop.f32.mrf.mxu0  ;;  %v1910_v33 = vpop.f32.mrf.mxu1 }
 0x18c   : > { %v1708_v61 = vpop.f32.mrf.mxu0  ;;  %v1913_v31 = vpop.f32.mrf.mxu1 }
 0x18d   : > { %v4329_v35 = vadd.f32 %v1913_v31, %v1688_v4 }
 0x18e   : > { %v1710_v36 = vpop.f32.mrf.mxu0  ;;  %v1915_v37 = vpop.f32.mrf.mxu1 }
 0x190   : > { %v1713_v38 = vpop.f32.mrf.mxu0  ;;  %v1918_v41 = vpop.f32.mrf.mxu1 }
 0x191   : > { %v4331_v42 = vadd.f32 %v1918_v41, %v1693_v32 }
 0x192   : > { %v1715_v44 = vpop.f32.mrf.mxu0  ;;  %v1920_v45 = vpop.f32.mrf.mxu1 }
 0x194   : > { %v1718_v46 = vpop.f32.mrf.mxu0  ;;  %v1923_v49 = vpop.f32.mrf.mxu1 }
 0x195   : > { %v4333_v51 = vadd.f32 %v1923_v49, %v1698_v16 }
 0x196   : > { %v1720_v52 = vpop.f32.mrf.mxu0  ;;  %v1925_v34 = vpop.f32.mrf.mxu1 }
 0x198   : > { %v1723_v55 = vpop.f32.mrf.mxu0  ;;  %v1928_v23 = vpop.f32.mrf.mxu1 }
 0x199   : > { %v4335_v59 = vadd.f32 %v1928_v23, %v1703_v27 }
 0x19a   : > { %v1725_v47 = vpop.f32.mrf.mxu0  ;;  %v1930_v60 = vpop.f32.mrf.mxu1 }
 0x19c   : > { %v1728_v1 = vpop.f32.mrf.mxu0  ;;  %v1933_v63 = vpop.f32.mrf.mxu1 }
 0x19d   : > { %v4337_v2 = vadd.f32 %v1933_v63, %v1708_v61 }
 0x19e   : > { %v1730_v6 = vpop.f32.mrf.mxu0  ;;  %v1935_v7 = vpop.f32.mrf.mxu1 }
 0x1a0   : > { %v1733_v10 = vpop.f32.mrf.mxu0  ;;  %v1938_v58 = vpop.f32.mrf.mxu1 }
 0x1a1   : > { %v4339_v8 = vadd.f32 %v1938_v58, %v1713_v38 }
 0x1a2   : > { %v1735_v24 = vpop.f32.mrf.mxu0  ;;  %v1940_v39 = vpop.f32.mrf.mxu1 }
 0x1a4   : > { %v1738_v50 = vpop.f32.mrf.mxu0  ;;  %v1943_v62 = vpop.f32.mrf.mxu1 }
 0x1a5   : > { %v4341_v14 = vadd.f32 %v1943_v62, %v1718_v46 }
 0x1a6   : > { %v1740_v30 = vpop.f32.mrf.mxu0  ;;  %v1945_v43 = vpop.f32.mrf.mxu1 }
 0x1a8   : > { %v1743_v56 = vpop.f32.mrf.mxu0  ;;  %v1948_v9 = vpop.f32.mrf.mxu1 }
 0x1a9   : > { %v4343_v25 = vadd.f32 %v1948_v9, %v1723_v55 }
 0x1aa   : > { %v1745_v3 = vpop.f32.mrf.mxu0  ;;  %v1950_v54 = vpop.f32.mrf.mxu1 }
 0x1ac   : > { %v4345_v5 = vpop.f32.mrf.mxu0  ;;  %v1953_v40 = vpop.f32.mrf.mxu1 }
 0x1ad   : > { %v4347_v53 = vadd.f32 %v1953_v40, %v1728_v1 }
 0x1ae   : > { %v1750_v4 = vpop.f32.mrf.mxu0  ;;  %v1955_v22 = vpop.f32.mrf.mxu1 }
 0x1b0   : > { %v4349_v57 = vpop.f32.mrf.mxu0  ;;  %v1958_v20 = vpop.f32.mrf.mxu1 }
 0x1b1   : > { %v4351_v32 = vadd.f32 %v1958_v20, %v1733_v10 }
 0x1b2   : > { %v1755_v11 = vpop.f32.mrf.mxu0  ;;  %v1960_v48 = vpop.f32.mrf.mxu1 }
 0x1b4   : > { %v4353_v15 = vpop.f32.mrf.mxu0  ;;  %v1963_v16 = vpop.f32.mrf.mxu1 }
 0x1b5   : > { %v4355_v0 = vadd.f32 %v1963_v16, %v1738_v50 }
 0x1b6   : > { %v1760_v18 = vpop.f32.mrf.mxu0  ;;  %v1965_v19 = vpop.f32.mrf.mxu1 }
 0x1b8   : > { %v4357_v27 = vpop.f32.mrf.mxu0  ;;  %v1968_v28 = vpop.f32.mrf.mxu1 }
 0x1b9   : > { %v4359_v12 = vadd.f32 %v1968_v28, %v1743_v56 }
 0x1ba   : > { %v1765_v33 = vpop.f32.mrf.mxu0  ;;  %v1970_v61 = vpop.f32.mrf.mxu1 }
 0x1bc   : > { %v4361_v31 = vpop.f32.mrf.mxu0  ;;  %v4363_v36 = vpop.f32.mrf.mxu1 }
 0x1be   : > { %v1770_v37 = vpop.f32.mrf.mxu0  ;;  %v1975_v38 = vpop.f32.mrf.mxu1 }
 0x1c0   : > { %v4365_v41 = vpop.f32.mrf.mxu0  ;;  %v4367_v44 = vpop.f32.mrf.mxu1 }
 0x1c2   : > { %v1775_v45 = vpop.f32.mrf.mxu0  ;;  %v1980_v46 = vpop.f32.mrf.mxu1 }
 0x1c4   : > { %v4369_v49 = vpop.f32.mrf.mxu0  ;;  %v4371_v52 = vpop.f32.mrf.mxu1 }
 0x1c6   : > { %v1780_v34 = vpop.f32.mrf.mxu0  ;;  %v1985_v55 = vpop.f32.mrf.mxu1 }
 0x1c8   : > { %v4373_v23 = vpop.f32.mrf.mxu0  ;;  %v4375_v47 = vpop.f32.mrf.mxu1 }
 0x1ca   : > { %v1785_v60 = vpop.f32.mrf.mxu0  ;;  %v1990_v1 = vpop.f32.mrf.mxu1 }
 0x1cc   : > { %v4377_v63 = vpop.f32.mrf.mxu0  ;;  %v4379_v6 = vpop.f32.mrf.mxu1 }
 0x1ce   : > { %v1790_v7 = vpop.f32.mrf.mxu0  ;;  %v1995_v10 = vpop.f32.mrf.mxu1 }
 0x1d0   : > { %v4381_v58 = vpop.f32.mrf.mxu0  ;;  %v4383_v24 = vpop.f32.mrf.mxu1 }
 0x1d2   : > { %v1795_v39 = vpop.f32.mrf.mxu0  ;;  %v2000_v50 = vpop.f32.mrf.mxu1 }
 0x1d4   : > { %v4385_v62 = vpop.f32.mrf.mxu0  ;;  %v4387_v30 = vpop.f32.mrf.mxu1 }
 0x1d6   : > { %v1800_v43 = vpop.f32.mrf.mxu0  ;;  %v2005_v56 = vpop.f32.mrf.mxu1 }
 0x1d8   : > { %v4389_v9 = vpop.f32.mrf.mxu0  ;;  %v4391_v3 = vpop.f32.mrf.mxu1 }
 0x1da   : > { %v1805_v54 = vpop.f32.mrf.mxu0  ;;  %v2010_v40 = vpop.f32.mrf.mxu1 }
 0x1dc   : > { %v4393_v4 = vpop.f32.mrf.mxu0  ;;  %v4395_v22 = vpop.f32.mrf.mxu1 }
 0x1de   : > { %v1810_v20 = vpop.f32.mrf.mxu0  ;;  %v2015_v11 = vpop.f32.mrf.mxu1 }
 0x1e0   : > { %v4397_v48 = vpop.f32.mrf.mxu0  ;;  %v4399_v16 = vpop.f32.mrf.mxu1 }
 0x1e2   : > { %v1815_v18 = vpop.f32.mrf.mxu0  ;;  %v2020_v19 = vpop.f32.mrf.mxu1 }
 0x1e4   : > { %v4401_v28 = vpop.f32.mrf.mxu0  ;;  %v4403_v33 = vpop.f32.mrf.mxu1 }
 0x1e6   : > { %v1820_v61 = vpop.f32.mrf.mxu0  ;;  %v2025_v37 = vpop.f32.mrf.mxu1 }
 0x1e8   : > { %v4405_v38 = vpop.f32.mrf.mxu1  ;;  %v2687_v45 = vpop.f32.mrf.mxu0 }
 0x1e9   : > { %v2119_v46 = vadd.f32 %v2687_v45, %v4321_v26 }
 0x1ea   : > { %v2030_v34 = vpop.f32.mrf.mxu1  ;;  %v2113_v55 = vpop.f32.mrf.mxu0 }
 0x1eb   : > { %2273 = vst.msk [vmem:[%s4412_s13 + $0x8] sm:$0xff] %vm411_vm0, %v2119_v46  ;;  %v2376_v60 = vmul.f32 %v2119_v46, %v2119_v46  ;;  %v2114_v1 = vadd.f32 %v2113_v55, %v4319_v21  ;;  %v2305_v39 = vsel %vm411_vm0, %v2119_v46, 0.0 }
 0x1ec   : > { %v4418_v7 = vpop.f32.mrf.mxu1  ;;  %v2690_v10 = vpop.f32.mrf.mxu0 }
 0x1ed   : > { %2272 = vst.msk [vmem:[%s4412_s13] sm:$0xff] %vm411_vm0, %v2114_v1  ;;  %v2304_v50 = vsel %vm411_vm0, %v2114_v1, 0.0  ;;  %v2375_v43 = vmul.f32 %v2114_v1, %v2114_v1  ;;  %v2129_v56 = vadd.f32 %v2690_v10, %v4325_v17  ;;  %v2408_v20 = vsel %vm411_vm0, %v2376_v60, 0.0 }
 0x1ee   : > { %v2306_v26 = vadd.f32 %v2305_v39, %v2304_v50  ;;  %v2035_v54 = vpop.f32.mrf.mxu1  ;;  %v2123_v40 = vpop.f32.mrf.mxu0 }
 0x1ef   : > { %v2407_v21 = vsel %vm411_vm0, %v2375_v43, 0.0  ;;  %v2124_v11 = vadd.f32 %v2123_v40, %v4323_v13  ;;  %2275 = vst.msk [vmem:[%s4412_s13 + $0x18] sm:$0xff] %vm411_vm0, %v2129_v56  ;;  %v2378_v37 = vmul.f32 %v2129_v56, %v2129_v56  ;;  %v2309_v13 = vsel %vm411_vm0, %v2129_v56, 0.0 }
 0x1f0   : > { %v2409_v18 = vadd.f32 %v2408_v20, %v2407_v21  ;;  %v4430_v19 = vpop.f32.mrf.mxu1  ;;  %v2693_v61 = vpop.f32.mrf.mxu0 }
 0x1f1   : > { %2274 = vst.msk [vmem:[%s4412_s13 + $0x10] sm:$0xff] %vm411_vm0, %v2124_v11  ;;  %v2307_v17 = vsel %vm411_vm0, %v2124_v11, 0.0  ;;  %v2377_v45 = vmul.f32 %v2124_v11, %v2124_v11  ;;  %v2139_v46 = vadd.f32 %v2693_v61, %v4329_v35  ;;  %v2412_v35 = vsel %vm411_vm0, %v2378_v37, 0.0 }
 0x1f2   : > { %v2308_v34 = vadd.f32 %v2307_v17, %v2306_v26  ;;  %v2040_v55 = vpop.f32.mrf.mxu1  ;;  %v2133_v60 = vpop.f32.mrf.mxu0  ;;  %v1974_v61 = vadd.f32 %v4363_v36, %v4345_v5 }
 0x1f3   : > { %v2410_v1 = vsel %vm411_vm0, %v2377_v45, 0.0  ;;  %2277 = vst.msk [vmem:[%s4412_s13 + $0x28] sm:$0xff] %vm411_vm0, %v2139_v46  ;;  %v2134_v10 = vadd.f32 %v2133_v60, %v4327_v29  ;;  %v2380_v50 = vmul.f32 %v2139_v46, %v2139_v46  ;;  %v2313_v17 = vsel %vm411_vm0, %v2139_v46, 0.0 }
 0x1f4   : > { %v2411_v39 = vadd.f32 %v2410_v1, %v2409_v18  ;;  %v2310_v43 = vadd.f32 %v2309_v13, %v2308_v34  ;;  %v4441_v54 = vpop.f32.mrf.mxu1  ;;  %v2696_v40 = vpop.f32.mrf.mxu0 }
 0x1f5   : > { %2276 = vst.msk [vmem:[%s4412_s13 + $0x20] sm:$0xff] %vm411_vm0, %v2134_v10  ;;  %v2311_v26 = vsel %vm411_vm0, %v2134_v10, 0.0  ;;  %v2379_v56 = vmul.f32 %v2134_v10, %v2134_v10  ;;  %v2149_v11 = vadd.f32 %v2696_v40, %v4333_v51  ;;  %v2416_v34 = vsel %vm411_vm0, %v2380_v50, 0.0 }
 0x1f6   : > { %v2312_v20 = vadd.f32 %v2311_v26, %v2310_v43  ;;  %v2413_v21 = vadd.f32 %v2412_v35, %v2411_v39  ;;  %v2045_v29 = vpop.f32.mrf.mxu1  ;;  %v2143_v18 = vpop.f32.mrf.mxu0  ;;  %v1984_v40 = vadd.f32 %v4371_v52, %v4353_v15 }
 0x1f7   : > { %v2414_v45 = vsel %vm411_vm0, %v2379_v56, 0.0  ;;  %v2144_v37 = vadd.f32 %v2143_v18, %v4331_v42  ;;  %2279 = vst.msk [vmem:[%s4412_s13 + $0x38] sm:$0xff] %vm411_vm0, %v2149_v11  ;;  %v2382_v60 = vmul.f32 %v2149_v11, %v2149_v11  ;;  %v2317_v35 = vsel %vm411_vm0, %v2149_v11, 0.0 }
 0x1f8   : > { %v2415_v55 = vadd.f32 %v2414_v45, %v2413_v21  ;;  %v2314_v13 = vadd.f32 %v2313_v17, %v2312_v20  ;;  %v2699_v51 = vpop.f32.mrf.mxu0  ;;  %v2711_v1 = vpop.f32.mrf.mxu1 }
 0x1f9   : > { %2278 = vst.msk [vmem:[%s4412_s13 + $0x30] sm:$0xff] %vm411_vm0, %v2144_v37  ;;  %v2315_v5 = vsel %vm411_vm0, %v2144_v37, 0.0  ;;  %v2381_v36 = vmul.f32 %v2144_v37, %v2144_v37  ;;  %v2159_v46 = vadd.f32 %v2699_v51, %v4337_v2  ;;  %v4460_v10 = vadd.f32 %v2711_v1, %v1974_v61 }
 0x1fa   : > { %v2316_v42 = vadd.f32 %v2315_v5, %v2314_v13  ;;  %v2417_v39 = vadd.f32 %v2416_v34, %v2415_v55  ;;  %v2153_v50 = vpop.f32.mrf.mxu0  ;;  %v2193_v43 = vpop.f32.mrf.mxu1  ;;  %v2420_v15 = vsel %vm411_vm0, %v2382_v60, 0.0  ;;  %v1994_v1 = vadd.f32 %v4379_v6, %v4361_v31 }
 0x1fb   : > { %v2418_v26 = vsel %vm411_vm0, %v2381_v36, 0.0  ;;  %2281 = vst.msk [vmem:[%s4412_s13 + $0x48] sm:$0xff] %vm411_vm0, %v2159_v46  ;;  %2289 = vst.msk [vmem:[%s4412_s13 + $0x88] sm:$0xff] %vm411_vm0, %v4460_v10  ;;  %v2154_v56 = vadd.f32 %v2153_v50, %v4335_v59  ;;  %v4474_v52 = vadd.f32 %v2193_v43, %v4359_v12  ;;  %v2384_v61 = vmul.f32 %v2159_v46, %v2159_v46 }
 0x1fc   : > { %v2419_v2 = vadd.f32 %v2418_v26, %v2417_v39  ;;  %v2318_v20 = vadd.f32 %v2317_v35, %v2316_v42  ;;  %v2702_v21 = vpop.f32.mrf.mxu0  ;;  %v2714_v29 = vpop.f32.mrf.mxu1  ;;  %v2321_v12 = vsel %vm411_vm0, %v2159_v46, 0.0 }
 0x1fd   : > { %v2169_v11 = vadd.f32 %v2702_v21, %v4341_v14  ;;  %v4477_v18 = vadd.f32 %v2714_v29, %v1984_v40  ;;  %2280 = vst.msk [vmem:[%s4412_s13 + $0x40] sm:$0xff] %vm411_vm0, %v2154_v56  ;;  %v2319_v59 = vsel %vm411_vm0, %v2154_v56, 0.0  ;;  %v2383_v17 = vmul.f32 %v2154_v56, %v2154_v56  ;;  %2288 = vst.msk [vmem:[%s4412_s13 + $0x80] sm:$0xff] %vm411_vm0, %v4474_v52 }
 0x1fe   : > { %v2421_v45 = vadd.f32 %v2420_v15, %v2419_v2  ;;  %v2163_v37 = vpop.f32.mrf.mxu0  ;;  %v2203_v34 = vpop.f32.mrf.mxu1  ;;  %v2320_v55 = vadd.f32 %v2319_v59, %v2318_v20  ;;  %v1979_v14 = vadd.f32 %v4367_v44, %v4349_v57  ;;  %v2424_v39 = vsel %vm411_vm0, %v2384_v61, 0.0 }
 0x1ff   : > { %2283 = vst.msk [vmem:[%s4412_s13 + $0x58] sm:$0xff] %vm411_vm0, %v2169_v11  ;;  %2291 = vst.msk [vmem:[%s4412_s13 + $0x98] sm:$0xff] %vm411_vm0, %v4477_v18  ;;  %v2422_v60 = vsel %vm411_vm0, %v2383_v17, 0.0  ;;  %v2164_v36 = vadd.f32 %v2163_v37, %v4339_v8  ;;  %v2386_v50 = vmul.f32 %v2169_v11, %v2169_v11  ;;  %v1989_v2 = vadd.f32 %v4375_v47, %v4357_v27 }
 0x200   : > { %v2705_v13 = vpop.f32.mrf.mxu0  ;;  %v2717_v51 = vpop.f32.mrf.mxu1  ;;  %v2423_v5 = vadd.f32 %v2422_v60, %v2421_v45  ;;  %v2322_v42 = vadd.f32 %v2321_v12, %v2320_v55  ;;  %v4498_v43 = vadd.f32 %v2203_v34, %v1979_v14  ;;  %v2325_v56 = vsel %vm411_vm0, %v2169_v11, 0.0 }
 0x201   : > { %v2179_v57 = vadd.f32 %v2705_v13, %v4347_v53  ;;  %2282 = vst.msk [vmem:[%s4412_s13 + $0x50] sm:$0xff] %vm411_vm0, %v2164_v36  ;;  %v2323_v31 = vsel %vm411_vm0, %v2164_v36, 0.0  ;;  %v2385_v6 = vmul.f32 %v2164_v36, %v2164_v36  ;;  %v4504_v35 = vadd.f32 %v2717_v51, %v1994_v1 }
 0x202   : > { %v2173_v44 = vpop.f32.mrf.mxu0  ;;  %v2213_v46 = vpop.f32.mrf.mxu1  ;;  %v2425_v40 = vadd.f32 %v2424_v39, %v2423_v5  ;;  %v2324_v8 = vadd.f32 %v2323_v31, %v2322_v42  ;;  %2290 = vst.msk [vmem:[%s4412_s13 + $0x90] sm:$0xff] %vm411_vm0, %v4498_v43  ;;  %v2004_v21 = vadd.f32 %v4387_v30, %v4369_v49  ;;  %v2428_v17 = vsel %vm411_vm0, %v2386_v50, 0.0 }
 0x203   : > { %2285 = vst.msk [vmem:[%s4412_s13 + $0x68] sm:$0xff] %vm411_vm0, %v2179_v57  ;;  %v2426_v20 = vsel %vm411_vm0, %v2385_v6, 0.0  ;;  %2293 = vst.msk [vmem:[%s4412_s13 + $0xa8] sm:$0xff] %vm411_vm0, %v4504_v35  ;;  %v2174_v15 = vadd.f32 %v2173_v44, %v4343_v25  ;;  %v2388_v27 = vmul.f32 %v2179_v57, %v2179_v57  ;;  %v4522_v47 = vadd.f32 %v2213_v46, %v1989_v2 }
 0x204   : > { %v2708_v26 = vpop.f32.mrf.mxu0  ;;  %v2720_v53 = vpop.f32.mrf.mxu1  ;;  %v2427_v29 = vadd.f32 %v2426_v20, %v2425_v40  ;;  %v2326_v61 = vadd.f32 %v2325_v56, %v2324_v8  ;;  %v2014_v14 = vadd.f32 %v4395_v22, %v4377_v63  ;;  %v2329_v12 = vsel %vm411_vm0, %v2179_v57, 0.0 }
 0x205   : > { %v2189_v11 = vadd.f32 %v2708_v26, %v4355_v0  ;;  %2284 = vst.msk [vmem:[%s4412_s13 + $0x60] sm:$0xff] %vm411_vm0, %v2174_v15  ;;  %v2327_v45 = vsel %vm411_vm0, %v2174_v15, 0.0  ;;  %v2387_v49 = vmul.f32 %v2174_v15, %v2174_v15  ;;  %v4528_v37 = vadd.f32 %v2720_v53, %v2004_v21  ;;  %2292 = vst.msk [vmem:[%s4412_s13 + $0xa0] sm:$0xff] %vm411_vm0, %v4522_v47 }
 0x206   : > { %v2223_v59 = vpop.f32.mrf.mxu1  ;;  %v2429_v30 = vadd.f32 %v2428_v17, %v2427_v29  ;;  %v2183_v25 = vpop.f32.mrf.mxu0  ;;  %v2328_v55 = vadd.f32 %v2327_v45, %v2326_v61  ;;  %v1999_v0 = vadd.f32 %v4383_v24, %v4365_v41  ;;  %v2009_v51 = vadd.f32 %v4391_v3, %v4373_v23 }
 0x207   : > { %2287 = vst.msk [vmem:[%s4412_s13 + $0x78] sm:$0xff] %vm411_vm0, %v2189_v11  ;;  %v2430_v60 = vsel %vm411_vm0, %v2387_v49, 0.0  ;;  %2295 = vst.msk [vmem:[%s4412_s13 + $0xb8] sm:$0xff] %vm411_vm0, %v4528_v37  ;;  %v2184_v5 = vadd.f32 %v2183_v25, %v4351_v32  ;;  %v2432_v24 = vsel %vm411_vm0, %v2388_v27, 0.0  ;;  %v2390_v63 = vmul.f32 %v2189_v11, %v2189_v11 }
 0x208   : > { %v2723_v34 = vpop.f32.mrf.mxu1  ;;  %v2431_v1 = vadd.f32 %v2430_v60, %v2429_v30  ;;  %v2330_v41 = vadd.f32 %v2329_v12, %v2328_v55  ;;  %v4548_v22 = vadd.f32 %v2223_v59, %v1999_v0  ;;  %v2019_v32 = vadd.f32 %v4399_v16, %v4381_v58 }
 0x209   : > { %v4550_v36 = vadd.f32 %v2723_v34, %v2014_v14  ;;  %2286 = vst.msk [vmem:[%s4412_s13 + $0x70] sm:$0xff] %vm411_vm0, %v2184_v5  ;;  %v2331_v39 = vsel %vm411_vm0, %v2184_v5, 0.0  ;;  %v2389_v23 = vmul.f32 %v2184_v5, %v2184_v5  ;;  %v2024_v57 = vadd.f32 %v4403_v33, %v4385_v62 }
 0x20a   : > { %v2233_v13 = vpop.f32.mrf.mxu1  ;;  %v2433_v3 = vadd.f32 %v2432_v24, %v2431_v1  ;;  %v2332_v44 = vadd.f32 %v2331_v39, %v2330_v41  ;;  %2294 = vst.msk [vmem:[%s4412_s13 + $0xb0] sm:$0xff] %vm411_vm0, %v4548_v22  ;;  %v2034_v31 = vadd.f32 %v4418_v7, %v4393_v4  ;;  %v2391_v6 = vmul.f32 %v4474_v52, %v4474_v52 }
 0x20b   : > { %v4555_v50 = vadd.f32 %v2233_v13, %v2009_v51  ;;  %2297 = vst.msk [vmem:[%s4412_s13 + $0xc8] sm:$0xff] %vm411_vm0, %v4550_v36  ;;  %v2333_v58 = vsel %vm411_vm0, %v2189_v11, 0.0  ;;  %v2434_v16 = vsel %vm411_vm0, %v2389_v23, 0.0  ;;  %v2392_v62 = vmul.f32 %v4460_v10, %v4460_v10 }
 0x20c   : > { %v2726_v42 = vpop.f32.mrf.mxu1  ;;  %v2334_v33 = vadd.f32 %v2333_v58, %v2332_v44  ;;  %v2435_v40 = vadd.f32 %v2434_v16, %v2433_v3  ;;  %v2335_v7 = vsel %vm411_vm0, %v4474_v52, 0.0  ;;  %v2436_v26 = vsel %vm411_vm0, %v2390_v63, 0.0 }
 0x20d   : > { %2296 = vst.msk [vmem:[%s4412_s13 + $0xc0] sm:$0xff] %vm411_vm0, %v4555_v50  ;;  %v4578_v8 = vadd.f32 %v2726_v42, %v2024_v57  ;;  %v2029_v56 = vadd.f32 %v4405_v38, %v4389_v9  ;;  %v2044_v15 = vadd.f32 %v4441_v54, %v4401_v28  ;;  %v2337_v52 = vsel %vm411_vm0, %v4460_v10, 0.0 }
 0x20e   : > { %v2243_v46 = vpop.f32.mrf.mxu1  ;;  %v2336_v20 = vadd.f32 %v2335_v7, %v2334_v33  ;;  %v2437_v21 = vadd.f32 %v2436_v26, %v2435_v40  ;;  %v2438_v61 = vsel %vm411_vm0, %v2391_v6, 0.0  ;;  %v2393_v59 = vmul.f32 %v4498_v43, %v4498_v43 }
 0x20f   : > { %v4583_v53 = vadd.f32 %v2243_v46, %v2019_v32  ;;  %2299 = vst.msk [vmem:[%s4412_s13 + $0xd8] sm:$0xff] %vm411_vm0, %v4578_v8  ;;  %v2039_v9 = vadd.f32 %v4430_v19, %v4397_v48  ;;  %v2440_v17 = vsel %vm411_vm0, %v2392_v62, 0.0  ;;  %v2394_v27 = vmul.f32 %v4477_v18, %v4477_v18 }
 0x210   : > { %v2729_v4 = vpop.f32.mrf.mxu1  ;;  %v2338_v28 = vadd.f32 %v2337_v52, %v2336_v20  ;;  %v2439_v38 = vadd.f32 %v2438_v61, %v2437_v21  ;;  %v2339_v11 = vsel %vm411_vm0, %v4498_v43, 0.0  ;;  %v2341_v19 = vsel %vm411_vm0, %v4477_v18, 0.0 }
 0x211   : > { %v4585_v2 = vadd.f32 %v2729_v4, %v2034_v31  ;;  %2298 = vst.msk [vmem:[%s4412_s13 + $0xd0] sm:$0xff] %vm411_vm0, %v4583_v53  ;;  %v2442_v25 = vsel %vm411_vm0, %v2393_v59, 0.0  ;;  %v2395_v34 = vmul.f32 %v4522_v47, %v4522_v47  ;;  %v2444_v14 = vsel %vm411_vm0, %v2394_v27, 0.0 }
 0x212   : > { %v2253_v29 = vpop.f32.mrf.mxu1  ;;  %v2441_v49 = vadd.f32 %v2440_v17, %v2439_v38  ;;  %v2340_v30 = vadd.f32 %v2339_v11, %v2338_v28  ;;  %v2396_v12 = vmul.f32 %v4504_v35, %v4504_v35  ;;  %v2343_v60 = vsel %vm411_vm0, %v4522_v47, 0.0 }
 0x213   : > { %2301 = vst.msk [vmem:[%s4412_s13 + $0xe8] sm:$0xff] %vm411_vm0, %v4585_v2  ;;  %v2254_v54 = vadd.f32 %v2253_v29, %v2029_v56  ;;  %v2345_v51 = vsel %vm411_vm0, %v4504_v35, 0.0  ;;  %v2446_v1 = vsel %vm411_vm0, %v2395_v34, 0.0  ;;  %v2397_v5 = vmul.f32 %v4548_v22, %v4548_v22 }
 0x214   : > { %v2732_v10 = vpop.f32.mrf.mxu1  ;;  %v2342_v55 = vadd.f32 %v2341_v19, %v2340_v30  ;;  %v2443_v0 = vadd.f32 %v2442_v25, %v2441_v49  ;;  %v2448_v63 = vsel %vm411_vm0, %v2396_v12, 0.0  ;;  %v2398_v42 = vmul.f32 %v4528_v37, %v4528_v37 }
 0x215   : > { %v4612_v45 = vadd.f32 %v2732_v10, %v2044_v15  ;;  %2300 = vst.msk [vmem:[%s4412_s13 + $0xe0] sm:$0xff] %vm411_vm0, %v2254_v54  ;;  %v2347_v47 = vsel %vm411_vm0, %v4548_v22, 0.0  ;;  %v2349_v35 = vsel %vm411_vm0, %v4528_v37, 0.0  ;;  %v2450_v3 = vsel %vm411_vm0, %v2397_v5, 0.0 }
 0x216   : > { %v2263_v48 = vpop.f32.mrf.mxu1  ;;  %v2344_v18 = vadd.f32 %v2343_v60, %v2342_v55  ;;  %v2445_v13 = vadd.f32 %v2444_v14, %v2443_v0  ;;  %v2399_v32 = vmul.f32 %v4555_v50, %v4555_v50  ;;  %v2452_v46 = vsel %vm411_vm0, %v2398_v42, 0.0 }
 0x217   : > { %2303 = vst.msk [vmem:[%s4412_s13 + $0xf8] sm:$0xff] %vm411_vm0, %v4612_v45  ;;  %v2264_v43 = vadd.f32 %v2263_v48, %v2039_v9  ;;  %v2400_v31 = vmul.f32 %v4550_v36, %v4550_v36  ;;  %v2351_v22 = vsel %vm411_vm0, %v4555_v50, 0.0  ;;  %v2353_v37 = vsel %vm411_vm0, %v4550_v36, 0.0 }
 0x218   : > { %v2346_v41 = vadd.f32 %v2345_v51, %v2344_v18  ;;  %v2447_v24 = vadd.f32 %v2446_v1, %v2445_v13  ;;  %v2454_v16 = vsel %vm411_vm0, %v2399_v32, 0.0  ;;  %v2401_v62 = vmul.f32 %v4583_v53, %v4583_v53 }
 0x219   : > { %2302 = vst.msk [vmem:[%s4412_s13 + $0xf0] sm:$0xff] %vm411_vm0, %v2264_v43  ;;  %v2456_v4 = vsel %vm411_vm0, %v2400_v31, 0.0  ;;  %v2402_v7 = vmul.f32 %v4578_v8, %v4578_v8  ;;  %v2355_v50 = vsel %vm411_vm0, %v4583_v53, 0.0  ;;  %v2357_v36 = vsel %vm411_vm0, %v4578_v8, 0.0 }
 0x21a   : > { %v2348_v39 = vadd.f32 %v2347_v47, %v2346_v41  ;;  %v2449_v23 = vadd.f32 %v2448_v63, %v2447_v24  ;;  %v2458_v20 = vsel %vm411_vm0, %v2401_v62, 0.0  ;;  %v2403_v21 = vmul.f32 %v2254_v54, %v2254_v54 }
 0x21b   : > { %v2460_v52 = vsel %vm411_vm0, %v2402_v7, 0.0  ;;  %v2404_v61 = vmul.f32 %v4585_v2, %v4585_v2  ;;  %v2359_v59 = vsel %vm411_vm0, %v2254_v54, 0.0  ;;  %v2361_v53 = vsel %vm411_vm0, %v4585_v2, 0.0 }
 0x21c   : > { %v2451_v57 = vadd.f32 %v2450_v3, %v2449_v23  ;;  %v2350_v44 = vadd.f32 %v2349_v35, %v2348_v39  ;;  %v2462_v38 = vsel %vm411_vm0, %v2403_v21, 0.0  ;;  %v2405_v8 = vmul.f32 %v2264_v43, %v2264_v43 }
 0x21d   : > { %v2464_v27 = vsel %vm411_vm0, %v2404_v61, 0.0  ;;  %v2406_v11 = vmul.f32 %v4612_v45, %v4612_v45  ;;  %v2363_v49 = vsel %vm411_vm0, %v2264_v43, 0.0  ;;  %v2365_v54 = vsel %vm411_vm0, %v4612_v45, 0.0 }
 0x21e   : > { %v2352_v6 = vadd.f32 %v2351_v22, %v2350_v44  ;;  %v2453_v58 = vadd.f32 %v2452_v46, %v2451_v57  ;;  %v2466_v2 = vsel %vm411_vm0, %v2405_v8, 0.0 }
 0x21f   : > { %v2468_v34 = vsel %vm411_vm0, %v2406_v11, 0.0 }
 0x220   : > { %v2455_v33 = vadd.f32 %v2454_v16, %v2453_v58  ;;  %v2354_v40 = vadd.f32 %v2353_v37, %v2352_v6 }
 0x222   : > { %v2356_v26 = vadd.f32 %v2355_v50, %v2354_v40  ;;  %v2457_v56 = vadd.f32 %v2456_v4, %v2455_v33 }
 0x224   : > { %v2459_v29 = vadd.f32 %v2458_v20, %v2457_v56  ;;  %v2358_v15 = vadd.f32 %v2357_v36, %v2356_v26 }
 0x226   : > { %v2360_v9 = vadd.f32 %v2359_v59, %v2358_v15  ;;  %v2461_v28 = vadd.f32 %v2460_v52, %v2459_v29 }
 0x228   : > { %v2463_v10 = vadd.f32 %v2462_v38, %v2461_v28  ;;  %v2362_v17 = vadd.f32 %v2361_v53, %v2360_v9 }
 0x22a   : > { %v2364_v30 = vadd.f32 %v2363_v49, %v2362_v17  ;;  %v2465_v48 = vadd.f32 %v2464_v27, %v2463_v10 }
 0x22c   : > { %v2366_v19 = vadd.f32 %v2365_v54, %v2364_v30  ;;  %v2467_v25 = vadd.f32 %v2466_v2, %v2465_v48 }
 0x22e   : > { %v2367_v55 = vrot.slane %v2366_v19, 4  ;;  %v2469_v0 = vadd.f32 %v2468_v34, %v2467_v25 }
 0x230   : > { %v2368_v14 = vadd.f32 %v2367_v55, %v2366_v19  ;;  %v2470_v12 = vrot.slane %v2469_v0, 4 }
 0x232   : > { %v2369_v60 = vrot.slane %v2368_v14, 2  ;;  %v2471_v18 = vadd.f32 %v2470_v12, %v2469_v0 }
 0x234   : > { %v2370_v43 = vadd.f32 %v2369_v60, %v2368_v14  ;;  %v2472_v13 = vrot.slane %v2471_v18, 2 }
 0x236   : > { %v2371_v51 = vrot.slane %v2370_v43, 1  ;;  %v2473_v1 = vadd.f32 %v2472_v13, %v2471_v18 }
 0x238   : > { %v2372_v45 = vadd.f32 %v2371_v51, %v2370_v43  ;;  %v2474_v5 = vrot.slane %v2473_v1, 1 }
 0x23a   : > { %2374 = vst.msk [vmem:[%s265_s16] sm:$0x1] %vm2373_vm2, %v2372_v45  ;;  %v2475_v41 = vadd.f32 %v2474_v5, %v2473_v1 }
 0x23c   : > { %2476 = vst.msk [vmem:[%s268_s19] sm:$0x1] %vm2373_vm2, %v2475_v41 }
 0x23d PF: > { %s17_s21 = sadd.s32 1, %s3085_s21  }
 0x23e   : > { %p14_p4 = scmp.ge.s32.totalorder %s17_s21, 4  }
 0x240   :  { %16 = sbr.rel (!%p14_p4) target bundleno = 1 (0x1), region = 92 }

// kernel: dncnn_forward.5
= control target key start
LH: loop header
LB: loop body
LE: loop exit
PB: predicated region body
PF: predicated region fallthrough
CT: control target
= control target key end

     0   :  { %s3044_s21 = smov 0   ;;  %s4547_s0 = inlined_call_operand.vmem [shape: f32[2,16,16,64], index: 0, kind: input, shape index: {}]   ;;  %s4548_s1 = inlined_call_operand.vmem [shape: f32[576,64], index: 1, kind: input, shape index: {}]   ;;  %s4549_s2 = inlined_call_operand.vmem [shape: f32[1,64], index: 2, kind: input, shape index: {}]   ;;  %s4550_s3 = inlined_call_operand.vmem [shape: f32[1,64], index: 3, kind: input, shape index: {}]   ;;  %s4551_s4 = inlined_call_operand.vmem [shape: f32[2,16,16,64], index: 4, kind: output, shape index: {0}]   ;;  %s4552_s5 = inlined_call_operand.vmem [shape: f32[2,1,64], index: 5, kind: output, shape index: {1}]   ;;  %s4553_s6 = inlined_call_operand.vmem [shape: f32[2,1,64], index: 6, kind: output, shape index: {2}]  }
   0x1 LB: > { %s2504_s2 = sadd.s32 4294967295, %s3005_s21   ;;  %p2508_p0 = scmp.ge.s32.totalorder %s3005_s21, 1  ;;  %s3005_s21 = sphi %s3044_s21, %s17_s21  }
   0x2   : > { %p217_p1 = scmp.lt.s32.totalorder %s3005_s21, 3 }
   0x4   : > { %p218_p2 = pnand %p2508_p0, %p217_p1 }
   0x5   : > { %p3054_p3 = scmp.lt.s32.totalorder (!%p218_p2), %s2504_s2, 1  ;;  %s3008_s9 = smov (!%p218_p2), 64  }
   0x6   : > { %221 = sbr.rel (%p218_p2) target bundleno = 573 (0x23d), region = 36 }
   0xb   : > { %vm333_vm0 = vcmask 523264   ;;  %vm336_vm1 = vcmask 517120   ;;  %v1366_v0 = vld [vmem:[%s4548_s1 + $0x78] sm:$0xff]  ;;  %v3007_v1 = vmov 0.0   ;;  %v1365_v2 = vld [vmem:[%s4548_s1 + $0x70] sm:$0xff]  ;;  %s4556_s2 = smov (!%p3054_p3, %s2504_s2), 1 }
   0xc   : > { %334 = vst.msk [vmem:[#allocation2] sm:$0xff] %vm333_vm0, %v3007_v1  ;;  %335 = vst.msk [vmem:[#allocation2 + $0x8] sm:$0xff] %vm333_vm0, %v3007_v1  ;;  %1519 = vmatprep.subr.mxu0 %v3007_v1  ;;  %1744 = vmatprep.subr.mxu1 %v3007_v1  ;;  %v1364_v3 = vld [vmem:[%s4548_s1 + $0x68] sm:$0xff]  ;;  %v1398_v4 = vld [vmem:[%s4548_s1 + $0x178] sm:$0xff]  ;;  %s2547_s30 = sshll.u32 %s4556_s2, 8  ;;  %s265_s19 = scalar_lea.vmem %s4552_s5, %s4556_s2  ;;  %vm2295_vm2 = vcmask 516096  }
   0xd   : > { %338 = vst.msk [vmem:[#allocation2 + $0x18] sm:$0xff] %vm333_vm0, %v3007_v1  ;;  %339 = vst.msk [vmem:[#allocation2 + $0x20] sm:$0xff] %vm333_vm0, %v3007_v1  ;;  %1520 = vmatpush1.msra.mxu0 %v1366_v0  ;;  %v1363_v5 = vld [vmem:[%s4548_s1 + $0x60] sm:$0xff]  ;;  %1745 = vmatpush1.msra.mxu1 %v1398_v4  ;;  %v1397_v6 = vld [vmem:[%s4548_s1 + $0x170] sm:$0xff]  ;;  %s3199_s13 = scalar_lea.vmem %s4547_s0, %s2547_s30  ;;  %s4269_s17 = scalar_lea.vmem %s4551_s4, %s2547_s30 }
   0xe   : > { %341 = vst.msk [vmem:[#allocation2 + $0x30] sm:$0xff] %vm333_vm0, %v3007_v1  ;;  %342 = vst.msk [vmem:[#allocation2 + $0x38] sm:$0xff] %vm333_vm0, %v3007_v1  ;;  %1521 = vmatprep.subr.mxu0 %v3007_v1  ;;  %v1362_v7 = vld [vmem:[%s4548_s1 + $0x58] sm:$0xff]  ;;  %1746 = vmatprep.subr.mxu1 %v3007_v1  ;;  %v1396_v8 = vld [vmem:[%s4548_s1 + $0x168] sm:$0xff]  ;;  %s268_s22 = scalar_lea.vmem %s4553_s6, %s4556_s2 }
   0xf   : > { %344 = vst.msk [vmem:[#allocation2 + $0x48] sm:$0xff] %vm333_vm0, %v3007_v1  ;;  %345 = vst.msk [vmem:[#allocation2 + $0x50] sm:$0xff] %vm333_vm0, %v3007_v1  ;;  %1522 = vmatpush1.msra.mxu0 %v1365_v2  ;;  %v1395_v9 = vld [vmem:[%s4548_s1 + $0x160] sm:$0xff]  ;;  %v271_v11 = vld [vmem:[%s3199_s13 + $0x10] sm:$0xff]  ;;  %1747 = vmatpush1.msra.mxu1 %v1397_v6 }
  0x10   : > { %347 = vst.msk [vmem:[#allocation2 + $0x60] sm:$0xff] %vm333_vm0, %v3007_v1  ;;  %348 = vst.msk [vmem:[#allocation2 + $0x68] sm:$0xff] %vm333_vm0, %v3007_v1  ;;  %1523 = vmatprep.subr.mxu0 %v3007_v1  ;;  %v269_v10 = vld [vmem:[%s3199_s13] sm:$0xff]  ;;  %v270_v12 = vld [vmem:[%s3199_s13 + $0x8] sm:$0xff]  ;;  %v303_v14 = vmax.f32 %v271_v11, 0.0  ;;  %1748 = vmatprep.subr.mxu1 %v3007_v1 }
  0x11   : > { %350 = vst.msk [vmem:[#allocation2 + $0x78] sm:$0xff] %vm333_vm0, %v3007_v1  ;;  %351 = vst.msk [vmem:[#allocation2 + $0x80] sm:$0xff] %vm333_vm0, %v3007_v1  ;;  %1524 = vmatpush1.msra.mxu0 %v1364_v3  ;;  %v301_v13 = vmax.f32 %v269_v10, 0.0  ;;  %v302_v15 = vmax.f32 %v270_v12, 0.0  ;;  %v272_v16 = vld [vmem:[%s3199_s13 + $0x18] sm:$0xff]  ;;  %v273_v17 = vld [vmem:[%s3199_s13 + $0x20] sm:$0xff]  ;;  %1749 = vmatpush1.msra.mxu1 %v1396_v8 }
  0x12   : > { %353 = vst.msk [vmem:[#allocation2 + $0x90] sm:$0xff] %vm333_vm0, %v3007_v1  ;;  %354 = vst.msk [vmem:[#allocation2 + $0x98] sm:$0xff] %vm333_vm0, %v3007_v1  ;;  %v274_v18 = vld [vmem:[%s3199_s13 + $0x28] sm:$0xff]  ;;  %1525 = vmatprep.subr.mxu0 %v3007_v1  ;;  %v304_v19 = vmax.f32 %v272_v16, 0.0  ;;  %v305_v20 = vmax.f32 %v273_v17, 0.0  ;;  %v275_v22 = vld [vmem:[%s3199_s13 + $0x30] sm:$0xff]  ;;  %1750 = vmatprep.subr.mxu1 %v3007_v1 }
  0x13   : > { %356 = vst.msk [vmem:[#allocation2 + $0xa8] sm:$0xff] %vm333_vm0, %v3007_v1  ;;  %357 = vst.msk [vmem:[#allocation2 + $0xb0] sm:$0xff] %vm333_vm0, %v3007_v1  ;;  %v306_v21 = vmax.f32 %v274_v18, 0.0  ;;  %1526 = vmatpush1.msra.mxu0 %v1363_v5  ;;  %v1361_v23 = vld [vmem:[%s4548_s1 + $0x50] sm:$0xff]  ;;  %v307_v24 = vmax.f32 %v275_v22, 0.0  ;;  %v276_v25 = vld [vmem:[%s3199_s13 + $0x38] sm:$0xff]  ;;  %1751 = vmatpush1.msra.mxu1 %v1395_v9 }
  0x14   : > { %359 = vst.msk [vmem:[#allocation2 + $0xc0] sm:$0xff] %vm333_vm0, %v3007_v1  ;;  %360 = vst.msk [vmem:[#allocation2 + $0xc8] sm:$0xff] %vm333_vm0, %v3007_v1  ;;  %v277_v26 = vld [vmem:[%s3199_s13 + $0x40] sm:$0xff]  ;;  %v278_v27 = vld [vmem:[%s3199_s13 + $0x48] sm:$0xff]  ;;  %1527 = vmatprep.subr.mxu0 %v3007_v1  ;;  %v308_v29 = vmax.f32 %v276_v25, 0.0  ;;  %1752 = vmatprep.subr.mxu1 %v3007_v1 }
  0x15   : > { %362 = vst.msk [vmem:[#allocation2 + $0xd8] sm:$0xff] %vm333_vm0, %v3007_v1  ;;  %363 = vst.msk [vmem:[#allocation2 + $0xe0] sm:$0xff] %vm333_vm0, %v3007_v1  ;;  %v1360_v28 = vld [vmem:[%s4548_s1 + $0x48] sm:$0xff]  ;;  %v309_v30 = vmax.f32 %v277_v26, 0.0  ;;  %v310_v31 = vmax.f32 %v278_v27, 0.0  ;;  %v279_v32 = vld [vmem:[%s3199_s13 + $0x50] sm:$0xff]  ;;  %1528 = vmatpush1.msra.mxu0 %v1362_v7 }
  0x16   : > { %365 = vst.msk [vmem:[#allocation2 + $0xf0] sm:$0xff] %vm333_vm0, %v3007_v1  ;;  %366 = vst.msk [vmem:[#allocation2 + $0xf8] sm:$0xff] %vm333_vm0, %v3007_v1  ;;  %v280_v33 = vld [vmem:[%s3199_s13 + $0x58] sm:$0xff]  ;;  %v281_v34 = vld [vmem:[%s3199_s13 + $0x60] sm:$0xff]  ;;  %v311_v35 = vmax.f32 %v279_v32, 0.0  ;;  %1529 = vmatprep.subr.mxu0 %v3007_v1 }
  0x17   : > { %368 = vst.msk [vmem:[#allocation2 + $0x108] sm:$0xff] %vm333_vm0, %v3007_v1  ;;  %369 = vst.msk [vmem:[#allocation2 + $0x110] sm:$0xff] %vm333_vm0, %v3007_v1  ;;  %v312_v36 = vmax.f32 %v280_v33, 0.0  ;;  %v313_v37 = vmax.f32 %v281_v34, 0.0  ;;  %v282_v38 = vld [vmem:[%s3199_s13 + $0x68] sm:$0xff]  ;;  %v283_v39 = vld [vmem:[%s3199_s13 + $0x70] sm:$0xff]  ;;  %1530 = vmatpush1.msra.mxu0 %v1361_v23 }
  0x18   : > { %371 = vst.msk [vmem:[#allocation2 + $0x120] sm:$0xff] %vm333_vm0, %v3007_v1  ;;  %372 = vst.msk [vmem:[#allocation2 + $0x128] sm:$0xff] %vm333_vm0, %v3007_v1  ;;  %v284_v40 = vld [vmem:[%s3199_s13 + $0x78] sm:$0xff]  ;;  %v1359_v41 = vld [vmem:[%s4548_s1 + $0x40] sm:$0xff]  ;;  %v314_v42 = vmax.f32 %v282_v38, 0.0  ;;  %v315_v43 = vmax.f32 %v283_v39, 0.0  ;;  %1531 = vmatprep.subr.mxu0 %v3007_v1 }
  0x19   : > { %374 = vst.msk [vmem:[#allocation2 + $0x138] sm:$0xff] %vm333_vm0, %v3007_v1  ;;  %375 = vst.msk [vmem:[#allocation2 + $0x140] sm:$0xff] %vm333_vm0, %v3007_v1  ;;  %v316_v44 = vmax.f32 %v284_v40, 0.0  ;;  %v285_v45 = vld [vmem:[%s3199_s13 + $0x80] sm:$0xff]  ;;  %v286_v46 = vld [vmem:[%s3199_s13 + $0x88] sm:$0xff]  ;;  %1532 = vmatpush1.msra.mxu0 %v1360_v28 }
  0x1a   : > { %377 = vst.msk [vmem:[#allocation2 + $0x150] sm:$0xff] %vm333_vm0, %v3007_v1  ;;  %378 = vst.msk [vmem:[#allocation2 + $0x158] sm:$0xff] %vm333_vm0, %v3007_v1  ;;  %v287_v47 = vld [vmem:[%s3199_s13 + $0x90] sm:$0xff]  ;;  %v317_v48 = vmax.f32 %v285_v45, 0.0  ;;  %v318_v49 = vmax.f32 %v286_v46, 0.0  ;;  %v288_v51 = vld [vmem:[%s3199_s13 + $0x98] sm:$0xff]  ;;  %1533 = vmatprep.subr.mxu0 %v3007_v1 }
  0x1b   : > { %380 = vst.msk [vmem:[#allocation2 + $0x168] sm:$0xff] %vm333_vm0, %v3007_v1  ;;  %381 = vst.msk [vmem:[#allocation2 + $0x170] sm:$0xff] %vm333_vm0, %v3007_v1  ;;  %v319_v50 = vmax.f32 %v287_v47, 0.0  ;;  %v289_v52 = vld [vmem:[%s3199_s13 + $0xa0] sm:$0xff]  ;;  %v290_v53 = vld [vmem:[%s3199_s13 + $0xa8] sm:$0xff]  ;;  %v320_v56 = vmax.f32 %v288_v51, 0.0  ;;  %1534 = vmatpush1.msra.mxu0 %v1359_v41 }
  0x1c   : > { %383 = vst.msk [vmem:[#allocation2 + $0x180] sm:$0xff] %vm333_vm0, %v3007_v1  ;;  %384 = vst.msk [vmem:[#allocation2 + $0x188] sm:$0xff] %vm333_vm0, %v3007_v1  ;;  %v1358_v54 = vld [vmem:[%s4548_s1 + $0x38] sm:$0xff]  ;;  %v454_v55 = vld [vmem:[#allocation2 + $0x1] sm:$0xff]  ;;  %v321_v57 = vmax.f32 %v289_v52, 0.0  ;;  %v322_v58 = vmax.f32 %v290_v53, 0.0  ;;  %1535 = vmatprep.subr.mxu0 %v3007_v1 }
  0x1d   : > { %386 = vst.msk [vmem:[#allocation2 + $0x198] sm:$0xff] %vm333_vm0, %v3007_v1  ;;  %387 = vst.msk [vmem:[#allocation2 + $0x1a0] sm:$0xff] %vm333_vm0, %v3007_v1  ;;  %v291_v59 = vld [vmem:[%s3199_s13 + $0xb0] sm:$0xff]  ;;  %v292_v60 = vld [vmem:[%s3199_s13 + $0xb8] sm:$0xff]  ;;  %1536 = vmatpush1.msra.mxu0 %v1358_v54 }
  0x1e   : > { %337 = vst.msk [vmem:[#allocation2 + $0x10] sm:$0x3] %vm336_vm1, %v3007_v1  ;;  %340 = vst.msk [vmem:[#allocation2 + $0x28] sm:$0x3] %vm336_vm1, %v3007_v1  ;;  %v323_v62 = vmax.f32 %v291_v59, 0.0  ;;  %v324_v63 = vmax.f32 %v292_v60, 0.0  ;;  %1537 = vmatprep.subr.mxu0 %v3007_v1 }
  0x1f   : > { %343 = vst.msk [vmem:[#allocation2 + $0x40] sm:$0x3] %vm336_vm1, %v3007_v1  ;;  %346 = vst.msk [vmem:[#allocation2 + $0x58] sm:$0x3] %vm336_vm1, %v3007_v1  ;;  %v1394_v0 = vld [vmem:[%s4548_s1 + $0x158] sm:$0xff]  ;;  %v293_v2 = vld [vmem:[%s3199_s13 + $0xc0] sm:$0xff] }
  0x20   : > { %349 = vst.msk [vmem:[#allocation2 + $0x70] sm:$0x3] %vm336_vm1, %v3007_v1  ;;  %352 = vst.msk [vmem:[#allocation2 + $0x88] sm:$0x3] %vm336_vm1, %v3007_v1  ;;  %1753 = vmatpush1.msra.mxu1 %v1394_v0  ;;  %v325_v6 = vmax.f32 %v293_v2, 0.0  ;;  %v1357_v12 = vld [vmem:[%s4548_s1 + $0x30] sm:$0xff] }
  0x21   : > { %355 = vst.msk [vmem:[#allocation2 + $0xa0] sm:$0x3] %vm336_vm1, %v3007_v1  ;;  %358 = vst.msk [vmem:[#allocation2 + $0xb8] sm:$0x3] %vm336_vm1, %v3007_v1  ;;  %1754 = vmatprep.subr.mxu1 %v3007_v1  ;;  %1538 = vmatpush1.msra.mxu0 %v1357_v12  ;;  %v1355_v23 = vld [vmem:[%s4548_s1 + $0x20] sm:$0xff]  ;;  %v1354_v27 = vld [vmem:[%s4548_s1 + $0x18] sm:$0xff] }
  0x22   : > { %361 = vst.msk [vmem:[#allocation2 + $0xd0] sm:$0x3] %vm336_vm1, %v3007_v1  ;;  %364 = vst.msk [vmem:[#allocation2 + $0xe8] sm:$0x3] %vm336_vm1, %v3007_v1  ;;  %1539 = vmatprep.subr.mxu0 %v3007_v1  ;;  %v1353_v33 = vld [vmem:[%s4548_s1 + $0x10] sm:$0xff]  ;;  %v1352_v45 = vld [vmem:[%s4548_s1 + $0x8] sm:$0xff] }
  0x23   : > { %367 = vst.msk [vmem:[#allocation2 + $0x100] sm:$0x3] %vm336_vm1, %v3007_v1  ;;  %370 = vst.msk [vmem:[#allocation2 + $0x118] sm:$0x3] %vm336_vm1, %v3007_v1  ;;  %v1392_v46 = vld [vmem:[%s4548_s1 + $0x148] sm:$0xff]  ;;  %v1351_v51 = vld [vmem:[%s4548_s1] sm:$0xff] }
  0x24   : > { %373 = vst.msk [vmem:[#allocation2 + $0x130] sm:$0x3] %vm336_vm1, %v3007_v1  ;;  %376 = vst.msk [vmem:[#allocation2 + $0x148] sm:$0x3] %vm336_vm1, %v3007_v1  ;;  %v294_v47 = vld [vmem:[%s3199_s13 + $0xc8] sm:$0xff] }
  0x25   : > { %379 = vst.msk [vmem:[#allocation2 + $0x160] sm:$0x3] %vm336_vm1, %v3007_v1  ;;  %382 = vst.msk [vmem:[#allocation2 + $0x178] sm:$0x3] %vm336_vm1, %v3007_v1  ;;  %v455_v61 = vld [vmem:[#allocation2 + $0x9] sm:$0xff] }
  0x26   : > { %385 = vst.msk [vmem:[#allocation2 + $0x190] sm:$0x3] %vm336_vm1, %v3007_v1  ;;  %388 = vst.msk [vmem:[#allocation2 + $0x1a8] sm:$0x3] %vm336_vm1, %v3007_v1 }
  0x27   : > { %390 = vst.msk [vmem:[#allocation2 + $0x19] sm:$0xff] %vm333_vm0, %v301_v13  ;;  %392 = vst.msk [vmem:[#allocation2 + $0x31] sm:$0xff] %vm333_vm0, %v303_v14 }
  0x28   : > { %391 = vst.msk [vmem:[#allocation2 + $0x21] sm:$0xff] %vm333_vm0, %v302_v15  ;;  %393 = vst.msk [vmem:[#allocation2 + $0x39] sm:$0xff] %vm333_vm0, %v304_v19  ;;  %v1356_v19 = vld [vmem:[%s4548_s1 + $0x28] sm:$0xff] }
  0x29   : > { %394 = vst.msk [vmem:[#allocation2 + $0x49] sm:$0xff] %vm333_vm0, %v305_v20  ;;  %395 = vst.msk [vmem:[#allocation2 + $0x51] sm:$0xff] %vm333_vm0, %v306_v21  ;;  %1540 = vmatpush1.msra.mxu0 %v1356_v19 }
  0x2a   : > { %396 = vst.msk [vmem:[#allocation2 + $0x61] sm:$0xff] %vm333_vm0, %v307_v24  ;;  %397 = vst.msk [vmem:[#allocation2 + $0x69] sm:$0xff] %vm333_vm0, %v308_v29  ;;  %1541 = vmatprep.subr.mxu0 %v3007_v1 }
  0x2b   : > { %398 = vst.msk [vmem:[#allocation2 + $0x79] sm:$0xff] %vm333_vm0, %v309_v30  ;;  %399 = vst.msk [vmem:[#allocation2 + $0x81] sm:$0xff] %vm333_vm0, %v310_v31  ;;  %1542 = vmatpush1.msra.mxu0 %v1355_v23 }
  0x2c   : > { %400 = vst.msk [vmem:[#allocation2 + $0x91] sm:$0xff] %vm333_vm0, %v311_v35  ;;  %401 = vst.msk [vmem:[#allocation2 + $0x99] sm:$0xff] %vm333_vm0, %v312_v36  ;;  %1543 = vmatprep.subr.mxu0 %v3007_v1 }
  0x2d   : > { %402 = vst.msk [vmem:[#allocation2 + $0xa9] sm:$0xff] %vm333_vm0, %v313_v37  ;;  %403 = vst.msk [vmem:[#allocation2 + $0xb1] sm:$0xff] %vm333_vm0, %v314_v42  ;;  %1544 = vmatpush1.msra.mxu0 %v1354_v27  ;;  %v1378_v27 = vld [vmem:[%s4548_s1 + $0xd8] sm:$0xff] }
  0x2e   : > { %404 = vst.msk [vmem:[#allocation2 + $0xc1] sm:$0xff] %vm333_vm0, %v315_v43  ;;  %405 = vst.msk [vmem:[#allocation2 + $0xc9] sm:$0xff] %vm333_vm0, %v316_v44  ;;  %v518_v3 = vld [vmem:[#allocation2 + $0x18] sm:$0xff]  ;;  %v520_v5 = vld [vmem:[#allocation2 + $0x30] sm:$0xff]  ;;  %1545 = vmatprep.subr.mxu0 %v3007_v1 }
  0x2f   : > { %406 = vst.msk [vmem:[#allocation2 + $0xd9] sm:$0xff] %vm333_vm0, %v317_v48  ;;  %407 = vst.msk [vmem:[#allocation2 + $0xe1] sm:$0xff] %vm333_vm0, %v318_v49  ;;  %v456_v4 = vld [vmem:[#allocation2 + $0x19] sm:$0xff]  ;;  %v2679_v7 = vpack.i.bf16 %v454_v55, %v518_v3  ;;  %v457_v10 = vld [vmem:[#allocation2 + $0x21] sm:$0xff]  ;;  %1546 = vmatpush1.msra.mxu0 %v1353_v33 }
  0x30   : > { %408 = vst.msk [vmem:[#allocation2 + $0xf1] sm:$0xff] %vm333_vm0, %v319_v50  ;;  %409 = vst.msk [vmem:[#allocation2 + $0xf9] sm:$0xff] %vm333_vm0, %v320_v56  ;;  %v2689_v8 = vpack.i.bf16 %v456_v4, %v520_v5  ;;  %v519_v9 = vld [vmem:[#allocation2 + $0x20] sm:$0xff]  ;;  %v521_v11 = vld [vmem:[#allocation2 + $0x38] sm:$0xff]  ;;  %1547 = vmatprep.subr.mxu0 %v3007_v1  ;;  %v326_v50 = vmax.f32 %v294_v47, 0.0 }
  0x31   : > { %410 = vst.msk [vmem:[#allocation2 + $0x109] sm:$0xff] %vm333_vm0, %v321_v57  ;;  %411 = vst.msk [vmem:[#allocation2 + $0x111] sm:$0xff] %vm333_vm0, %v322_v58  ;;  %2680 = vrot.lane.b32.xlu0 %v2679_v7, %s3008_s9  ;;  %v2684_v13 = vpack.i.bf16 %v455_v61, %v519_v9  ;;  %v2694_v14 = vpack.i.bf16 %v457_v10, %v521_v11  ;;  %v458_v15 = vld [vmem:[#allocation2 + $0x31] sm:$0xff]  ;;  %v522_v16 = vld [vmem:[#allocation2 + $0x48] sm:$0xff]  ;;  %1548 = vmatpush1.msra.mxu0 %v1352_v45 }
  0x32   : > { %412 = vst.msk [vmem:[#allocation2 + $0x121] sm:$0xff] %vm333_vm0, %v323_v62  ;;  %413 = vst.msk [vmem:[#allocation2 + $0x129] sm:$0xff] %vm333_vm0, %v324_v63  ;;  %2690 = vrot.lane.b32.xlu1 %v2689_v8, %s3008_s9  ;;  %v459_v17 = vld [vmem:[#allocation2 + $0x39] sm:$0xff]  ;;  %v523_v18 = vld [vmem:[#allocation2 + $0x50] sm:$0xff]  ;;  %v2699_v20 = vpack.i.bf16 %v458_v15, %v522_v16  ;;  %1549 = vmatprep.subr.mxu0 %v3007_v1 }
  0x33   : > { %414 = vst.msk [vmem:[#allocation2 + $0x139] sm:$0xff] %vm333_vm0, %v325_v6  ;;  %v2704_v21 = vpack.i.bf16 %v459_v17, %v523_v18  ;;  %v460_v22 = vld [vmem:[#allocation2 + $0x49] sm:$0xff]  ;;  %v524_v24 = vld [vmem:[#allocation2 + $0x60] sm:$0xff]  ;;  %v3302_v25 = vld [vmem:[#allocation2 + $0x51] sm:$0xff]  ;;  %1550 = vmatpush1.msra.mxu0 %v1351_v51 }
  0x34   : > { %v525_v26 = vld [vmem:[#allocation2 + $0x68] sm:$0xff]  ;;  %v2709_v28 = vpack.i.bf16 %v460_v22, %v524_v24  ;;  %v526_v30 = vld [vmem:[#allocation2 + $0x78] sm:$0xff]  ;;  %v527_v36 = vld [vmem:[#allocation2 + $0x80] sm:$0xff]  ;;  %415 = vst.msk [vmem:[#allocation2 + $0x141] sm:$0xff] %vm333_vm0, %v326_v50  ;;  %1551 = vmatprep.subr.mxu0 %v3007_v1 }
  0x35   : > { %2685 = vrot.lane.b32.xlu0 %v2684_v13, %s3008_s9  ;;  %v2714_v29 = vpack.i.bf16 %v3302_v25, %v525_v26  ;;  %v3311_v31 = vld [vmem:[#allocation2 + $0x61] sm:$0xff]  ;;  %v2719_v34 = vpack.i.bf16 %v458_v15, %v526_v30  ;;  %v3324_v37 = vld [vmem:[#allocation2 + $0x69] sm:$0xff]  ;;  %v2729_v39 = vpack.i.bf16 %v459_v17, %v527_v36  ;;  %v3333_v42 = vld [vmem:[#allocation2 + $0x79] sm:$0xff] }
  0x36   : > { %2695 = vrot.lane.b32.xlu1 %v2694_v14, %s3008_s9  ;;  %v3313_v32 = vld [vmem:[#allocation2 + $0x1a] sm:$0xff]  ;;  %v3326_v38 = vld [vmem:[#allocation2 + $0x22] sm:$0xff]  ;;  %v528_v41 = vld [vmem:[#allocation2 + $0x90] sm:$0xff] }
  0x37   : > { %v2724_v35 = vpack.i.bf16 %v3313_v32, %v3311_v31  ;;  %v2734_v40 = vpack.i.bf16 %v3326_v38, %v3324_v37  ;;  %v3335_v43 = vld [vmem:[#allocation2 + $0x32] sm:$0xff]  ;;  %v2739_v48 = vpack.i.bf16 %v460_v22, %v528_v41  ;;  %v3354_v53 = vld [vmem:[#allocation2 + $0x81] sm:$0xff]  ;;  %v586_v2 = vld [vmem:[#allocation2 + $0x4a] sm:$0xff] }
  0x38   : > { %v1393_v44 = vld [vmem:[%s4548_s1 + $0x150] sm:$0xff]  ;;  %v2744_v49 = vpack.i.bf16 %v3335_v43, %v3333_v42  ;;  %v529_v52 = vld [vmem:[#allocation2 + $0x98] sm:$0xff]  ;;  %v1391_v55 = vld [vmem:[%s4548_s1 + $0x140] sm:$0xff] }
  0x39   : > { %2700 = vrot.lane.b32.xlu0 %v2699_v20, %s3008_s9  ;;  %1755 = vmatpush1.msra.mxu1 %v1393_v44  ;;  %v585_v54 = vld [vmem:[#allocation2 + $0x3a] sm:$0xff]  ;;  %v295_v56 = vld [vmem:[%s3199_s13 + $0xd0] sm:$0xff]  ;;  %v2749_v59 = vpack.i.bf16 %v3302_v25, %v529_v52  ;;  %v530_v63 = vld [vmem:[#allocation2 + $0xa8] sm:$0xff] }
  0x3a   : > { %2705 = vrot.lane.b32.xlu1 %v2704_v21, %s3008_s9  ;;  %1756 = vmatprep.subr.mxu1 %v3007_v1  ;;  %v1382_v57 = vld [vmem:[%s4548_s1 + $0xf8] sm:$0xff]  ;;  %v327_v58 = vmax.f32 %v295_v56, 0.0  ;;  %v2754_v60 = vpack.i.bf16 %v585_v54, %v3354_v53  ;;  %v1381_v4 = vld [vmem:[%s4548_s1 + $0xf0] sm:$0xff]  ;;  %v297_v5 = vld [vmem:[%s3199_s13 + $0xe0] sm:$0xff]  ;;  %v2759_v8 = vpack.i.bf16 %v3311_v31, %v530_v63 }
  0x3b   : > { %1757 = vmatpush1.msra.mxu1 %v1392_v46  ;;  %v1390_v61 = vld [vmem:[%s4548_s1 + $0x138] sm:$0xff]  ;;  %1552 = vmatpush2.msra.mxu0 %v1382_v57  ;;  %v1389_v6 = vld [vmem:[%s4548_s1 + $0x130] sm:$0xff]  ;;  %v329_v7 = vmax.f32 %v297_v5, 0.0  ;;  %v1380_v10 = vld [vmem:[%s4548_s1 + $0xe8] sm:$0xff] }
  0x3c   : > { %1758 = vmatprep.subr.mxu1 %v3007_v1  ;;  %v296_v62 = vld [vmem:[%s3199_s13 + $0xd8] sm:$0xff]  ;;  %416 = vst.msk [vmem:[#allocation2 + $0x151] sm:$0xff] %vm333_vm0, %v327_v58  ;;  %1553 = vmatprep.subr.mxu0 %v3007_v1  ;;  %v298_v11 = vld [vmem:[%s3199_s13 + $0xe8] sm:$0xff]  ;;  %v531_v12 = vld [vmem:[#allocation2 + $0xb0] sm:$0xff] }
  0x3d   : > { %2710 = vrot.lane.b32.xlu0 %v2709_v28, %s3008_s9  ;;  %v3375_v0 = vld [vmem:[#allocation2 + $0x91] sm:$0xff]  ;;  %1759 = vmatpush1.msra.mxu1 %v1391_v55  ;;  %v328_v3 = vmax.f32 %v296_v62, 0.0  ;;  %v3397_v13 = vld [vmem:[#allocation2 + $0x99] sm:$0xff]  ;;  %418 = vst.msk [vmem:[#allocation2 + $0x169] sm:$0xff] %vm333_vm0, %v329_v7  ;;  %v330_v15 = vmax.f32 %v298_v11, 0.0  ;;  %v1388_v16 = vld [vmem:[%s4548_s1 + $0x128] sm:$0xff]  ;;  %v2769_v19 = vpack.i.bf16 %v3324_v37, %v531_v12 }
  0x3e   : > { %2715 = vrot.lane.b32.xlu1 %v2714_v29, %s3008_s9  ;;  %1760 = vmatprep.subr.mxu1 %v3007_v1  ;;  %v2764_v9 = vpack.i.bf16 %v586_v2, %v3375_v0  ;;  %v587_v14 = vld [vmem:[#allocation2 + $0x52] sm:$0xff]  ;;  %v1379_v17 = vld [vmem:[%s4548_s1 + $0xe0] sm:$0xff]  ;;  %v3418_v24 = vld [vmem:[#allocation2 + $0xa9] sm:$0xff] }
  0x3f   : > { %1761 = vmatpush1.msra.mxu1 %v1390_v61  ;;  %417 = vst.msk [vmem:[#allocation2 + $0x159] sm:$0xff] %vm333_vm0, %v328_v3  ;;  %1554 = vmatpush2.msra.mxu0 %v1381_v4  ;;  %419 = vst.msk [vmem:[#allocation2 + $0x171] sm:$0xff] %vm333_vm0, %v330_v15  ;;  %v299_v18 = vld [vmem:[%s3199_s13 + $0xf0] sm:$0xff]  ;;  %v2774_v20 = vpack.i.bf16 %v587_v14, %v3397_v13  ;;  %v532_v21 = vld [vmem:[#allocation2 + $0xc0] sm:$0xff] }
  0x40   : > { %1762 = vmatprep.subr.mxu1 %v3007_v1  ;;  %1555 = vmatprep.subr.mxu0 %v3007_v1  ;;  %v1387_v22 = vld [vmem:[%s4548_s1 + $0x120] sm:$0xff]  ;;  %v331_v23 = vmax.f32 %v299_v18, 0.0  ;;  %v300_v26 = vld [vmem:[%s3199_s13 + $0xf8] sm:$0xff]  ;;  %v2779_v30 = vpack.i.bf16 %v3333_v42, %v532_v21  ;;  %v1377_v33 = vld [vmem:[%s4548_s1 + $0xd0] sm:$0xff] }
  0x41   : > { %2720 = vrot.lane.b32.xlu0 %v2719_v34, %s3008_s9  ;;  %1763 = vmatpush1.msra.mxu1 %v1389_v6  ;;  %v588_v25 = vld [vmem:[#allocation2 + $0x62] sm:$0xff]  ;;  %v332_v28 = vmax.f32 %v300_v26, 0.0  ;;  %v1386_v29 = vld [vmem:[%s4548_s1 + $0x118] sm:$0xff]  ;;  %v589_v36 = vld [vmem:[#allocation2 + $0x6a] sm:$0xff] }
  0x42   : > { %2725 = vrot.lane.b32.xlu1 %v2724_v35, %s3008_s9  ;;  %1556 = vmatpush2.msra.mxu0 %v1380_v10  ;;  %420 = vst.msk [vmem:[#allocation2 + $0x181] sm:$0xff] %vm333_vm0, %v331_v23  ;;  %v2784_v31 = vpack.i.bf16 %v588_v25, %v3418_v24  ;;  %v533_v34 = vld [vmem:[#allocation2 + $0xc8] sm:$0xff]  ;;  %v3439_v35 = vld [vmem:[#allocation2 + $0xb1] sm:$0xff]  ;;  %v590_v46 = vld [vmem:[#allocation2 + $0x7a] sm:$0xff] }
  0x43   : > { %1764 = vmatprep.subr.mxu1 %v3007_v1  ;;  %1557 = vmatprep.subr.mxu0 %v3007_v1  ;;  %421 = vst.msk [vmem:[#allocation2 + $0x189] sm:$0xff] %vm333_vm0, %v332_v28  ;;  %v1385_v37 = vld [vmem:[%s4548_s1 + $0x110] sm:$0xff]  ;;  %v2794_v41 = vpack.i.bf16 %v589_v36, %v3439_v35  ;;  %v1384_v42 = vld [vmem:[%s4548_s1 + $0x108] sm:$0xff]  ;;  %v534_v44 = vld [vmem:[#allocation2 + $0xd8] sm:$0xff] }
  0x44   : > { %1765 = vmatpush1.msra.mxu1 %v1388_v16  ;;  %1558 = vmatpush2.msra.mxu0 %v1379_v17  ;;  %v3457_v45 = vld [vmem:[#allocation2 + $0xc1] sm:$0xff]  ;;  %v1374_v51 = vld [vmem:[%s4548_s1 + $0xb8] sm:$0xff]  ;;  %v1373_v56 = vld [vmem:[%s4548_s1 + $0xb0] sm:$0xff] }
  0x45   : > { %2730 = vrot.lane.b32.xlu0 %v2729_v39, %s3008_s9  ;;  %1766 = vmatprep.subr.mxu1 %v3007_v1  ;;  %v1376_v39 = vld [vmem:[%s4548_s1 + $0xc8] sm:$0xff]  ;;  %v1375_v47 = vld [vmem:[%s4548_s1 + $0xc0] sm:$0xff]  ;;  %v2804_v50 = vpack.i.bf16 %v590_v46, %v3457_v45  ;;  %v1414_v55 = vld [vmem:[%s4548_s1 + $0x1f8] sm:$0xff] }
  0x46   : > { %2735 = vrot.lane.b32.xlu1 %v2734_v40, %s3008_s9  ;;  %1559 = vmatprep.subr.mxu0 %v3007_v1  ;;  %v2789_v40 = vpack.i.bf16 %v3354_v53, %v533_v34  ;;  %v535_v52 = vld [vmem:[#allocation2 + $0xe0] sm:$0xff]  ;;  %v3475_v53 = vld [vmem:[#allocation2 + $0xc9] sm:$0xff]  ;;  %v592_v62 = vld [vmem:[#allocation2 + $0x92] sm:$0xff] }
  0x47   : > { %1767 = vmatpush1.msra.mxu1 %v1387_v22  ;;  %1560 = vmatpush2.msra.mxu0 %v1378_v27  ;;  %v591_v54 = vld [vmem:[#allocation2 + $0x82] sm:$0xff]  ;;  %v2809_v57 = vpack.i.bf16 %v3397_v13, %v535_v52  ;;  %v3493_v61 = vld [vmem:[#allocation2 + $0xd9] sm:$0xff]  ;;  %v3529_v14 = vld [vmem:[#allocation2 + $0xf1] sm:$0xff] }
  0x48   : > { %1768 = vmatprep.subr.mxu1 %v3007_v1  ;;  %1561 = vmatprep.subr.mxu0 %v3007_v1  ;;  %v2814_v58 = vpack.i.bf16 %v591_v54, %v3475_v53  ;;  %v1372_v63 = vld [vmem:[%s4548_s1 + $0xa8] sm:$0xff]  ;;  %v2824_v3 = vpack.i.bf16 %v592_v62, %v3493_v61  ;;  %v1371_v4 = vld [vmem:[%s4548_s1 + $0xa0] sm:$0xff]  ;;  %v537_v5 = vld [vmem:[#allocation2 + $0xf8] sm:$0xff] }
  0x49   : > { %2740 = vrot.lane.b32.xlu0 %v2739_v48, %s3008_s9  ;;  %1769 = vmatpush1.msra.mxu1 %v1386_v29  ;;  %v1383_v48 = vld [vmem:[%s4548_s1 + $0x100] sm:$0xff]  ;;  %v2829_v10 = vpack.i.bf16 %v3439_v35, %v537_v5  ;;  %v1410_v12 = vld [vmem:[%s4548_s1 + $0x1d8] sm:$0xff]  ;;  %v538_v13 = vld [vmem:[#allocation2 + $0x108] sm:$0xff] }
  0x4a   : > { %2745 = vrot.lane.b32.xlu1 %v2744_v49, %s3008_s9  ;;  %1562 = vmatpush2.msra.mxu0 %v1377_v33  ;;  %v2799_v49 = vpack.i.bf16 %v3375_v0, %v534_v44  ;;  %v1412_v0 = vld [vmem:[%s4548_s1 + $0x1e8] sm:$0xff]  ;;  %v593_v7 = vld [vmem:[#allocation2 + $0x9a] sm:$0xff]  ;;  %v1369_v16 = vld [vmem:[%s4548_s1 + $0x90] sm:$0xff]  ;;  %v2839_v18 = vpack.i.bf16 %v3457_v45, %v538_v13 }
  0x4b   : > { %1770 = vmatprep.subr.mxu1 %v3007_v1  ;;  %1563 = vmatprep.subr.mxu0 %v3007_v1  ;;  %v3511_v6 = vld [vmem:[#allocation2 + $0xe1] sm:$0xff]  ;;  %v594_v15 = vld [vmem:[#allocation2 + $0xaa] sm:$0xff]  ;;  %v3547_v22 = vld [vmem:[#allocation2 + $0xf9] sm:$0xff] }
  0x4c   : > { %1771 = vmatpush1.msra.mxu1 %v1385_v37  ;;  %1564 = vmatpush2.msra.mxu0 %v1376_v39  ;;  %v2834_v11 = vpack.i.bf16 %v593_v7, %v3511_v6  ;;  %v1409_v17 = vld [vmem:[%s4548_s1 + $0x1d0] sm:$0xff]  ;;  %v1367_v25 = vld [vmem:[%s4548_s1 + $0x80] sm:$0xff]  ;;  %v3568_v29 = vld [vmem:[%s4548_s1 + $0x238] sm:$0xff] }
  0x4d   : > { %2750 = vrot.lane.b32.xlu0 %v2749_v59, %s3008_s9  ;;  %1772 = vmatprep.subr.mxu1 %v3007_v1  ;;  %v1413_v59 = vld [vmem:[%s4548_s1 + $0x1f0] sm:$0xff]  ;;  %v1407_v28 = vld [vmem:[%s4548_s1 + $0x1c0] sm:$0xff]  ;;  %v1406_v34 = vld [vmem:[%s4548_s1 + $0x1b8] sm:$0xff] }
  0x4e   : > { %2755 = vrot.lane.b32.xlu1 %v2754_v60, %s3008_s9  ;;  %1565 = vmatprep.subr.mxu0 %v3007_v1  ;;  %v536_v60 = vld [vmem:[#allocation2 + $0xf0] sm:$0xff]  ;;  %v596_v33 = vld [vmem:[#allocation2 + $0xc2] sm:$0xff]  ;;  %v542_v46 = vld [vmem:[#allocation2 + $0x138] sm:$0xff] }
  0x4f   : > { %1773 = vmatpush1.msra.mxu1 %v1384_v42  ;;  %1566 = vmatpush2.msra.mxu0 %v1375_v47  ;;  %v2819_v2 = vpack.i.bf16 %v3418_v24, %v536_v60  ;;  %v539_v21 = vld [vmem:[#allocation2 + $0x110] sm:$0xff]  ;;  %v1408_v24 = vld [vmem:[%s4548_s1 + $0x1c8] sm:$0xff]  ;;  %v543_v52 = vld [vmem:[#allocation2 + $0x140] sm:$0xff] }
  0x50   : > { %1774 = vmatprep.subr.mxu1 %v3007_v1  ;;  %1567 = vmatprep.subr.mxu0 %v3007_v1  ;;  %v595_v23 = vld [vmem:[#allocation2 + $0xb2] sm:$0xff]  ;;  %v2849_v26 = vpack.i.bf16 %v3475_v53, %v539_v21  ;;  %v541_v37 = vld [vmem:[#allocation2 + $0x128] sm:$0xff]  ;;  %v1399_v5 = vld [vmem:[%s4548_s1 + $0x180] sm:$0xff] }
  0x51   : > { %2760 = vrot.lane.b32.xlu0 %v2759_v8, %s3008_s9  ;;  %1775 = vmatpush1.msra.mxu1 %v1383_v48  ;;  %v1411_v8 = vld [vmem:[%s4548_s1 + $0x1e0] sm:$0xff]  ;;  %v2854_v27 = vpack.i.bf16 %v595_v23, %v3547_v22  ;;  %v477_v39 = vld [vmem:[#allocation2 + $0x111] sm:$0xff]  ;;  %v2869_v42 = vpack.i.bf16 %v3511_v6, %v541_v37  ;;  %v1404_v45 = vld [vmem:[%s4548_s1 + $0x1a8] sm:$0xff] }
  0x52   : > { %2765 = vrot.lane.b32.xlu1 %v2764_v9, %s3008_s9  ;;  %1568 = vmatpush2.msra.mxu0 %v1374_v51  ;;  %v1370_v9 = vld [vmem:[%s4548_s1 + $0x98] sm:$0xff]  ;;  %v478_v47 = vld [vmem:[#allocation2 + $0x121] sm:$0xff]  ;;  %v479_v53 = vld [vmem:[#allocation2 + $0x129] sm:$0xff] }
  0x53   : > { %1776 = vmatprep.subr.mxu1 %v3007_v1  ;;  %1569 = vmatprep.subr.mxu0 %v3007_v1  ;;  %v598_v48 = vld [vmem:[#allocation2 + $0xda] sm:$0xff]  ;;  %v599_v54 = vld [vmem:[#allocation2 + $0xe2] sm:$0xff]  ;;  %v547_v13 = vld [vmem:[#allocation2 + $0x170] sm:$0xff] }
  0x54   : > { %1777 = vmatpush2.msra.mxu1 %v1414_v55  ;;  %1570 = vmatpush2.msra.mxu0 %v1373_v56  ;;  %v2884_v51 = vpack.i.bf16 %v598_v48, %v478_v47  ;;  %v1402_v55 = vld [vmem:[%s4548_s1 + $0x198] sm:$0xff]  ;;  %v2889_v56 = vpack.i.bf16 %v3547_v22, %v543_v52  ;;  %v1400_v62 = vld [vmem:[%s4548_s1 + $0x188] sm:$0xff] }
  0x55   : > { %2770 = vrot.lane.b32.xlu0 %v2769_v19, %s3008_s9  ;;  %1778 = vmatprep.subr.mxu1 %v3007_v1  ;;  %v2844_v19 = vpack.i.bf16 %v594_v15, %v3529_v14  ;;  %v480_v60 = vld [vmem:[#allocation2 + $0x139] sm:$0xff]  ;;  %v2929_v15 = vpack.i.bf16 %v479_v53, %v547_v13  ;;  %v549_v22 = vld [vmem:[#allocation2 + $0x188] sm:$0xff]  ;;  %v485_v23 = vld [vmem:[#allocation2 + $0x171] sm:$0xff] }
  0x56   : > { %2775 = vrot.lane.b32.xlu1 %v2774_v20, %s3008_s9  ;;  %1571 = vmatprep.subr.mxu0 %v3007_v1  ;;  %v1368_v20 = vld [vmem:[%s4548_s1 + $0x88] sm:$0xff] }
  0x57   : > { %1779 = vmatpush2.msra.mxu1 %v1413_v59  ;;  %1572 = vmatpush2.msra.mxu0 %v1372_v63  ;;  %v544_v59 = vld [vmem:[#allocation2 + $0x150] sm:$0xff]  ;;  %v486_v37 = vld [vmem:[#allocation2 + $0x2] sm:$0xff] }
  0x58   : > { %1780 = vmatprep.subr.mxu1 %v3007_v1  ;;  %1573 = vmatprep.subr.mxu0 %v3007_v1 }
  0x59   : > { %2780 = vrot.lane.b32.xlu0 %v2779_v30, %s3008_s9  ;;  %1781 = vmatpush2.msra.mxu1 %v1412_v0  ;;  %v540_v30 = vld [vmem:[#allocation2 + $0x120] sm:$0xff] }
  0x5a   : > { %2785 = vrot.lane.b32.xlu1 %v2784_v31, %s3008_s9  ;;  %1574 = vmatpush2.msra.mxu0 %v1371_v4  ;;  %v3570_v31 = vld [vmem:[#allocation2 + $0x109] sm:$0xff]  ;;  %v2859_v35 = vpack.i.bf16 %v3493_v61, %v540_v30  ;;  %v600_v61 = vld [vmem:[#allocation2 + $0xf2] sm:$0xff]  ;;  %v601_v4 = vld [vmem:[#allocation2 + $0xfa] sm:$0xff] }
  0x5b   : > { %1782 = vmatprep.subr.mxu1 %v3007_v1  ;;  %1575 = vmatprep.subr.mxu0 %v3007_v1  ;;  %v2864_v36 = vpack.i.bf16 %v596_v33, %v3570_v31  ;;  %v2899_v63 = vpack.i.bf16 %v3570_v31, %v544_v59  ;;  %v2904_v0 = vpack.i.bf16 %v600_v61, %v480_v60  ;;  %v608_v33 = vld [vmem:[#allocation2 + $0x152] sm:$0xff]  ;;  %v423_v59 = vld [vmem:[#allocation2 + $0x8] sm:$0xff] }
  0x5c   : > { %1783 = vmatpush2.msra.mxu1 %v1411_v8  ;;  %1576 = vmatpush2.msra.mxu0 %v1370_v9  ;;  %v546_v8 = vld [vmem:[#allocation2 + $0x168] sm:$0xff]  ;;  %v482_v9 = vld [vmem:[#allocation2 + $0x151] sm:$0xff] }
  0x5d   : > { %2790 = vrot.lane.b32.xlu0 %v2789_v40, %s3008_s9  ;;  %1784 = vmatprep.subr.mxu1 %v3007_v1  ;;  %v597_v40 = vld [vmem:[#allocation2 + $0xca] sm:$0xff] }
  0x5e   : > { %2795 = vrot.lane.b32.xlu1 %v2794_v41, %s3008_s9  ;;  %1577 = vmatprep.subr.mxu0 %v3007_v1  ;;  %v1405_v41 = vld [vmem:[%s4548_s1 + $0x1b0] sm:$0xff]  ;;  %v2874_v44 = vpack.i.bf16 %v597_v40, %v477_v39  ;;  %v675_v40 = vld [vmem:[#allocation2 + $0x181] sm:$0xff] }
  0x5f   : > { %1785 = vmatpush2.msra.mxu1 %v1410_v12  ;;  %1578 = vmatpush2.msra.mxu0 %v1369_v16 }
  0x60   : > { %1786 = vmatprep.subr.mxu1 %v3007_v1  ;;  %1579 = vmatprep.subr.mxu0 %v3007_v1 }
  0x61   : > { %2800 = vrot.lane.b32.xlu0 %v2799_v49, %s3008_s9  ;;  %1787 = vmatpush2.msra.mxu1 %v1409_v17  ;;  %v1403_v49 = vld [vmem:[%s4548_s1 + $0x1a0] sm:$0xff] }
  0x62   : > { %2805 = vrot.lane.b32.xlu1 %v2804_v50, %s3008_s9  ;;  %1580 = vmatpush2.msra.mxu0 %v1368_v20  ;;  %v2879_v50 = vpack.i.bf16 %v3529_v14, %v542_v46  ;;  %v603_v14 = vld [vmem:[#allocation2 + $0x112] sm:$0xff]  ;;  %v548_v17 = vld [vmem:[#allocation2 + $0x180] sm:$0xff]  ;;  %v676_v46 = vld [vmem:[#allocation2 + $0x189] sm:$0xff] }
  0x63   : > { %1788 = vmatprep.subr.mxu1 %v3007_v1  ;;  %1581 = vmatprep.subr.mxu0 %v3007_v1  ;;  %v2939_v20 = vpack.i.bf16 %v480_v60, %v548_v17 }
  0x64   : > { %1789 = vmatpush2.msra.mxu1 %v1408_v24  ;;  %1582 = vmatpush2.msra.mxu0 %v1367_v25  ;;  %v605_v24 = vld [vmem:[#allocation2 + $0x12a] sm:$0xff] }
  0x65   : > { %2810 = vrot.lane.b32.xlu0 %v2809_v57, %s3008_s9  ;;  %1790 = vmatprep.subr.mxu1 %v3007_v1  ;;  %v2894_v57 = vpack.i.bf16 %v599_v54, %v479_v53  ;;  %v612_v54 = vld [vmem:[#allocation2 + $0x182] sm:$0xff] }
  0x66   : > { %2815 = vrot.lane.b32.xlu1 %v2814_v58, %s3008_s9  ;;  %1791 = vmatpush2.msra.mxu1 %v1407_v28  ;;  %v1401_v58 = vld [vmem:[%s4548_s1 + $0x190] sm:$0xff]  ;;  %v607_v28 = vld [vmem:[#allocation2 + $0x142] sm:$0xff] }
  0x67   : > { %2589 = vmatprep.subr.mxu0 %v3568_v29  ;;  %1792 = vmatprep.subr.mxu1 %v3007_v1 }
  0x68   : > { %1793 = vmatpush2.msra.mxu1 %v1406_v34  ;;  %v609_v34 = vld [vmem:[#allocation2 + $0x15a] sm:$0xff] }
  0x69   : > { %2820 = vrot.lane.b32.xlu0 %v2819_v2, %s3008_s9  ;;  %1794 = vmatprep.subr.mxu1 %v3007_v1  ;;  %v545_v2 = vld [vmem:[#allocation2 + $0x158] sm:$0xff] }
  0x6a   : > { %2825 = vrot.lane.b32.xlu1 %v2824_v3, %s3008_s9  ;;  %1795 = vmatpush2.msra.mxu1 %v1405_v41  ;;  %v481_v3 = vld [vmem:[#allocation2 + $0x141] sm:$0xff]  ;;  %v2909_v6 = vpack.i.bf16 %v477_v39, %v545_v2  ;;  %v610_v39 = vld [vmem:[#allocation2 + $0x16a] sm:$0xff] }
  0x6b   : > { %1796 = vmatprep.subr.mxu1 %v3007_v1  ;;  %v2914_v7 = vpack.i.bf16 %v601_v4, %v481_v3  ;;  %v2949_v25 = vpack.i.bf16 %v481_v3, %v549_v22 }
  0x6c   : > { %1797 = vmatpush2.msra.mxu1 %v1404_v45  ;;  %v611_v45 = vld [vmem:[#allocation2 + $0x172] sm:$0xff] }
  0x6d   : > { %2830 = vrot.lane.b32.xlu0 %v2829_v10, %s3008_s9  ;;  %1798 = vmatprep.subr.mxu1 %v3007_v1  ;;  %v602_v10 = vld [vmem:[#allocation2 + $0x10a] sm:$0xff]  ;;  %v2984_v53 = vpack.i.bf16 %v611_v45, %v676_v46 }
  0x6e   : > { %2835 = vrot.lane.b32.xlu1 %v2834_v11, %s3008_s9  ;;  %1799 = vmatpush2.msra.mxu1 %v1403_v49  ;;  %v2919_v11 = vpack.i.bf16 %v478_v47, %v546_v8  ;;  %v2924_v12 = vpack.i.bf16 %v602_v10, %v482_v9  ;;  %v2979_v49 = vpack.i.bf16 %v610_v39, %v675_v40  ;;  %v424_v8 = vld [vmem:[#allocation2 + $0x18] sm:$0xff] }
  0x6f   : > { %1800 = vmatprep.subr.mxu1 %v3007_v1  ;;  %v616_v39 = vld [vmem:[#allocation2 + $0x38] sm:$0xff] }
  0x70   : > { %1801 = vmatpush2.msra.mxu1 %v1402_v55  ;;  %v677_v55 = vld [vmem:[#allocation2 + $0x199] sm:$0xff] }
  0x71   : > { %2840 = vrot.lane.b32.xlu0 %v2839_v18, %s3008_s9  ;;  %1802 = vmatprep.subr.mxu1 %v3007_v1  ;;  %v484_v18 = vld [vmem:[#allocation2 + $0x169] sm:$0xff]  ;;  %v2989_v3 = vpack.i.bf16 %v612_v54, %v677_v55 }
  0x72   : > { %2845 = vrot.lane.b32.xlu1 %v2844_v19, %s3008_s9  ;;  %1803 = vmatpush2.msra.mxu1 %v1401_v58  ;;  %v604_v19 = vld [vmem:[#allocation2 + $0x122] sm:$0xff]  ;;  %v487_v58 = vld [vmem:[#allocation2 + $0xa] sm:$0xff] }
  0x73   : > { %1804 = vmatprep.subr.mxu1 %v3007_v1  ;;  %v2944_v21 = vpack.i.bf16 %v604_v19, %v484_v18 }
  0x74   : > { %1805 = vmatpush2.msra.mxu1 %v1400_v62  ;;  %v3645_v62 = vld [vmem:[%s4548_s1 + $0x230] sm:$0xff] }
  0x75   : > { %2850 = vrot.lane.b32.xlu0 %v2849_v26, %s3008_s9  ;;  %1806 = vmatprep.subr.mxu1 %v3007_v1  ;;  %v483_v1 = vld [vmem:[#allocation2 + $0x159] sm:$0xff]  ;;  %v2954_v26 = vpack.i.bf16 %v605_v24, %v485_v23 }
  0x76   : > { %2855 = vrot.lane.b32.xlu1 %v2854_v27, %s3008_s9  ;;  %1807 = vmatpush2.msra.mxu1 %v1399_v5  ;;  %v2934_v16 = vpack.i.bf16 %v603_v14, %v483_v1  ;;  %v606_v27 = vld [vmem:[#allocation2 + $0x13a] sm:$0xff]  ;;  %v2964_v31 = vpack.i.bf16 %v607_v28, %v483_v1  ;;  %v3694_v28 = vld [vmem:[%s4548_s1 + $0x210] sm:$0xff] }
  0x77   : > { %2653 = vmatprep.subr.mxu1 %v3568_v29  ;;  %v2959_v30 = vpack.i.bf16 %v606_v27, %v482_v9  ;;  %v491_v27 = vld [vmem:[#allocation2 + $0x3a] sm:$0xff] }
  0x79   : > { %2860 = vrot.lane.b32.xlu0 %v2859_v35, %s3008_s9  ;;  %v2969_v35 = vpack.i.bf16 %v608_v33, %v484_v18  ;;  %v3674_v18 = vld [vmem:[%s4548_s1 + $0x220] sm:$0xff] }
  0x7a   : > { %2865 = vrot.lane.b32.xlu1 %v2864_v36, %s3008_s9  ;;  %v2974_v36 = vpack.i.bf16 %v609_v34, %v485_v23  ;;  %v615_v23 = vld [vmem:[#allocation2 + $0x30] sm:$0xff] }
  0x7d   : > { %2870 = vrot.lane.b32.xlu0 %v2869_v42, %s3008_s9 }
  0x7e   : > { %2875 = vrot.lane.b32.xlu1 %v2874_v44, %s3008_s9  ;;  %v422_v44 = vld [vmem:[#allocation2] sm:$0xff] }
  0x81   : > { %2880 = vrot.lane.b32.xlu0 %v2879_v50, %s3008_s9 }
  0x82   : > { %2885 = vrot.lane.b32.xlu1 %v2884_v51, %s3008_s9 }
  0x85   : > { %2890 = vrot.lane.b32.xlu0 %v2889_v56, %s3008_s9 }
  0x86   : > { %2895 = vrot.lane.b32.xlu1 %v2894_v57, %s3008_s9 }
  0x89   : > { %2900 = vrot.lane.b32.xlu0 %v2899_v63, %s3008_s9  ;;  %v613_v63 = vld [vmem:[#allocation2 + $0x18a] sm:$0xff] }
  0x8a   : > { %2905 = vrot.lane.b32.xlu1 %v2904_v0, %s3008_s9  ;;  %v678_v0 = vld [vmem:[#allocation2 + $0x1a1] sm:$0xff] }
  0x8d   : > { %2910 = vrot.lane.b32.xlu0 %v2909_v6, %s3008_s9 }
  0x8e   : > { %2915 = vrot.lane.b32.xlu1 %v2914_v7, %s3008_s9 }
  0x91   : > { %2920 = vrot.lane.b32.xlu0 %v2919_v11, %s3008_s9  ;;  %v2994_v11 = vpack.i.bf16 %v613_v63, %v678_v0 }
  0x92   : > { %2925 = vrot.lane.b32.xlu1 %v2924_v12, %s3008_s9  ;;  %v3658_v12 = vld [vmem:[%s4548_s1 + $0x228] sm:$0xff] }
  0x95   : > { %2930 = vrot.lane.b32.xlu0 %v2929_v15, %s3008_s9  ;;  %v425_v15 = vld [vmem:[#allocation2 + $0x20] sm:$0xff] }
  0x96   : > { %2935 = vrot.lane.b32.xlu1 %v2934_v16, %s3008_s9 }
  0x99   : > { %2940 = vrot.lane.b32.xlu0 %v2939_v20, %s3008_s9  ;;  %v3681_v20 = vld [vmem:[%s4548_s1 + $0x218] sm:$0xff] }
  0x9a   : > { %2945 = vrot.lane.b32.xlu1 %v2944_v21, %s3008_s9 }
  0x9d   : > { %2950 = vrot.lane.b32.xlu0 %v2949_v25, %s3008_s9 }
  0x9e   : > { %2955 = vrot.lane.b32.xlu1 %v2954_v26, %s3008_s9  ;;  %v550_v26 = vld [vmem:[#allocation2 + $0x19] sm:$0xff] }
  0xa1   : > { %2960 = vrot.lane.b32.xlu0 %v2959_v30, %s3008_s9 }
  0xa2   : > { %2965 = vrot.lane.b32.xlu1 %v2964_v31, %s3008_s9 }
  0xa3   : > { %v2681_v41 = vpop.permute.xlu0 %2680 }
  0xa4   : > { %v2691_v42 = vpop.permute.xlu1 %2690  ;;  %v2683_v47 = vunpack.i.h.bf16 %v2681_v41  ;;  %v2682_v48 = vunpack.i.l.bf16 %v2681_v41 }
  0xa5   : > { %2970 = vrot.lane.b32.xlu0 %v2969_v35, %s3008_s9  ;;  %v2692_v50 = vunpack.i.l.bf16 %v2691_v42  ;;  %v2693_v2 = vunpack.i.h.bf16 %v2691_v42  ;;  %v551_v42 = vld [vmem:[#allocation2 + $0x21] sm:$0xff] }
  0xa6   : > { %2975 = vrot.lane.b32.xlu1 %v2974_v36, %s3008_s9  ;;  %v1255_v51 = vsel %vm333_vm0, %v486_v37, %v2682_v48  ;;  %v1223_v52 = vsel %vm333_vm0, %v422_v44, %v2683_v47  ;;  %v3710_v44 = vld [vmem:[#allocation2 + $0x4a] sm:$0xff] }
  0xa7   : > { %v2686_v56 = vpop.permute.xlu0 %2685  ;;  %1583 = vmatprep.mubr.f32.mxu0 %v1255_v51  ;;  %v1257_v7 = vsel %vm333_vm0, %v3313_v32, %v2692_v50  ;;  %v1225_v1 = vsel %vm333_vm0, %v424_v8, %v2693_v2  ;;  %v618_v2 = vld [vmem:[#allocation2 + $0x50] sm:$0xff] }
  0xa8   : > { %v2696_v57 = vpop.permute.xlu1 %2695  ;;  %v2688_v60 = vunpack.i.h.bf16 %v2686_v56  ;;  %v2687_v61 = vunpack.i.l.bf16 %v2686_v56  ;;  %1584 = vmatmul.mubr.f32.vlgmr.msra.gmra.mxu0 %v1223_v52  ;;  %v552_v56 = vld [vmem:[#allocation2 + $0x31] sm:$0xff] }
  0xa9   : > { %2590 = vmatpush3.msra.mxu0 %v3568_v29  ;;  %2980 = vrot.lane.b32.xlu0 %v2979_v49, %s3008_s9  ;;  %v2697_v4 = vunpack.i.l.bf16 %v2696_v57  ;;  %v2698_v13 = vunpack.i.h.bf16 %v2696_v57  ;;  %v3728_v57 = vld [vmem:[#allocation2 + $0x52] sm:$0xff] }
  0xaa   : > { %v1256_v5 = vsel %vm333_vm0, %v487_v58, %v2687_v61  ;;  %v1224_v6 = vsel %vm333_vm0, %v423_v59, %v2688_v60  ;;  %2985 = vrot.lane.b32.xlu1 %v2984_v53, %s3008_s9  ;;  %2591 = vmatprep.subr.mxu0 %v3645_v62  ;;  %v617_v53 = vld [vmem:[#allocation2 + $0x48] sm:$0xff] }
  0xab   : > { %v2701_v9 = vpop.permute.xlu0 %2700  ;;  %1588 = vmatprep.mubr.f32.mxu0 %v1256_v5  ;;  %2592 = vmatpush3.msra.mxu0 %v3645_v62  ;;  %v1258_v14 = vsel %vm333_vm0, %v3326_v38, %v2697_v4  ;;  %v1226_v38 = vsel %vm333_vm0, %v425_v15, %v2698_v13  ;;  %v553_v5 = vld [vmem:[#allocation2 + $0x39] sm:$0xff] }
  0xac   : > { %v2706_v10 = vpop.permute.xlu1 %2705  ;;  %1589 = vmatmul.mubr.f32.gmra.mxu0 %v1224_v6  ;;  %v2702_v32 = vunpack.i.l.bf16 %v2701_v9  ;;  %2593 = vmatprep.subr.mxu0 %v3658_v12  ;;  %v2703_v19 = vunpack.i.h.bf16 %v2701_v9  ;;  %v3746_v6 = vld [vmem:[#allocation2 + $0x62] sm:$0xff] }
  0xad   : > { %1593 = vmatprep.mubr.f32.mxu0 %v1257_v7  ;;  %2990 = vrot.lane.b32.xlu0 %v2989_v3, %s3008_s9  ;;  %v2707_v21 = vunpack.i.l.bf16 %v2706_v10  ;;  %v2708_v31 = vunpack.i.h.bf16 %v2706_v10  ;;  %v3754_v9 = vld [vmem:[%s4548_s1 + $0x208] sm:$0xff] }
  0xae   : > { %2995 = vrot.lane.b32.xlu1 %v2994_v11, %s3008_s9  ;;  %2594 = vmatpush3.msra.mxu0 %v3658_v12  ;;  %v1259_v22 = vsel %vm333_vm0, %v3335_v43, %v2702_v32  ;;  %v1227_v33 = vsel %vm333_vm0, %v615_v23, %v2703_v19  ;;  %v3769_v19 = vld [vmem:[#allocation2 + $0x6a] sm:$0xff] }
  0xaf   : > { %v3665_v16 = vpop.permute.xlu0 %2710  ;;  %2595 = vmatprep.subr.mxu0 %v3674_v18  ;;  %v1260_v37 = vsel %vm333_vm0, %v491_v27, %v2707_v21  ;;  %v1228_v48 = vsel %vm333_vm0, %v616_v39, %v2708_v31  ;;  %v3777_v21 = vld [vmem:[%s4548_s1 + $0x200] sm:$0xff] }
  0xb0   : > { %v3667_v17 = vpop.permute.xlu1 %2715  ;;  %1594 = vmatmul.mubr.f32.gmra.mxu0 %v1225_v1  ;;  %v2712_v34 = vunpack.i.l.bf16 %v3665_v16  ;;  %v2713_v47 = vunpack.i.h.bf16 %v3665_v16 }
  0xb1   : > { %1598 = vmatprep.mubr.f32.mxu0 %v1258_v14  ;;  %2596 = vmatpush3.msra.mxu0 %v3674_v18  ;;  %v2717_v49 = vunpack.i.l.bf16 %v3667_v17  ;;  %v2718_v59 = vunpack.i.h.bf16 %v3667_v17  ;;  %v619_v14 = vld [vmem:[#allocation2 + $0x60] sm:$0xff]  ;;  %v554_v17 = vld [vmem:[#allocation2 + $0x49] sm:$0xff] }
  0xb2   : > { %2597 = vmatprep.subr.mxu0 %v3681_v20  ;;  %v1261_v52 = vsel %vm333_vm0, %v3710_v44, %v2712_v34  ;;  %v1229_v60 = vsel %vm333_vm0, %v617_v53, %v2713_v47  ;;  %v3792_v34 = vld [vmem:[#allocation2 + $0x7a] sm:$0xff] }
  0xb3   : > { %v3686_v24 = vpop.permute.xlu0 %2720  ;;  %2598 = vmatpush3.msra.mxu0 %v3681_v20  ;;  %v1230_v11 = vsel %vm333_vm0, %v618_v2, %v2718_v59 }
  0xb4   : > { %v3688_v25 = vpop.permute.xlu1 %2725  ;;  %v2723_v30 = vunpack.i.h.bf16 %v3686_v24  ;;  %1599 = vmatmul.mubr.f32.gmra.mxu0 %v1226_v38  ;;  %2599 = vmatprep.subr.mxu0 %v3694_v28  ;;  %v2722_v61 = vunpack.i.l.bf16 %v3686_v24 }
  0xb5   : > { %v2728_v43 = vunpack.i.h.bf16 %v3688_v25  ;;  %1603 = vmatprep.mubr.f32.mxu0 %v1259_v22  ;;  %2600 = vmatpush3.msra.mxu0 %v3694_v28  ;;  %v2727_v10 = vunpack.i.l.bf16 %v3688_v25 }
  0xb6   : > { %v1319_v35 = vsel %vm333_vm0, %v615_v23, %v2723_v30  ;;  %v1263_v32 = vsel %vm333_vm0, %v3746_v6, %v2722_v61  ;;  %2601 = vmatprep.subr.mxu0 %v3754_v9  ;;  %v620_v30 = vld [vmem:[#allocation2 + $0x68] sm:$0xff]  ;;  %v3828_v61 = vld [vmem:[#allocation2 + $0x92] sm:$0xff] }
  0xb7   : > { %v1287_v36 = vsel %vm333_vm0, %v550_v26, %v2728_v43  ;;  %v3706_v40 = vpop.permute.xlu0 %2730  ;;  %1808 = vmatprep.mubr.f32.mxu1 %v1319_v35  ;;  %v1231_v23 = vsel %vm333_vm0, %v619_v14, %v2727_v10  ;;  %2602 = vmatpush3.msra.mxu0 %v3754_v9 }
  0xb8   : > { %v3708_v41 = vpop.permute.xlu1 %2735  ;;  %v2733_v45 = vunpack.i.h.bf16 %v3706_v40  ;;  %1604 = vmatmul.mubr.f32.gmra.mxu0 %v1227_v33  ;;  %1809 = vmatmul.mubr.f32.vlgmr.msra.gmra.mxu1 %v1287_v36  ;;  %v555_v33 = vld [vmem:[#allocation2 + $0x51] sm:$0xff] }
  0xb9   : > { %v2738_v46 = vunpack.i.h.bf16 %v3708_v41  ;;  %1608 = vmatprep.mubr.f32.mxu0 %v1260_v37  ;;  %2661 = vmatpush3.msra.mxu1 %v3568_v29  ;;  %v2737_v22 = vunpack.i.l.bf16 %v3708_v41 }
  0xba   : > { %v1320_v50 = vsel %vm333_vm0, %v616_v39, %v2733_v45  ;;  %2654 = vmatprep.subr.mxu1 %v3645_v62  ;;  %2603 = vmatprep.subr.mxu0 %v3777_v21  ;;  %v621_v45 = vld [vmem:[#allocation2 + $0x78] sm:$0xff] }
  0xbb   : > { %v1288_v51 = vsel %vm333_vm0, %v551_v42, %v2738_v46  ;;  %v3724_v54 = vpop.permute.xlu0 %2740  ;;  %1813 = vmatprep.mubr.f32.mxu1 %v1320_v50  ;;  %2662 = vmatpush3.msra.mxu1 %v3645_v62  ;;  %v1262_v62 = vsel %vm333_vm0, %v3728_v57, %v2717_v49  ;;  %v3810_v49 = vld [vmem:[#allocation2 + $0x82] sm:$0xff] }
  0xbc   : > { %v3726_v55 = vpop.permute.xlu1 %2745  ;;  %v2743_v29 = vunpack.i.h.bf16 %v3724_v54  ;;  %1609 = vmatmul.mubr.f32.gmra.mxu0 %v1228_v48  ;;  %1814 = vmatmul.mubr.f32.gmra.mxu1 %v1288_v51  ;;  %v2742_v24 = vunpack.i.l.bf16 %v3724_v54  ;;  %v556_v48 = vld [vmem:[#allocation2 + $0x61] sm:$0xff] }
  0xbd   : > { %v2748_v58 = vunpack.i.h.bf16 %v3726_v55  ;;  %1613 = vmatprep.mubr.f32.mxu0 %v1261_v52  ;;  %2655 = vmatprep.subr.mxu1 %v3658_v12  ;;  %v2747_v37 = vunpack.i.l.bf16 %v3726_v55 }
  0xbe   : > { %v1321_v63 = vsel %vm333_vm0, %v617_v53, %v2743_v29  ;;  %2663 = vmatpush3.msra.mxu1 %v3658_v12  ;;  %v2732_v12 = vunpack.i.l.bf16 %v3706_v40  ;;  %v1265_v42 = vsel %vm333_vm0, %v3792_v34, %v2742_v24  ;;  %2604 = vmatpush3.msra.mxu0 %v3777_v21  ;;  %v622_v29 = vld [vmem:[#allocation2 + $0x80] sm:$0xff]  ;;  %v3860_v24 = vld [vmem:[#allocation2 + $0xaa] sm:$0xff] }
  0xbf   : > { %v1289_v0 = vsel %vm333_vm0, %v552_v56, %v2748_v58  ;;  %v3742_v3 = vpop.permute.xlu0 %2750  ;;  %1818 = vmatprep.mubr.f32.mxu1 %v1321_v63  ;;  %2656 = vmatprep.subr.mxu1 %v3674_v18 }
  0xc0   : > { %v3744_v4 = vpop.permute.xlu1 %2755  ;;  %v2753_v7 = vunpack.i.h.bf16 %v3742_v3  ;;  %1614 = vmatmul.mubr.f32.gmra.mxu0 %v1229_v60  ;;  %1819 = vmatmul.mubr.f32.gmra.mxu1 %v1289_v0  ;;  %v1264_v27 = vsel %vm333_vm0, %v3769_v19, %v2732_v12  ;;  %v2752_v39 = vunpack.i.l.bf16 %v3742_v3  ;;  %v557_v60 = vld [vmem:[#allocation2 + $0x69] sm:$0xff]  ;;  %v3845_v12 = vld [vmem:[#allocation2 + $0x9a] sm:$0xff] }
  0xc1   : > { %v2758_v8 = vunpack.i.h.bf16 %v3744_v4  ;;  %1618 = vmatprep.mubr.f32.mxu0 %v1262_v62  ;;  %2664 = vmatpush3.msra.mxu1 %v3674_v18  ;;  %v2757_v52 = vunpack.i.l.bf16 %v3744_v4 }
  0xc2   : > { %v1322_v13 = vsel %vm333_vm0, %v618_v2, %v2753_v7  ;;  %2657 = vmatprep.subr.mxu1 %v3681_v20  ;;  %v1266_v56 = vsel %vm333_vm0, %v3810_v49, %v2752_v39  ;;  %v560_v39 = vld [vmem:[#allocation2 + $0x91] sm:$0xff] }
  0xc3   : > { %v1290_v1 = vsel %vm333_vm0, %v553_v5, %v2758_v8  ;;  %v3765_v15 = vpop.permute.xlu0 %2760  ;;  %1823 = vmatprep.mubr.f32.mxu1 %v1322_v13  ;;  %2665 = vmatpush3.msra.mxu1 %v3681_v20  ;;  %v1232_v20 = vsel %vm333_vm0, %v620_v30, %v2737_v22  ;;  %v1234_v2 = vsel %vm333_vm0, %v622_v29, %v2757_v52  ;;  %v623_v8 = vld [vmem:[#allocation2 + $0x90] sm:$0xff] }
  0xc4   : > { %v3767_v16 = vpop.permute.xlu1 %2765  ;;  %v2763_v18 = vunpack.i.h.bf16 %v3765_v15  ;;  %1619 = vmatmul.mubr.f32.gmra.mxu0 %v1230_v11  ;;  %1824 = vmatmul.mubr.f32.gmra.mxu1 %v1290_v1  ;;  %v2762_v53 = vunpack.i.l.bf16 %v3765_v15  ;;  %v558_v11 = vld [vmem:[#allocation2 + $0x79] sm:$0xff]  ;;  %v626_v52 = vld [vmem:[#allocation2 + $0xb0] sm:$0xff] }
  0xc5   : > { %v2768_v38 = vunpack.i.h.bf16 %v3767_v16  ;;  %1623 = vmatprep.mubr.f32.mxu0 %v1263_v32  ;;  %2658 = vmatprep.subr.mxu1 %v3694_v28  ;;  %v2767_v62 = vunpack.i.l.bf16 %v3767_v16 }
  0xc6   : > { %v1323_v25 = vsel %vm333_vm0, %v619_v14, %v2763_v18  ;;  %2666 = vmatpush3.msra.mxu1 %v3694_v28  ;;  %v1233_v28 = vsel %vm333_vm0, %v621_v45, %v2747_v37  ;;  %v1267_v7 = vsel %vm333_vm0, %v3828_v61, %v2762_v53 }
  0xc7   : > { %v1291_v26 = vsel %vm333_vm0, %v554_v17, %v2768_v38  ;;  %v3788_v43 = vpop.permute.xlu0 %2770  ;;  %1828 = vmatprep.mubr.f32.mxu1 %v1323_v25  ;;  %2659 = vmatprep.subr.mxu1 %v3754_v9  ;;  %v1235_v14 = vsel %vm333_vm0, %v623_v8, %v2767_v62  ;;  %v624_v38 = vld [vmem:[#allocation2 + $0x98] sm:$0xff] }
  0xc8   : > { %v3790_v31 = vpop.permute.xlu1 %2775  ;;  %v2773_v35 = vunpack.i.h.bf16 %v3788_v43  ;;  %1624 = vmatmul.mubr.f32.gmra.mxu0 %v1231_v23  ;;  %1829 = vmatmul.mubr.f32.gmra.mxu1 %v1291_v26  ;;  %v2772_v3 = vunpack.i.l.bf16 %v3788_v43  ;;  %v559_v23 = vld [vmem:[#allocation2 + $0x81] sm:$0xff] }
  0xc9   : > { %v2778_v36 = vunpack.i.h.bf16 %v3790_v31  ;;  %1628 = vmatprep.mubr.f32.mxu0 %v1264_v27  ;;  %2667 = vmatpush3.msra.mxu1 %v3754_v9  ;;  %v2777_v32 = vunpack.i.l.bf16 %v3790_v31 }
  0xca   : > { %v1324_v40 = vsel %vm333_vm0, %v620_v30, %v2773_v35  ;;  %2660 = vmatprep.subr.mxu1 %v3777_v21  ;;  %v1268_v18 = vsel %vm333_vm0, %v3845_v12, %v2772_v3 }
  0xcb   : > { %v1292_v41 = vsel %vm333_vm0, %v555_v33, %v2778_v36  ;;  %v3806_v46 = vpop.permute.xlu0 %2780  ;;  %1833 = vmatprep.mubr.f32.mxu1 %v1324_v40  ;;  %2668 = vmatpush3.msra.mxu1 %v3777_v21  ;;  %v1236_v30 = vsel %vm333_vm0, %v624_v38, %v2777_v32  ;;  %v625_v36 = vld [vmem:[#allocation2 + $0xa8] sm:$0xff]  ;;  %v3875_v40 = vld [vmem:[#allocation2 + $0xb2] sm:$0xff] }
  0xcc   : > { %v3808_v47 = vpop.permute.xlu1 %2785  ;;  %v2783_v50 = vunpack.i.h.bf16 %v3806_v46  ;;  %1629 = vmatmul.mubr.f32.gmra.mxu0 %v1232_v20  ;;  %1834 = vmatmul.mubr.f32.gmra.mxu1 %v1292_v41  ;;  %v2782_v15 = vunpack.i.l.bf16 %v3806_v46 }
  0xcd   : > { %v2788_v51 = vunpack.i.h.bf16 %v3808_v47  ;;  %1633 = vmatprep.mubr.f32.mxu0 %v1265_v42  ;;  %v2787_v27 = vunpack.i.l.bf16 %v3808_v47 }
  0xce   : > { %v1325_v54 = vsel %vm333_vm0, %v621_v45, %v2783_v50  ;;  %v1269_v35 = vsel %vm333_vm0, %v3860_v24, %v2782_v15  ;;  %v628_v15 = vld [vmem:[#allocation2 + $0xc8] sm:$0xff] }
  0xcf   : > { %v1293_v55 = vsel %vm333_vm0, %v556_v48, %v2788_v51  ;;  %v3824_v58 = vpop.permute.xlu0 %2790  ;;  %1838 = vmatprep.mubr.f32.mxu1 %v1325_v54  ;;  %v1237_v46 = vsel %vm333_vm0, %v625_v36, %v2787_v27  ;;  %v561_v54 = vld [vmem:[#allocation2 + $0x99] sm:$0xff] }
  0xd0   : > { %v3826_v59 = vpop.permute.xlu1 %2795  ;;  %v2793_v63 = vunpack.i.h.bf16 %v3824_v58  ;;  %1634 = vmatmul.mubr.f32.gmra.mxu0 %v1233_v28  ;;  %1839 = vmatmul.mubr.f32.gmra.mxu1 %v1293_v55  ;;  %v2792_v43 = vunpack.i.l.bf16 %v3824_v58  ;;  %v3890_v55 = vld [vmem:[#allocation2 + $0xc2] sm:$0xff] }
  0xd1   : > { %v2798_v0 = vunpack.i.h.bf16 %v3826_v59  ;;  %1638 = vmatprep.mubr.f32.mxu0 %v1266_v56  ;;  %v2797_v45 = vunpack.i.l.bf16 %v3826_v59 }
  0xd2   : > { %v1326_v4 = vsel %vm333_vm0, %v622_v29, %v2793_v63  ;;  %v1270_v51 = vsel %vm333_vm0, %v3875_v40, %v2792_v43 }
  0xd3   : > { %v1294_v5 = vsel %vm333_vm0, %v557_v60, %v2798_v0  ;;  %v3841_v9 = vpop.permute.xlu0 %2800  ;;  %1843 = vmatprep.mubr.f32.mxu1 %v1326_v4  ;;  %v1238_v59 = vsel %vm333_vm0, %v626_v52, %v2797_v45 }
  0xd4   : > { %v3843_v10 = vpop.permute.xlu1 %2805  ;;  %v2803_v13 = vunpack.i.h.bf16 %v3841_v9  ;;  %1639 = vmatmul.mubr.f32.gmra.mxu0 %v1234_v2  ;;  %1844 = vmatmul.mubr.f32.gmra.mxu1 %v1294_v5  ;;  %v2802_v47 = vunpack.i.l.bf16 %v3841_v9  ;;  %v627_v2 = vld [vmem:[#allocation2 + $0xc0] sm:$0xff]  ;;  %v562_v5 = vld [vmem:[#allocation2 + $0xa9] sm:$0xff] }
  0xd5   : > { %v2808_v1 = vunpack.i.h.bf16 %v3843_v10  ;;  %1643 = vmatprep.mubr.f32.mxu0 %v1267_v7  ;;  %v2807_v58 = vunpack.i.l.bf16 %v3843_v10  ;;  %v3905_v7 = vld [vmem:[#allocation2 + $0xca] sm:$0xff] }
  0xd6   : > { %v1327_v16 = vsel %vm333_vm0, %v623_v8, %v2803_v13  ;;  %v1271_v62 = vsel %vm333_vm0, %v3890_v55, %v2802_v47 }
  0xd7   : > { %v1295_v17 = vsel %vm333_vm0, %v558_v11, %v2808_v1  ;;  %v3856_v21 = vpop.permute.xlu0 %2810  ;;  %1848 = vmatprep.mubr.f32.mxu1 %v1327_v16  ;;  %v1239_v11 = vsel %vm333_vm0, %v627_v2, %v2807_v58 }
  0xd8   : > { %v3858_v22 = vpop.permute.xlu1 %2815  ;;  %v2813_v25 = vunpack.i.h.bf16 %v3856_v21  ;;  %1644 = vmatmul.mubr.f32.gmra.mxu0 %v1235_v14  ;;  %1849 = vmatmul.mubr.f32.gmra.mxu1 %v1295_v17  ;;  %v2812_v60 = vunpack.i.l.bf16 %v3856_v21 }
  0xd9   : > { %v2818_v26 = vunpack.i.h.bf16 %v3858_v22  ;;  %1648 = vmatprep.mubr.f32.mxu0 %v1268_v18  ;;  %v2817_v10 = vunpack.i.l.bf16 %v3858_v22  ;;  %v563_v18 = vld [vmem:[#allocation2 + $0xb1] sm:$0xff] }
  0xda   : > { %v1328_v31 = vsel %vm333_vm0, %v624_v38, %v2813_v25  ;;  %v1272_v14 = vsel %vm333_vm0, %v3905_v7, %v2812_v60  ;;  %v3920_v38 = vld [vmem:[#allocation2 + $0xda] sm:$0xff] }
  0xdb   : > { %v1296_v33 = vsel %vm333_vm0, %v559_v23, %v2818_v26  ;;  %v3871_v37 = vpop.permute.xlu0 %2820  ;;  %1853 = vmatprep.mubr.f32.mxu1 %v1328_v31  ;;  %v1240_v25 = vsel %vm333_vm0, %v628_v15, %v2817_v10  ;;  %v629_v31 = vld [vmem:[#allocation2 + $0xd8] sm:$0xff] }
  0xdc   : > { %v3873_v20 = vpop.permute.xlu1 %2825  ;;  %v2823_v41 = vunpack.i.h.bf16 %v3871_v37  ;;  %1649 = vmatmul.mubr.f32.gmra.mxu0 %v1236_v30  ;;  %1854 = vmatmul.mubr.f32.gmra.mxu1 %v1296_v33  ;;  %v2822_v13 = vunpack.i.l.bf16 %v3871_v37  ;;  %v3935_v37 = vld [vmem:[#allocation2 + $0xe2] sm:$0xff] }
  0xdd   : > { %v2828_v42 = vunpack.i.h.bf16 %v3873_v20  ;;  %1653 = vmatprep.mubr.f32.mxu0 %v1269_v35  ;;  %v2827_v23 = vunpack.i.l.bf16 %v3873_v20 }
  0xde   : > { %v1329_v48 = vsel %vm333_vm0, %v625_v36, %v2823_v41  ;;  %v1273_v43 = vsel %vm333_vm0, %v3920_v38, %v2822_v13  ;;  %v564_v36 = vld [vmem:[#allocation2 + $0xc1] sm:$0xff] }
  0xdf   : > { %v1297_v50 = vsel %vm333_vm0, %v560_v39, %v2828_v42  ;;  %v3886_v28 = vpop.permute.xlu0 %2830  ;;  %1858 = vmatprep.mubr.f32.mxu1 %v1329_v48  ;;  %v1241_v42 = vsel %vm333_vm0, %v629_v31, %v2827_v23 }
  0xe0   : > { %v3888_v53 = vpop.permute.xlu1 %2835  ;;  %v2833_v56 = vunpack.i.h.bf16 %v3886_v28  ;;  %1654 = vmatmul.mubr.f32.gmra.mxu0 %v1237_v46  ;;  %1859 = vmatmul.mubr.f32.gmra.mxu1 %v1297_v50  ;;  %v2832_v26 = vunpack.i.l.bf16 %v3886_v28  ;;  %v630_v50 = vld [vmem:[#allocation2 + $0xe0] sm:$0xff]  ;;  %v565_v28 = vld [vmem:[#allocation2 + $0xc9] sm:$0xff] }
  0xe1   : > { %v2838_v29 = vunpack.i.h.bf16 %v3888_v53  ;;  %1658 = vmatprep.mubr.f32.mxu0 %v1270_v51  ;;  %v2837_v41 = vunpack.i.l.bf16 %v3888_v53  ;;  %v3950_v53 = vld [vmem:[#allocation2 + $0xf2] sm:$0xff] }
  0xe2   : > { %v1330_v63 = vsel %vm333_vm0, %v626_v52, %v2833_v56  ;;  %v1274_v48 = vsel %vm333_vm0, %v3935_v37, %v2832_v26 }
  0xe3   : > { %v1298_v0 = vsel %vm333_vm0, %v561_v54, %v2838_v29  ;;  %v3901_v3 = vpop.permute.xlu0 %2840  ;;  %1863 = vmatprep.mubr.f32.mxu1 %v1330_v63  ;;  %v1242_v58 = vsel %vm333_vm0, %v630_v50, %v2837_v41 }
  0xe4   : > { %v3903_v4 = vpop.permute.xlu1 %2845  ;;  %v2843_v8 = vunpack.i.h.bf16 %v3901_v3  ;;  %1659 = vmatmul.mubr.f32.gmra.mxu0 %v1238_v59  ;;  %1864 = vmatmul.mubr.f32.gmra.mxu1 %v1298_v0  ;;  %v2842_v45 = vunpack.i.l.bf16 %v3901_v3 }
  0xe5   : > { %v2848_v9 = vunpack.i.h.bf16 %v3903_v4  ;;  %1663 = vmatprep.mubr.f32.mxu0 %v1271_v62  ;;  %v2847_v29 = vunpack.i.l.bf16 %v3903_v4  ;;  %v631_v62 = vld [vmem:[#allocation2 + $0xf0] sm:$0xff]  ;;  %v3965_v4 = vld [vmem:[#allocation2 + $0xfa] sm:$0xff] }
  0xe6   : > { %v1331_v1 = vsel %vm333_vm0, %v627_v2, %v2843_v8  ;;  %v1275_v0 = vsel %vm333_vm0, %v3950_v53, %v2842_v45 }
  0xe7   : > { %v1299_v32 = vsel %vm333_vm0, %v562_v5, %v2848_v9  ;;  %v3916_v16 = vpop.permute.xlu0 %2850  ;;  %1868 = vmatprep.mubr.f32.mxu1 %v1331_v1  ;;  %v566_v5 = vld [vmem:[#allocation2 + $0xd9] sm:$0xff] }
  0xe8   : > { %v3918_v17 = vpop.permute.xlu1 %2855  ;;  %v2853_v21 = vunpack.i.h.bf16 %v3916_v16  ;;  %1664 = vmatmul.mubr.f32.gmra.mxu0 %v1239_v11  ;;  %1869 = vmatmul.mubr.f32.gmra.mxu1 %v1299_v32  ;;  %v2852_v59 = vunpack.i.l.bf16 %v3916_v16  ;;  %v1243_v11 = vsel %vm333_vm0, %v631_v62, %v2847_v29  ;;  %v569_v29 = vld [vmem:[#allocation2 + $0xf9] sm:$0xff] }
  0xe9   : > { %v2858_v22 = vunpack.i.h.bf16 %v3918_v17  ;;  %1668 = vmatprep.mubr.f32.mxu0 %v1272_v14  ;;  %v2857_v10 = vunpack.i.l.bf16 %v3918_v17  ;;  %v3980_v17 = vld [vmem:[#allocation2 + $0x10a] sm:$0xff] }
  0xea   : > { %v1332_v27 = vsel %vm333_vm0, %v628_v15, %v2853_v21  ;;  %v1276_v14 = vsel %vm333_vm0, %v3965_v4, %v2852_v59  ;;  %v632_v15 = vld [vmem:[#allocation2 + $0xf8] sm:$0xff]  ;;  %v567_v21 = vld [vmem:[#allocation2 + $0xe1] sm:$0xff] }
  0xeb   : > { %v1300_v30 = vsel %vm333_vm0, %v563_v18, %v2858_v22  ;;  %v3931_v33 = vpop.permute.xlu0 %2860  ;;  %1873 = vmatprep.mubr.f32.mxu1 %v1332_v27  ;;  %v1244_v26 = vsel %vm333_vm0, %v632_v15, %v2857_v10 }
  0xec   : > { %v3933_v35 = vpop.permute.xlu1 %2865  ;;  %v2863_v20 = vunpack.i.h.bf16 %v3931_v33  ;;  %1669 = vmatmul.mubr.f32.gmra.mxu0 %v1240_v25  ;;  %1874 = vmatmul.mubr.f32.gmra.mxu1 %v1300_v30  ;;  %v2862_v13 = vunpack.i.l.bf16 %v3931_v33  ;;  %v633_v33 = vld [vmem:[#allocation2 + $0x108] sm:$0xff] }
  0xed   : > { %v2868_v39 = vunpack.i.h.bf16 %v3933_v35  ;;  %1673 = vmatprep.mubr.f32.mxu0 %v1273_v43  ;;  %v2867_v25 = vunpack.i.l.bf16 %v3933_v35  ;;  %v3995_v35 = vld [vmem:[#allocation2 + $0x112] sm:$0xff] }
  0xee   : > { %v1333_v46 = vsel %vm333_vm0, %v629_v31, %v2863_v20  ;;  %v1277_v31 = vsel %vm333_vm0, %v3980_v17, %v2862_v13 }
  0xef   : > { %v1301_v47 = vsel %vm333_vm0, %v564_v36, %v2868_v39  ;;  %v3946_v51 = vpop.permute.xlu0 %2870  ;;  %1878 = vmatprep.mubr.f32.mxu1 %v1333_v46  ;;  %v568_v39 = vld [vmem:[#allocation2 + $0xf1] sm:$0xff]  ;;  %v1245_v46 = vsel %vm333_vm0, %v633_v33, %v2867_v25 }
  0xf0   : > { %v3948_v52 = vpop.permute.xlu1 %2875  ;;  %v2873_v54 = vunpack.i.h.bf16 %v3946_v51  ;;  %1674 = vmatmul.mubr.f32.gmra.mxu0 %v1241_v42  ;;  %1879 = vmatmul.mubr.f32.gmra.mxu1 %v1301_v47  ;;  %v2872_v27 = vunpack.i.l.bf16 %v3946_v51 }
  0xf1   : > { %v2878_v56 = vunpack.i.h.bf16 %v3948_v52  ;;  %1678 = vmatprep.mubr.f32.mxu0 %v1274_v48  ;;  %v2877_v45 = vunpack.i.l.bf16 %v3948_v52  ;;  %v4010_v52 = vld [vmem:[#allocation2 + $0x122] sm:$0xff] }
  0xf2   : > { %v1334_v60 = vsel %vm333_vm0, %v630_v50, %v2873_v54  ;;  %v1278_v51 = vsel %vm333_vm0, %v3995_v35, %v2872_v27  ;;  %v571_v27 = vld [vmem:[#allocation2 + $0x111] sm:$0xff] }
  0xf3   : > { %v1302_v63 = vsel %vm333_vm0, %v565_v28, %v2878_v56  ;;  %v3961_v2 = vpop.permute.xlu0 %2880  ;;  %1883 = vmatprep.mubr.f32.mxu1 %v1334_v60  ;;  %v634_v28 = vld [vmem:[#allocation2 + $0x110] sm:$0xff] }
  0xf4   : > { %v3963_v3 = vpop.permute.xlu1 %2885  ;;  %v2883_v8 = vunpack.i.h.bf16 %v3961_v2  ;;  %1679 = vmatmul.mubr.f32.gmra.mxu0 %v1242_v58  ;;  %1884 = vmatmul.mubr.f32.gmra.mxu1 %v1302_v63  ;;  %v2882_v47 = vunpack.i.l.bf16 %v3961_v2  ;;  %v1246_v63 = vsel %vm333_vm0, %v634_v28, %v2877_v45  ;;  %v637_v45 = vld [vmem:[#allocation2 + $0x138] sm:$0xff] }
  0xf5   : > { %v2888_v9 = vunpack.i.h.bf16 %v3963_v3  ;;  %1683 = vmatprep.mubr.f32.mxu0 %v1275_v0  ;;  %v2887_v60 = vunpack.i.l.bf16 %v3963_v3  ;;  %v4025_v3 = vld [vmem:[#allocation2 + $0x12a] sm:$0xff] }
  0xf6   : > { %v1335_v1 = vsel %vm333_vm0, %v631_v62, %v2883_v8  ;;  %v635_v8 = vld [vmem:[#allocation2 + $0x120] sm:$0xff] }
  0xf7   : > { %v1303_v32 = vsel %vm333_vm0, %v566_v5, %v2888_v9  ;;  %v3976_v16 = vpop.permute.xlu0 %2890  ;;  %1888 = vmatprep.mubr.f32.mxu1 %v1335_v1  ;;  %v1279_v5 = vsel %vm333_vm0, %v4010_v52, %v2882_v47 }
  0xf8   : > { %v3978_v18 = vpop.permute.xlu1 %2895  ;;  %v2893_v22 = vunpack.i.h.bf16 %v3976_v16  ;;  %1684 = vmatmul.mubr.f32.gmra.mxu0 %v1243_v11  ;;  %1889 = vmatmul.mubr.f32.gmra.mxu1 %v1303_v32  ;;  %v2892_v0 = vunpack.i.l.bf16 %v3976_v16  ;;  %v570_v11 = vld [vmem:[#allocation2 + $0x109] sm:$0xff] }
  0xf9   : > { %v2898_v23 = vunpack.i.h.bf16 %v3978_v18  ;;  %1688 = vmatprep.mubr.f32.mxu0 %v1276_v14  ;;  %v2897_v32 = vunpack.i.l.bf16 %v3978_v18  ;;  %v1247_v14 = vsel %vm333_vm0, %v635_v8, %v2887_v60  ;;  %v4040_v18 = vld [vmem:[#allocation2 + $0x13a] sm:$0xff] }
  0xfa   : > { %v1336_v30 = vsel %vm333_vm0, %v632_v15, %v2893_v22  ;;  %v1280_v22 = vsel %vm333_vm0, %v4025_v3, %v2892_v0 }
  0xfb   : > { %v1304_v43 = vsel %vm333_vm0, %v567_v21, %v2898_v23  ;;  %v3991_v36 = vpop.permute.xlu0 %2900  ;;  %1893 = vmatprep.mubr.f32.mxu1 %v1336_v30  ;;  %v636_v23 = vld [vmem:[#allocation2 + $0x128] sm:$0xff] }
  0xfc   : > { %v3993_v20 = vpop.permute.xlu1 %2905  ;;  %v2903_v41 = vunpack.i.h.bf16 %v3991_v36  ;;  %1689 = vmatmul.mubr.f32.gmra.mxu0 %v1244_v26  ;;  %1894 = vmatmul.mubr.f32.gmra.mxu1 %v1304_v43  ;;  %v2902_v15 = vunpack.i.l.bf16 %v3991_v36 }
  0xfd   : > { %v2908_v42 = vunpack.i.h.bf16 %v3993_v20  ;;  %1693 = vmatprep.mubr.f32.mxu0 %v1277_v31  ;;  %v2907_v31 = vunpack.i.l.bf16 %v3993_v20  ;;  %v4055_v20 = vld [vmem:[#allocation2 + $0x142] sm:$0xff] }
  0xfe   : > { %v1337_v48 = vsel %vm333_vm0, %v633_v33, %v2903_v41  ;;  %v1248_v33 = vsel %vm333_vm0, %v636_v23, %v2897_v32 }
  0xff   : > { %v1305_v50 = vsel %vm333_vm0, %v568_v39, %v2908_v42  ;;  %v4006_v54 = vpop.permute.xlu0 %2910  ;;  %1898 = vmatprep.mubr.f32.mxu1 %v1337_v48  ;;  %v1281_v42 = vsel %vm333_vm0, %v4040_v18, %v2902_v15  ;;  %v572_v48 = vld [vmem:[#allocation2 + $0x121] sm:$0xff]  ;;  %v639_v15 = vld [vmem:[#allocation2 + $0x150] sm:$0xff] }
 0x100   : > { %v4008_v56 = vpop.permute.xlu1 %2915  ;;  %v2913_v58 = vunpack.i.h.bf16 %v4006_v54  ;;  %1694 = vmatmul.mubr.f32.gmra.mxu0 %v1245_v46  ;;  %1899 = vmatmul.mubr.f32.gmra.mxu1 %v1305_v50  ;;  %v2912_v36 = vunpack.i.l.bf16 %v4006_v54  ;;  %v1249_v54 = vsel %vm333_vm0, %v637_v45, %v2907_v31 }
 0x101   : > { %v2918_v59 = vunpack.i.h.bf16 %v4008_v56  ;;  %1698 = vmatprep.mubr.f32.mxu0 %v1278_v51 }
 0x102   : > { %v1338_v62 = vsel %vm333_vm0, %v634_v28, %v2913_v58  ;;  %v2917_v28 = vunpack.i.l.bf16 %v4008_v56  ;;  %v1282_v60 = vsel %vm333_vm0, %v4055_v20, %v2912_v36  ;;  %v4070_v56 = vld [vmem:[#allocation2 + $0x152] sm:$0xff] }
 0x103   : > { %v1306_v2 = vsel %vm333_vm0, %v569_v29, %v2918_v59  ;;  %v4021_v9 = vpop.permute.xlu0 %2920  ;;  %1903 = vmatprep.mubr.f32.mxu1 %v1338_v62 }
 0x104   : > { %v4023_v10 = vpop.permute.xlu1 %2925  ;;  %v2923_v13 = vunpack.i.h.bf16 %v4021_v9  ;;  %1699 = vmatmul.mubr.f32.gmra.mxu0 %v1246_v63  ;;  %1904 = vmatmul.mubr.f32.gmra.mxu1 %v1306_v2  ;;  %v2922_v29 = vunpack.i.l.bf16 %v4021_v9  ;;  %v638_v63 = vld [vmem:[#allocation2 + $0x140] sm:$0xff]  ;;  %v573_v2 = vld [vmem:[#allocation2 + $0x129] sm:$0xff] }
 0x105   : > { %v2928_v1 = vunpack.i.h.bf16 %v4023_v10  ;;  %1703 = vmatprep.mubr.f32.mxu0 %v1279_v5  ;;  %v2927_v9 = vunpack.i.l.bf16 %v4023_v10  ;;  %v640_v10 = vld [vmem:[#allocation2 + $0x158] sm:$0xff] }
 0x106   : > { %v1339_v16 = vsel %vm333_vm0, %v635_v8, %v2923_v13  ;;  %v1250_v13 = vsel %vm333_vm0, %v638_v63, %v2917_v28  ;;  %v641_v28 = vld [vmem:[#allocation2 + $0x168] sm:$0xff] }
 0x107   : > { %v1307_v21 = vsel %vm333_vm0, %v570_v11, %v2928_v1  ;;  %v4036_v25 = vpop.permute.xlu0 %2930  ;;  %1908 = vmatprep.mubr.f32.mxu1 %v1339_v16  ;;  %v4081_v16 = vld [vmem:[#allocation2 + $0x15a] sm:$0xff] }
 0x108   : > { %v4038_v26 = vpop.permute.xlu1 %2935  ;;  %v2933_v30 = vunpack.i.h.bf16 %v4036_v25  ;;  %1704 = vmatmul.mubr.f32.gmra.mxu0 %v1247_v14  ;;  %1909 = vmatmul.mubr.f32.gmra.mxu1 %v1307_v21  ;;  %v2932_v11 = vunpack.i.l.bf16 %v4036_v25  ;;  %v1283_v14 = vsel %vm333_vm0, %v4070_v56, %v2922_v29 }
 0x109   : > { %v2938_v43 = vunpack.i.h.bf16 %v4038_v26  ;;  %1708 = vmatprep.mubr.f32.mxu0 %v1280_v22 }
 0x10a   : > { %v1340_v39 = vsel %vm333_vm0, %v636_v23, %v2933_v30  ;;  %v574_v23 = vld [vmem:[#allocation2 + $0x139] sm:$0xff]  ;;  %v1284_v36 = vsel %vm333_vm0, %v4081_v16, %v2932_v11 }
 0x10b   : > { %v1308_v41 = vsel %vm333_vm0, %v571_v27, %v2938_v43  ;;  %v4051_v46 = vpop.permute.xlu0 %2940  ;;  %1913 = vmatprep.mubr.f32.mxu1 %v1340_v39  ;;  %v2937_v43 = vunpack.i.l.bf16 %v4038_v26  ;;  %v4091_v26 = vld [vmem:[#allocation2 + $0x16a] sm:$0xff]  ;;  %v4100_v11 = vld [vmem:[#allocation2 + $0x172] sm:$0xff] }
 0x10c   : > { %v4053_v47 = vpop.permute.xlu1 %2945  ;;  %v2943_v50 = vunpack.i.h.bf16 %v4051_v46  ;;  %1709 = vmatmul.mubr.f32.gmra.mxu0 %v1248_v33  ;;  %1914 = vmatmul.mubr.f32.gmra.mxu1 %v1308_v41  ;;  %v1251_v33 = vsel %vm333_vm0, %v639_v15, %v2927_v9  ;;  %v2942_v39 = vunpack.i.l.bf16 %v4051_v46 }
 0x10d   : > { %v2948_v51 = vunpack.i.h.bf16 %v4053_v47  ;;  %1713 = vmatprep.mubr.f32.mxu0 %v1281_v42  ;;  %v2947_v29 = vunpack.i.l.bf16 %v4053_v47  ;;  %v1252_v46 = vsel %vm333_vm0, %v640_v10, %v2937_v43  ;;  %v642_v47 = vld [vmem:[#allocation2 + $0x170] sm:$0xff] }
 0x10e   : > { %v1341_v58 = vsel %vm333_vm0, %v637_v45, %v2943_v50 }
 0x10f   : > { %v1309_v59 = vsel %vm333_vm0, %v572_v48, %v2948_v51  ;;  %v4066_v0 = vpop.permute.xlu0 %2950  ;;  %1918 = vmatprep.mubr.f32.mxu1 %v1341_v58  ;;  %v575_v48 = vld [vmem:[#allocation2 + $0x141] sm:$0xff] }
 0x110   : > { %v4068_v62 = vpop.permute.xlu1 %2955  ;;  %v2953_v5 = vunpack.i.h.bf16 %v4066_v0  ;;  %1714 = vmatmul.mubr.f32.gmra.mxu0 %v1249_v54  ;;  %1919 = vmatmul.mubr.f32.gmra.mxu1 %v1309_v59 }
 0x111   : > { %v2958_v8 = vunpack.i.h.bf16 %v4068_v62  ;;  %1718 = vmatprep.mubr.f32.mxu0 %v1282_v60  ;;  %v2952_v60 = vunpack.i.l.bf16 %v4066_v0  ;;  %v1253_v0 = vsel %vm333_vm0, %v641_v28, %v2947_v29 }
 0x112   : > { %v1342_v1 = vsel %vm333_vm0, %v638_v63, %v2953_v5 }
 0x113   : > { %v1310_v32 = vsel %vm333_vm0, %v573_v2, %v2958_v8  ;;  %v2961_v21 = vpop.permute.xlu0 %2960  ;;  %1923 = vmatprep.mubr.f32.mxu1 %v1342_v1  ;;  %v1285_v2 = vsel %vm333_vm0, %v4091_v26, %v2942_v39  ;;  %v576_v8 = vld [vmem:[#allocation2 + $0x151] sm:$0xff]  ;;  %v644_v39 = vld [vmem:[#allocation2 + $0x188] sm:$0xff] }
 0x114   : > { %v2966_v22 = vpop.permute.xlu1 %2965  ;;  %v2963_v27 = vunpack.i.h.bf16 %v2961_v21  ;;  %v2962_v25 = vunpack.i.l.bf16 %v2961_v21  ;;  %1719 = vmatmul.mubr.f32.gmra.mxu0 %v1250_v13  ;;  %1924 = vmatmul.mubr.f32.gmra.mxu1 %v1310_v32  ;;  %v2957_v13 = vunpack.i.l.bf16 %v4068_v62 }
 0x115   : > { %v2967_v30 = vunpack.i.l.bf16 %v2966_v22  ;;  %v2968_v31 = vunpack.i.h.bf16 %v2966_v22  ;;  %1723 = vmatprep.mubr.f32.mxu0 %v1283_v14  ;;  %v577_v22 = vld [vmem:[#allocation2 + $0x159] sm:$0xff] }
 0x116   : > { %v1343_v41 = vsel %vm333_vm0, %v639_v15, %v2962_v25  ;;  %v1311_v42 = vsel %vm333_vm0, %v574_v23, %v2963_v27  ;;  %v1286_v15 = vsel %vm333_vm0, %v4100_v11, %v2952_v60  ;;  %v1254_v62 = vsel %vm333_vm0, %v642_v47, %v2957_v13  ;;  %v580_v60 = vld [vmem:[#allocation2 + $0x181] sm:$0xff] }
 0x117   : > { %v1344_v45 = vsel %vm333_vm0, %v640_v10, %v2967_v30  ;;  %1928 = vmatprep.mubr.f32.mxu1 %v1343_v41  ;;  %v2971_v50 = vpop.permute.xlu0 %2970  ;;  %v1312_v59 = vsel %vm333_vm0, %v575_v48, %v2968_v31  ;;  %v643_v10 = vld [vmem:[#allocation2 + $0x180] sm:$0xff]  ;;  %v679_v31 = vld [vmem:[#allocation2 + $0x32] sm:$0xff] }
 0x118   : > { %v2976_v51 = vpop.permute.xlu1 %2975  ;;  %1724 = vmatmul.mubr.f32.gmra.mxu0 %v1251_v33  ;;  %1929 = vmatmul.mubr.f32.gmra.mxu1 %v1311_v42  ;;  %v2972_v54 = vunpack.i.l.bf16 %v2971_v50  ;;  %v2973_v58 = vunpack.i.h.bf16 %v2971_v50  ;;  %v578_v33 = vld [vmem:[#allocation2 + $0x169] sm:$0xff] }
 0x119   : > { %1728 = vmatprep.mubr.f32.mxu0 %v1284_v36  ;;  %1933 = vmatprep.mubr.f32.mxu1 %v1344_v45  ;;  %v2977_v63 = vunpack.i.l.bf16 %v2976_v51  ;;  %v2978_v1 = vunpack.i.h.bf16 %v2976_v51  ;;  %v680_v45 = vld [vmem:[#allocation2 + $0x3a] sm:$0xff]  ;;  %v579_v51 = vld [vmem:[#allocation2 + $0x171] sm:$0xff] }
 0x11a   : > { %v1345_v5 = vsel %vm333_vm0, %v641_v28, %v2972_v54  ;;  %v1313_v32 = vsel %vm333_vm0, %v576_v8, %v2973_v58  ;;  %v645_v54 = vld [vmem:[#allocation2 + $0x198] sm:$0xff]  ;;  %v581_v8 = vld [vmem:[#allocation2 + $0x189] sm:$0xff] }
 0x11b   : > { %v2981_v9 = vpop.permute.xlu0 %2980  ;;  %v1346_v21 = vsel %vm333_vm0, %v642_v47, %v2977_v63  ;;  %v1314_v25 = vsel %vm333_vm0, %v577_v22, %v2978_v1  ;;  %v646_v63 = vld [vmem:[#allocation2 + $0x1a0] sm:$0xff] }
 0x11c   : > { %1729 = vmatmul.mubr.f32.gmra.mxu0 %v1252_v46  ;;  %1934 = vmatmul.mubr.f32.gmra.mxu1 %v1312_v59  ;;  %v2982_v14 = vunpack.i.l.bf16 %v2981_v9  ;;  %v2986_v23 = vpop.permute.xlu1 %2985  ;;  %v2983_v27 = vunpack.i.h.bf16 %v2981_v9 }
 0x11d   : > { %1733 = vmatprep.mubr.f32.mxu0 %v1285_v2  ;;  %1938 = vmatprep.mubr.f32.mxu1 %v1345_v5  ;;  %v2987_v30 = vunpack.i.l.bf16 %v2986_v23  ;;  %v2988_v41 = vunpack.i.h.bf16 %v2986_v23 }
 0x11e   : > { %v1347_v43 = vsel %vm333_vm0, %v643_v10, %v2982_v14  ;;  %v1315_v42 = vsel %vm333_vm0, %v578_v33, %v2983_v27 }
 0x11f   : > { %v2991_v36 = vpop.permute.xlu0 %2990  ;;  %v1348_v50 = vsel %vm333_vm0, %v644_v39, %v2987_v30  ;;  %v1316_v58 = vsel %vm333_vm0, %v579_v51, %v2988_v41 }
 0x120   : > { %1734 = vmatmul.mubr.f32.gmra.mxu0 %v1253_v0  ;;  %1939 = vmatmul.mubr.f32.gmra.mxu1 %v1313_v32  ;;  %v2992_v48 = vunpack.i.l.bf16 %v2991_v36  ;;  %v2996_v28 = vpop.permute.xlu1 %2995  ;;  %v2993_v29 = vunpack.i.h.bf16 %v2991_v36 }
 0x121   : > { %1738 = vmatprep.mubr.f32.mxu0 %v1286_v15  ;;  %1943 = vmatprep.mubr.f32.mxu1 %v1346_v21  ;;  %v2997_v46 = vunpack.i.l.bf16 %v2996_v28  ;;  %v2998_v2 = vunpack.i.h.bf16 %v2996_v28 }
 0x122   : > { %v1349_v59 = vsel %vm333_vm0, %v645_v54, %v2992_v48  ;;  %v1317_v5 = vsel %vm333_vm0, %v580_v60, %v2993_v29 }
 0x124   : > { %1739 = vmatmul.mubr.f32.gmra.mxu0 %v1254_v62  ;;  %1944 = vmatmul.mubr.f32.gmra.mxu1 %v1314_v25 }
 0x125   : > { %1948 = vmatprep.mubr.f32.mxu1 %v1347_v43  ;;  %2605 = vmatprep.mubr.msk.f32.mxu0 %vm333_vm0, %v679_v31 }
 0x128   : > { %1949 = vmatmul.mubr.f32.gmra.mxu1 %v1315_v42  ;;  %2606 = vmatmul.mubr.msk.f32.vlgmr.msra.gmra.mxu0 %vm333_vm0, %v680_v45 }
 0x129   : > { %1953 = vmatprep.mubr.f32.mxu1 %v1348_v50  ;;  %2608 = vmatprep.mubr.msk.f32.mxu0 %vm333_vm0, %v3710_v44  ;;  %v1350_v44 = vsel %vm333_vm0, %v646_v63, %v2997_v46 }
 0x12c   : > { %1954 = vmatmul.mubr.f32.gmra.mxu1 %v1316_v58  ;;  %2609 = vmatmul.mubr.msk.f32.gmra.mxu0 %vm333_vm0, %v3728_v57  ;;  %v1318_v57 = vsel %vm333_vm0, %v581_v8, %v2998_v2 }
 0x12d   : > { %1958 = vmatprep.mubr.f32.mxu1 %v1349_v59  ;;  %2611 = vmatprep.mubr.msk.f32.mxu0 %vm333_vm0, %v3746_v6  ;;  %v707_v6 = vld [vmem:[#allocation2 + $0x182] sm:$0xff] }
 0x130   : > { %1959 = vmatmul.mubr.f32.gmra.mxu1 %v1317_v5  ;;  %2612 = vmatmul.mubr.msk.f32.gmra.mxu0 %vm333_vm0, %v3769_v19  ;;  %v708_v19 = vld [vmem:[#allocation2 + $0x18a] sm:$0xff] }
 0x131   : > { %1963 = vmatprep.mubr.f32.mxu1 %v1350_v44  ;;  %2614 = vmatprep.mubr.msk.f32.mxu0 %vm333_vm0, %v3792_v34  ;;  %v709_v34 = vld [vmem:[#allocation2 + $0x19a] sm:$0xff] }
 0x134   : > { %1964 = vmatmul.mubr.f32.gmra.mxu1 %v1318_v57  ;;  %2615 = vmatmul.mubr.msk.f32.gmra.mxu0 %vm333_vm0, %v3810_v49  ;;  %v710_v49 = vld [vmem:[#allocation2 + $0x1a2] sm:$0xff] }
 0x135   : > { %2617 = vmatprep.mubr.msk.f32.mxu0 %vm333_vm0, %v3828_v61  ;;  %2629 = vmatprep.mubr.msk.f32.mxu1 %vm333_vm0, %v3950_v53 }
 0x138   : > { %2618 = vmatmul.mubr.msk.f32.gmra.mxu0 %vm333_vm0, %v3845_v12  ;;  %2630 = vmatmul.mubr.msk.f32.vlgmr.msra.gmra.mxu1 %vm333_vm0, %v3965_v4 }
 0x139   : > { %2620 = vmatprep.mubr.msk.f32.mxu0 %vm333_vm0, %v3860_v24  ;;  %2632 = vmatprep.mubr.msk.f32.mxu1 %vm333_vm0, %v3980_v17 }
 0x13c   : > { %2621 = vmatmul.mubr.msk.f32.gmra.mxu0 %vm333_vm0, %v3875_v40  ;;  %2633 = vmatmul.mubr.msk.f32.gmra.mxu1 %vm333_vm0, %v3995_v35 }
 0x13d   : > { %2623 = vmatprep.mubr.msk.f32.mxu0 %vm333_vm0, %v3890_v55  ;;  %2635 = vmatprep.mubr.msk.f32.mxu1 %vm333_vm0, %v4010_v52 }
 0x140   : > { %2624 = vmatmul.mubr.msk.f32.gmra.mxu0 %vm333_vm0, %v3905_v7  ;;  %2636 = vmatmul.mubr.msk.f32.gmra.mxu1 %vm333_vm0, %v4025_v3 }
 0x141   : > { %2626 = vmatprep.mubr.msk.f32.mxu0 %vm333_vm0, %v3920_v38  ;;  %2638 = vmatprep.mubr.msk.f32.mxu1 %vm333_vm0, %v4040_v18 }
 0x144   : > { %2627 = vmatmul.mubr.msk.f32.gmra.mxu0 %vm333_vm0, %v3935_v37  ;;  %2639 = vmatmul.mubr.msk.f32.gmra.mxu1 %vm333_vm0, %v4055_v20 }
 0x145   : > { %2641 = vmatprep.mubr.msk.f32.mxu1 %vm333_vm0, %v4070_v56 }
 0x148   : > { %2642 = vmatmul.mubr.msk.f32.gmra.mxu1 %vm333_vm0, %v4081_v16 }
 0x149   : > { %2644 = vmatprep.mubr.msk.f32.mxu1 %vm333_vm0, %v4091_v26 }
 0x14c   : > { %2645 = vmatmul.mubr.msk.f32.gmra.mxu1 %vm333_vm0, %v4100_v11 }
 0x14d   : > { %2647 = vmatprep.mubr.msk.f32.mxu1 %vm333_vm0, %v707_v6 }
 0x150   : > { %2648 = vmatmul.mubr.msk.f32.gmra.mxu1 %vm333_vm0, %v708_v19 }
 0x151   : > { %2650 = vmatprep.mubr.msk.f32.mxu1 %vm333_vm0, %v709_v34 }
 0x154   : > { %2651 = vmatmul.mubr.msk.f32.gmra.mxu1 %vm333_vm0, %v710_v49 }
 0x168   : > { %v1585_v61 = vpop.f32.mrf.mxu0 }
 0x16a   : > { %v1587_v12 = vpop.f32.mrf.mxu0 }
 0x16c   : > { %v1590_v24 = vpop.f32.mrf.mxu0 }
 0x16e   : > { %v1592_v40 = vpop.f32.mrf.mxu0 }
 0x170   : > { %v1595_v55 = vpop.f32.mrf.mxu0 }
 0x172   : > { %v1597_v7 = vpop.f32.mrf.mxu0 }
 0x174   : > { %v1600_v38 = vpop.f32.mrf.mxu0 }
 0x176   : > { %v1602_v37 = vpop.f32.mrf.mxu0 }
 0x178   : > { %v1605_v53 = vpop.f32.mrf.mxu0  ;;  %v1810_v4 = vpop.f32.mrf.mxu1 }
 0x179   : > { %v4176_v17 = vadd.f32 %v1810_v4, %v1585_v61 }
 0x17a   : > { %v1607_v35 = vpop.f32.mrf.mxu0  ;;  %v1812_v52 = vpop.f32.mrf.mxu1 }
 0x17c   : > { %v1610_v3 = vpop.f32.mrf.mxu0  ;;  %v1815_v18 = vpop.f32.mrf.mxu1 }
 0x17d   : > { %v4178_v20 = vadd.f32 %v1815_v18, %v1590_v24 }
 0x17e   : > { %v1612_v56 = vpop.f32.mrf.mxu0  ;;  %v1817_v16 = vpop.f32.mrf.mxu1 }
 0x180   : > { %v1615_v26 = vpop.f32.mrf.mxu0  ;;  %v1820_v9 = vpop.f32.mrf.mxu1 }
 0x181   : > { %v4180_v11 = vadd.f32 %v1820_v9, %v1595_v55 }
 0x182   : > { %v1617_v47 = vpop.f32.mrf.mxu0  ;;  %v1822_v13 = vpop.f32.mrf.mxu1 }
 0x184   : > { %v1620_v1 = vpop.f32.mrf.mxu0  ;;  %v1825_v0 = vpop.f32.mrf.mxu1 }
 0x185   : > { %v4182_v32 = vadd.f32 %v1825_v0, %v1600_v38 }
 0x186   : > { %v1622_v14 = vpop.f32.mrf.mxu0  ;;  %v1827_v15 = vpop.f32.mrf.mxu1 }
 0x188   : > { %v1625_v21 = vpop.f32.mrf.mxu0  ;;  %v1830_v22 = vpop.f32.mrf.mxu1 }
 0x189   : > { %v4184_v23 = vadd.f32 %v1830_v22, %v1605_v53 }
 0x18a   : > { %v1627_v10 = vpop.f32.mrf.mxu0  ;;  %v1832_v27 = vpop.f32.mrf.mxu1 }
 0x18c   : > { %v1630_v62 = vpop.f32.mrf.mxu0  ;;  %v1835_v25 = vpop.f32.mrf.mxu1 }
 0x18d   : > { %v4186_v30 = vadd.f32 %v1835_v25, %v1610_v3 }
 0x18e   : > { %v1632_v43 = vpop.f32.mrf.mxu0  ;;  %v1837_v31 = vpop.f32.mrf.mxu1 }
 0x190   : > { %v1635_v33 = vpop.f32.mrf.mxu0  ;;  %v1840_v36 = vpop.f32.mrf.mxu1 }
 0x191   : > { %v4188_v39 = vadd.f32 %v1840_v36, %v1615_v26 }
 0x192   : > { %v1637_v41 = vpop.f32.mrf.mxu0  ;;  %v1842_v42 = vpop.f32.mrf.mxu1 }
 0x194   : > { %v1640_v45 = vpop.f32.mrf.mxu0  ;;  %v1845_v48 = vpop.f32.mrf.mxu1 }
 0x195   : > { %v4190_v50 = vadd.f32 %v1845_v48, %v1620_v1 }
 0x196   : > { %v1642_v51 = vpop.f32.mrf.mxu0  ;;  %v1847_v28 = vpop.f32.mrf.mxu1 }
 0x198   : > { %v1645_v54 = vpop.f32.mrf.mxu0  ;;  %v1850_v29 = vpop.f32.mrf.mxu1 }
 0x199   : > { %v4192_v58 = vadd.f32 %v1850_v29, %v1625_v21 }
 0x19a   : > { %v1647_v46 = vpop.f32.mrf.mxu0  ;;  %v1852_v59 = vpop.f32.mrf.mxu1 }
 0x19c   : > { %v1650_v60 = vpop.f32.mrf.mxu0  ;;  %v1855_v63 = vpop.f32.mrf.mxu1 }
 0x19d   : > { %v4194_v2 = vadd.f32 %v1855_v63, %v1630_v62 }
 0x19e   : > { %v1652_v5 = vpop.f32.mrf.mxu0  ;;  %v1857_v44 = vpop.f32.mrf.mxu1 }
 0x1a0   : > { %v1655_v8 = vpop.f32.mrf.mxu0  ;;  %v1860_v57 = vpop.f32.mrf.mxu1 }
 0x1a1   : > { %v4196_v6 = vadd.f32 %v1860_v57, %v1635_v33 }
 0x1a2   : > { %v1657_v19 = vpop.f32.mrf.mxu0  ;;  %v1862_v34 = vpop.f32.mrf.mxu1 }
 0x1a4   : > { %v1660_v49 = vpop.f32.mrf.mxu0  ;;  %v1865_v61 = vpop.f32.mrf.mxu1 }
 0x1a5   : > { %v4198_v12 = vadd.f32 %v1865_v61, %v1640_v45 }
 0x1a6   : > { %v1662_v24 = vpop.f32.mrf.mxu0  ;;  %v1867_v40 = vpop.f32.mrf.mxu1 }
 0x1a8   : > { %v1665_v55 = vpop.f32.mrf.mxu0  ;;  %v1870_v7 = vpop.f32.mrf.mxu1 }
 0x1a9   : > { %v4200_v38 = vadd.f32 %v1870_v7, %v1645_v54 }
 0x1aa   : > { %v1667_v37 = vpop.f32.mrf.mxu0  ;;  %v1872_v53 = vpop.f32.mrf.mxu1 }
 0x1ac   : > { %v4202_v4 = vpop.f32.mrf.mxu0  ;;  %v1875_v35 = vpop.f32.mrf.mxu1 }
 0x1ad   : > { %v4204_v52 = vadd.f32 %v1875_v35, %v1650_v60 }
 0x1ae   : > { %v1672_v3 = vpop.f32.mrf.mxu0  ;;  %v1877_v18 = vpop.f32.mrf.mxu1 }
 0x1b0   : > { %v4206_v56 = vpop.f32.mrf.mxu0  ;;  %v1880_v16 = vpop.f32.mrf.mxu1 }
 0x1b1   : > { %v4208_v26 = vadd.f32 %v1880_v16, %v1655_v8 }
 0x1b2   : > { %v1677_v9 = vpop.f32.mrf.mxu0  ;;  %v1882_v47 = vpop.f32.mrf.mxu1 }
 0x1b4   : > { %v4210_v13 = vpop.f32.mrf.mxu0  ;;  %v1885_v1 = vpop.f32.mrf.mxu1 }
 0x1b5   : > { %v4212_v0 = vadd.f32 %v1885_v1, %v1660_v49 }
 0x1b6   : > { %v1682_v14 = vpop.f32.mrf.mxu0  ;;  %v1887_v15 = vpop.f32.mrf.mxu1 }
 0x1b8   : > { %v4214_v21 = vpop.f32.mrf.mxu0  ;;  %v1890_v22 = vpop.f32.mrf.mxu1 }
 0x1b9   : > { %v4216_v10 = vadd.f32 %v1890_v22, %v1665_v55 }
 0x1ba   : > { %v1687_v27 = vpop.f32.mrf.mxu0  ;;  %v1892_v62 = vpop.f32.mrf.mxu1 }
 0x1bc   : > { %v4218_v25 = vpop.f32.mrf.mxu0  ;;  %v4220_v43 = vpop.f32.mrf.mxu1 }
 0x1be   : > { %v1692_v31 = vpop.f32.mrf.mxu0  ;;  %v1897_v33 = vpop.f32.mrf.mxu1 }
 0x1c0   : > { %v4222_v36 = vpop.f32.mrf.mxu0  ;;  %v4224_v41 = vpop.f32.mrf.mxu1 }
 0x1c2   : > { %v1697_v42 = vpop.f32.mrf.mxu0  ;;  %v1902_v45 = vpop.f32.mrf.mxu1 }
 0x1c4   : > { %v4226_v48 = vpop.f32.mrf.mxu0  ;;  %v4228_v51 = vpop.f32.mrf.mxu1 }
 0x1c6   : > { %v1702_v28 = vpop.f32.mrf.mxu0  ;;  %v1907_v54 = vpop.f32.mrf.mxu1 }
 0x1c8   : > { %v4230_v29 = vpop.f32.mrf.mxu0  ;;  %v4232_v46 = vpop.f32.mrf.mxu1 }
 0x1ca   : > { %v1707_v59 = vpop.f32.mrf.mxu0  ;;  %v1912_v60 = vpop.f32.mrf.mxu1 }
 0x1cc   : > { %v4234_v63 = vpop.f32.mrf.mxu0  ;;  %v4236_v5 = vpop.f32.mrf.mxu1 }
 0x1ce   : > { %v1712_v44 = vpop.f32.mrf.mxu0  ;;  %v1917_v8 = vpop.f32.mrf.mxu1 }
 0x1d0   : > { %v4238_v57 = vpop.f32.mrf.mxu0  ;;  %v4240_v19 = vpop.f32.mrf.mxu1 }
 0x1d2   : > { %v1717_v34 = vpop.f32.mrf.mxu0  ;;  %v1922_v49 = vpop.f32.mrf.mxu1 }
 0x1d4   : > { %v4242_v61 = vpop.f32.mrf.mxu0  ;;  %v4244_v24 = vpop.f32.mrf.mxu1 }
 0x1d6   : > { %v1722_v40 = vpop.f32.mrf.mxu0  ;;  %v1927_v55 = vpop.f32.mrf.mxu1 }
 0x1d8   : > { %v4246_v7 = vpop.f32.mrf.mxu0  ;;  %v4248_v37 = vpop.f32.mrf.mxu1 }
 0x1da   : > { %v1727_v53 = vpop.f32.mrf.mxu0  ;;  %v1932_v35 = vpop.f32.mrf.mxu1 }
 0x1dc   : > { %v4250_v3 = vpop.f32.mrf.mxu0  ;;  %v4252_v18 = vpop.f32.mrf.mxu1 }
 0x1de   : > { %v1732_v16 = vpop.f32.mrf.mxu0  ;;  %v1937_v9 = vpop.f32.mrf.mxu1 }
 0x1e0   : > { %v4254_v47 = vpop.f32.mrf.mxu0  ;;  %v4256_v1 = vpop.f32.mrf.mxu1 }
 0x1e2   : > { %v1737_v14 = vpop.f32.mrf.mxu0  ;;  %v1942_v15 = vpop.f32.mrf.mxu1 }
 0x1e4   : > { %v4258_v22 = vpop.f32.mrf.mxu0  ;;  %v4260_v27 = vpop.f32.mrf.mxu1 }
 0x1e6   : > { %v1742_v62 = vpop.f32.mrf.mxu0  ;;  %v1947_v31 = vpop.f32.mrf.mxu1 }
 0x1e8   : > { %v4262_v33 = vpop.f32.mrf.mxu1  ;;  %v2607_v42 = vpop.f32.mrf.mxu0 }
 0x1e9   : > { %v2041_v45 = vadd.f32 %v2607_v42, %v4178_v20 }
 0x1ea   : > { %v1952_v28 = vpop.f32.mrf.mxu1  ;;  %v2035_v54 = vpop.f32.mrf.mxu0 }
 0x1eb   : > { %2195 = vst.msk [vmem:[%s4269_s17 + $0x8] sm:$0xff] %vm333_vm0, %v2041_v45  ;;  %v2298_v59 = vmul.f32 %v2041_v45, %v2041_v45  ;;  %v2036_v60 = vadd.f32 %v2035_v54, %v4176_v17  ;;  %v2227_v34 = vsel %vm333_vm0, %v2041_v45, 0.0 }
 0x1ec   : > { %v4275_v44 = vpop.f32.mrf.mxu1  ;;  %v2610_v8 = vpop.f32.mrf.mxu0 }
 0x1ed   : > { %2194 = vst.msk [vmem:[%s4269_s17] sm:$0xff] %vm333_vm0, %v2036_v60  ;;  %v2226_v49 = vsel %vm333_vm0, %v2036_v60, 0.0  ;;  %v2297_v40 = vmul.f32 %v2036_v60, %v2036_v60  ;;  %v2051_v55 = vadd.f32 %v2610_v8, %v4182_v32  ;;  %v2330_v16 = vsel %vm333_vm0, %v2298_v59, 0.0 }
 0x1ee   : > { %v2228_v20 = vadd.f32 %v2227_v34, %v2226_v49  ;;  %v1957_v53 = vpop.f32.mrf.mxu1  ;;  %v2045_v35 = vpop.f32.mrf.mxu0 }
 0x1ef   : > { %v2329_v17 = vsel %vm333_vm0, %v2297_v40, 0.0  ;;  %v2046_v9 = vadd.f32 %v2045_v35, %v4180_v11  ;;  %2197 = vst.msk [vmem:[%s4269_s17 + $0x18] sm:$0xff] %vm333_vm0, %v2051_v55  ;;  %v2300_v31 = vmul.f32 %v2051_v55, %v2051_v55  ;;  %v2231_v11 = vsel %vm333_vm0, %v2051_v55, 0.0 }
 0x1f0   : > { %v2331_v14 = vadd.f32 %v2330_v16, %v2329_v17  ;;  %v4287_v15 = vpop.f32.mrf.mxu1  ;;  %v2613_v62 = vpop.f32.mrf.mxu0 }
 0x1f1   : > { %2196 = vst.msk [vmem:[%s4269_s17 + $0x10] sm:$0xff] %vm333_vm0, %v2046_v9  ;;  %v2229_v32 = vsel %vm333_vm0, %v2046_v9, 0.0  ;;  %v2299_v42 = vmul.f32 %v2046_v9, %v2046_v9  ;;  %v2061_v45 = vadd.f32 %v2613_v62, %v4186_v30  ;;  %v2334_v30 = vsel %vm333_vm0, %v2300_v31, 0.0 }
 0x1f2   : > { %v2230_v28 = vadd.f32 %v2229_v32, %v2228_v20  ;;  %v1962_v54 = vpop.f32.mrf.mxu1  ;;  %v2055_v59 = vpop.f32.mrf.mxu0  ;;  %v1896_v62 = vadd.f32 %v4220_v43, %v4202_v4 }
 0x1f3   : > { %v2332_v60 = vsel %vm333_vm0, %v2299_v42, 0.0  ;;  %2199 = vst.msk [vmem:[%s4269_s17 + $0x28] sm:$0xff] %vm333_vm0, %v2061_v45  ;;  %v2056_v8 = vadd.f32 %v2055_v59, %v4184_v23  ;;  %v2302_v49 = vmul.f32 %v2061_v45, %v2061_v45  ;;  %v2235_v32 = vsel %vm333_vm0, %v2061_v45, 0.0 }
 0x1f4   : > { %v2333_v34 = vadd.f32 %v2332_v60, %v2331_v14  ;;  %v2232_v40 = vadd.f32 %v2231_v11, %v2230_v28  ;;  %v4298_v53 = vpop.f32.mrf.mxu1  ;;  %v2616_v35 = vpop.f32.mrf.mxu0 }
 0x1f5   : > { %2198 = vst.msk [vmem:[%s4269_s17 + $0x20] sm:$0xff] %vm333_vm0, %v2056_v8  ;;  %v2233_v20 = vsel %vm333_vm0, %v2056_v8, 0.0  ;;  %v2301_v55 = vmul.f32 %v2056_v8, %v2056_v8  ;;  %v2071_v9 = vadd.f32 %v2616_v35, %v4190_v50  ;;  %v2338_v28 = vsel %vm333_vm0, %v2302_v49, 0.0 }
 0x1f6   : > { %v2234_v16 = vadd.f32 %v2233_v20, %v2232_v40  ;;  %v2335_v17 = vadd.f32 %v2334_v30, %v2333_v34  ;;  %v1967_v23 = vpop.f32.mrf.mxu1  ;;  %v2065_v14 = vpop.f32.mrf.mxu0  ;;  %v1906_v35 = vadd.f32 %v4228_v51, %v4210_v13 }
 0x1f7   : > { %v2336_v42 = vsel %vm333_vm0, %v2301_v55, 0.0  ;;  %v2066_v31 = vadd.f32 %v2065_v14, %v4188_v39  ;;  %2201 = vst.msk [vmem:[%s4269_s17 + $0x38] sm:$0xff] %vm333_vm0, %v2071_v9  ;;  %v2304_v59 = vmul.f32 %v2071_v9, %v2071_v9  ;;  %v2239_v30 = vsel %vm333_vm0, %v2071_v9, 0.0 }
 0x1f8   : > { %v2337_v54 = vadd.f32 %v2336_v42, %v2335_v17  ;;  %v2236_v11 = vadd.f32 %v2235_v32, %v2234_v16  ;;  %v2619_v50 = vpop.f32.mrf.mxu0  ;;  %v2631_v60 = vpop.f32.mrf.mxu1 }
 0x1f9   : > { %2200 = vst.msk [vmem:[%s4269_s17 + $0x30] sm:$0xff] %vm333_vm0, %v2066_v31  ;;  %v2237_v4 = vsel %vm333_vm0, %v2066_v31, 0.0  ;;  %v2303_v43 = vmul.f32 %v2066_v31, %v2066_v31  ;;  %v2081_v45 = vadd.f32 %v2619_v50, %v4194_v2  ;;  %v4317_v8 = vadd.f32 %v2631_v60, %v1896_v62 }
 0x1fa   : > { %v2238_v39 = vadd.f32 %v2237_v4, %v2236_v11  ;;  %v2339_v34 = vadd.f32 %v2338_v28, %v2337_v54  ;;  %v2075_v49 = vpop.f32.mrf.mxu0  ;;  %v2115_v40 = vpop.f32.mrf.mxu1  ;;  %v2342_v13 = vsel %vm333_vm0, %v2304_v59, 0.0  ;;  %v1916_v60 = vadd.f32 %v4236_v5, %v4218_v25 }
 0x1fb   : > { %v2340_v20 = vsel %vm333_vm0, %v2303_v43, 0.0  ;;  %2203 = vst.msk [vmem:[%s4269_s17 + $0x48] sm:$0xff] %vm333_vm0, %v2081_v45  ;;  %2211 = vst.msk [vmem:[%s4269_s17 + $0x88] sm:$0xff] %vm333_vm0, %v4317_v8  ;;  %v2076_v55 = vadd.f32 %v2075_v49, %v4192_v58  ;;  %v4331_v51 = vadd.f32 %v2115_v40, %v4216_v10  ;;  %v2306_v62 = vmul.f32 %v2081_v45, %v2081_v45 }
 0x1fc   : > { %v2341_v2 = vadd.f32 %v2340_v20, %v2339_v34  ;;  %v2240_v16 = vadd.f32 %v2239_v30, %v2238_v39  ;;  %v2622_v17 = vpop.f32.mrf.mxu0  ;;  %v2634_v23 = vpop.f32.mrf.mxu1  ;;  %v2243_v10 = vsel %vm333_vm0, %v2081_v45, 0.0 }
 0x1fd   : > { %v2091_v9 = vadd.f32 %v2622_v17, %v4198_v12  ;;  %v4334_v14 = vadd.f32 %v2634_v23, %v1906_v35  ;;  %2202 = vst.msk [vmem:[%s4269_s17 + $0x40] sm:$0xff] %vm333_vm0, %v2076_v55  ;;  %v2241_v58 = vsel %vm333_vm0, %v2076_v55, 0.0  ;;  %v2305_v32 = vmul.f32 %v2076_v55, %v2076_v55  ;;  %2210 = vst.msk [vmem:[%s4269_s17 + $0x80] sm:$0xff] %vm333_vm0, %v4331_v51 }
 0x1fe   : > { %v2343_v42 = vadd.f32 %v2342_v13, %v2341_v2  ;;  %v2085_v31 = vpop.f32.mrf.mxu0  ;;  %v2125_v28 = vpop.f32.mrf.mxu1  ;;  %v2242_v54 = vadd.f32 %v2241_v58, %v2240_v16  ;;  %v1901_v12 = vadd.f32 %v4224_v41, %v4206_v56  ;;  %v2346_v34 = vsel %vm333_vm0, %v2306_v62, 0.0 }
 0x1ff   : > { %2205 = vst.msk [vmem:[%s4269_s17 + $0x58] sm:$0xff] %vm333_vm0, %v2091_v9  ;;  %2213 = vst.msk [vmem:[%s4269_s17 + $0x98] sm:$0xff] %vm333_vm0, %v4334_v14  ;;  %v2344_v59 = vsel %vm333_vm0, %v2305_v32, 0.0  ;;  %v2086_v43 = vadd.f32 %v2085_v31, %v4196_v6  ;;  %v2308_v49 = vmul.f32 %v2091_v9, %v2091_v9  ;;  %v1911_v2 = vadd.f32 %v4232_v46, %v4214_v21 }
 0x200   : > { %v2625_v11 = vpop.f32.mrf.mxu0  ;;  %v2637_v50 = vpop.f32.mrf.mxu1  ;;  %v2345_v4 = vadd.f32 %v2344_v59, %v2343_v42  ;;  %v2244_v39 = vadd.f32 %v2243_v10, %v2242_v54  ;;  %v4355_v40 = vadd.f32 %v2125_v28, %v1901_v12  ;;  %v2247_v55 = vsel %vm333_vm0, %v2091_v9, 0.0 }
 0x201   : > { %v2101_v56 = vadd.f32 %v2625_v11, %v4204_v52  ;;  %2204 = vst.msk [vmem:[%s4269_s17 + $0x50] sm:$0xff] %vm333_vm0, %v2086_v43  ;;  %v2245_v25 = vsel %vm333_vm0, %v2086_v43, 0.0  ;;  %v2307_v5 = vmul.f32 %v2086_v43, %v2086_v43  ;;  %v4361_v30 = vadd.f32 %v2637_v50, %v1916_v60 }
 0x202   : > { %v2095_v41 = vpop.f32.mrf.mxu0  ;;  %v2135_v45 = vpop.f32.mrf.mxu1  ;;  %v2347_v35 = vadd.f32 %v2346_v34, %v2345_v4  ;;  %v2246_v6 = vadd.f32 %v2245_v25, %v2244_v39  ;;  %2212 = vst.msk [vmem:[%s4269_s17 + $0x90] sm:$0xff] %vm333_vm0, %v4355_v40  ;;  %v1926_v17 = vadd.f32 %v4244_v24, %v4226_v48  ;;  %v2350_v32 = vsel %vm333_vm0, %v2308_v49, 0.0 }
 0x203   : > { %2207 = vst.msk [vmem:[%s4269_s17 + $0x68] sm:$0xff] %vm333_vm0, %v2101_v56  ;;  %v2348_v16 = vsel %vm333_vm0, %v2307_v5, 0.0  ;;  %2215 = vst.msk [vmem:[%s4269_s17 + $0xa8] sm:$0xff] %vm333_vm0, %v4361_v30  ;;  %v2096_v13 = vadd.f32 %v2095_v41, %v4200_v38  ;;  %v2310_v21 = vmul.f32 %v2101_v56, %v2101_v56  ;;  %v4379_v46 = vadd.f32 %v2135_v45, %v1911_v2 }
 0x204   : > { %v2628_v20 = vpop.f32.mrf.mxu0  ;;  %v2640_v52 = vpop.f32.mrf.mxu1  ;;  %v2349_v23 = vadd.f32 %v2348_v16, %v2347_v35  ;;  %v2248_v62 = vadd.f32 %v2247_v55, %v2246_v6  ;;  %v1936_v12 = vadd.f32 %v4252_v18, %v4234_v63  ;;  %v2251_v10 = vsel %vm333_vm0, %v2101_v56, 0.0 }
 0x205   : > { %v2111_v9 = vadd.f32 %v2628_v20, %v4212_v0  ;;  %2206 = vst.msk [vmem:[%s4269_s17 + $0x60] sm:$0xff] %vm333_vm0, %v2096_v13  ;;  %v2249_v42 = vsel %vm333_vm0, %v2096_v13, 0.0  ;;  %v2309_v48 = vmul.f32 %v2096_v13, %v2096_v13  ;;  %v4385_v31 = vadd.f32 %v2640_v52, %v1926_v17  ;;  %2214 = vst.msk [vmem:[%s4269_s17 + $0xa0] sm:$0xff] %vm333_vm0, %v4379_v46 }
 0x206   : > { %v2145_v58 = vpop.f32.mrf.mxu1  ;;  %v2351_v24 = vadd.f32 %v2350_v32, %v2349_v23  ;;  %v2105_v38 = vpop.f32.mrf.mxu0  ;;  %v2250_v54 = vadd.f32 %v2249_v42, %v2248_v62  ;;  %v1921_v0 = vadd.f32 %v4240_v19, %v4222_v36  ;;  %v1931_v50 = vadd.f32 %v4248_v37, %v4230_v29 }
 0x207   : > { %2209 = vst.msk [vmem:[%s4269_s17 + $0x78] sm:$0xff] %vm333_vm0, %v2111_v9  ;;  %v2352_v59 = vsel %vm333_vm0, %v2309_v48, 0.0  ;;  %2217 = vst.msk [vmem:[%s4269_s17 + $0xb8] sm:$0xff] %vm333_vm0, %v4385_v31  ;;  %v2106_v4 = vadd.f32 %v2105_v38, %v4208_v26  ;;  %v2354_v19 = vsel %vm333_vm0, %v2310_v21, 0.0  ;;  %v2312_v63 = vmul.f32 %v2111_v9, %v2111_v9 }
 0x208   : > { %v2643_v28 = vpop.f32.mrf.mxu1  ;;  %v2353_v60 = vadd.f32 %v2352_v59, %v2351_v24  ;;  %v2252_v36 = vadd.f32 %v2251_v10, %v2250_v54  ;;  %v4405_v18 = vadd.f32 %v2145_v58, %v1921_v0  ;;  %v1941_v26 = vadd.f32 %v4256_v1, %v4238_v57 }
 0x209   : > { %v4407_v43 = vadd.f32 %v2643_v28, %v1936_v12  ;;  %2208 = vst.msk [vmem:[%s4269_s17 + $0x70] sm:$0xff] %vm333_vm0, %v2106_v4  ;;  %v2253_v34 = vsel %vm333_vm0, %v2106_v4, 0.0  ;;  %v2311_v29 = vmul.f32 %v2106_v4, %v2106_v4  ;;  %v1946_v56 = vadd.f32 %v4260_v27, %v4242_v61 }
 0x20a   : > { %v2155_v11 = vpop.f32.mrf.mxu1  ;;  %v2355_v37 = vadd.f32 %v2354_v19, %v2353_v60  ;;  %v2254_v41 = vadd.f32 %v2253_v34, %v2252_v36  ;;  %2216 = vst.msk [vmem:[%s4269_s17 + $0xb0] sm:$0xff] %vm333_vm0, %v4405_v18  ;;  %v1956_v25 = vadd.f32 %v4275_v44, %v4250_v3  ;;  %v2313_v5 = vmul.f32 %v4331_v51, %v4331_v51 }
 0x20b   : > { %v4412_v49 = vadd.f32 %v2155_v11, %v1931_v50  ;;  %2219 = vst.msk [vmem:[%s4269_s17 + $0xc8] sm:$0xff] %vm333_vm0, %v4407_v43  ;;  %v2255_v57 = vsel %vm333_vm0, %v2111_v9, 0.0  ;;  %v2356_v1 = vsel %vm333_vm0, %v2311_v29, 0.0  ;;  %v2314_v61 = vmul.f32 %v4317_v8, %v4317_v8 }
 0x20c   : > { %v2646_v39 = vpop.f32.mrf.mxu1  ;;  %v2256_v27 = vadd.f32 %v2255_v57, %v2254_v41  ;;  %v2357_v35 = vadd.f32 %v2356_v1, %v2355_v37  ;;  %v2257_v44 = vsel %vm333_vm0, %v4331_v51, 0.0  ;;  %v2358_v20 = vsel %vm333_vm0, %v2312_v63, 0.0 }
 0x20d   : > { %2218 = vst.msk [vmem:[%s4269_s17 + $0xc0] sm:$0xff] %vm333_vm0, %v4412_v49  ;;  %v4435_v6 = vadd.f32 %v2646_v39, %v1946_v56  ;;  %v1951_v55 = vadd.f32 %v4262_v33, %v4246_v7  ;;  %v1966_v13 = vadd.f32 %v4298_v53, %v4258_v22  ;;  %v2259_v51 = vsel %vm333_vm0, %v4317_v8, 0.0 }
 0x20e   : > { %v2165_v45 = vpop.f32.mrf.mxu1  ;;  %v2258_v16 = vadd.f32 %v2257_v44, %v2256_v27  ;;  %v2359_v17 = vadd.f32 %v2358_v20, %v2357_v35  ;;  %v2360_v62 = vsel %vm333_vm0, %v2313_v5, 0.0  ;;  %v2315_v58 = vmul.f32 %v4355_v40, %v4355_v40 }
 0x20f   : > { %v4440_v52 = vadd.f32 %v2165_v45, %v1941_v26  ;;  %2221 = vst.msk [vmem:[%s4269_s17 + $0xd8] sm:$0xff] %vm333_vm0, %v4435_v6  ;;  %v1961_v7 = vadd.f32 %v4287_v15, %v4254_v47  ;;  %v2362_v32 = vsel %vm333_vm0, %v2314_v61, 0.0  ;;  %v2316_v21 = vmul.f32 %v4334_v14, %v4334_v14 }
 0x210   : > { %v2649_v3 = vpop.f32.mrf.mxu1  ;;  %v2260_v22 = vadd.f32 %v2259_v51, %v2258_v16  ;;  %v2361_v33 = vadd.f32 %v2360_v62, %v2359_v17  ;;  %v2261_v9 = vsel %vm333_vm0, %v4355_v40, 0.0  ;;  %v2263_v15 = vsel %vm333_vm0, %v4334_v14, 0.0 }
 0x211   : > { %v4442_v2 = vadd.f32 %v2649_v3, %v1956_v25  ;;  %2220 = vst.msk [vmem:[%s4269_s17 + $0xd0] sm:$0xff] %vm333_vm0, %v4440_v52  ;;  %v2364_v38 = vsel %vm333_vm0, %v2315_v58, 0.0  ;;  %v2317_v28 = vmul.f32 %v4379_v46, %v4379_v46  ;;  %v2366_v12 = vsel %vm333_vm0, %v2316_v21, 0.0 }
 0x212   : > { %v2175_v23 = vpop.f32.mrf.mxu1  ;;  %v2363_v48 = vadd.f32 %v2362_v32, %v2361_v33  ;;  %v2262_v24 = vadd.f32 %v2261_v9, %v2260_v22  ;;  %v2318_v10 = vmul.f32 %v4361_v30, %v4361_v30  ;;  %v2265_v59 = vsel %vm333_vm0, %v4379_v46, 0.0 }
 0x213   : > { %2223 = vst.msk [vmem:[%s4269_s17 + $0xe8] sm:$0xff] %vm333_vm0, %v4442_v2  ;;  %v2176_v53 = vadd.f32 %v2175_v23, %v1951_v55  ;;  %v2267_v50 = vsel %vm333_vm0, %v4361_v30, 0.0  ;;  %v2368_v60 = vsel %vm333_vm0, %v2317_v28, 0.0  ;;  %v2319_v4 = vmul.f32 %v4405_v18, %v4405_v18 }
 0x214   : > { %v2652_v8 = vpop.f32.mrf.mxu1  ;;  %v2264_v54 = vadd.f32 %v2263_v15, %v2262_v24  ;;  %v2365_v0 = vadd.f32 %v2364_v38, %v2363_v48  ;;  %v2370_v63 = vsel %vm333_vm0, %v2318_v10, 0.0  ;;  %v2320_v39 = vmul.f32 %v4385_v31, %v4385_v31 }
 0x215   : > { %v4469_v42 = vadd.f32 %v2652_v8, %v1966_v13  ;;  %2222 = vst.msk [vmem:[%s4269_s17 + $0xe0] sm:$0xff] %vm333_vm0, %v2176_v53  ;;  %v2269_v46 = vsel %vm333_vm0, %v4405_v18, 0.0  ;;  %v2271_v30 = vsel %vm333_vm0, %v4385_v31, 0.0  ;;  %v2372_v37 = vsel %vm333_vm0, %v2319_v4, 0.0 }
 0x216   : > { %v2185_v47 = vpop.f32.mrf.mxu1  ;;  %v2266_v14 = vadd.f32 %v2265_v59, %v2264_v54  ;;  %v2367_v11 = vadd.f32 %v2366_v12, %v2365_v0  ;;  %v2321_v26 = vmul.f32 %v4412_v49, %v4412_v49  ;;  %v2374_v45 = vsel %vm333_vm0, %v2320_v39, 0.0 }
 0x217   : > { %2225 = vst.msk [vmem:[%s4269_s17 + $0xf8] sm:$0xff] %vm333_vm0, %v4469_v42  ;;  %v2186_v40 = vadd.f32 %v2185_v47, %v1961_v7  ;;  %v2322_v25 = vmul.f32 %v4407_v43, %v4407_v43  ;;  %v2273_v18 = vsel %vm333_vm0, %v4412_v49, 0.0  ;;  %v2275_v31 = vsel %vm333_vm0, %v4407_v43, 0.0 }
 0x218   : > { %v2268_v36 = vadd.f32 %v2267_v50, %v2266_v14  ;;  %v2369_v19 = vadd.f32 %v2368_v60, %v2367_v11  ;;  %v2376_v1 = vsel %vm333_vm0, %v2321_v26, 0.0  ;;  %v2323_v61 = vmul.f32 %v4440_v52, %v4440_v52 }
 0x219   : > { %2224 = vst.msk [vmem:[%s4269_s17 + $0xf0] sm:$0xff] %vm333_vm0, %v2186_v40  ;;  %v2378_v3 = vsel %vm333_vm0, %v2322_v25, 0.0  ;;  %v2324_v44 = vmul.f32 %v4435_v6, %v4435_v6  ;;  %v2277_v49 = vsel %vm333_vm0, %v4440_v52, 0.0  ;;  %v2279_v43 = vsel %vm333_vm0, %v4435_v6, 0.0 }
 0x21a   : > { %v2270_v34 = vadd.f32 %v2269_v46, %v2268_v36  ;;  %v2371_v29 = vadd.f32 %v2370_v63, %v2369_v19  ;;  %v2380_v16 = vsel %vm333_vm0, %v2323_v61, 0.0  ;;  %v2325_v17 = vmul.f32 %v2176_v53, %v2176_v53 }
 0x21b   : > { %v2382_v51 = vsel %vm333_vm0, %v2324_v44, 0.0  ;;  %v2326_v62 = vmul.f32 %v4442_v2, %v4442_v2  ;;  %v2281_v58 = vsel %vm333_vm0, %v2176_v53, 0.0  ;;  %v2283_v52 = vsel %vm333_vm0, %v4442_v2, 0.0 }
 0x21c   : > { %v2373_v56 = vadd.f32 %v2372_v37, %v2371_v29  ;;  %v2272_v41 = vadd.f32 %v2271_v30, %v2270_v34  ;;  %v2384_v33 = vsel %vm333_vm0, %v2325_v17, 0.0  ;;  %v2327_v6 = vmul.f32 %v2186_v40, %v2186_v40 }
 0x21d   : > { %v2386_v21 = vsel %vm333_vm0, %v2326_v62, 0.0  ;;  %v2328_v9 = vmul.f32 %v4469_v42, %v4469_v42  ;;  %v2285_v48 = vsel %vm333_vm0, %v2186_v40, 0.0  ;;  %v2287_v53 = vsel %vm333_vm0, %v4469_v42, 0.0 }
 0x21e   : > { %v2274_v5 = vadd.f32 %v2273_v18, %v2272_v41  ;;  %v2375_v57 = vadd.f32 %v2374_v45, %v2373_v56  ;;  %v2388_v2 = vsel %vm333_vm0, %v2327_v6, 0.0 }
 0x21f   : > { %v2390_v28 = vsel %vm333_vm0, %v2328_v9, 0.0 }
 0x220   : > { %v2377_v27 = vadd.f32 %v2376_v1, %v2375_v57  ;;  %v2276_v35 = vadd.f32 %v2275_v31, %v2274_v5 }
 0x222   : > { %v2278_v20 = vadd.f32 %v2277_v49, %v2276_v35  ;;  %v2379_v55 = vadd.f32 %v2378_v3, %v2377_v27 }
 0x224   : > { %v2381_v23 = vadd.f32 %v2380_v16, %v2379_v55  ;;  %v2280_v13 = vadd.f32 %v2279_v43, %v2278_v20 }
 0x226   : > { %v2282_v7 = vadd.f32 %v2281_v58, %v2280_v13  ;;  %v2383_v22 = vadd.f32 %v2382_v51, %v2381_v23 }
 0x228   : > { %v2385_v8 = vadd.f32 %v2384_v33, %v2383_v22  ;;  %v2284_v32 = vadd.f32 %v2283_v52, %v2282_v7 }
 0x22a   : > { %v2286_v24 = vadd.f32 %v2285_v48, %v2284_v32  ;;  %v2387_v47 = vadd.f32 %v2386_v21, %v2385_v8 }
 0x22c   : > { %v2288_v15 = vadd.f32 %v2287_v53, %v2286_v24  ;;  %v2389_v38 = vadd.f32 %v2388_v2, %v2387_v47 }
 0x22e   : > { %v2289_v54 = vrot.slane %v2288_v15, 4  ;;  %v2391_v0 = vadd.f32 %v2390_v28, %v2389_v38 }
 0x230   : > { %v2290_v12 = vadd.f32 %v2289_v54, %v2288_v15  ;;  %v2392_v10 = vrot.slane %v2391_v0, 4 }
 0x232   : > { %v2291_v59 = vrot.slane %v2290_v12, 2  ;;  %v2393_v14 = vadd.f32 %v2392_v10, %v2391_v0 }
 0x234   : > { %v2292_v40 = vadd.f32 %v2291_v59, %v2290_v12  ;;  %v2394_v11 = vrot.slane %v2393_v14, 2 }
 0x236   : > { %v2293_v50 = vrot.slane %v2292_v40, 1  ;;  %v2395_v60 = vadd.f32 %v2394_v11, %v2393_v14 }
 0x238   : > { %v2294_v42 = vadd.f32 %v2293_v50, %v2292_v40  ;;  %v2396_v4 = vrot.slane %v2395_v60, 1 }
 0x23a   : > { %2296 = vst.msk [vmem:[%s265_s19] sm:$0x1] %vm2295_vm2, %v2294_v42  ;;  %v2397_v36 = vadd.f32 %v2396_v4, %v2395_v60 }
 0x23c   : > { %2398 = vst.msk [vmem:[%s268_s22] sm:$0x1] %vm2295_vm2, %v2397_v36 }
 0x23d PF: > { %s17_s21 = sadd.s32 1, %s3005_s21  }
 0x23e   : > { %p14_p4 = scmp.ge.s32.totalorder %s17_s21, 4  }
 0x240   :  { %16 = sbr.rel (!%p14_p4) target bundleno = 1 (0x1), region = 92 }

// kernel: dncnn_forward.7
= control target key start
LH: loop header
LB: loop body
LE: loop exit
PB: predicated region body
PF: predicated region fallthrough
CT: control target
= control target key end

     0   :  { %s2821_s15 = smov 0   ;;  %s4088_s0 = inlined_call_operand.vmem [shape: f32[2,16,16,64], index: 0, kind: input, shape index: {}]   ;;  %s4089_s1 = inlined_call_operand.vmem [shape: f32[576,4], index: 1, kind: input, shape index: {}]   ;;  %s4090_s2 = inlined_call_operand.vmem [shape: f32[1,64], index: 2, kind: input, shape index: {}]   ;;  %s4091_s3 = inlined_call_operand.vmem [shape: f32[1,64], index: 3, kind: input, shape index: {}]   ;;  %s4092_s4 = inlined_call_operand.vmem [shape: f32[2,16,16,4], index: 4, kind: output, shape index: {}]  }
   0x1 LB: > { %s2289_s16 = sadd.s32 4294967295, %s2792_s15   ;;  %p2293_p0 = scmp.ge.s32.totalorder %s2792_s15, 1  ;;  %s2792_s15 = sphi %s2821_s15, %s14_s15  }
   0x2   : > { %p162_p1 = scmp.lt.s32.totalorder %s2792_s15, 3 }
   0x4   : > { %p163_p2 = pnand %p2293_p0, %p162_p1 }
   0x5   : > { %p188_p3 = scmp.lt.s32.totalorder (!%p163_p2), %s2289_s16, 1  ;;  %s2795_s19 = smov (!%p163_p2), 64  }
   0x6   : > { %166 = sbr.rel (%p163_p2) target bundleno = 526 (0x20e), region = 36 }
   0xb   : > { %vm340_vm0 = vcmask 523264   ;;  %vm343_vm1 = vcmask 517120   ;;  %v1373_v0 = vld [vmem:[%s4089_s1 + $0x78] sm:$0xff]  ;;  %s4094_s16 = smov (!%p188_p3, %s2289_s16), 1  ;;  %v2794_v2 = vmov 0.0   ;;  %v1372_v3 = vld [vmem:[%s4089_s1 + $0x70] sm:$0xff] }
   0xc   : > { %v1405_v1 = vld [vmem:[%s4089_s1 + $0x178] sm:$0xff]  ;;  %345 = vst.msk [vmem:[#allocation2 + $0x18] sm:$0xff] %vm340_vm0, %v2794_v2  ;;  %346 = vst.msk [vmem:[#allocation2 + $0x20] sm:$0xff] %vm340_vm0, %v2794_v2  ;;  %1526 = vmatprep.subr.mxu0 %v2794_v2  ;;  %1751 = vmatprep.subr.mxu1 %v2794_v2  ;;  %v1404_v4 = vld [vmem:[%s4089_s1 + $0x170] sm:$0xff]  ;;  %s2334_s25 = sshll.u32 %s4094_s16, 8  ;;  %vm2201_vm2 = vcmask 31744  }
   0xd   : > { %348 = vst.msk [vmem:[#allocation2 + $0x30] sm:$0xff] %vm340_vm0, %v2794_v2  ;;  %349 = vst.msk [vmem:[#allocation2 + $0x38] sm:$0xff] %vm340_vm0, %v2794_v2  ;;  %1527 = vmatpush1.msra.mxu0 %v1373_v0  ;;  %1752 = vmatpush1.msra.mxu1 %v1405_v1  ;;  %v2957_v5 = vld [vmem:[%s4090_s2] ss:$0 sm:$0xff]  ;;  %v1371_v6 = vld [vmem:[%s4089_s1 + $0x68] sm:$0xff]  ;;  %s2972_s8 = scalar_lea.vmem %s4088_s0, %s2334_s25  ;;  %s3976_s14 = scalar_lea.vmem %s4092_s4, %s2334_s25 }
   0xe   : > { %341 = vst.msk [vmem:[#allocation2] sm:$0xff] %vm340_vm0, %v2794_v2  ;;  %342 = vst.msk [vmem:[#allocation2 + $0x8] sm:$0xff] %vm340_vm0, %v2794_v2  ;;  %1528 = vmatprep.subr.mxu0 %v2794_v2  ;;  %1753 = vmatprep.subr.mxu1 %v2794_v2  ;;  %v1403_v7 = vld [vmem:[%s4089_s1 + $0x168] sm:$0xff]  ;;  %v2977_v8 = vld [vmem:[%s4091_s3] ss:$0 sm:$0xff] }
   0xf   : > { %351 = vst.msk [vmem:[#allocation2 + $0x48] sm:$0xff] %vm340_vm0, %v2794_v2  ;;  %352 = vst.msk [vmem:[#allocation2 + $0x50] sm:$0xff] %vm340_vm0, %v2794_v2  ;;  %1529 = vmatpush1.msra.mxu0 %v1372_v3  ;;  %1754 = vmatpush1.msra.mxu1 %v1404_v4  ;;  %v1370_v9 = vld [vmem:[%s4089_s1 + $0x60] sm:$0xff]  ;;  %v200_v12 = vld [vmem:[%s2972_s8 + $0x10] sm:$0xff] }
  0x10   : > { %354 = vst.msk [vmem:[#allocation2 + $0x60] sm:$0xff] %vm340_vm0, %v2794_v2  ;;  %355 = vst.msk [vmem:[#allocation2 + $0x68] sm:$0xff] %vm340_vm0, %v2794_v2  ;;  %v1402_v10 = vld [vmem:[%s4089_s1 + $0x160] sm:$0xff]  ;;  %v199_v13 = vld [vmem:[%s2972_s8 + $0x8] sm:$0xff]  ;;  %1530 = vmatprep.subr.mxu0 %v2794_v2  ;;  %1755 = vmatprep.subr.mxu1 %v2794_v2  ;;  %v239_v15 = vmul.f32 %v2957_v5, %v200_v12 }
  0x11   : > { %357 = vst.msk [vmem:[#allocation2 + $0x78] sm:$0xff] %vm340_vm0, %v2794_v2  ;;  %358 = vst.msk [vmem:[#allocation2 + $0x80] sm:$0xff] %vm340_vm0, %v2794_v2  ;;  %v198_v11 = vld [vmem:[%s2972_s8] sm:$0xff]  ;;  %v201_v16 = vld [vmem:[%s2972_s8 + $0x18] sm:$0xff]  ;;  %v238_v17 = vmul.f32 %v2957_v5, %v199_v13  ;;  %1531 = vmatpush1.msra.mxu0 %v1371_v6  ;;  %1756 = vmatpush1.msra.mxu1 %v1403_v7 }
  0x12   : > { %360 = vst.msk [vmem:[#allocation2 + $0x90] sm:$0xff] %vm340_vm0, %v2794_v2  ;;  %361 = vst.msk [vmem:[#allocation2 + $0x98] sm:$0xff] %vm340_vm0, %v2794_v2  ;;  %v237_v14 = vmul.f32 %v2957_v5, %v198_v11  ;;  %v202_v18 = vld [vmem:[%s2972_s8 + $0x20] sm:$0xff]  ;;  %v203_v19 = vld [vmem:[%s2972_s8 + $0x28] sm:$0xff]  ;;  %v240_v20 = vmul.f32 %v2957_v5, %v201_v16  ;;  %1532 = vmatprep.subr.mxu0 %v2794_v2  ;;  %1757 = vmatprep.subr.mxu1 %v2794_v2 }
  0x13   : > { %363 = vst.msk [vmem:[#allocation2 + $0xa8] sm:$0xff] %vm340_vm0, %v2794_v2  ;;  %364 = vst.msk [vmem:[#allocation2 + $0xb0] sm:$0xff] %vm340_vm0, %v2794_v2  ;;  %v241_v21 = vmul.f32 %v2957_v5, %v202_v18  ;;  %v242_v22 = vmul.f32 %v2957_v5, %v203_v19  ;;  %v204_v23 = vld [vmem:[%s2972_s8 + $0x30] sm:$0xff]  ;;  %v205_v24 = vld [vmem:[%s2972_s8 + $0x38] sm:$0xff]  ;;  %v278_v27 = vadd.f32 %v2977_v8, %v239_v15  ;;  %1533 = vmatpush1.msra.mxu0 %v1370_v9 }
  0x14   : > { %366 = vst.msk [vmem:[#allocation2 + $0xc0] sm:$0xff] %vm340_vm0, %v2794_v2  ;;  %367 = vst.msk [vmem:[#allocation2 + $0xc8] sm:$0xff] %vm340_vm0, %v2794_v2  ;;  %v1369_v25 = vld [vmem:[%s4089_s1 + $0x58] sm:$0xff]  ;;  %v276_v26 = vadd.f32 %v2977_v8, %v237_v14  ;;  %v277_v28 = vadd.f32 %v2977_v8, %v238_v17  ;;  %v243_v29 = vmul.f32 %v2957_v5, %v204_v23  ;;  %v1368_v31 = vld [vmem:[%s4089_s1 + $0x50] sm:$0xff]  ;;  %1758 = vmatpush1.msra.mxu1 %v1402_v10 }
  0x15   : > { %369 = vst.msk [vmem:[#allocation2 + $0xd8] sm:$0xff] %vm340_vm0, %v2794_v2  ;;  %370 = vst.msk [vmem:[#allocation2 + $0xe0] sm:$0xff] %vm340_vm0, %v2794_v2  ;;  %v1401_v30 = vld [vmem:[%s4089_s1 + $0x158] sm:$0xff]  ;;  %v1400_v32 = vld [vmem:[%s4089_s1 + $0x150] sm:$0xff]  ;;  %v279_v33 = vadd.f32 %v2977_v8, %v240_v20  ;;  %v280_v34 = vadd.f32 %v2977_v8, %v241_v21  ;;  %v281_v35 = vadd.f32 %v2977_v8, %v242_v22  ;;  %v310_v41 = vmax.f32 %v278_v27, 0.0 }
  0x16   : > { %372 = vst.msk [vmem:[#allocation2 + $0xf0] sm:$0xff] %vm340_vm0, %v2794_v2  ;;  %373 = vst.msk [vmem:[#allocation2 + $0xf8] sm:$0xff] %vm340_vm0, %v2794_v2  ;;  %v244_v36 = vmul.f32 %v2957_v5, %v205_v24  ;;  %v206_v37 = vld [vmem:[%s2972_s8 + $0x40] sm:$0xff]  ;;  %v207_v38 = vld [vmem:[%s2972_s8 + $0x48] sm:$0xff]  ;;  %v308_v40 = vmax.f32 %v276_v26, 0.0  ;;  %v309_v42 = vmax.f32 %v277_v28, 0.0  ;;  %v282_v43 = vadd.f32 %v2977_v8, %v243_v29  ;;  %1534 = vmatprep.subr.mxu0 %v2794_v2 }
  0x17   : > { %375 = vst.msk [vmem:[#allocation2 + $0x108] sm:$0xff] %vm340_vm0, %v2794_v2  ;;  %376 = vst.msk [vmem:[#allocation2 + $0x110] sm:$0xff] %vm340_vm0, %v2794_v2  ;;  %v208_v39 = vld [vmem:[%s2972_s8 + $0x50] sm:$0xff]  ;;  %v209_v44 = vld [vmem:[%s2972_s8 + $0x58] sm:$0xff]  ;;  %1759 = vmatprep.subr.mxu1 %v2794_v2  ;;  %v311_v47 = vmax.f32 %v279_v33, 0.0  ;;  %v312_v48 = vmax.f32 %v280_v34, 0.0  ;;  %1535 = vmatpush1.msra.mxu0 %v1369_v25  ;;  %v245_v53 = vmul.f32 %v2957_v5, %v206_v37 }
  0x18   : > { %378 = vst.msk [vmem:[#allocation2 + $0x120] sm:$0xff] %vm340_vm0, %v2794_v2  ;;  %379 = vst.msk [vmem:[#allocation2 + $0x128] sm:$0xff] %vm340_vm0, %v2794_v2  ;;  %v210_v45 = vld [vmem:[%s2972_s8 + $0x60] sm:$0xff]  ;;  %v211_v46 = vld [vmem:[%s2972_s8 + $0x68] sm:$0xff]  ;;  %v313_v49 = vmax.f32 %v281_v35, 0.0  ;;  %v283_v50 = vadd.f32 %v2977_v8, %v244_v36  ;;  %1760 = vmatpush1.msra.mxu1 %v1401_v30  ;;  %v314_v52 = vmax.f32 %v282_v43, 0.0  ;;  %v246_v54 = vmul.f32 %v2957_v5, %v207_v38 }
  0x19   : > { %381 = vst.msk [vmem:[#allocation2 + $0x138] sm:$0xff] %vm340_vm0, %v2794_v2  ;;  %382 = vst.msk [vmem:[#allocation2 + $0x140] sm:$0xff] %vm340_vm0, %v2794_v2  ;;  %v212_v51 = vld [vmem:[%s2972_s8 + $0x70] sm:$0xff]  ;;  %v247_v55 = vmul.f32 %v2957_v5, %v208_v39  ;;  %v213_v56 = vld [vmem:[%s2972_s8 + $0x78] sm:$0xff]  ;;  %1536 = vmatprep.subr.mxu0 %v2794_v2  ;;  %1761 = vmatprep.subr.mxu1 %v2794_v2  ;;  %v248_v58 = vmul.f32 %v2957_v5, %v209_v44 }
  0x1a   : > { %384 = vst.msk [vmem:[#allocation2 + $0x150] sm:$0xff] %vm340_vm0, %v2794_v2  ;;  %385 = vst.msk [vmem:[#allocation2 + $0x158] sm:$0xff] %vm340_vm0, %v2794_v2  ;;  %v315_v57 = vmax.f32 %v283_v50, 0.0  ;;  %v249_v59 = vmul.f32 %v2957_v5, %v210_v45  ;;  %v250_v60 = vmul.f32 %v2957_v5, %v211_v46  ;;  %1537 = vmatpush1.msra.mxu0 %v1368_v31  ;;  %1762 = vmatpush1.msra.mxu1 %v1400_v32  ;;  %v1367_v61 = vld [vmem:[%s4089_s1 + $0x48] sm:$0xff]  ;;  %v214_v4 = vld [vmem:[%s2972_s8 + $0x80] sm:$0xff] }
  0x1b   : > { %387 = vst.msk [vmem:[#allocation2 + $0x168] sm:$0xff] %vm340_vm0, %v2794_v2  ;;  %388 = vst.msk [vmem:[#allocation2 + $0x170] sm:$0xff] %vm340_vm0, %v2794_v2  ;;  %v1399_v62 = vld [vmem:[%s4089_s1 + $0x148] sm:$0xff]  ;;  %v284_v63 = vadd.f32 %v2977_v8, %v245_v53  ;;  %v285_v0 = vadd.f32 %v2977_v8, %v246_v54  ;;  %v286_v1 = vadd.f32 %v2977_v8, %v247_v55  ;;  %1538 = vmatprep.subr.mxu0 %v2794_v2  ;;  %v1366_v6 = vld [vmem:[%s4089_s1 + $0x40] sm:$0xff] }
  0x1c   : > { %390 = vst.msk [vmem:[#allocation2 + $0x180] sm:$0xff] %vm340_vm0, %v2794_v2  ;;  %391 = vst.msk [vmem:[#allocation2 + $0x188] sm:$0xff] %vm340_vm0, %v2794_v2  ;;  %v251_v3 = vmul.f32 %v2957_v5, %v212_v51  ;;  %v287_v7 = vadd.f32 %v2977_v8, %v248_v58  ;;  %v288_v9 = vadd.f32 %v2977_v8, %v249_v59  ;;  %v215_v12 = vld [vmem:[%s2972_s8 + $0x88] sm:$0xff]  ;;  %v216_v13 = vld [vmem:[%s2972_s8 + $0x90] sm:$0xff]  ;;  %1763 = vmatprep.subr.mxu1 %v2794_v2 }
  0x1d   : > { %393 = vst.msk [vmem:[#allocation2 + $0x198] sm:$0xff] %vm340_vm0, %v2794_v2  ;;  %394 = vst.msk [vmem:[#allocation2 + $0x1a0] sm:$0xff] %vm340_vm0, %v2794_v2  ;;  %v289_v10 = vadd.f32 %v2977_v8, %v250_v60  ;;  %v252_v11 = vmul.f32 %v2957_v5, %v213_v56  ;;  %v1398_v14 = vld [vmem:[%s4089_s1 + $0x140] sm:$0xff]  ;;  %v316_v15 = vmax.f32 %v284_v63, 0.0  ;;  %v317_v16 = vmax.f32 %v285_v0, 0.0  ;;  %1539 = vmatpush1.msra.mxu0 %v1367_v61  ;;  %v217_v19 = vld [vmem:[%s2972_s8 + $0x98] sm:$0xff] }
  0x1e   : > { %347 = vst.msk [vmem:[#allocation2 + $0x28] sm:$0x3] %vm343_vm1, %v2794_v2  ;;  %350 = vst.msk [vmem:[#allocation2 + $0x40] sm:$0x3] %vm343_vm1, %v2794_v2  ;;  %v318_v17 = vmax.f32 %v286_v1, 0.0  ;;  %v290_v18 = vadd.f32 %v2977_v8, %v251_v3  ;;  %1764 = vmatpush1.msra.mxu1 %v1399_v62  ;;  %v218_v20 = vld [vmem:[%s2972_s8 + $0xa0] sm:$0xff]  ;;  %1540 = vmatprep.subr.mxu0 %v2794_v2  ;;  %v253_v30 = vmul.f32 %v2957_v5, %v214_v4 }
  0x1f   : > { %344 = vst.msk [vmem:[#allocation2 + $0x10] sm:$0x3] %vm343_vm1, %v2794_v2  ;;  %353 = vst.msk [vmem:[#allocation2 + $0x58] sm:$0x3] %vm343_vm1, %v2794_v2  ;;  %v219_v21 = vld [vmem:[%s2972_s8 + $0xa8] sm:$0xff]  ;;  %v319_v22 = vmax.f32 %v287_v7, 0.0  ;;  %v291_v25 = vadd.f32 %v2977_v8, %v252_v11  ;;  %1765 = vmatprep.subr.mxu1 %v2794_v2  ;;  %v254_v31 = vmul.f32 %v2957_v5, %v215_v12  ;;  %1541 = vmatpush1.msra.mxu0 %v1366_v6 }
  0x20   : > { %356 = vst.msk [vmem:[#allocation2 + $0x70] sm:$0x3] %vm343_vm1, %v2794_v2  ;;  %359 = vst.msk [vmem:[#allocation2 + $0x88] sm:$0x3] %vm343_vm1, %v2794_v2  ;;  %v320_v23 = vmax.f32 %v288_v9, 0.0  ;;  %v321_v24 = vmax.f32 %v289_v10, 0.0  ;;  %v255_v32 = vmul.f32 %v2957_v5, %v216_v13  ;;  %1766 = vmatpush1.msra.mxu1 %v1398_v14  ;;  %v256_v38 = vmul.f32 %v2957_v5, %v217_v19 }
  0x21   : > { %362 = vst.msk [vmem:[#allocation2 + $0xa0] sm:$0x3] %vm343_vm1, %v2794_v2  ;;  %365 = vst.msk [vmem:[#allocation2 + $0xb8] sm:$0x3] %vm343_vm1, %v2794_v2  ;;  %v1365_v26 = vld [vmem:[%s4089_s1 + $0x38] sm:$0xff]  ;;  %v3086_v27 = vld [vmem:[#allocation2 + $0x1] sm:$0xff]  ;;  %1542 = vmatprep.subr.mxu0 %v2794_v2  ;;  %1767 = vmatprep.subr.mxu1 %v2794_v2  ;;  %v257_v39 = vmul.f32 %v2957_v5, %v218_v20  ;;  %v292_v45 = vadd.f32 %v2977_v8, %v253_v30 }
  0x22   : > { %368 = vst.msk [vmem:[#allocation2 + $0xd0] sm:$0x3] %vm343_vm1, %v2794_v2  ;;  %371 = vst.msk [vmem:[#allocation2 + $0xe8] sm:$0x3] %vm343_vm1, %v2794_v2  ;;  %v322_v29 = vmax.f32 %v290_v18, 0.0  ;;  %v1397_v33 = vld [vmem:[%s4089_s1 + $0x138] sm:$0xff]  ;;  %v293_v46 = vadd.f32 %v2977_v8, %v254_v31  ;;  %1543 = vmatpush1.msra.mxu0 %v1365_v26 }
  0x23   : > { %374 = vst.msk [vmem:[#allocation2 + $0x100] sm:$0x3] %vm343_vm1, %v2794_v2  ;;  %377 = vst.msk [vmem:[#allocation2 + $0x118] sm:$0x3] %vm343_vm1, %v2794_v2  ;;  %v323_v37 = vmax.f32 %v291_v25, 0.0  ;;  %1768 = vmatpush1.msra.mxu1 %v1397_v33  ;;  %v1364_v50 = vld [vmem:[%s4089_s1 + $0x30] sm:$0xff]  ;;  %1544 = vmatprep.subr.mxu0 %v2794_v2  ;;  %v296_v62 = vadd.f32 %v2977_v8, %v257_v39 }
  0x24   : > { %380 = vst.msk [vmem:[#allocation2 + $0x130] sm:$0x3] %vm343_vm1, %v2794_v2  ;;  %383 = vst.msk [vmem:[#allocation2 + $0x148] sm:$0x3] %vm343_vm1, %v2794_v2  ;;  %v1396_v51 = vld [vmem:[%s4089_s1 + $0x130] sm:$0xff]  ;;  %v324_v54 = vmax.f32 %v292_v45, 0.0  ;;  %1769 = vmatprep.subr.mxu1 %v2794_v2  ;;  %1545 = vmatpush1.msra.mxu0 %v1364_v50 }
  0x25   : > { %386 = vst.msk [vmem:[#allocation2 + $0x160] sm:$0x3] %vm343_vm1, %v2794_v2  ;;  %389 = vst.msk [vmem:[#allocation2 + $0x178] sm:$0x3] %vm343_vm1, %v2794_v2  ;;  %v325_v55 = vmax.f32 %v293_v46, 0.0  ;;  %v1363_v63 = vld [vmem:[%s4089_s1 + $0x28] sm:$0xff]  ;;  %1770 = vmatpush1.msra.mxu1 %v1396_v51  ;;  %1546 = vmatprep.subr.mxu0 %v2794_v2 }
  0x26   : > { %392 = vst.msk [vmem:[#allocation2 + $0x190] sm:$0x3] %vm343_vm1, %v2794_v2  ;;  %395 = vst.msk [vmem:[#allocation2 + $0x1a8] sm:$0x3] %vm343_vm1, %v2794_v2  ;;  %v3088_v28 = vld [vmem:[#allocation2 + $0x9] sm:$0xff]  ;;  %v328_v7 = vmax.f32 %v296_v62, 0.0  ;;  %1771 = vmatprep.subr.mxu1 %v2794_v2  ;;  %1547 = vmatpush1.msra.mxu0 %v1363_v63 }
  0x27   : > { %397 = vst.msk [vmem:[#allocation2 + $0x19] sm:$0xff] %vm340_vm0, %v308_v40  ;;  %399 = vst.msk [vmem:[#allocation2 + $0x31] sm:$0xff] %vm340_vm0, %v310_v41  ;;  %v258_v40 = vmul.f32 %v2957_v5, %v219_v21  ;;  %v1395_v3 = vld [vmem:[%s4089_s1 + $0x128] sm:$0xff]  ;;  %v1362_v12 = vld [vmem:[%s4089_s1 + $0x20] sm:$0xff]  ;;  %1548 = vmatprep.subr.mxu0 %v2794_v2 }
  0x28   : > { %398 = vst.msk [vmem:[#allocation2 + $0x21] sm:$0xff] %vm340_vm0, %v309_v42  ;;  %400 = vst.msk [vmem:[#allocation2 + $0x39] sm:$0xff] %vm340_vm0, %v311_v47  ;;  %v294_v47 = vadd.f32 %v2977_v8, %v255_v32  ;;  %v1394_v13 = vld [vmem:[%s4089_s1 + $0x120] sm:$0xff]  ;;  %1772 = vmatpush1.msra.mxu1 %v1395_v3  ;;  %1549 = vmatpush1.msra.mxu0 %v1362_v12  ;;  %v1392_v31 = vld [vmem:[%s4089_s1 + $0x110] sm:$0xff] }
  0x29   : > { %401 = vst.msk [vmem:[#allocation2 + $0x49] sm:$0xff] %vm340_vm0, %v312_v48  ;;  %402 = vst.msk [vmem:[#allocation2 + $0x51] sm:$0xff] %vm340_vm0, %v313_v49  ;;  %v295_v49 = vadd.f32 %v2977_v8, %v256_v38  ;;  %v297_v4 = vadd.f32 %v2977_v8, %v258_v40  ;;  %1773 = vmatprep.subr.mxu1 %v2794_v2  ;;  %1550 = vmatprep.subr.mxu0 %v2794_v2  ;;  %v1359_v33 = vld [vmem:[%s4089_s1 + $0x8] sm:$0xff]  ;;  %v1358_v40 = vld [vmem:[%s4089_s1] sm:$0xff] }
  0x2a   : > { %403 = vst.msk [vmem:[#allocation2 + $0x61] sm:$0xff] %vm340_vm0, %v314_v52  ;;  %404 = vst.msk [vmem:[#allocation2 + $0x69] sm:$0xff] %vm340_vm0, %v315_v57  ;;  %v220_v52 = vld [vmem:[%s2972_s8 + $0xb0] sm:$0xff]  ;;  %v326_v56 = vmax.f32 %v294_v47, 0.0  ;;  %v221_v57 = vld [vmem:[%s2972_s8 + $0xb8] sm:$0xff]  ;;  %1774 = vmatpush1.msra.mxu1 %v1394_v13 }
  0x2b   : > { %405 = vst.msk [vmem:[#allocation2 + $0x79] sm:$0xff] %vm340_vm0, %v316_v15  ;;  %406 = vst.msk [vmem:[#allocation2 + $0x81] sm:$0xff] %vm340_vm0, %v317_v16  ;;  %v327_v61 = vmax.f32 %v295_v49, 0.0  ;;  %v259_v6 = vmul.f32 %v2957_v5, %v220_v52  ;;  %v260_v9 = vmul.f32 %v2957_v5, %v221_v57  ;;  %v329_v11 = vmax.f32 %v297_v4, 0.0  ;;  %1775 = vmatprep.subr.mxu1 %v2794_v2  ;;  %v1390_v46 = vld [vmem:[%s4089_s1 + $0x100] sm:$0xff]  ;;  %v224_v4 = vld [vmem:[%s2972_s8 + $0xd0] sm:$0xff] }
  0x2c   : > { %407 = vst.msk [vmem:[#allocation2 + $0x91] sm:$0xff] %vm340_vm0, %v318_v17  ;;  %408 = vst.msk [vmem:[#allocation2 + $0x99] sm:$0xff] %vm340_vm0, %v319_v22  ;;  %v1361_v22 = vld [vmem:[%s4089_s1 + $0x18] sm:$0xff]  ;;  %v222_v49 = vld [vmem:[%s2972_s8 + $0xc0] sm:$0xff] }
  0x2d   : > { %409 = vst.msk [vmem:[#allocation2 + $0xa9] sm:$0xff] %vm340_vm0, %v320_v23  ;;  %410 = vst.msk [vmem:[#allocation2 + $0xb1] sm:$0xff] %vm340_vm0, %v321_v24  ;;  %v298_v14 = vadd.f32 %v2977_v8, %v259_v6  ;;  %v299_v18 = vadd.f32 %v2977_v8, %v260_v9  ;;  %v1393_v23 = vld [vmem:[%s4089_s1 + $0x118] sm:$0xff]  ;;  %1551 = vmatpush1.msra.mxu0 %v1361_v22  ;;  %v263_v9 = vmul.f32 %v2957_v5, %v224_v4 }
  0x2e   : > { %v525_v34 = vld [vmem:[#allocation2 + $0x18] sm:$0xff]  ;;  %411 = vst.msk [vmem:[#allocation2 + $0xc1] sm:$0xff] %vm340_vm0, %v322_v29  ;;  %412 = vst.msk [vmem:[#allocation2 + $0xc9] sm:$0xff] %vm340_vm0, %v323_v37  ;;  %v527_v59 = vld [vmem:[#allocation2 + $0x30] sm:$0xff]  ;;  %1776 = vmatpush1.msra.mxu1 %v1393_v23  ;;  %1552 = vmatprep.subr.mxu0 %v2794_v2 }
  0x2f   : > { %v3099_v35 = vld [vmem:[#allocation2 + $0x31] sm:$0xff]  ;;  %v526_v36 = vld [vmem:[#allocation2 + $0x20] sm:$0xff]  ;;  %413 = vst.msk [vmem:[#allocation2 + $0xd9] sm:$0xff] %vm340_vm0, %v324_v54  ;;  %414 = vst.msk [vmem:[#allocation2 + $0xe1] sm:$0xff] %vm340_vm0, %v325_v55  ;;  %v330_v21 = vmax.f32 %v298_v14, 0.0  ;;  %v331_v24 = vmax.f32 %v299_v18, 0.0  ;;  %1777 = vmatprep.subr.mxu1 %v2794_v2 }
  0x30   : > { %v2466_v41 = vpack.i.bf16 %v3099_v35, %v525_v34  ;;  %v3110_v42 = vld [vmem:[#allocation2 + $0x39] sm:$0xff]  ;;  %v590_v44 = vld [vmem:[#allocation2 + $0x22] sm:$0xff]  ;;  %415 = vst.msk [vmem:[#allocation2 + $0xf1] sm:$0xff] %vm340_vm0, %v326_v56  ;;  %416 = vst.msk [vmem:[#allocation2 + $0xf9] sm:$0xff] %vm340_vm0, %v327_v61  ;;  %1778 = vmatpush1.msra.mxu1 %v1392_v31 }
  0x31   : > { %v589_v43 = vld [vmem:[#allocation2 + $0x1a] sm:$0xff]  ;;  %v2476_v48 = vpack.i.bf16 %v3110_v42, %v526_v36  ;;  %v2481_v58 = vpack.i.bf16 %v590_v44, %v3088_v28  ;;  %v3132_v60 = vld [vmem:[#allocation2 + $0x49] sm:$0xff]  ;;  %v591_v1 = vld [vmem:[#allocation2 + $0x32] sm:$0xff]  ;;  %417 = vst.msk [vmem:[#allocation2 + $0x109] sm:$0xff] %vm340_vm0, %v328_v7  ;;  %1779 = vmatprep.subr.mxu1 %v2794_v2 }
  0x32   : > { %2467 = vrot.lane.b32.xlu0 %v2466_v41, %s2795_s19  ;;  %v2471_v53 = vpack.i.bf16 %v589_v43, %v3086_v27  ;;  %v463_v0 = vld [vmem:[#allocation2 + $0x19] sm:$0xff]  ;;  %v2486_v10 = vpack.i.bf16 %v3132_v60, %v527_v59  ;;  %v3161_v17 = vld [vmem:[#allocation2 + $0x51] sm:$0xff]  ;;  %v464_v19 = vld [vmem:[#allocation2 + $0x21] sm:$0xff]  ;;  %418 = vst.msk [vmem:[#allocation2 + $0x111] sm:$0xff] %vm340_vm0, %v329_v11 }
  0x33   : > { %2477 = vrot.lane.b32.xlu1 %v2476_v48, %s2795_s19  ;;  %v2491_v15 = vpack.i.bf16 %v591_v1, %v463_v0  ;;  %v528_v16 = vld [vmem:[#allocation2 + $0x38] sm:$0xff]  ;;  %419 = vst.msk [vmem:[#allocation2 + $0x121] sm:$0xff] %vm340_vm0, %v330_v21  ;;  %v529_v27 = vld [vmem:[#allocation2 + $0x48] sm:$0xff]  ;;  %v1360_v29 = vld [vmem:[%s4089_s1 + $0x10] sm:$0xff] }
  0x34   : > { %v592_v20 = vld [vmem:[#allocation2 + $0x3a] sm:$0xff]  ;;  %v2496_v25 = vpack.i.bf16 %v3161_v17, %v528_v16  ;;  %420 = vst.msk [vmem:[#allocation2 + $0x129] sm:$0xff] %vm340_vm0, %v331_v24  ;;  %v593_v30 = vld [vmem:[#allocation2 + $0x4a] sm:$0xff]  ;;  %1553 = vmatpush1.msra.mxu0 %v1360_v29  ;;  %v594_v39 = vld [vmem:[#allocation2 + $0x52] sm:$0xff] }
  0x35   : > { %v2501_v26 = vpack.i.bf16 %v592_v20, %v464_v19  ;;  %v3179_v28 = vld [vmem:[#allocation2 + $0x61] sm:$0xff]  ;;  %v2511_v36 = vpack.i.bf16 %v593_v30, %v3099_v35  ;;  %v530_v37 = vld [vmem:[#allocation2 + $0x50] sm:$0xff]  ;;  %1554 = vmatprep.subr.mxu0 %v2794_v2  ;;  %v2521_v35 = vpack.i.bf16 %v594_v39, %v3110_v42  ;;  %v3213_v44 = vld [vmem:[#allocation2 + $0x79] sm:$0xff] }
  0x36   : > { %2472 = vrot.lane.b32.xlu0 %v2471_v53, %s2795_s19  ;;  %v2506_v32 = vpack.i.bf16 %v3179_v28, %v529_v27  ;;  %v1391_v34 = vld [vmem:[%s4089_s1 + $0x108] sm:$0xff]  ;;  %1555 = vmatpush1.msra.mxu0 %v1359_v33  ;;  %v531_v43 = vld [vmem:[#allocation2 + $0x60] sm:$0xff]  ;;  %v1389_v42 = vld [vmem:[%s4089_s1 + $0xf8] sm:$0xff]  ;;  %v261_v53 = vmul.f32 %v2957_v5, %v222_v49 }
  0x37   : > { %2482 = vrot.lane.b32.xlu1 %v2481_v58, %s2795_s19  ;;  %v3201_v38 = vld [vmem:[#allocation2 + $0x69] sm:$0xff]  ;;  %1780 = vmatpush1.msra.mxu1 %v1391_v34  ;;  %v2526_v47 = vpack.i.bf16 %v3213_v44, %v531_v43  ;;  %v1421_v48 = vld [vmem:[%s4089_s1 + $0x1f8] sm:$0xff]  ;;  %v3231_v52 = vld [vmem:[#allocation2 + $0x81] sm:$0xff] }
  0x38   : > { %v2516_v41 = vpack.i.bf16 %v3201_v38, %v530_v37  ;;  %1556 = vmatprep.subr.mxu0 %v2794_v2  ;;  %1781 = vmatprep.subr.mxu1 %v2794_v2  ;;  %v595_v45 = vld [vmem:[#allocation2 + $0x62] sm:$0xff]  ;;  %v1388_v54 = vld [vmem:[%s4089_s1 + $0xf0] sm:$0xff]  ;;  %v300_v57 = vadd.f32 %v2977_v8, %v261_v53  ;;  %v533_v0 = vld [vmem:[#allocation2 + $0x78] sm:$0xff] }
  0x39   : > { %1557 = vmatpush1.msra.mxu0 %v1358_v40  ;;  %1782 = vmatpush1.msra.mxu1 %v1390_v46  ;;  %v2531_v50 = vpack.i.bf16 %v595_v45, %v3132_v60  ;;  %v532_v51 = vld [vmem:[#allocation2 + $0x68] sm:$0xff]  ;;  %v1420_v56 = vld [vmem:[%s4089_s1 + $0x1f0] sm:$0xff]  ;;  %v597_v6 = vld [vmem:[#allocation2 + $0x7a] sm:$0xff] }
  0x3a   : > { %2487 = vrot.lane.b32.xlu0 %v2486_v10, %s2795_s19  ;;  %1558 = vmatprep.subr.mxu0 %v2794_v2  ;;  %v596_v55 = vld [vmem:[#allocation2 + $0x6a] sm:$0xff]  ;;  %v2536_v59 = vpack.i.bf16 %v3231_v52, %v532_v51  ;;  %v332_v3 = vmax.f32 %v300_v57, 0.0  ;;  %v1386_v10 = vld [vmem:[%s4089_s1 + $0xe0] sm:$0xff]  ;;  %v225_v12 = vld [vmem:[%s2972_s8 + $0xd8] sm:$0xff]  ;;  %v2551_v18 = vpack.i.bf16 %v597_v6, %v3179_v28 }
  0x3b   : > { %2492 = vrot.lane.b32.xlu1 %v2491_v15, %s2795_s19  ;;  %1783 = vmatprep.subr.mxu1 %v2794_v2  ;;  %v223_v58 = vld [vmem:[%s2972_s8 + $0xc8] sm:$0xff]  ;;  %v2541_v63 = vpack.i.bf16 %v596_v55, %v3161_v17  ;;  %v3256_v1 = vld [vmem:[#allocation2 + $0x91] sm:$0xff]  ;;  %v1418_v11 = vld [vmem:[%s4089_s1 + $0x1e0] sm:$0xff]  ;;  %v302_v15 = vadd.f32 %v2977_v8, %v263_v9  ;;  %v264_v16 = vmul.f32 %v2957_v5, %v225_v12 }
  0x3c   : > { %1559 = vmatpush2.msra.mxu0 %v1389_v42  ;;  %1784 = vmatpush2.msra.mxu1 %v1421_v48  ;;  %v1387_v60 = vld [vmem:[%s4089_s1 + $0xe8] sm:$0xff]  ;;  %v262_v62 = vmul.f32 %v2957_v5, %v223_v58  ;;  %421 = vst.msk [vmem:[#allocation2 + $0x139] sm:$0xff] %vm340_vm0, %v332_v3  ;;  %v2546_v13 = vpack.i.bf16 %v3256_v1, %v533_v0  ;;  %v226_v17 = vld [vmem:[%s2972_s8 + $0xe0] sm:$0xff]  ;;  %v1385_v21 = vld [vmem:[%s4089_s1 + $0xd8] sm:$0xff] }
  0x3d   : > { %1560 = vmatprep.subr.mxu0 %v2794_v2  ;;  %1785 = vmatprep.subr.mxu1 %v2794_v2  ;;  %v1419_v61 = vld [vmem:[%s4089_s1 + $0x1e8] sm:$0xff]  ;;  %v534_v19 = vld [vmem:[#allocation2 + $0x80] sm:$0xff]  ;;  %v265_v22 = vmul.f32 %v2957_v5, %v226_v17  ;;  %v1417_v24 = vld [vmem:[%s4089_s1 + $0x1d8] sm:$0xff] }
  0x3e   : > { %2497 = vrot.lane.b32.xlu0 %v2496_v25, %s2795_s19  ;;  %1561 = vmatpush2.msra.mxu0 %v1388_v54  ;;  %v301_v7 = vadd.f32 %v2977_v8, %v262_v62  ;;  %v3279_v20 = vld [vmem:[#allocation2 + $0x99] sm:$0xff]  ;;  %v598_v23 = vld [vmem:[#allocation2 + $0x82] sm:$0xff]  ;;  %v334_v25 = vmax.f32 %v302_v15, 0.0  ;;  %v1384_v31 = vld [vmem:[%s4089_s1 + $0xd0] sm:$0xff] }
  0x3f   : > { %2502 = vrot.lane.b32.xlu1 %v2501_v26, %s2795_s19  ;;  %1786 = vmatpush2.msra.mxu1 %v1420_v56  ;;  %v303_v26 = vadd.f32 %v2977_v8, %v264_v16  ;;  %v227_v27 = vld [vmem:[%s2972_s8 + $0xe8] sm:$0xff]  ;;  %v304_v28 = vadd.f32 %v2977_v8, %v265_v22  ;;  %v2556_v30 = vpack.i.bf16 %v3279_v20, %v534_v19  ;;  %v228_v34 = vld [vmem:[%s2972_s8 + $0xf0] sm:$0xff]  ;;  %v229_v42 = vld [vmem:[%s2972_s8 + $0xf8] sm:$0xff] }
  0x40   : > { %1562 = vmatprep.subr.mxu0 %v2794_v2  ;;  %1787 = vmatprep.subr.mxu1 %v2794_v2  ;;  %v333_v14 = vmax.f32 %v301_v7, 0.0  ;;  %v266_v29 = vmul.f32 %v2957_v5, %v227_v27  ;;  %423 = vst.msk [vmem:[#allocation2 + $0x151] sm:$0xff] %vm340_vm0, %v334_v25  ;;  %v535_v37 = vld [vmem:[#allocation2 + $0x90] sm:$0xff]  ;;  %v1415_v45 = vld [vmem:[%s4089_s1 + $0x1c8] sm:$0xff]  ;;  %v268_v49 = vmul.f32 %v2957_v5, %v229_v42  ;;  %v536_v51 = vld [vmem:[#allocation2 + $0x98] sm:$0xff] }
  0x41   : > { %1563 = vmatpush2.msra.mxu0 %v1387_v60  ;;  %1788 = vmatpush2.msra.mxu1 %v1419_v61  ;;  %v335_v33 = vmax.f32 %v303_v26, 0.0  ;;  %v3308_v39 = vld [vmem:[#allocation2 + $0xa9] sm:$0xff]  ;;  %v336_v40 = vmax.f32 %v304_v28, 0.0  ;;  %v599_v43 = vld [vmem:[#allocation2 + $0x92] sm:$0xff]  ;;  %v1382_v54 = vld [vmem:[%s4089_s1 + $0xc0] sm:$0xff] }
  0x42   : > { %2507 = vrot.lane.b32.xlu0 %v2506_v32, %s2795_s19  ;;  %1564 = vmatprep.subr.mxu0 %v2794_v2  ;;  %422 = vst.msk [vmem:[#allocation2 + $0x141] sm:$0xff] %vm340_vm0, %v333_v14  ;;  %v1416_v32 = vld [vmem:[%s4089_s1 + $0x1d0] sm:$0xff]  ;;  %v2566_v48 = vpack.i.bf16 %v3308_v39, %v535_v37  ;;  %v600_v56 = vld [vmem:[#allocation2 + $0x9a] sm:$0xff]  ;;  %v537_v61 = vld [vmem:[#allocation2 + $0xa8] sm:$0xff] }
  0x43   : > { %2512 = vrot.lane.b32.xlu1 %v2511_v36, %s2795_s19  ;;  %1789 = vmatprep.subr.mxu1 %v2794_v2  ;;  %v2561_v36 = vpack.i.bf16 %v598_v23, %v3201_v38  ;;  %424 = vst.msk [vmem:[#allocation2 + $0x159] sm:$0xff] %vm340_vm0, %v335_v33  ;;  %v1383_v38 = vld [vmem:[%s4089_s1 + $0xc8] sm:$0xff]  ;;  %425 = vst.msk [vmem:[#allocation2 + $0x169] sm:$0xff] %vm340_vm0, %v336_v40  ;;  %v3330_v53 = vld [vmem:[#allocation2 + $0xb1] sm:$0xff]  ;;  %v2581_v60 = vpack.i.bf16 %v600_v56, %v3231_v52 }
  0x44   : > { %1565 = vmatpush2.msra.mxu0 %v1386_v10  ;;  %1790 = vmatpush2.msra.mxu1 %v1418_v11  ;;  %v2576_v57 = vpack.i.bf16 %v3330_v53, %v536_v51  ;;  %v1381_v58 = vld [vmem:[%s4089_s1 + $0xb8] sm:$0xff]  ;;  %v3354_v62 = vld [vmem:[#allocation2 + $0xc1] sm:$0xff]  ;;  %v1380_v0 = vld [vmem:[%s4089_s1 + $0xb0] sm:$0xff] }
  0x45   : > { %1566 = vmatprep.subr.mxu0 %v2794_v2  ;;  %1791 = vmatprep.subr.mxu1 %v2794_v2  ;;  %v1412_v52 = vld [vmem:[%s4089_s1 + $0x1b0] sm:$0xff]  ;;  %v2586_v3 = vpack.i.bf16 %v3354_v62, %v537_v61  ;;  %v1379_v9 = vld [vmem:[%s4089_s1 + $0xa8] sm:$0xff]  ;;  %v1378_v12 = vld [vmem:[%s4089_s1 + $0xa0] sm:$0xff] }
  0x46   : > { %2517 = vrot.lane.b32.xlu0 %v2516_v41, %s2795_s19  ;;  %1567 = vmatpush2.msra.mxu0 %v1385_v21  ;;  %v305_v41 = vadd.f32 %v2977_v8, %v266_v29  ;;  %v538_v6 = vld [vmem:[#allocation2 + $0xb0] sm:$0xff]  ;;  %v1411_v11 = vld [vmem:[%s4089_s1 + $0x1a8] sm:$0xff]  ;;  %v539_v15 = vld [vmem:[#allocation2 + $0xc0] sm:$0xff] }
  0x47   : > { %2522 = vrot.lane.b32.xlu1 %v2521_v35, %s2795_s19  ;;  %1792 = vmatpush2.msra.mxu1 %v1417_v24  ;;  %v267_v35 = vmul.f32 %v2957_v5, %v228_v34  ;;  %v1414_v5 = vld [vmem:[%s4089_s1 + $0x1c0] sm:$0xff]  ;;  %v3370_v7 = vld [vmem:[#allocation2 + $0xc9] sm:$0xff]  ;;  %v602_v10 = vld [vmem:[#allocation2 + $0xb2] sm:$0xff] }
  0x48   : > { %1568 = vmatprep.subr.mxu0 %v2794_v2  ;;  %1793 = vmatprep.subr.mxu1 %v2794_v2  ;;  %v337_v46 = vmax.f32 %v305_v41, 0.0  ;;  %v2601_v14 = vpack.i.bf16 %v602_v10, %v3279_v20  ;;  %v3391_v16 = vld [vmem:[#allocation2 + $0xd9] sm:$0xff]  ;;  %v603_v17 = vld [vmem:[#allocation2 + $0xc2] sm:$0xff]  ;;  %v1376_v24 = vld [vmem:[%s4089_s1 + $0x90] sm:$0xff] }
  0x49   : > { %1569 = vmatpush2.msra.mxu0 %v1384_v31  ;;  %1794 = vmatpush2.msra.mxu1 %v1416_v32  ;;  %v1409_v19 = vld [vmem:[%s4089_s1 + $0x198] sm:$0xff]  ;;  %v2606_v20 = vpack.i.bf16 %v3391_v16, %v539_v15  ;;  %v2611_v21 = vpack.i.bf16 %v603_v17, %v3308_v39  ;;  %v540_v22 = vld [vmem:[#allocation2 + $0xc8] sm:$0xff]  ;;  %v1408_v26 = vld [vmem:[%s4089_s1 + $0x190] sm:$0xff] }
  0x4a   : > { %2527 = vrot.lane.b32.xlu0 %v2526_v47, %s2795_s19  ;;  %v306_v47 = vadd.f32 %v2977_v8, %v267_v35  ;;  %1570 = vmatprep.subr.mxu0 %v2794_v2  ;;  %426 = vst.msk [vmem:[#allocation2 + $0x171] sm:$0xff] %vm340_vm0, %v337_v46  ;;  %v3406_v23 = vld [vmem:[#allocation2 + $0xe1] sm:$0xff]  ;;  %v604_v25 = vld [vmem:[#allocation2 + $0xca] sm:$0xff]  ;;  %v541_v31 = vld [vmem:[#allocation2 + $0xd8] sm:$0xff] }
  0x4b   : > { %2532 = vrot.lane.b32.xlu1 %v2531_v50, %s2795_s19  ;;  %v2571_v50 = vpack.i.bf16 %v599_v43, %v3213_v44  ;;  %1795 = vmatprep.subr.mxu1 %v2794_v2  ;;  %v307_v44 = vadd.f32 %v2977_v8, %v268_v49  ;;  %v2616_v27 = vpack.i.bf16 %v3406_v23, %v540_v22  ;;  %v1375_v28 = vld [vmem:[%s4089_s1 + $0x88] sm:$0xff]  ;;  %v670_v32 = vld [vmem:[#allocation2 + $0xf1] sm:$0xff]  ;;  %v605_v33 = vld [vmem:[#allocation2 + $0xda] sm:$0xff] }
  0x4c   : > { %v338_v55 = vmax.f32 %v306_v47, 0.0  ;;  %1571 = vmatpush2.msra.mxu0 %v1383_v38  ;;  %1796 = vmatpush2.msra.mxu1 %v1415_v45  ;;  %v1407_v29 = vld [vmem:[%s4089_s1 + $0x188] sm:$0xff]  ;;  %v1374_v34 = vld [vmem:[%s4089_s1 + $0x80] sm:$0xff]  ;;  %v2626_v37 = vpack.i.bf16 %v670_v32, %v541_v31  ;;  %v3440_v39 = vld [vmem:[%s4089_s1 + $0x238] sm:$0xff]  ;;  %v2631_v40 = vpack.i.bf16 %v605_v33, %v3354_v62 }
  0x4d   : > { %1572 = vmatprep.subr.mxu0 %v2794_v2  ;;  %1797 = vmatprep.subr.mxu1 %v2794_v2  ;;  %v339_v8 = vmax.f32 %v307_v44, 0.0  ;;  %v542_v41 = vld [vmem:[#allocation2 + $0xe0] sm:$0xff]  ;;  %v543_v46 = vld [vmem:[#allocation2 + $0xf0] sm:$0xff]  ;;  %v544_v49 = vld [vmem:[#allocation2 + $0xf8] sm:$0xff] }
  0x4e   : > { %2537 = vrot.lane.b32.xlu0 %v2536_v59, %s2795_s19  ;;  %427 = vst.msk [vmem:[#allocation2 + $0x181] sm:$0xff] %vm340_vm0, %v338_v55  ;;  %1573 = vmatpush2.msra.mxu0 %v1382_v54  ;;  %v1413_v59 = vld [vmem:[%s4089_s1 + $0x1b8] sm:$0xff]  ;;  %v606_v43 = vld [vmem:[#allocation2 + $0xe2] sm:$0xff] }
  0x4f   : > { %2542 = vrot.lane.b32.xlu1 %v2541_v63, %s2795_s19  ;;  %1798 = vmatpush2.msra.mxu1 %v1414_v5  ;;  %v601_v63 = vld [vmem:[#allocation2 + $0xaa] sm:$0xff]  ;;  %428 = vst.msk [vmem:[#allocation2 + $0x189] sm:$0xff] %vm340_vm0, %v339_v8  ;;  %v671_v35 = vld [vmem:[#allocation2 + $0xf9] sm:$0xff]  ;;  %v2641_v45 = vpack.i.bf16 %v606_v43, %v3370_v7  ;;  %v674_v56 = vld [vmem:[#allocation2 + $0x121] sm:$0xff] }
  0x50   : > { %1574 = vmatprep.subr.mxu0 %v2794_v2  ;;  %1799 = vmatprep.subr.mxu1 %v2794_v2  ;;  %v2591_v4 = vpack.i.bf16 %v601_v63, %v3256_v1  ;;  %v2596_v1 = vpack.i.bf16 %v3370_v7, %v538_v6  ;;  %v2636_v38 = vpack.i.bf16 %v671_v35, %v542_v41  ;;  %v672_v47 = vld [vmem:[#allocation2 + $0x109] sm:$0xff]  ;;  %v607_v42 = vld [vmem:[#allocation2 + $0xf2] sm:$0xff]  ;;  %v608_v51 = vld [vmem:[#allocation2 + $0xfa] sm:$0xff] }
  0x51   : > { %1575 = vmatpush2.msra.mxu0 %v1381_v58  ;;  %1800 = vmatpush2.msra.mxu1 %v1413_v59  ;;  %v2661_v54 = vpack.i.bf16 %v608_v51, %v3406_v23  ;;  %v545_v55 = vld [vmem:[#allocation2 + $0x108] sm:$0xff]  ;;  %v546_v58 = vld [vmem:[#allocation2 + $0x110] sm:$0xff]  ;;  %v547_v62 = vld [vmem:[#allocation2 + $0x120] sm:$0xff] }
  0x52   : > { %2547 = vrot.lane.b32.xlu0 %v2546_v13, %s2795_s19  ;;  %1576 = vmatprep.subr.mxu0 %v2794_v2  ;;  %v1410_v13 = vld [vmem:[%s4089_s1 + $0x1a0] sm:$0xff]  ;;  %v609_v5 = vld [vmem:[#allocation2 + $0x10a] sm:$0xff]  ;;  %v2666_v44 = vpack.i.bf16 %v674_v56, %v545_v55  ;;  %v610_v8 = vld [vmem:[#allocation2 + $0x112] sm:$0xff] }
  0x53   : > { %2552 = vrot.lane.b32.xlu1 %v2551_v18, %s2795_s19  ;;  %1801 = vmatprep.subr.mxu1 %v2794_v2  ;;  %v1377_v18 = vld [vmem:[%s4089_s1 + $0x98] sm:$0xff]  ;;  %v675_v59 = vld [vmem:[#allocation2 + $0x129] sm:$0xff]  ;;  %v2681_v61 = vpack.i.bf16 %v610_v8, %v671_v35  ;;  %v677_v6 = vld [vmem:[#allocation2 + $0x141] sm:$0xff] }
  0x54   : > { %1577 = vmatpush2.msra.mxu0 %v1380_v0  ;;  %1802 = vmatpush2.msra.mxu1 %v1412_v52  ;;  %v676_v63 = vld [vmem:[#allocation2 + $0x139] sm:$0xff]  ;;  %v611_v0 = vld [vmem:[#allocation2 + $0x122] sm:$0xff]  ;;  %v612_v7 = vld [vmem:[#allocation2 + $0x12a] sm:$0xff] }
  0x55   : > { %1578 = vmatprep.subr.mxu0 %v2794_v2  ;;  %1803 = vmatprep.subr.mxu1 %v2794_v2  ;;  %v2686_v52 = vpack.i.bf16 %v676_v63, %v547_v62  ;;  %v550_v15 = vld [vmem:[#allocation2 + $0x140] sm:$0xff]  ;;  %v615_v22 = vld [vmem:[#allocation2 + $0x152] sm:$0xff] }
  0x56   : > { %2557 = vrot.lane.b32.xlu0 %v2556_v30, %s2795_s19  ;;  %1579 = vmatpush2.msra.mxu0 %v1379_v9  ;;  %v2621_v30 = vpack.i.bf16 %v604_v25, %v3330_v53  ;;  %v614_v17 = vld [vmem:[#allocation2 + $0x142] sm:$0xff]  ;;  %v552_v25 = vld [vmem:[#allocation2 + $0x158] sm:$0xff] }
  0x57   : > { %2562 = vrot.lane.b32.xlu1 %v2561_v36, %s2795_s19  ;;  %1804 = vmatpush2.msra.mxu1 %v1411_v11  ;;  %v1406_v36 = vld [vmem:[%s4089_s1 + $0x180] sm:$0xff]  ;;  %v549_v11 = vld [vmem:[#allocation2 + $0x138] sm:$0xff] }
  0x58   : > { %1580 = vmatprep.subr.mxu0 %v2794_v2  ;;  %1805 = vmatprep.subr.mxu1 %v2794_v2  ;;  %v682_v31 = vld [vmem:[#allocation2 + $0x181] sm:$0xff]  ;;  %v557_v8 = vld [vmem:[#allocation2 + $0x19] sm:$0xff] }
  0x59   : > { %1581 = vmatpush2.msra.mxu0 %v1378_v12  ;;  %1806 = vmatpush2.msra.mxu1 %v1410_v13  ;;  %v613_v12 = vld [vmem:[#allocation2 + $0x13a] sm:$0xff] }
  0x5a   : > { %2567 = vrot.lane.b32.xlu0 %v2566_v48, %s2795_s19  ;;  %1582 = vmatprep.subr.mxu0 %v2794_v2  ;;  %v2651_v48 = vpack.i.bf16 %v607_v42, %v3391_v16  ;;  %v679_v16 = vld [vmem:[#allocation2 + $0x159] sm:$0xff]  ;;  %v3482_v42 = vld [vmem:[#allocation2 + $0x30] sm:$0xff] }
  0x5b   : > { %2572 = vrot.lane.b32.xlu1 %v2571_v50, %s2795_s19  ;;  %1807 = vmatprep.subr.mxu1 %v2794_v2  ;;  %v673_v50 = vld [vmem:[#allocation2 + $0x111] sm:$0xff]  ;;  %v555_v43 = vld [vmem:[#allocation2 + $0x180] sm:$0xff] }
  0x5c   : > { %1583 = vmatpush2.msra.mxu0 %v1377_v18  ;;  %1808 = vmatpush2.msra.mxu1 %v1409_v19  ;;  %v2656_v53 = vpack.i.bf16 %v673_v50, %v544_v49  ;;  %v2701_v10 = vpack.i.bf16 %v612_v7, %v673_v50  ;;  %v2716_v18 = vpack.i.bf16 %v679_v16, %v550_v15  ;;  %v429_v50 = vld [vmem:[#allocation2] sm:$0xff]  ;;  %v3500_v15 = vld [vmem:[#allocation2 + $0x48] sm:$0xff] }
  0x5d   : > { %1584 = vmatprep.subr.mxu0 %v2794_v2  ;;  %1809 = vmatprep.subr.mxu1 %v2794_v2  ;;  %v2721_v19 = vpack.i.bf16 %v614_v17, %v675_v59 }
  0x5e   : > { %2577 = vrot.lane.b32.xlu0 %v2576_v57, %s2795_s19  ;;  %1585 = vmatpush2.msra.mxu0 %v1376_v24  ;;  %v2671_v57 = vpack.i.bf16 %v609_v5, %v670_v32  ;;  %v2731_v24 = vpack.i.bf16 %v615_v22, %v676_v63  ;;  %v617_v32 = vld [vmem:[#allocation2 + $0x16a] sm:$0xff] }
  0x5f   : > { %2582 = vrot.lane.b32.xlu1 %v2581_v60, %s2795_s19  ;;  %1810 = vmatpush2.msra.mxu1 %v1408_v26  ;;  %v2676_v60 = vpack.i.bf16 %v675_v59, %v546_v58  ;;  %v3473_v26 = vld [vmem:[#allocation2 + $0x171] sm:$0xff] }
  0x60   : > { %1586 = vmatprep.subr.mxu0 %v2794_v2  ;;  %1811 = vmatprep.subr.mxu1 %v2794_v2  ;;  %v620_v58 = vld [vmem:[#allocation2 + $0x18a] sm:$0xff] }
  0x61   : > { %1587 = vmatpush2.msra.mxu0 %v1375_v28  ;;  %1812 = vmatpush2.msra.mxu1 %v1407_v29  ;;  %v2736_v28 = vpack.i.bf16 %v3473_v26, %v552_v25 }
  0x62   : > { %2587 = vrot.lane.b32.xlu0 %v2586_v3, %s2795_s19  ;;  %1588 = vmatprep.subr.mxu0 %v2794_v2  ;;  %v2691_v3 = vpack.i.bf16 %v611_v0, %v672_v47 }
  0x63   : > { %2592 = vrot.lane.b32.xlu1 %v2591_v4, %s2795_s19  ;;  %1813 = vmatprep.subr.mxu1 %v2794_v2  ;;  %v2646_v2 = vpack.i.bf16 %v672_v47, %v543_v46  ;;  %v548_v4 = vld [vmem:[#allocation2 + $0x128] sm:$0xff] }
  0x64   : > { %1589 = vmatpush2.msra.mxu0 %v1374_v34  ;;  %1814 = vmatpush2.msra.mxu1 %v1406_v36  ;;  %v2696_v9 = vpack.i.bf16 %v677_v6, %v548_v4  ;;  %v554_v36 = vld [vmem:[#allocation2 + $0x170] sm:$0xff]  ;;  %v493_v47 = vld [vmem:[#allocation2 + $0x2] sm:$0xff] }
  0x65   : > { %2376 = vmatprep.subr.mxu0 %v3440_v39  ;;  %2440 = vmatprep.subr.mxu1 %v3440_v39  ;;  %v430_v4 = vld [vmem:[#allocation2 + $0x8] sm:$0xff] }
  0x66   : > { %2597 = vrot.lane.b32.xlu0 %v2596_v1, %s2795_s19  ;;  %v678_v1 = vld [vmem:[#allocation2 + $0x151] sm:$0xff] }
  0x67   : > { %2602 = vrot.lane.b32.xlu1 %v2601_v14, %s2795_s19  ;;  %v2706_v13 = vpack.i.bf16 %v678_v1, %v549_v11  ;;  %v2711_v14 = vpack.i.bf16 %v613_v12, %v674_v56  ;;  %v2751_v34 = vpack.i.bf16 %v617_v32, %v678_v1 }
  0x6a   : > { %2607 = vrot.lane.b32.xlu0 %v2606_v20, %s2795_s19  ;;  %v551_v20 = vld [vmem:[#allocation2 + $0x150] sm:$0xff] }
  0x6b   : > { %2612 = vrot.lane.b32.xlu1 %v2611_v21, %s2795_s19  ;;  %v3468_v21 = vld [vmem:[#allocation2 + $0x169] sm:$0xff] }
  0x6c   : > { %v2726_v23 = vpack.i.bf16 %v3468_v21, %v551_v20 }
  0x6e   : > { %2617 = vrot.lane.b32.xlu0 %v2616_v27, %s2795_s19  ;;  %v616_v27 = vld [vmem:[#allocation2 + $0x15a] sm:$0xff] }
  0x6f   : > { %2622 = vrot.lane.b32.xlu1 %v2621_v30, %s2795_s19  ;;  %v2741_v29 = vpack.i.bf16 %v616_v27, %v677_v6  ;;  %v553_v30 = vld [vmem:[#allocation2 + $0x168] sm:$0xff] }
  0x70   : > { %v2746_v33 = vpack.i.bf16 %v682_v31, %v553_v30  ;;  %v558_v6 = vld [vmem:[#allocation2 + $0x21] sm:$0xff] }
  0x72   : > { %2627 = vrot.lane.b32.xlu0 %v2626_v37, %s2795_s19  ;;  %v683_v37 = vld [vmem:[#allocation2 + $0x189] sm:$0xff] }
  0x73   : > { %2632 = vrot.lane.b32.xlu1 %v2631_v40, %s2795_s19  ;;  %v618_v40 = vld [vmem:[#allocation2 + $0x172] sm:$0xff]  ;;  %v2756_v41 = vpack.i.bf16 %v683_v37, %v554_v36 }
  0x74   : > { %v2761_v35 = vpack.i.bf16 %v618_v40, %v679_v16  ;;  %v432_v40 = vld [vmem:[#allocation2 + $0x20] sm:$0xff] }
  0x76   : > { %2637 = vrot.lane.b32.xlu0 %v2636_v38, %s2795_s19  ;;  %v684_v38 = vld [vmem:[#allocation2 + $0x199] sm:$0xff] }
  0x77   : > { %2642 = vrot.lane.b32.xlu1 %v2641_v45, %s2795_s19  ;;  %v619_v45 = vld [vmem:[#allocation2 + $0x182] sm:$0xff]  ;;  %v2766_v51 = vpack.i.bf16 %v684_v38, %v555_v43 }
  0x78   : > { %v1427_v38 = vld [vmem:[%s4089_s1 + $0x228] sm:$0xff] }
  0x7a   : > { %2647 = vrot.lane.b32.xlu0 %v2646_v2, %s2795_s19 }
  0x7b   : > { %2652 = vrot.lane.b32.xlu1 %v2651_v48, %s2795_s19 }
  0x7e   : > { %2657 = vrot.lane.b32.xlu0 %v2656_v53, %s2795_s19  ;;  %v2771_v53 = vpack.i.bf16 %v619_v45, %v3468_v21 }
  0x7f   : > { %2662 = vrot.lane.b32.xlu1 %v2661_v54, %s2795_s19 }
  0x82   : > { %2667 = vrot.lane.b32.xlu0 %v2666_v44, %s2795_s19  ;;  %v556_v44 = vld [vmem:[#allocation2 + $0x188] sm:$0xff] }
  0x83   : > { %2672 = vrot.lane.b32.xlu1 %v2671_v57, %s2795_s19  ;;  %v685_v57 = vld [vmem:[#allocation2 + $0x1a1] sm:$0xff] }
  0x84   : > { %v2776_v7 = vpack.i.bf16 %v685_v57, %v556_v44  ;;  %v1426_v44 = vld [vmem:[%s4089_s1 + $0x220] sm:$0xff] }
  0x86   : > { %2677 = vrot.lane.b32.xlu0 %v2676_v60, %s2795_s19  ;;  %v494_v60 = vld [vmem:[#allocation2 + $0xa] sm:$0xff] }
  0x87   : > { %2682 = vrot.lane.b32.xlu1 %v2681_v61, %s2795_s19  ;;  %v3490_v61 = vld [vmem:[#allocation2 + $0x38] sm:$0xff] }
  0x8a   : > { %2687 = vrot.lane.b32.xlu0 %v2686_v52, %s2795_s19 }
  0x8b   : > { %2692 = vrot.lane.b32.xlu1 %v2691_v3, %s2795_s19 }
  0x8e   : > { %2697 = vrot.lane.b32.xlu0 %v2696_v9, %s2795_s19  ;;  %v2781_v9 = vpack.i.bf16 %v620_v58, %v3473_v26  ;;  %v1428_v26 = vld [vmem:[%s4089_s1 + $0x230] sm:$0xff]  ;;  %v3534_v58 = vld [vmem:[#allocation2 + $0x3a] sm:$0xff] }
  0x8f   : > { %2702 = vrot.lane.b32.xlu1 %v2701_v10, %s2795_s19 }
  0x92   : > { %2707 = vrot.lane.b32.xlu0 %v2706_v13, %s2795_s19 }
  0x93   : > { %2712 = vrot.lane.b32.xlu1 %v2711_v14, %s2795_s19  ;;  %v495_v14 = vld [vmem:[#allocation2 + $0x1a] sm:$0xff] }
  0x96   : > { %2717 = vrot.lane.b32.xlu0 %v2716_v18, %s2795_s19 }
  0x97   : > { %2722 = vrot.lane.b32.xlu1 %v2721_v19, %s2795_s19 }
  0x9a   : > { %2727 = vrot.lane.b32.xlu0 %v2726_v23, %s2795_s19  ;;  %v431_v23 = vld [vmem:[#allocation2 + $0x18] sm:$0xff] }
  0x9b   : > { %2732 = vrot.lane.b32.xlu1 %v2731_v24, %s2795_s19  ;;  %v559_v24 = vld [vmem:[#allocation2 + $0x31] sm:$0xff] }
  0x9e   : > { %2737 = vrot.lane.b32.xlu0 %v2736_v28, %s2795_s19  ;;  %v496_v28 = vld [vmem:[#allocation2 + $0x22] sm:$0xff] }
  0x9f   : > { %2742 = vrot.lane.b32.xlu1 %v2741_v29, %s2795_s19  ;;  %v3514_v29 = vld [vmem:[#allocation2 + $0x50] sm:$0xff] }
  0xa2   : > { %2747 = vrot.lane.b32.xlu0 %v2746_v33, %s2795_s19 }
  0xa3   : > { %2752 = vrot.lane.b32.xlu1 %v2751_v34, %s2795_s19 }
  0xa4   : > { %v2468_v46 = vpop.permute.xlu0 %2467 }
  0xa5   : > { %v2470_v2 = vunpack.i.h.bf16 %v2468_v46  ;;  %v2469_v48 = vunpack.i.l.bf16 %v2468_v46  ;;  %v2478_v49 = vpop.permute.xlu1 %2477  ;;  %v497_v46 = vld [vmem:[#allocation2 + $0x32] sm:$0xff] }
  0xa6   : > { %2757 = vrot.lane.b32.xlu0 %v2756_v41, %s2795_s19  ;;  %v2480_v54 = vunpack.i.h.bf16 %v2478_v49  ;;  %v2479_v55 = vunpack.i.l.bf16 %v2478_v49  ;;  %v560_v41 = vld [vmem:[#allocation2 + $0x39] sm:$0xff] }
  0xa7   : > { %v1262_v56 = vsel %vm340_vm0, %v493_v47, %v2469_v48  ;;  %v1326_v5 = vsel %vm340_vm0, %v3482_v42, %v2470_v2  ;;  %2762 = vrot.lane.b32.xlu1 %v2761_v35, %s2795_s19  ;;  %v3524_v47 = vld [vmem:[#allocation2 + $0x60] sm:$0xff] }
  0xa8   : > { %v2473_v59 = vpop.permute.xlu0 %2472  ;;  %1590 = vmatprep.mubr.f32.mxu0 %v1262_v56  ;;  %1815 = vmatprep.mubr.f32.mxu1 %v1326_v5  ;;  %v1263_v1 = vsel %vm340_vm0, %v494_v60, %v2479_v55  ;;  %v1327_v12 = vsel %vm340_vm0, %v3490_v61, %v2480_v54  ;;  %v561_v55 = vld [vmem:[#allocation2 + $0x49] sm:$0xff] }
  0xa9   : > { %v2475_v62 = vunpack.i.h.bf16 %v2473_v59  ;;  %v2474_v63 = vunpack.i.l.bf16 %v2473_v59  ;;  %v2483_v0 = vpop.permute.xlu1 %2482  ;;  %v3536_v59 = vld [vmem:[#allocation2 + $0x68] sm:$0xff] }
  0xaa   : > { %v2485_v52 = vunpack.i.h.bf16 %v2483_v0  ;;  %v2484_v3 = vunpack.i.l.bf16 %v2483_v0  ;;  %2767 = vrot.lane.b32.xlu0 %v2766_v51, %s2795_s19 }
  0xab   : > { %v1230_v10 = vsel %vm340_vm0, %v429_v50, %v2474_v63  ;;  %v1294_v11 = vsel %vm340_vm0, %v557_v8, %v2475_v62  ;;  %2772 = vrot.lane.b32.xlu1 %v2771_v53, %s2795_s19 }
  0xac   : > { %1591 = vmatmul.mubr.f32.vlgmr.msra.gmra.mxu0 %v1230_v10  ;;  %1816 = vmatmul.mubr.f32.vlgmr.msra.gmra.mxu1 %v1294_v11  ;;  %v2488_v13 = vpop.permute.xlu0 %2487  ;;  %v1231_v18 = vsel %vm340_vm0, %v430_v4, %v2484_v3  ;;  %v1295_v19 = vsel %vm340_vm0, %v558_v6, %v2485_v52  ;;  %v562_v4 = vld [vmem:[#allocation2 + $0x51] sm:$0xff] }
  0xad   : > { %2377 = vmatpush3.msra.mxu0 %v3440_v39  ;;  %2448 = vmatpush3.msra.mxu1 %v3440_v39  ;;  %v2490_v16 = vunpack.i.h.bf16 %v2488_v13  ;;  %v2489_v17 = vunpack.i.l.bf16 %v2488_v13  ;;  %v2493_v20 = vpop.permute.xlu1 %2492  ;;  %v3548_v10 = vld [vmem:[#allocation2 + $0x4a] sm:$0xff]  ;;  %v3550_v11 = vld [vmem:[#allocation2 + $0x78] sm:$0xff] }
  0xae   : > { %1595 = vmatprep.mubr.f32.mxu0 %v1263_v1  ;;  %1820 = vmatprep.mubr.f32.mxu1 %v1327_v12  ;;  %v2495_v21 = vunpack.i.h.bf16 %v2493_v20  ;;  %v2494_v22 = vunpack.i.l.bf16 %v2493_v20 }
  0xaf   : > { %2777 = vrot.lane.b32.xlu0 %v2776_v7, %s2795_s19  ;;  %2782 = vrot.lane.b32.xlu1 %v2781_v9, %s2795_s19  ;;  %v1264_v25 = vsel %vm340_vm0, %v495_v14, %v2489_v17  ;;  %v1328_v39 = vsel %vm340_vm0, %v3500_v15, %v2490_v16  ;;  %v1425_v9 = vld [vmem:[%s4089_s1 + $0x218] sm:$0xff] }
  0xb0   : > { %1596 = vmatmul.mubr.f32.gmra.mxu0 %v1231_v18  ;;  %1821 = vmatmul.mubr.f32.gmra.mxu1 %v1295_v19  ;;  %v2498_v27 = vpop.permute.xlu0 %2497  ;;  %v1232_v33 = vsel %vm340_vm0, %v431_v23, %v2494_v22  ;;  %v1296_v34 = vsel %vm340_vm0, %v559_v24, %v2495_v21  ;;  %v563_v19 = vld [vmem:[#allocation2 + $0x61] sm:$0xff]  ;;  %v1424_v22 = vld [vmem:[%s4089_s1 + $0x210] sm:$0xff] }
  0xb1   : > { %v2500_v30 = vunpack.i.h.bf16 %v2498_v27  ;;  %v2499_v31 = vunpack.i.l.bf16 %v2498_v27  ;;  %1600 = vmatprep.mubr.f32.mxu0 %v1264_v25  ;;  %1825 = vmatprep.mubr.f32.mxu1 %v1328_v39  ;;  %v2503_v32 = vpop.permute.xlu1 %2502  ;;  %v3562_v23 = vld [vmem:[#allocation2 + $0x52] sm:$0xff]  ;;  %v3564_v24 = vld [vmem:[#allocation2 + $0x80] sm:$0xff] }
  0xb2   : > { %v2505_v36 = vunpack.i.h.bf16 %v2503_v32  ;;  %v2504_v37 = vunpack.i.l.bf16 %v2503_v32  ;;  %2378 = vmatprep.subr.mxu0 %v1428_v26  ;;  %2441 = vmatprep.subr.mxu1 %v1428_v26  ;;  %v564_v32 = vld [vmem:[#allocation2 + $0x69] sm:$0xff] }
  0xb3   : > { %v1265_v35 = vsel %vm340_vm0, %v496_v28, %v2499_v31  ;;  %v1329_v43 = vsel %vm340_vm0, %v3514_v29, %v2500_v30  ;;  %2379 = vmatpush3.msra.mxu0 %v1428_v26  ;;  %2449 = vmatpush3.msra.mxu1 %v1428_v26 }
  0xb4   : > { %1601 = vmatmul.mubr.f32.gmra.mxu0 %v1232_v33  ;;  %1826 = vmatmul.mubr.f32.gmra.mxu1 %v1296_v34  ;;  %v2508_v45 = vpop.permute.xlu0 %2507  ;;  %v1233_v50 = vsel %vm340_vm0, %v432_v40, %v2504_v37  ;;  %v1297_v51 = vsel %vm340_vm0, %v560_v41, %v2505_v36  ;;  %v1423_v36 = vld [vmem:[%s4089_s1 + $0x208] sm:$0xff]  ;;  %v3578_v40 = vld [vmem:[#allocation2 + $0x90] sm:$0xff] }
  0xb5   : > { %v2510_v2 = vunpack.i.h.bf16 %v2508_v45  ;;  %v2509_v48 = vunpack.i.l.bf16 %v2508_v45  ;;  %1605 = vmatprep.mubr.f32.mxu0 %v1265_v35  ;;  %1830 = vmatprep.mubr.f32.mxu1 %v1329_v43  ;;  %v2513_v49 = vpop.permute.xlu1 %2512  ;;  %v3576_v37 = vld [vmem:[#allocation2 + $0x62] sm:$0xff] }
  0xb6   : > { %v2515_v53 = vunpack.i.h.bf16 %v2513_v49  ;;  %v2514_v54 = vunpack.i.l.bf16 %v2513_v49  ;;  %2380 = vmatprep.subr.mxu0 %v1427_v38  ;;  %2442 = vmatprep.subr.mxu1 %v1427_v38 }
  0xb7   : > { %v1266_v56 = vsel %vm340_vm0, %v497_v46, %v2509_v48  ;;  %v1330_v5 = vsel %vm340_vm0, %v3524_v47, %v2510_v2  ;;  %2381 = vmatpush3.msra.mxu0 %v1427_v38  ;;  %2450 = vmatpush3.msra.mxu1 %v1427_v38  ;;  %v565_v48 = vld [vmem:[#allocation2 + $0x79] sm:$0xff] }
  0xb8   : > { %1606 = vmatmul.mubr.f32.gmra.mxu0 %v1233_v50  ;;  %1831 = vmatmul.mubr.f32.gmra.mxu1 %v1297_v51  ;;  %v2518_v57 = vpop.permute.xlu0 %2517  ;;  %v1234_v63 = vsel %vm340_vm0, %v3482_v42, %v2514_v54  ;;  %v1298_v0 = vsel %vm340_vm0, %v561_v55, %v2515_v53  ;;  %v1422_v51 = vld [vmem:[%s4089_s1 + $0x200] sm:$0xff]  ;;  %v3590_v53 = vld [vmem:[#allocation2 + $0x6a] sm:$0xff]  ;;  %v3592_v54 = vld [vmem:[#allocation2 + $0x98] sm:$0xff] }
  0xb9   : > { %v2520_v8 = vunpack.i.h.bf16 %v2518_v57  ;;  %v2519_v60 = vunpack.i.l.bf16 %v2518_v57  ;;  %1610 = vmatprep.mubr.f32.mxu0 %v1266_v56  ;;  %1835 = vmatprep.mubr.f32.mxu1 %v1330_v5  ;;  %v2523_v62 = vpop.permute.xlu1 %2522 }
  0xba   : > { %v2525_v52 = vunpack.i.h.bf16 %v2523_v62  ;;  %v2524_v3 = vunpack.i.l.bf16 %v2523_v62  ;;  %2382 = vmatprep.subr.mxu0 %v1426_v44  ;;  %2443 = vmatprep.subr.mxu1 %v1426_v44  ;;  %v566_v62 = vld [vmem:[#allocation2 + $0x81] sm:$0xff] }
  0xbb   : > { %v1267_v6 = vsel %vm340_vm0, %v3534_v58, %v2519_v60  ;;  %v1331_v7 = vsel %vm340_vm0, %v3536_v59, %v2520_v8  ;;  %2383 = vmatpush3.msra.mxu0 %v1426_v44  ;;  %2451 = vmatpush3.msra.mxu1 %v1426_v44 }
  0xbc   : > { %1611 = vmatmul.mubr.f32.gmra.mxu0 %v1234_v63  ;;  %1836 = vmatmul.mubr.f32.gmra.mxu1 %v1298_v0  ;;  %v2528_v42 = vpop.permute.xlu0 %2527  ;;  %v1235_v14 = vsel %vm340_vm0, %v3490_v61, %v2524_v3  ;;  %v1299_v16 = vsel %vm340_vm0, %v562_v4, %v2525_v52  ;;  %v3601_v3 = vld [vmem:[#allocation2 + $0x7a] sm:$0xff] }
  0xbd   : > { %v2530_v1 = vunpack.i.h.bf16 %v2528_v42  ;;  %v2529_v12 = vunpack.i.l.bf16 %v2528_v42  ;;  %1615 = vmatprep.mubr.f32.mxu0 %v1267_v6  ;;  %1840 = vmatprep.mubr.f32.mxu1 %v1331_v7  ;;  %v2533_v13 = vpop.permute.xlu1 %2532 }
  0xbe   : > { %v2535_v17 = vunpack.i.h.bf16 %v2533_v13  ;;  %v2534_v18 = vunpack.i.l.bf16 %v2533_v13  ;;  %2384 = vmatprep.subr.mxu0 %v1425_v9  ;;  %2444 = vmatprep.subr.mxu1 %v1425_v9  ;;  %v567_v13 = vld [vmem:[#allocation2 + $0x91] sm:$0xff] }
  0xbf   : > { %v1268_v20 = vsel %vm340_vm0, %v3548_v10, %v2529_v12  ;;  %v1332_v21 = vsel %vm340_vm0, %v3550_v11, %v2530_v1  ;;  %2385 = vmatpush3.msra.mxu0 %v1425_v9  ;;  %2452 = vmatpush3.msra.mxu1 %v1425_v9 }
  0xc0   : > { %1616 = vmatmul.mubr.f32.gmra.mxu0 %v1235_v14  ;;  %1841 = vmatmul.mubr.f32.gmra.mxu1 %v1299_v16  ;;  %v2538_v61 = vpop.permute.xlu0 %2537  ;;  %v1236_v27 = vsel %vm340_vm0, %v3500_v15, %v2534_v18  ;;  %v1300_v28 = vsel %vm340_vm0, %v563_v19, %v2535_v17  ;;  %v3612_v18 = vld [vmem:[#allocation2 + $0x82] sm:$0xff]  ;;  %v3614_v19 = vld [vmem:[#allocation2 + $0xb0] sm:$0xff] }
  0xc1   : > { %v2540_v25 = vunpack.i.h.bf16 %v2538_v61  ;;  %v2539_v39 = vunpack.i.l.bf16 %v2538_v61  ;;  %1620 = vmatprep.mubr.f32.mxu0 %v1268_v20  ;;  %1845 = vmatprep.mubr.f32.mxu1 %v1332_v21  ;;  %v2543_v26 = vpop.permute.xlu1 %2542 }
  0xc2   : > { %v2545_v30 = vunpack.i.h.bf16 %v2543_v26  ;;  %v2544_v31 = vunpack.i.l.bf16 %v2543_v26  ;;  %2386 = vmatprep.subr.mxu0 %v1424_v22  ;;  %2445 = vmatprep.subr.mxu1 %v1424_v22  ;;  %v568_v26 = vld [vmem:[#allocation2 + $0x99] sm:$0xff] }
  0xc3   : > { %v1269_v33 = vsel %vm340_vm0, %v3562_v23, %v2539_v39  ;;  %v1333_v34 = vsel %vm340_vm0, %v3564_v24, %v2540_v25  ;;  %2387 = vmatpush3.msra.mxu0 %v1424_v22  ;;  %2453 = vmatpush3.msra.mxu1 %v1424_v22 }
  0xc4   : > { %1621 = vmatmul.mubr.f32.gmra.mxu0 %v1236_v27  ;;  %1846 = vmatmul.mubr.f32.gmra.mxu1 %v1300_v28  ;;  %v2548_v15 = vpop.permute.xlu0 %2547  ;;  %v1237_v38 = vsel %vm340_vm0, %v3514_v29, %v2544_v31  ;;  %v1301_v45 = vsel %vm340_vm0, %v564_v32, %v2545_v30  ;;  %v3623_v31 = vld [vmem:[#allocation2 + $0x92] sm:$0xff]  ;;  %v3625_v32 = vld [vmem:[#allocation2 + $0xc0] sm:$0xff] }
  0xc5   : > { %v2550_v41 = vunpack.i.h.bf16 %v2548_v15  ;;  %v2549_v35 = vunpack.i.l.bf16 %v2548_v15  ;;  %1625 = vmatprep.mubr.f32.mxu0 %v1269_v33  ;;  %1850 = vmatprep.mubr.f32.mxu1 %v1333_v34  ;;  %v2553_v43 = vpop.permute.xlu1 %2552 }
  0xc6   : > { %v2555_v46 = vunpack.i.h.bf16 %v2553_v43  ;;  %v2554_v2 = vunpack.i.l.bf16 %v2553_v43  ;;  %2388 = vmatprep.subr.mxu0 %v1423_v36  ;;  %2446 = vmatprep.subr.mxu1 %v1423_v36  ;;  %v569_v43 = vld [vmem:[#allocation2 + $0xa9] sm:$0xff] }
  0xc7   : > { %v1270_v49 = vsel %vm340_vm0, %v3576_v37, %v2549_v35  ;;  %v1334_v50 = vsel %vm340_vm0, %v3578_v40, %v2550_v41  ;;  %2389 = vmatpush3.msra.mxu0 %v1423_v36  ;;  %2454 = vmatpush3.msra.mxu1 %v1423_v36 }
  0xc8   : > { %1626 = vmatmul.mubr.f32.gmra.mxu0 %v1237_v38  ;;  %1851 = vmatmul.mubr.f32.gmra.mxu1 %v1301_v45  ;;  %v2558_v29 = vpop.permute.xlu0 %2557  ;;  %v1238_v44 = vsel %vm340_vm0, %v3524_v47, %v2554_v2  ;;  %v1302_v57 = vsel %vm340_vm0, %v565_v48, %v2555_v46  ;;  %v3603_v47 = vld [vmem:[#allocation2 + $0xa8] sm:$0xff]  ;;  %v3634_v2 = vld [vmem:[#allocation2 + $0x9a] sm:$0xff] }
  0xc9   : > { %v2560_v55 = vunpack.i.h.bf16 %v2558_v29  ;;  %v2559_v56 = vunpack.i.l.bf16 %v2558_v29  ;;  %1630 = vmatprep.mubr.f32.mxu0 %v1270_v49  ;;  %1855 = vmatprep.mubr.f32.mxu1 %v1334_v50  ;;  %v2563_v5 = vpop.permute.xlu1 %2562  ;;  %v3636_v48 = vld [vmem:[#allocation2 + $0xc8] sm:$0xff] }
  0xca   : > { %v2565_v8 = vunpack.i.h.bf16 %v2563_v5  ;;  %v2564_v60 = vunpack.i.l.bf16 %v2563_v5  ;;  %2390 = vmatprep.subr.mxu0 %v1422_v51  ;;  %2447 = vmatprep.subr.mxu1 %v1422_v51  ;;  %v570_v5 = vld [vmem:[#allocation2 + $0xb1] sm:$0xff] }
  0xcb   : > { %v1271_v63 = vsel %vm340_vm0, %v3590_v53, %v2559_v56  ;;  %v1335_v0 = vsel %vm340_vm0, %v3592_v54, %v2560_v55  ;;  %2391 = vmatpush3.msra.mxu0 %v1422_v51  ;;  %2455 = vmatpush3.msra.mxu1 %v1422_v51 }
  0xcc   : > { %1631 = vmatmul.mubr.f32.gmra.mxu0 %v1238_v44  ;;  %1856 = vmatmul.mubr.f32.gmra.mxu1 %v1302_v57  ;;  %v2568_v52 = vpop.permute.xlu0 %2567  ;;  %v1239_v9 = vsel %vm340_vm0, %v3536_v59, %v2564_v60  ;;  %v1303_v42 = vsel %vm340_vm0, %v566_v62, %v2565_v8  ;;  %v3645_v60 = vld [vmem:[#allocation2 + $0xaa] sm:$0xff]  ;;  %v3647_v62 = vld [vmem:[#allocation2 + $0xd8] sm:$0xff] }
  0xcd   : > { %v2570_v4 = vunpack.i.h.bf16 %v2568_v52  ;;  %v2569_v6 = vunpack.i.l.bf16 %v2568_v52  ;;  %1635 = vmatprep.mubr.f32.mxu0 %v1271_v63  ;;  %1860 = vmatprep.mubr.f32.mxu1 %v1335_v0  ;;  %v2573_v7 = vpop.permute.xlu1 %2572 }
  0xce   : > { %v2575_v1 = vunpack.i.h.bf16 %v2573_v7  ;;  %v2574_v12 = vunpack.i.l.bf16 %v2573_v7 }
  0xcf   : > { %v1272_v14 = vsel %vm340_vm0, %v3601_v3, %v2569_v6  ;;  %v1336_v16 = vsel %vm340_vm0, %v3603_v47, %v2570_v4 }
  0xd0   : > { %1636 = vmatmul.mubr.f32.gmra.mxu0 %v1239_v9  ;;  %1861 = vmatmul.mubr.f32.gmra.mxu1 %v1303_v42  ;;  %v2578_v17 = vpop.permute.xlu0 %2577  ;;  %v1240_v22 = vsel %vm340_vm0, %v3550_v11, %v2574_v12  ;;  %v1304_v61 = vsel %vm340_vm0, %v567_v13, %v2575_v1  ;;  %v571_v9 = vld [vmem:[#allocation2 + $0xc1] sm:$0xff]  ;;  %v3656_v13 = vld [vmem:[#allocation2 + $0xb2] sm:$0xff] }
  0xd1   : > { %v2580_v20 = vunpack.i.h.bf16 %v2578_v17  ;;  %v2579_v59 = vunpack.i.l.bf16 %v2578_v17  ;;  %1640 = vmatprep.mubr.f32.mxu0 %v1272_v14  ;;  %1865 = vmatprep.mubr.f32.mxu1 %v1336_v16  ;;  %v2583_v21 = vpop.permute.xlu1 %2582  ;;  %v3658_v14 = vld [vmem:[#allocation2 + $0xe0] sm:$0xff] }
  0xd2   : > { %v2585_v25 = vunpack.i.h.bf16 %v2583_v21  ;;  %v2584_v39 = vunpack.i.l.bf16 %v2583_v21 }
  0xd3   : > { %v1273_v27 = vsel %vm340_vm0, %v3612_v18, %v2579_v59  ;;  %v1337_v28 = vsel %vm340_vm0, %v3614_v19, %v2580_v20 }
  0xd4   : > { %1641 = vmatmul.mubr.f32.gmra.mxu0 %v1240_v22  ;;  %1866 = vmatmul.mubr.f32.gmra.mxu1 %v1304_v61  ;;  %v2588_v30 = vpop.permute.xlu0 %2587  ;;  %v1241_v36 = vsel %vm340_vm0, %v3564_v24, %v2584_v39  ;;  %v1305_v15 = vsel %vm340_vm0, %v568_v26, %v2585_v25  ;;  %v572_v61 = vld [vmem:[#allocation2 + $0xc9] sm:$0xff] }
  0xd5   : > { %v2590_v33 = vunpack.i.h.bf16 %v2588_v30  ;;  %v2589_v11 = vunpack.i.l.bf16 %v2588_v30  ;;  %1645 = vmatprep.mubr.f32.mxu0 %v1273_v27  ;;  %1870 = vmatprep.mubr.f32.mxu1 %v1337_v28  ;;  %v2593_v34 = vpop.permute.xlu1 %2592  ;;  %v3667_v27 = vld [vmem:[#allocation2 + $0xc2] sm:$0xff]  ;;  %v3669_v28 = vld [vmem:[#allocation2 + $0xf0] sm:$0xff] }
  0xd6   : > { %v2595_v41 = vunpack.i.h.bf16 %v2593_v34  ;;  %v2594_v35 = vunpack.i.l.bf16 %v2593_v34 }
  0xd7   : > { %v1274_v38 = vsel %vm340_vm0, %v3623_v31, %v2589_v11  ;;  %v1338_v45 = vsel %vm340_vm0, %v3625_v32, %v2590_v33 }
  0xd8   : > { %1646 = vmatmul.mubr.f32.gmra.mxu0 %v1241_v36  ;;  %1871 = vmatmul.mubr.f32.gmra.mxu1 %v1305_v15  ;;  %v2598_v46 = vpop.permute.xlu0 %2597  ;;  %v1242_v51 = vsel %vm340_vm0, %v3578_v40, %v2594_v35  ;;  %v1306_v29 = vsel %vm340_vm0, %v569_v43, %v2595_v41  ;;  %v573_v41 = vld [vmem:[#allocation2 + $0xd9] sm:$0xff] }
  0xd9   : > { %v2600_v49 = vunpack.i.h.bf16 %v2598_v46  ;;  %v2599_v24 = vunpack.i.l.bf16 %v2598_v46  ;;  %1650 = vmatprep.mubr.f32.mxu0 %v1274_v38  ;;  %1875 = vmatprep.mubr.f32.mxu1 %v1338_v45  ;;  %v2603_v50 = vpop.permute.xlu1 %2602  ;;  %v3678_v45 = vld [vmem:[#allocation2 + $0xca] sm:$0xff]  ;;  %v3680_v46 = vld [vmem:[#allocation2 + $0xf8] sm:$0xff] }
  0xda   : > { %v2605_v55 = vunpack.i.h.bf16 %v2603_v50  ;;  %v2604_v56 = vunpack.i.l.bf16 %v2603_v50 }
  0xdb   : > { %v1275_v44 = vsel %vm340_vm0, %v3634_v2, %v2599_v24  ;;  %v1339_v57 = vsel %vm340_vm0, %v3636_v48, %v2600_v49 }
  0xdc   : > { %1651 = vmatmul.mubr.f32.gmra.mxu0 %v1242_v51  ;;  %1876 = vmatmul.mubr.f32.gmra.mxu1 %v1306_v29  ;;  %v2608_v8 = vpop.permute.xlu0 %2607  ;;  %v1243_v52 = vsel %vm340_vm0, %v3592_v54, %v2604_v56  ;;  %v1307_v4 = vsel %vm340_vm0, %v570_v5, %v2605_v55  ;;  %v574_v56 = vld [vmem:[#allocation2 + $0xe1] sm:$0xff] }
  0xdd   : > { %v2610_v63 = vunpack.i.h.bf16 %v2608_v8  ;;  %v2609_v40 = vunpack.i.l.bf16 %v2608_v8  ;;  %1655 = vmatprep.mubr.f32.mxu0 %v1275_v44  ;;  %1880 = vmatprep.mubr.f32.mxu1 %v1339_v57  ;;  %v2613_v0 = vpop.permute.xlu1 %2612  ;;  %v3689_v8 = vld [vmem:[#allocation2 + $0xda] sm:$0xff] }
  0xde   : > { %v2615_v6 = vunpack.i.h.bf16 %v2613_v0  ;;  %v2614_v7 = vunpack.i.l.bf16 %v2613_v0 }
  0xdf   : > { %v1276_v42 = vsel %vm340_vm0, %v3645_v60, %v2609_v40  ;;  %v1340_v1 = vsel %vm340_vm0, %v3647_v62, %v2610_v63  ;;  %v3691_v63 = vld [vmem:[#allocation2 + $0x108] sm:$0xff] }
  0xe0   : > { %1656 = vmatmul.mubr.f32.gmra.mxu0 %v1243_v52  ;;  %1881 = vmatmul.mubr.f32.gmra.mxu1 %v1307_v4  ;;  %v2618_v12 = vpop.permute.xlu0 %2617  ;;  %v1244_v20 = vsel %vm340_vm0, %v3603_v47, %v2614_v7  ;;  %v1308_v59 = vsel %vm340_vm0, %v571_v9, %v2615_v6  ;;  %v575_v9 = vld [vmem:[#allocation2 + $0xf1] sm:$0xff] }
  0xe1   : > { %v2620_v16 = vunpack.i.h.bf16 %v2618_v12  ;;  %v2619_v54 = vunpack.i.l.bf16 %v2618_v12  ;;  %1660 = vmatprep.mubr.f32.mxu0 %v1276_v42  ;;  %1885 = vmatprep.mubr.f32.mxu1 %v1340_v1  ;;  %v2623_v17 = vpop.permute.xlu1 %2622 }
  0xe2   : > { %v2625_v21 = vunpack.i.h.bf16 %v2623_v17  ;;  %v2624_v22 = vunpack.i.l.bf16 %v2623_v17 }
  0xe3   : > { %v1277_v25 = vsel %vm340_vm0, %v3656_v13, %v2619_v54  ;;  %v1341_v39 = vsel %vm340_vm0, %v3658_v14, %v2620_v16  ;;  %v3700_v16 = vld [vmem:[#allocation2 + $0xe2] sm:$0xff]  ;;  %v3702_v54 = vld [vmem:[#allocation2 + $0x110] sm:$0xff] }
  0xe4   : > { %1661 = vmatmul.mubr.f32.gmra.mxu0 %v1244_v20  ;;  %1886 = vmatmul.mubr.f32.gmra.mxu1 %v1308_v59  ;;  %v2628_v26 = vpop.permute.xlu0 %2627  ;;  %v1245_v11 = vsel %vm340_vm0, %v3614_v19, %v2624_v22  ;;  %v1309_v34 = vsel %vm340_vm0, %v572_v61, %v2625_v21 }
  0xe5   : > { %v2630_v30 = vunpack.i.h.bf16 %v2628_v26  ;;  %v2629_v47 = vunpack.i.l.bf16 %v2628_v26  ;;  %1665 = vmatprep.mubr.f32.mxu0 %v1277_v25  ;;  %1890 = vmatprep.mubr.f32.mxu1 %v1341_v39  ;;  %v2633_v33 = vpop.permute.xlu1 %2632  ;;  %v576_v25 = vld [vmem:[#allocation2 + $0xf9] sm:$0xff] }
  0xe6   : > { %v2635_v36 = vunpack.i.h.bf16 %v2633_v33  ;;  %v2634_v15 = vunpack.i.l.bf16 %v2633_v33  ;;  %v3713_v33 = vld [vmem:[#allocation2 + $0x120] sm:$0xff] }
  0xe7   : > { %v1278_v35 = vsel %vm340_vm0, %v3667_v27, %v2629_v47  ;;  %v1342_v43 = vsel %vm340_vm0, %v3669_v28, %v2630_v30  ;;  %v3711_v47 = vld [vmem:[#allocation2 + $0xf2] sm:$0xff] }
  0xe8   : > { %1666 = vmatmul.mubr.f32.gmra.mxu0 %v1245_v11  ;;  %1891 = vmatmul.mubr.f32.gmra.mxu1 %v1309_v34  ;;  %v2638_v38 = vpop.permute.xlu0 %2637  ;;  %v1246_v50 = vsel %vm340_vm0, %v3625_v32, %v2634_v15  ;;  %v1310_v51 = vsel %vm340_vm0, %v573_v41, %v2635_v36 }
  0xe9   : > { %v2640_v49 = vunpack.i.h.bf16 %v2638_v38  ;;  %v2639_v19 = vunpack.i.l.bf16 %v2638_v38  ;;  %1670 = vmatprep.mubr.f32.mxu0 %v1278_v35  ;;  %1895 = vmatprep.mubr.f32.mxu1 %v1342_v43  ;;  %v2643_v24 = vpop.permute.xlu1 %2642  ;;  %v577_v43 = vld [vmem:[#allocation2 + $0x109] sm:$0xff] }
  0xea   : > { %v2645_v29 = vunpack.i.h.bf16 %v2643_v24  ;;  %v2644_v55 = vunpack.i.l.bf16 %v2643_v24  ;;  %v3722_v24 = vld [vmem:[#allocation2 + $0xfa] sm:$0xff] }
  0xeb   : > { %v1279_v5 = vsel %vm340_vm0, %v3678_v45, %v2639_v19  ;;  %v1343_v44 = vsel %vm340_vm0, %v3680_v46, %v2640_v49 }
  0xec   : > { %1671 = vmatmul.mubr.f32.gmra.mxu0 %v1246_v50  ;;  %1896 = vmatmul.mubr.f32.gmra.mxu1 %v1310_v51  ;;  %v2648_v57 = vpop.permute.xlu0 %2647  ;;  %v1247_v52 = vsel %vm340_vm0, %v3636_v48, %v2644_v55  ;;  %v1311_v4 = vsel %vm340_vm0, %v574_v56, %v2645_v29  ;;  %v3724_v50 = vld [vmem:[#allocation2 + $0x128] sm:$0xff] }
  0xed   : > { %v2650_v40 = vunpack.i.h.bf16 %v2648_v57  ;;  %v2649_v32 = vunpack.i.l.bf16 %v2648_v57  ;;  %1675 = vmatprep.mubr.f32.mxu0 %v1279_v5  ;;  %1900 = vmatprep.mubr.f32.mxu1 %v1343_v44  ;;  %v2653_v0 = vpop.permute.xlu1 %2652  ;;  %v578_v57 = vld [vmem:[#allocation2 + $0x111] sm:$0xff] }
  0xee   : > { %v2655_v6 = vunpack.i.h.bf16 %v2653_v0  ;;  %v2654_v7 = vunpack.i.l.bf16 %v2653_v0 }
  0xef   : > { %v1280_v42 = vsel %vm340_vm0, %v3689_v8, %v2649_v32  ;;  %v1344_v1 = vsel %vm340_vm0, %v3691_v63, %v2650_v40 }
  0xf0   : > { %1676 = vmatmul.mubr.f32.gmra.mxu0 %v1247_v52  ;;  %1901 = vmatmul.mubr.f32.gmra.mxu1 %v1311_v4  ;;  %v2658_v12 = vpop.permute.xlu0 %2657  ;;  %v1248_v59 = vsel %vm340_vm0, %v3647_v62, %v2654_v7  ;;  %v1312_v21 = vsel %vm340_vm0, %v575_v9, %v2655_v6  ;;  %v3733_v52 = vld [vmem:[#allocation2 + $0x10a] sm:$0xff]  ;;  %v3735_v4 = vld [vmem:[#allocation2 + $0x138] sm:$0xff] }
  0xf1   : > { %v2660_v17 = vunpack.i.h.bf16 %v2658_v12  ;;  %v2659_v48 = vunpack.i.l.bf16 %v2658_v12  ;;  %1680 = vmatprep.mubr.f32.mxu0 %v1280_v42  ;;  %1905 = vmatprep.mubr.f32.mxu1 %v1344_v1  ;;  %v2663_v20 = vpop.permute.xlu1 %2662 }
  0xf2   : > { %v2665_v22 = vunpack.i.h.bf16 %v2663_v20  ;;  %v2664_v61 = vunpack.i.l.bf16 %v2663_v20 }
  0xf3   : > { %v1281_v39 = vsel %vm340_vm0, %v3700_v16, %v2659_v48  ;;  %v1345_v26 = vsel %vm340_vm0, %v3702_v54, %v2660_v17  ;;  %v579_v17 = vld [vmem:[#allocation2 + $0x121] sm:$0xff] }
  0xf4   : > { %1681 = vmatmul.mubr.f32.gmra.mxu0 %v1248_v59  ;;  %1906 = vmatmul.mubr.f32.gmra.mxu1 %v1312_v21  ;;  %v2668_v30 = vpop.permute.xlu0 %2667  ;;  %v1249_v36 = vsel %vm340_vm0, %v3658_v14, %v2664_v61  ;;  %v1313_v15 = vsel %vm340_vm0, %v576_v25, %v2665_v22  ;;  %v3744_v21 = vld [vmem:[#allocation2 + $0x112] sm:$0xff]  ;;  %v3746_v22 = vld [vmem:[#allocation2 + $0x140] sm:$0xff] }
  0xf5   : > { %v2670_v11 = vunpack.i.h.bf16 %v2668_v30  ;;  %v2669_v62 = vunpack.i.l.bf16 %v2668_v30  ;;  %1685 = vmatprep.mubr.f32.mxu0 %v1281_v39  ;;  %1910 = vmatprep.mubr.f32.mxu1 %v1345_v26  ;;  %v2673_v34 = vpop.permute.xlu1 %2672 }
  0xf6   : > { %v2675_v41 = vunpack.i.h.bf16 %v2673_v34  ;;  %v2674_v35 = vunpack.i.l.bf16 %v2673_v34 }
  0xf7   : > { %v1282_v38 = vsel %vm340_vm0, %v3711_v47, %v2669_v62  ;;  %v1346_v49 = vsel %vm340_vm0, %v3713_v33, %v2670_v11  ;;  %v580_v62 = vld [vmem:[#allocation2 + $0x129] sm:$0xff] }
  0xf8   : > { %1686 = vmatmul.mubr.f32.gmra.mxu0 %v1249_v36  ;;  %1911 = vmatmul.mubr.f32.gmra.mxu1 %v1313_v15  ;;  %v2678_v19 = vpop.permute.xlu0 %2677  ;;  %v1250_v55 = vsel %vm340_vm0, %v3669_v28, %v2674_v35  ;;  %v1314_v56 = vsel %vm340_vm0, %v577_v43, %v2675_v41  ;;  %v3755_v41 = vld [vmem:[#allocation2 + $0x122] sm:$0xff]  ;;  %v3757_v35 = vld [vmem:[#allocation2 + $0x150] sm:$0xff] }
  0xf9   : > { %v2680_v51 = vunpack.i.h.bf16 %v2678_v19  ;;  %v2679_v14 = vunpack.i.l.bf16 %v2678_v19  ;;  %1690 = vmatprep.mubr.f32.mxu0 %v1282_v38  ;;  %1915 = vmatprep.mubr.f32.mxu1 %v1346_v49  ;;  %v2683_v29 = vpop.permute.xlu1 %2682 }
  0xfa   : > { %v2685_v5 = vunpack.i.h.bf16 %v2683_v29  ;;  %v2684_v44 = vunpack.i.l.bf16 %v2683_v29  ;;  %v581_v29 = vld [vmem:[#allocation2 + $0x139] sm:$0xff] }
  0xfb   : > { %v1283_v40 = vsel %vm340_vm0, %v3722_v24, %v2679_v14  ;;  %v1347_v32 = vsel %vm340_vm0, %v3724_v50, %v2680_v51 }
  0xfc   : > { %1691 = vmatmul.mubr.f32.gmra.mxu0 %v1250_v55  ;;  %1916 = vmatmul.mubr.f32.gmra.mxu1 %v1314_v56  ;;  %v2688_v0 = vpop.permute.xlu0 %2687  ;;  %v1251_v9 = vsel %vm340_vm0, %v3680_v46, %v2684_v44  ;;  %v1315_v42 = vsel %vm340_vm0, %v578_v57, %v2685_v5  ;;  %v3766_v44 = vld [vmem:[#allocation2 + $0x12a] sm:$0xff]  ;;  %v3768_v57 = vld [vmem:[#allocation2 + $0x158] sm:$0xff] }
  0xfd   : > { %v2690_v6 = vunpack.i.h.bf16 %v2688_v0  ;;  %v2689_v28 = vunpack.i.l.bf16 %v2688_v0  ;;  %1695 = vmatprep.mubr.f32.mxu0 %v1283_v40  ;;  %1920 = vmatprep.mubr.f32.mxu1 %v1347_v32  ;;  %v2693_v7 = vpop.permute.xlu1 %2692 }
  0xfe   : > { %v2695_v1 = vunpack.i.h.bf16 %v2693_v7  ;;  %v2694_v12 = vunpack.i.l.bf16 %v2693_v7 }
  0xff   : > { %v1284_v48 = vsel %vm340_vm0, %v3733_v52, %v2689_v28  ;;  %v1348_v20 = vsel %vm340_vm0, %v3735_v4, %v2690_v6 }
 0x100   : > { %1696 = vmatmul.mubr.f32.gmra.mxu0 %v1251_v9  ;;  %1921 = vmatmul.mubr.f32.gmra.mxu1 %v1315_v42  ;;  %v2698_v59 = vpop.permute.xlu0 %2697  ;;  %v1252_v39 = vsel %vm340_vm0, %v3691_v63, %v2694_v12  ;;  %v1316_v26 = vsel %vm340_vm0, %v579_v17, %v2695_v1  ;;  %v582_v9 = vld [vmem:[#allocation2 + $0x141] sm:$0xff] }
 0x101   : > { %v2700_v61 = vunpack.i.h.bf16 %v2698_v59  ;;  %v2699_v46 = vunpack.i.l.bf16 %v2698_v59  ;;  %1700 = vmatprep.mubr.f32.mxu0 %v1284_v48  ;;  %1925 = vmatprep.mubr.f32.mxu1 %v1348_v20  ;;  %v2703_v25 = vpop.permute.xlu1 %2702  ;;  %v3777_v17 = vld [vmem:[#allocation2 + $0x13a] sm:$0xff]  ;;  %v3779_v48 = vld [vmem:[#allocation2 + $0x168] sm:$0xff] }
 0x102   : > { %v2705_v30 = vunpack.i.h.bf16 %v2703_v25  ;;  %v2704_v11 = vunpack.i.l.bf16 %v2703_v25 }
 0x103   : > { %v1285_v34 = vsel %vm340_vm0, %v3744_v21, %v2699_v46  ;;  %v1349_v36 = vsel %vm340_vm0, %v3746_v22, %v2700_v61 }
 0x104   : > { %1701 = vmatmul.mubr.f32.gmra.mxu0 %v1252_v39  ;;  %1926 = vmatmul.mubr.f32.gmra.mxu1 %v1316_v26  ;;  %v2708_v15 = vpop.permute.xlu0 %2707  ;;  %v1253_v49 = vsel %vm340_vm0, %v3702_v54, %v2704_v11  ;;  %v1317_v19 = vsel %vm340_vm0, %v580_v62, %v2705_v30  ;;  %v583_v26 = vld [vmem:[#allocation2 + $0x151] sm:$0xff] }
 0x105   : > { %v2710_v43 = vunpack.i.h.bf16 %v2708_v15  ;;  %v2709_v63 = vunpack.i.l.bf16 %v2708_v15  ;;  %1705 = vmatprep.mubr.f32.mxu0 %v1285_v34  ;;  %1930 = vmatprep.mubr.f32.mxu1 %v1349_v36  ;;  %v2713_v38 = vpop.permute.xlu1 %2712  ;;  %v3788_v34 = vld [vmem:[#allocation2 + $0x142] sm:$0xff]  ;;  %v3790_v36 = vld [vmem:[#allocation2 + $0x170] sm:$0xff] }
 0x106   : > { %v2715_v51 = vunpack.i.h.bf16 %v2713_v38  ;;  %v2714_v14 = vunpack.i.l.bf16 %v2713_v38 }
 0x107   : > { %v1286_v55 = vsel %vm340_vm0, %v3755_v41, %v2709_v63  ;;  %v1350_v56 = vsel %vm340_vm0, %v3757_v35, %v2710_v43 }
 0x108   : > { %1706 = vmatmul.mubr.f32.gmra.mxu0 %v1253_v49  ;;  %1931 = vmatmul.mubr.f32.gmra.mxu1 %v1317_v19  ;;  %v2718_v5 = vpop.permute.xlu0 %2717  ;;  %v1254_v0 = vsel %vm340_vm0, %v3713_v33, %v2714_v14  ;;  %v1318_v6 = vsel %vm340_vm0, %v581_v29, %v2715_v51  ;;  %v584_v51 = vld [vmem:[#allocation2 + $0x159] sm:$0xff] }
 0x109   : > { %v2720_v40 = vunpack.i.h.bf16 %v2718_v5  ;;  %v2719_v54 = vunpack.i.l.bf16 %v2718_v5  ;;  %1710 = vmatprep.mubr.f32.mxu0 %v1286_v55  ;;  %1935 = vmatprep.mubr.f32.mxu1 %v1350_v56  ;;  %v2723_v32 = vpop.permute.xlu1 %2722  ;;  %v3799_v56 = vld [vmem:[#allocation2 + $0x152] sm:$0xff]  ;;  %v650_v5 = vld [vmem:[#allocation2 + $0x180] sm:$0xff] }
 0x10a   : > { %v2725_v28 = vunpack.i.h.bf16 %v2723_v32  ;;  %v2724_v7 = vunpack.i.l.bf16 %v2723_v32 }
 0x10b   : > { %v1287_v42 = vsel %vm340_vm0, %v3766_v44, %v2719_v54  ;;  %v1351_v1 = vsel %vm340_vm0, %v3768_v57, %v2720_v40 }
 0x10c   : > { %1711 = vmatmul.mubr.f32.gmra.mxu0 %v1254_v0  ;;  %1936 = vmatmul.mubr.f32.gmra.mxu1 %v1318_v6  ;;  %v2728_v12 = vpop.permute.xlu0 %2727  ;;  %v1255_v61 = vsel %vm340_vm0, %v3724_v50, %v2724_v7  ;;  %v1319_v46 = vsel %vm340_vm0, %v582_v9, %v2725_v28  ;;  %v585_v7 = vld [vmem:[#allocation2 + $0x169] sm:$0xff] }
 0x10d   : > { %v2730_v20 = vunpack.i.h.bf16 %v2728_v12  ;;  %v2729_v33 = vunpack.i.l.bf16 %v2728_v12  ;;  %1715 = vmatprep.mubr.f32.mxu0 %v1287_v42  ;;  %1940 = vmatprep.mubr.f32.mxu1 %v1351_v1  ;;  %v2733_v59 = vpop.permute.xlu1 %2732  ;;  %v3807_v12 = vld [vmem:[#allocation2 + $0x15a] sm:$0xff] }
 0x10e   : > { %v2735_v25 = vunpack.i.h.bf16 %v2733_v59  ;;  %v2734_v39 = vunpack.i.l.bf16 %v2733_v59 }
 0x10f   : > { %v1288_v30 = vsel %vm340_vm0, %v3777_v17, %v2729_v33  ;;  %v1352_v11 = vsel %vm340_vm0, %v3779_v48, %v2730_v20  ;;  %v651_v20 = vld [vmem:[#allocation2 + $0x188] sm:$0xff] }
 0x110   : > { %1716 = vmatmul.mubr.f32.gmra.mxu0 %v1255_v61  ;;  %1941 = vmatmul.mubr.f32.gmra.mxu1 %v1319_v46  ;;  %v2738_v62 = vpop.permute.xlu0 %2737  ;;  %v1256_v63 = vsel %vm340_vm0, %v3735_v4, %v2734_v39  ;;  %v1320_v38 = vsel %vm340_vm0, %v583_v26, %v2735_v25  ;;  %v586_v26 = vld [vmem:[#allocation2 + $0x171] sm:$0xff] }
 0x111   : > { %v2740_v15 = vunpack.i.h.bf16 %v2738_v62  ;;  %v2739_v50 = vunpack.i.l.bf16 %v2738_v62  ;;  %1720 = vmatprep.mubr.f32.mxu0 %v1288_v30  ;;  %1945 = vmatprep.mubr.f32.mxu1 %v1352_v11  ;;  %v2743_v43 = vpop.permute.xlu1 %2742 }
 0x112   : > { %v2745_v49 = vunpack.i.h.bf16 %v2743_v43  ;;  %v2744_v19 = vunpack.i.l.bf16 %v2743_v43 }
 0x113   : > { %v1289_v14 = vsel %vm340_vm0, %v3788_v34, %v2739_v50  ;;  %v1353_v29 = vsel %vm340_vm0, %v3790_v36, %v2740_v15  ;;  %v523_v15 = vld [vmem:[#allocation2 + $0x16a] sm:$0xff]  ;;  %v652_v50 = vld [vmem:[#allocation2 + $0x198] sm:$0xff] }
 0x114   : > { %1721 = vmatmul.mubr.f32.gmra.mxu0 %v1256_v63  ;;  %1946 = vmatmul.mubr.f32.gmra.mxu1 %v1320_v38  ;;  %v2748_v55 = vpop.permute.xlu0 %2747  ;;  %v1257_v32 = vsel %vm340_vm0, %v3746_v22, %v2744_v19  ;;  %v1321_v0 = vsel %vm340_vm0, %v584_v51, %v2745_v49 }
 0x115   : > { %v2750_v40 = vunpack.i.h.bf16 %v2748_v55  ;;  %v2749_v54 = vunpack.i.l.bf16 %v2748_v55  ;;  %1725 = vmatprep.mubr.f32.mxu0 %v1289_v14  ;;  %1950 = vmatprep.mubr.f32.mxu1 %v1353_v29  ;;  %v2753_v4 = vpop.permute.xlu1 %2752  ;;  %v587_v14 = vld [vmem:[#allocation2 + $0x181] sm:$0xff] }
 0x116   : > { %v2755_v6 = vunpack.i.h.bf16 %v2753_v4  ;;  %v2754_v28 = vunpack.i.l.bf16 %v2753_v4  ;;  %v524_v4 = vld [vmem:[#allocation2 + $0x172] sm:$0xff] }
 0x117   : > { %v1290_v9 = vsel %vm340_vm0, %v3799_v56, %v2749_v54  ;;  %v1354_v42 = vsel %vm340_vm0, %v650_v5, %v2750_v40 }
 0x118   : > { %1726 = vmatmul.mubr.f32.gmra.mxu0 %v1257_v32  ;;  %1951 = vmatmul.mubr.f32.gmra.mxu1 %v1321_v0  ;;  %v2758_v1 = vpop.permute.xlu0 %2757  ;;  %v1258_v61 = vsel %vm340_vm0, %v3757_v35, %v2754_v28  ;;  %v1322_v46 = vsel %vm340_vm0, %v585_v7, %v2755_v6  ;;  %v653_v32 = vld [vmem:[#allocation2 + $0x1a0] sm:$0xff] }
 0x119   : > { %v2760_v33 = vunpack.i.h.bf16 %v2758_v1  ;;  %v2759_v59 = vunpack.i.l.bf16 %v2758_v1  ;;  %1730 = vmatprep.mubr.f32.mxu0 %v1290_v9  ;;  %1955 = vmatprep.mubr.f32.mxu1 %v1354_v42  ;;  %v2763_v22 = vpop.permute.xlu1 %2762  ;;  %v588_v9 = vld [vmem:[#allocation2 + $0x189] sm:$0xff] }
 0x11a   : > { %v2765_v25 = vunpack.i.h.bf16 %v2763_v22  ;;  %v2764_v39 = vunpack.i.l.bf16 %v2763_v22 }
 0x11b   : > { %v1291_v30 = vsel %vm340_vm0, %v3807_v12, %v2759_v59  ;;  %v1355_v11 = vsel %vm340_vm0, %v651_v20, %v2760_v33  ;;  %v686_v33 = vld [vmem:[#allocation2 + $0x32] sm:$0xff] }
 0x11c   : > { %1731 = vmatmul.mubr.f32.gmra.mxu0 %v1258_v61  ;;  %1956 = vmatmul.mubr.f32.gmra.mxu1 %v1322_v46  ;;  %v2768_v62 = vpop.permute.xlu0 %2767  ;;  %v1259_v38 = vsel %vm340_vm0, %v3768_v57, %v2764_v39  ;;  %v1323_v49 = vsel %vm340_vm0, %v586_v26, %v2765_v25 }
 0x11d   : > { %v2770_v43 = vunpack.i.h.bf16 %v2768_v62  ;;  %v2769_v63 = vunpack.i.l.bf16 %v2768_v62  ;;  %1735 = vmatprep.mubr.f32.mxu0 %v1291_v30  ;;  %1960 = vmatprep.mubr.f32.mxu1 %v1355_v11  ;;  %v2773_v35 = vpop.permute.xlu1 %2772 }
 0x11e   : > { %v2775_v19 = vunpack.i.h.bf16 %v2773_v35  ;;  %v2774_v51 = vunpack.i.l.bf16 %v2773_v35 }
 0x11f   : > { %v1292_v29 = vsel %vm340_vm0, %v523_v15, %v2769_v63  ;;  %v1356_v55 = vsel %vm340_vm0, %v652_v50, %v2770_v43 }
 0x120   : > { %1736 = vmatmul.mubr.f32.gmra.mxu0 %v1259_v38  ;;  %1961 = vmatmul.mubr.f32.gmra.mxu1 %v1323_v49  ;;  %v1260_v54 = vsel %vm340_vm0, %v3779_v48, %v2774_v51  ;;  %v1324_v57 = vsel %vm340_vm0, %v587_v14, %v2775_v19 }
 0x121   : > { %v2778_v5 = vpop.permute.xlu0 %2777  ;;  %1740 = vmatprep.mubr.f32.mxu0 %v1292_v29  ;;  %1965 = vmatprep.mubr.f32.mxu1 %v1356_v55  ;;  %v2783_v40 = vpop.permute.xlu1 %2782 }
 0x122   : > { %v2780_v0 = vunpack.i.h.bf16 %v2778_v5  ;;  %v2779_v6 = vunpack.i.l.bf16 %v2778_v5  ;;  %v2785_v28 = vunpack.i.h.bf16 %v2783_v40  ;;  %v2784_v7 = vunpack.i.l.bf16 %v2783_v40 }
 0x124   : > { %1741 = vmatmul.mubr.f32.gmra.mxu0 %v1260_v54  ;;  %1966 = vmatmul.mubr.f32.gmra.mxu1 %v1324_v57  ;;  %v1293_v42 = vsel %vm340_vm0, %v524_v4, %v2779_v6  ;;  %v1357_v1 = vsel %vm340_vm0, %v653_v32, %v2780_v0  ;;  %v1261_v48 = vsel %vm340_vm0, %v3790_v36, %v2784_v7 }
 0x125   : > { %1745 = vmatprep.mubr.f32.mxu0 %v1293_v42  ;;  %1970 = vmatprep.mubr.f32.mxu1 %v1357_v1  ;;  %v1325_v20 = vsel %vm340_vm0, %v588_v9, %v2785_v28 }
 0x128   : > { %1746 = vmatmul.mubr.f32.gmra.mxu0 %v1261_v48  ;;  %1971 = vmatmul.mubr.f32.gmra.mxu1 %v1325_v20 }
 0x129   : > { %2392 = vmatprep.mubr.msk.f32.mxu0 %vm340_vm0, %v686_v33  ;;  %2416 = vmatprep.mubr.msk.f32.mxu1 %vm340_vm0, %v3711_v47 }
 0x12c   : > { %2393 = vmatmul.mubr.msk.f32.vlgmr.msra.gmra.mxu0 %vm340_vm0, %v3534_v58  ;;  %2417 = vmatmul.mubr.msk.f32.vlgmr.msra.gmra.mxu1 %vm340_vm0, %v3722_v24  ;;  %v714_v58 = vld [vmem:[#allocation2 + $0x182] sm:$0xff] }
 0x12d   : > { %2395 = vmatprep.mubr.msk.f32.mxu0 %vm340_vm0, %v3548_v10  ;;  %2419 = vmatprep.mubr.msk.f32.mxu1 %vm340_vm0, %v3733_v52  ;;  %v715_v10 = vld [vmem:[#allocation2 + $0x18a] sm:$0xff] }
 0x130   : > { %2396 = vmatmul.mubr.msk.f32.gmra.mxu0 %vm340_vm0, %v3562_v23  ;;  %2420 = vmatmul.mubr.msk.f32.gmra.mxu1 %vm340_vm0, %v3744_v21  ;;  %v716_v23 = vld [vmem:[#allocation2 + $0x19a] sm:$0xff] }
 0x131   : > { %2398 = vmatprep.mubr.msk.f32.mxu0 %vm340_vm0, %v3576_v37  ;;  %2422 = vmatprep.mubr.msk.f32.mxu1 %vm340_vm0, %v3755_v41  ;;  %v717_v37 = vld [vmem:[#allocation2 + $0x1a2] sm:$0xff] }
 0x134   : > { %2399 = vmatmul.mubr.msk.f32.gmra.mxu0 %vm340_vm0, %v3590_v53  ;;  %2423 = vmatmul.mubr.msk.f32.gmra.mxu1 %vm340_vm0, %v3766_v44 }
 0x135   : > { %2401 = vmatprep.mubr.msk.f32.mxu0 %vm340_vm0, %v3601_v3  ;;  %2425 = vmatprep.mubr.msk.f32.mxu1 %vm340_vm0, %v3777_v17 }
 0x138   : > { %2402 = vmatmul.mubr.msk.f32.gmra.mxu0 %vm340_vm0, %v3612_v18  ;;  %2426 = vmatmul.mubr.msk.f32.gmra.mxu1 %vm340_vm0, %v3788_v34 }
 0x139   : > { %2404 = vmatprep.mubr.msk.f32.mxu0 %vm340_vm0, %v3623_v31  ;;  %2428 = vmatprep.mubr.msk.f32.mxu1 %vm340_vm0, %v3799_v56 }
 0x13c   : > { %2405 = vmatmul.mubr.msk.f32.gmra.mxu0 %vm340_vm0, %v3634_v2  ;;  %2429 = vmatmul.mubr.msk.f32.gmra.mxu1 %vm340_vm0, %v3807_v12 }
 0x13d   : > { %2407 = vmatprep.mubr.msk.f32.mxu0 %vm340_vm0, %v3645_v60  ;;  %2431 = vmatprep.mubr.msk.f32.mxu1 %vm340_vm0, %v523_v15 }
 0x140   : > { %2408 = vmatmul.mubr.msk.f32.gmra.mxu0 %vm340_vm0, %v3656_v13  ;;  %2432 = vmatmul.mubr.msk.f32.gmra.mxu1 %vm340_vm0, %v524_v4 }
 0x141   : > { %2410 = vmatprep.mubr.msk.f32.mxu0 %vm340_vm0, %v3667_v27  ;;  %2434 = vmatprep.mubr.msk.f32.mxu1 %vm340_vm0, %v714_v58 }
 0x144   : > { %2411 = vmatmul.mubr.msk.f32.gmra.mxu0 %vm340_vm0, %v3678_v45  ;;  %2435 = vmatmul.mubr.msk.f32.gmra.mxu1 %vm340_vm0, %v715_v10 }
 0x145   : > { %2413 = vmatprep.mubr.msk.f32.mxu0 %vm340_vm0, %v3689_v8  ;;  %2437 = vmatprep.mubr.msk.f32.mxu1 %vm340_vm0, %v716_v23 }
 0x148   : > { %2414 = vmatmul.mubr.msk.f32.gmra.mxu0 %vm340_vm0, %v3700_v16  ;;  %2438 = vmatmul.mubr.msk.f32.gmra.mxu1 %vm340_vm0, %v717_v37 }
 0x16c   : > { %v1592_v53 = vpop.f32.mrf.mxu0  ;;  %v1817_v3 = vpop.f32.mrf.mxu1 }
 0x16d   : > { %v3885_v18 = vadd.f32 %v1817_v3, %v1592_v53 }
 0x16e   : > { %v1594_v31 = vpop.f32.mrf.mxu0  ;;  %v1819_v2 = vpop.f32.mrf.mxu1 }
 0x170   : > { %v1597_v60 = vpop.f32.mrf.mxu0  ;;  %v1822_v13 = vpop.f32.mrf.mxu1 }
 0x171   : > { %v3887_v27 = vadd.f32 %v1822_v13, %v1597_v60 }
 0x172   : > { %v1599_v45 = vpop.f32.mrf.mxu0  ;;  %v1824_v8 = vpop.f32.mrf.mxu1 }
 0x174   : > { %v1602_v47 = vpop.f32.mrf.mxu0  ;;  %v1827_v24 = vpop.f32.mrf.mxu1 }
 0x175   : > { %v3889_v52 = vadd.f32 %v1827_v24, %v1602_v47 }
 0x176   : > { %v1604_v21 = vpop.f32.mrf.mxu0  ;;  %v1829_v16 = vpop.f32.mrf.mxu1 }
 0x178   : > { %v1607_v41 = vpop.f32.mrf.mxu0  ;;  %v1832_v44 = vpop.f32.mrf.mxu1 }
 0x179   : > { %v3891_v17 = vadd.f32 %v1832_v44, %v1607_v41 }
 0x17a   : > { %v1609_v34 = vpop.f32.mrf.mxu0  ;;  %v1834_v36 = vpop.f32.mrf.mxu1 }
 0x17c   : > { %v1612_v56 = vpop.f32.mrf.mxu0  ;;  %v1837_v12 = vpop.f32.mrf.mxu1 }
 0x17d   : > { %v3893_v59 = vadd.f32 %v1837_v12, %v1612_v56 }
 0x17e   : > { %v1614_v22 = vpop.f32.mrf.mxu0  ;;  %v1839_v61 = vpop.f32.mrf.mxu1 }
 0x180   : > { %v1617_v46 = vpop.f32.mrf.mxu0  ;;  %v1842_v25 = vpop.f32.mrf.mxu1 }
 0x181   : > { %v3895_v39 = vadd.f32 %v1842_v25, %v1617_v46 }
 0x182   : > { %v1619_v26 = vpop.f32.mrf.mxu0  ;;  %v1844_v30 = vpop.f32.mrf.mxu1 }
 0x184   : > { %v1622_v11 = vpop.f32.mrf.mxu0  ;;  %v1847_v62 = vpop.f32.mrf.mxu1 }
 0x185   : > { %v3897_v15 = vadd.f32 %v1847_v62, %v1622_v11 }
 0x186   : > { %v1624_v50 = vpop.f32.mrf.mxu0  ;;  %v1849_v43 = vpop.f32.mrf.mxu1 }
 0x188   : > { %v1627_v63 = vpop.f32.mrf.mxu0  ;;  %v1852_v35 = vpop.f32.mrf.mxu1 }
 0x189   : > { %v3899_v38 = vadd.f32 %v1852_v35, %v1627_v63 }
 0x18a   : > { %v1629_v49 = vpop.f32.mrf.mxu0  ;;  %v1854_v19 = vpop.f32.mrf.mxu1 }
 0x18c   : > { %v1632_v51 = vpop.f32.mrf.mxu0  ;;  %v1857_v14 = vpop.f32.mrf.mxu1 }
 0x18d   : > { %v3901_v29 = vadd.f32 %v1857_v14, %v1632_v51 }
 0x18e   : > { %v1634_v55 = vpop.f32.mrf.mxu0  ;;  %v1859_v5 = vpop.f32.mrf.mxu1 }
 0x190   : > { %v1637_v40 = vpop.f32.mrf.mxu0  ;;  %v1862_v54 = vpop.f32.mrf.mxu1 }
 0x191   : > { %v3903_v57 = vadd.f32 %v1862_v54, %v1637_v40 }
 0x192   : > { %v1639_v4 = vpop.f32.mrf.mxu0  ;;  %v1864_v32 = vpop.f32.mrf.mxu1 }
 0x194   : > { %v1642_v0 = vpop.f32.mrf.mxu0  ;;  %v1867_v6 = vpop.f32.mrf.mxu1 }
 0x195   : > { %v3905_v28 = vadd.f32 %v1867_v6, %v1642_v0 }
 0x196   : > { %v1644_v7 = vpop.f32.mrf.mxu0  ;;  %v1869_v9 = vpop.f32.mrf.mxu1 }
 0x198   : > { %v1647_v42 = vpop.f32.mrf.mxu0  ;;  %v1872_v1 = vpop.f32.mrf.mxu1 }
 0x199   : > { %v3907_v48 = vadd.f32 %v1872_v1, %v1647_v42 }
 0x19a   : > { %v1649_v20 = vpop.f32.mrf.mxu0  ;;  %v1874_v33 = vpop.f32.mrf.mxu1 }
 0x19c   : > { %v1652_v58 = vpop.f32.mrf.mxu0  ;;  %v1877_v10 = vpop.f32.mrf.mxu1 }
 0x19d   : > { %v3909_v23 = vadd.f32 %v1877_v10, %v1652_v58 }
 0x19e   : > { %v1654_v37 = vpop.f32.mrf.mxu0  ;;  %v1879_v53 = vpop.f32.mrf.mxu1 }
 0x1a0   : > { %v1657_v3 = vpop.f32.mrf.mxu0  ;;  %v1882_v31 = vpop.f32.mrf.mxu1 }
 0x1a1   : > { %v3911_v2 = vadd.f32 %v1882_v31, %v1657_v3 }
 0x1a2   : > { %v1659_v60 = vpop.f32.mrf.mxu0  ;;  %v1884_v13 = vpop.f32.mrf.mxu1 }
 0x1a4   : > { %v1662_v45 = vpop.f32.mrf.mxu0  ;;  %v1887_v8 = vpop.f32.mrf.mxu1 }
 0x1a5   : > { %v3913_v47 = vadd.f32 %v1887_v8, %v1662_v45 }
 0x1a6   : > { %v1664_v24 = vpop.f32.mrf.mxu0  ;;  %v1889_v21 = vpop.f32.mrf.mxu1 }
 0x1a8   : > { %v1667_v16 = vpop.f32.mrf.mxu0  ;;  %v1892_v41 = vpop.f32.mrf.mxu1 }
 0x1a9   : > { %v3915_v44 = vadd.f32 %v1892_v41, %v1667_v16 }
 0x1aa   : > { %v1669_v34 = vpop.f32.mrf.mxu0  ;;  %v1894_v36 = vpop.f32.mrf.mxu1 }
 0x1ac   : > { %v1672_v56 = vpop.f32.mrf.mxu0  ;;  %v1897_v12 = vpop.f32.mrf.mxu1 }
 0x1ad   : > { %v3917_v22 = vadd.f32 %v1897_v12, %v1672_v56 }
 0x1ae   : > { %v1674_v61 = vpop.f32.mrf.mxu0  ;;  %v1899_v46 = vpop.f32.mrf.mxu1 }
 0x1b0   : > { %v1677_v25 = vpop.f32.mrf.mxu0  ;;  %v1902_v26 = vpop.f32.mrf.mxu1 }
 0x1b2   : > { %v1679_v30 = vpop.f32.mrf.mxu0  ;;  %v1904_v11 = vpop.f32.mrf.mxu1 }
 0x1b4   : > { %v3919_v62 = vpop.f32.mrf.mxu0  ;;  %v3921_v50 = vpop.f32.mrf.mxu1 }
 0x1b6   : > { %v1684_v43 = vpop.f32.mrf.mxu0  ;;  %v1909_v63 = vpop.f32.mrf.mxu1 }
 0x1b8   : > { %v1687_v35 = vpop.f32.mrf.mxu0  ;;  %v1912_v49 = vpop.f32.mrf.mxu1 }
 0x1ba   : > { %v1689_v19 = vpop.f32.mrf.mxu0  ;;  %v1914_v51 = vpop.f32.mrf.mxu1 }
 0x1bc   : > { %v3923_v14 = vpop.f32.mrf.mxu0  ;;  %v3925_v55 = vpop.f32.mrf.mxu1 }
 0x1be   : > { %v1694_v5 = vpop.f32.mrf.mxu0  ;;  %v1919_v40 = vpop.f32.mrf.mxu1 }
 0x1c0   : > { %v3927_v54 = vpop.f32.mrf.mxu0  ;;  %v3929_v4 = vpop.f32.mrf.mxu1 }
 0x1c2   : > { %v1699_v32 = vpop.f32.mrf.mxu0  ;;  %v1924_v0 = vpop.f32.mrf.mxu1 }
 0x1c4   : > { %v3931_v6 = vpop.f32.mrf.mxu0  ;;  %v3933_v7 = vpop.f32.mrf.mxu1 }
 0x1c6   : > { %v1704_v9 = vpop.f32.mrf.mxu0  ;;  %v1929_v42 = vpop.f32.mrf.mxu1 }
 0x1c8   : > { %v3935_v1 = vpop.f32.mrf.mxu0  ;;  %v3937_v20 = vpop.f32.mrf.mxu1 }
 0x1ca   : > { %v1709_v33 = vpop.f32.mrf.mxu0  ;;  %v1934_v58 = vpop.f32.mrf.mxu1 }
 0x1cb   : > { %v1903_v58 = vadd.f32 %v1902_v26, %v1677_v25  ;;  %v1913_v25 = vadd.f32 %v1912_v49, %v1687_v35 }
 0x1cc   : > { %v3939_v10 = vpop.f32.mrf.mxu0  ;;  %v3941_v37 = vpop.f32.mrf.mxu1 }
 0x1ce   : > { %v1714_v53 = vpop.f32.mrf.mxu0  ;;  %v1939_v3 = vpop.f32.mrf.mxu1 }
 0x1d0   : > { %v3943_v31 = vpop.f32.mrf.mxu0  ;;  %v3945_v60 = vpop.f32.mrf.mxu1 }
 0x1d2   : > { %v1719_v13 = vpop.f32.mrf.mxu0  ;;  %v1944_v45 = vpop.f32.mrf.mxu1 }
 0x1d4   : > { %v3947_v8 = vpop.f32.mrf.mxu0  ;;  %v3949_v24 = vpop.f32.mrf.mxu1 }
 0x1d6   : > { %v1724_v21 = vpop.f32.mrf.mxu0  ;;  %v1949_v16 = vpop.f32.mrf.mxu1 }
 0x1d8   : > { %v3951_v41 = vpop.f32.mrf.mxu0  ;;  %v3953_v34 = vpop.f32.mrf.mxu1 }
 0x1da   : > { %v1729_v36 = vpop.f32.mrf.mxu0  ;;  %v1954_v56 = vpop.f32.mrf.mxu1 }
 0x1dc   : > { %v3955_v12 = vpop.f32.mrf.mxu0  ;;  %v3957_v61 = vpop.f32.mrf.mxu1 }
 0x1de   : > { %v1734_v46 = vpop.f32.mrf.mxu0  ;;  %v1959_v30 = vpop.f32.mrf.mxu1 }
 0x1e0   : > { %v3959_v11 = vpop.f32.mrf.mxu0  ;;  %v3961_v43 = vpop.f32.mrf.mxu1 }
 0x1e2   : > { %v1739_v63 = vpop.f32.mrf.mxu0  ;;  %v1964_v19 = vpop.f32.mrf.mxu1 }
 0x1e4   : > { %v3963_v51 = vpop.f32.mrf.mxu0  ;;  %v3965_v5 = vpop.f32.mrf.mxu1 }
 0x1e6   : > { %v1744_v40 = vpop.f32.mrf.mxu0  ;;  %v1969_v32 = vpop.f32.mrf.mxu1 }
 0x1e8   : > { %v3967_v0 = vpop.f32.mrf.mxu0  ;;  %v3969_v9 = vpop.f32.mrf.mxu1 }
 0x1ea   : > { %v1749_v42 = vpop.f32.mrf.mxu0  ;;  %v1974_v33 = vpop.f32.mrf.mxu1 }
 0x1ec   : > { %v2394_v53 = vpop.f32.mrf.mxu0  ;;  %v2418_v3 = vpop.f32.mrf.mxu1 }
 0x1ed   : > { %v2048_v13 = vadd.f32 %v2394_v53, %v3887_v27  ;;  %v2128_v45 = vadd.f32 %v2418_v3, %v1903_v58  ;;  %v1908_v27 = vadd.f32 %v3921_v50, %v3919_v62 }
 0x1ee   : > { %v2042_v21 = vpop.f32.mrf.mxu0  ;;  %v2122_v16 = vpop.f32.mrf.mxu1 }
 0x1ef   : > { %2203 = vst.msk [vmem:[%s3976_s14 + $0x8] sm:$0xff] %vm2201_vm2, %v2048_v13  ;;  %2219 = vst.msk [vmem:[%s3976_s14 + $0x88] sm:$0xff] %vm2201_vm2, %v2128_v45  ;;  %v2043_v26 = vadd.f32 %v2042_v21, %v3885_v18  ;;  %v2123_v36 = vadd.f32 %v2122_v16, %v3917_v22  ;;  %v1923_v18 = vadd.f32 %v3929_v4, %v3927_v54 }
 0x1f0   : > { %v2397_v56 = vpop.f32.mrf.mxu0  ;;  %v2421_v46 = vpop.f32.mrf.mxu1 }
 0x1f1   : > { %2202 = vst.msk [vmem:[%s3976_s14] sm:$0xff] %vm2201_vm2, %v2043_v26  ;;  %2218 = vst.msk [vmem:[%s3976_s14 + $0x80] sm:$0xff] %vm2201_vm2, %v2123_v36  ;;  %v2058_v35 = vadd.f32 %v2397_v56, %v3891_v17  ;;  %v2138_v49 = vadd.f32 %v2421_v46, %v1913_v25  ;;  %v1918_v17 = vadd.f32 %v3925_v55, %v3923_v14 }
 0x1f2   : > { %v2052_v30 = vpop.f32.mrf.mxu0  ;;  %v2132_v63 = vpop.f32.mrf.mxu1 }
 0x1f3   : > { %2205 = vst.msk [vmem:[%s3976_s14 + $0x18] sm:$0xff] %vm2201_vm2, %v2058_v35  ;;  %2221 = vst.msk [vmem:[%s3976_s14 + $0x98] sm:$0xff] %vm2201_vm2, %v2138_v49  ;;  %v2053_v22 = vadd.f32 %v2052_v30, %v3889_v52  ;;  %v2133_v62 = vadd.f32 %v2132_v63, %v1908_v27  ;;  %v1933_v52 = vadd.f32 %v3937_v20, %v3935_v1 }
 0x1f4   : > { %v2400_v50 = vpop.f32.mrf.mxu0  ;;  %v2424_v19 = vpop.f32.mrf.mxu1 }
 0x1f5   : > { %2204 = vst.msk [vmem:[%s3976_s14 + $0x10] sm:$0xff] %vm2201_vm2, %v2053_v22  ;;  %2220 = vst.msk [vmem:[%s3976_s14 + $0x90] sm:$0xff] %vm2201_vm2, %v2133_v62  ;;  %v2068_v54 = vadd.f32 %v2400_v50, %v3895_v39  ;;  %v2148_v4 = vadd.f32 %v2424_v19, %v1923_v18  ;;  %v1928_v39 = vadd.f32 %v3933_v7, %v3931_v6 }
 0x1f6   : > { %v2062_v40 = vpop.f32.mrf.mxu0  ;;  %v2142_v32 = vpop.f32.mrf.mxu1 }
 0x1f7   : > { %2207 = vst.msk [vmem:[%s3976_s14 + $0x28] sm:$0xff] %vm2201_vm2, %v2068_v54  ;;  %2223 = vst.msk [vmem:[%s3976_s14 + $0xa8] sm:$0xff] %vm2201_vm2, %v2148_v4  ;;  %v2063_v14 = vadd.f32 %v2062_v40, %v3893_v59  ;;  %v2143_v55 = vadd.f32 %v2142_v32, %v1918_v17  ;;  %v1943_v59 = vadd.f32 %v3945_v60, %v3943_v31 }
 0x1f8   : > { %v2403_v42 = vpop.f32.mrf.mxu0  ;;  %v2427_v33 = vpop.f32.mrf.mxu1 }
 0x1f9   : > { %2206 = vst.msk [vmem:[%s3976_s14 + $0x20] sm:$0xff] %vm2201_vm2, %v2063_v14  ;;  %2222 = vst.msk [vmem:[%s3976_s14 + $0xa0] sm:$0xff] %vm2201_vm2, %v2143_v55  ;;  %v2078_v1 = vadd.f32 %v2403_v42, %v3899_v38  ;;  %v2158_v20 = vadd.f32 %v2427_v33, %v1933_v52  ;;  %v1938_v38 = vadd.f32 %v3941_v37, %v3939_v10 }
 0x1fa   : > { %v2072_v58 = vpop.f32.mrf.mxu0  ;;  %v2152_v53 = vpop.f32.mrf.mxu1 }
 0x1fb   : > { %2209 = vst.msk [vmem:[%s3976_s14 + $0x38] sm:$0xff] %vm2201_vm2, %v2078_v1  ;;  %2225 = vst.msk [vmem:[%s3976_s14 + $0xb8] sm:$0xff] %vm2201_vm2, %v2158_v20  ;;  %v2073_v6 = vadd.f32 %v2072_v58, %v3897_v15  ;;  %v2153_v7 = vadd.f32 %v2152_v53, %v1928_v39  ;;  %v1953_v15 = vadd.f32 %v3953_v34, %v3951_v41 }
 0x1fc   : > { %v2406_v3 = vpop.f32.mrf.mxu0  ;;  %v2430_v13 = vpop.f32.mrf.mxu1 }
 0x1fd   : > { %2208 = vst.msk [vmem:[%s3976_s14 + $0x30] sm:$0xff] %vm2201_vm2, %v2073_v6  ;;  %2224 = vst.msk [vmem:[%s3976_s14 + $0xb0] sm:$0xff] %vm2201_vm2, %v2153_v7  ;;  %v2088_v31 = vadd.f32 %v2406_v3, %v3903_v57  ;;  %v2168_v60 = vadd.f32 %v2430_v13, %v1943_v59  ;;  %v1948_v57 = vadd.f32 %v3949_v24, %v3947_v8 }
 0x1fe   : > { %v2082_v45 = vpop.f32.mrf.mxu0  ;;  %v2162_v21 = vpop.f32.mrf.mxu1 }
 0x1ff   : > { %2211 = vst.msk [vmem:[%s3976_s14 + $0x48] sm:$0xff] %vm2201_vm2, %v2088_v31  ;;  %2227 = vst.msk [vmem:[%s3976_s14 + $0xc8] sm:$0xff] %vm2201_vm2, %v2168_v60  ;;  %v2083_v10 = vadd.f32 %v2082_v45, %v3901_v29  ;;  %v2163_v37 = vadd.f32 %v2162_v21, %v1938_v38  ;;  %v1963_v29 = vadd.f32 %v3961_v43, %v3959_v11 }
 0x200   : > { %v2409_v16 = vpop.f32.mrf.mxu0  ;;  %v2433_v25 = vpop.f32.mrf.mxu1 }
 0x201   : > { %2210 = vst.msk [vmem:[%s3976_s14 + $0x40] sm:$0xff] %vm2201_vm2, %v2083_v10  ;;  %2226 = vst.msk [vmem:[%s3976_s14 + $0xc0] sm:$0xff] %vm2201_vm2, %v2163_v37  ;;  %v2098_v41 = vadd.f32 %v2409_v16, %v3907_v48  ;;  %v2178_v34 = vadd.f32 %v2433_v25, %v1953_v15  ;;  %v1958_v48 = vadd.f32 %v3957_v61, %v3955_v12 }
 0x202   : > { %v2092_v26 = vpop.f32.mrf.mxu0  ;;  %v2172_v36 = vpop.f32.mrf.mxu1 }
 0x203   : > { %2213 = vst.msk [vmem:[%s3976_s14 + $0x58] sm:$0xff] %vm2201_vm2, %v2098_v41  ;;  %2229 = vst.msk [vmem:[%s3976_s14 + $0xd8] sm:$0xff] %vm2201_vm2, %v2178_v34  ;;  %v2093_v8 = vadd.f32 %v2092_v26, %v3905_v28  ;;  %v2173_v24 = vadd.f32 %v2172_v36, %v1948_v57  ;;  %v1973_v28 = vadd.f32 %v3969_v9, %v3967_v0 }
 0x204   : > { %v2412_v56 = vpop.f32.mrf.mxu0  ;;  %v2436_v46 = vpop.f32.mrf.mxu1 }
 0x205   : > { %2212 = vst.msk [vmem:[%s3976_s14 + $0x50] sm:$0xff] %vm2201_vm2, %v2093_v8  ;;  %2228 = vst.msk [vmem:[%s3976_s14 + $0xd0] sm:$0xff] %vm2201_vm2, %v2173_v24  ;;  %v2108_v11 = vadd.f32 %v2412_v56, %v3911_v2  ;;  %v2188_v43 = vadd.f32 %v2436_v46, %v1963_v29  ;;  %v1968_v2 = vadd.f32 %v3965_v5, %v3963_v51 }
 0x206   : > { %v2102_v27 = vpop.f32.mrf.mxu0  ;;  %v2182_v35 = vpop.f32.mrf.mxu1 }
 0x207   : > { %2215 = vst.msk [vmem:[%s3976_s14 + $0x68] sm:$0xff] %vm2201_vm2, %v2108_v11  ;;  %2231 = vst.msk [vmem:[%s3976_s14 + $0xe8] sm:$0xff] %vm2201_vm2, %v2188_v43  ;;  %v2103_v12 = vadd.f32 %v2102_v27, %v3909_v23  ;;  %v2183_v61 = vadd.f32 %v2182_v35, %v1958_v48 }
 0x208   : > { %v2415_v49 = vpop.f32.mrf.mxu0  ;;  %v2439_v30 = vpop.f32.mrf.mxu1 }
 0x209   : > { %2214 = vst.msk [vmem:[%s3976_s14 + $0x60] sm:$0xff] %vm2201_vm2, %v2103_v12  ;;  %2230 = vst.msk [vmem:[%s3976_s14 + $0xe0] sm:$0xff] %vm2201_vm2, %v2183_v61  ;;  %v2118_v0 = vadd.f32 %v2415_v49, %v3915_v44  ;;  %v2198_v9 = vadd.f32 %v2439_v30, %v1973_v28 }
 0x20a   : > { %v2112_v63 = vpop.f32.mrf.mxu0  ;;  %v2192_v18 = vpop.f32.mrf.mxu1 }
 0x20b   : > { %2217 = vst.msk [vmem:[%s3976_s14 + $0x78] sm:$0xff] %vm2201_vm2, %v2118_v0  ;;  %2233 = vst.msk [vmem:[%s3976_s14 + $0xf8] sm:$0xff] %vm2201_vm2, %v2198_v9  ;;  %v2113_v23 = vadd.f32 %v2112_v63, %v3913_v47  ;;  %v2193_v22 = vadd.f32 %v2192_v18, %v1968_v2 }
 0x20d   : > { %2216 = vst.msk [vmem:[%s3976_s14 + $0x70] sm:$0xff] %vm2201_vm2, %v2113_v23  ;;  %2232 = vst.msk [vmem:[%s3976_s14 + $0xf0] sm:$0xff] %vm2201_vm2, %v2193_v22 }
 0x20e PF: > { %s14_s15 = sadd.s32 1, %s2792_s15  }
 0x20f   : > { %p11_p4 = scmp.ge.s32.totalorder %s14_s15, 4  }
 0x211   :  { %13 = sbr.rel (!%p11_p4) target bundleno = 1 (0x1), region = 68 }

</bundles_post_ra>
